<compile_context>
chip_gen: v7x
topology: tpu7x:2x2x1
jax: 0.10.0
libtpu: 0.0.40
codegen_flags: <defaults>
</compile_context>

<pallas_src>
import math

import numpy as np

import jax
import jax.numpy as jnp
from jax.experimental import pallas as pl
from jax.experimental.pallas import tpu as pltpu


# ------------------------------ Pallas kernel ------------------------------- #

def _fused_classifier_kernel(
    x_ref,
    t1_ref, b1_ref,
    t2_ref, b2_ref,
    t3_ref, b3_ref,
    t4_ref, b4_ref,
    fcw_ref, fcb_ref,
    o_ref,
):
    """One batch tile of the ClassifierNet forward.

    x:   (TILE_N, F0)      bf16, NCHW-flat input tile
    t_l: (Fin_l, Fout_l)   bf16, dense conv operator (prev layer's BN folded in)
    b_l: (1, Fout_l)       f32,  conv bias (prev layer's BN shift folded in)
    fcw: (F4, 128)         bf16, class dim zero-padded to 128 lanes, BN4 folded
    fcb: (1, 128)          f32,  -1e30 on padded classes
    o:   (TILE_N, 128)     f32 softmax probabilities (padded classes ~ 0)
    """

    def conv_block(a_bf16, t_ref, b_ref):
        acc = jnp.dot(a_bf16, t_ref[...], preferred_element_type=jnp.float32)
        acc = acc + b_ref[...]                 # conv bias (+ folded BN shift of prev)
        acc = jnp.maximum(acc, 0.2 * acc)      # LeakyReLU(0.2)
        return acc.astype(jnp.bfloat16)        # bf16 feed for the next MXU matmul

    a = conv_block(x_ref[...], t1_ref, b1_ref)
    a = conv_block(a, t2_ref, b2_ref)
    a = conv_block(a, t3_ref, b3_ref)
    a = conv_block(a, t4_ref, b4_ref)

    logits = jnp.dot(a, fcw_ref[...], preferred_element_type=jnp.float32)
    logits = logits + fcb_ref[...]
    m = jnp.max(logits, axis=-1, keepdims=True)
    e = jnp.exp(logits - m)
    # Exact divide (not approx reciprocal) so softmax rows sum to 1 within 1e-5.
    o_ref[...] = e / jnp.sum(e, axis=-1, keepdims=True)


def fused_classifier(prepared, x_flat_bf16, tile_n):
    layers, fcw, fcb = prepared
    args = [x_flat_bf16]
    for t, b in layers:
        args.extend([t, b])
    args.extend([fcw, fcb])

    n_pad, f0 = x_flat_bf16.shape
    cpad = fcw.shape[1]
    grid = (pl.cdiv(n_pad, tile_n),)

    # x / o tiles march over the batch; all weights/biases use a constant
    # index_map so they are DMA'd once and stay VMEM-resident across steps.
    in_specs = [pl.BlockSpec((tile_n, f0), lambda i: (i, 0))]
    in_specs += [pl.BlockSpec(a.shape, lambda i: (0, 0)) for a in args[1:]]
    out_specs = pl.BlockSpec((tile_n, cpad), lambda i: (i, 0))

    return pl.pallas_call(
        _fused_classifier_kernel,
        out_shape=jax.ShapeDtypeStruct((n_pad, cpad), jnp.float32),
        grid=grid,
        in_specs=in_specs,
        out_specs=out_specs,
        compiler_params=pltpu.CompilerParams(
            dimension_semantics=("parallel",),      # shards batch tiles across TCs on v7x
            vmem_limit_bytes=32 * 1024 * 1024,
        ),
    )(*args)


# --------------------------- host-side weight prep -------------------------- #

def _conv_to_dense(w_np, Hi, Wi, in_channels_fastest):
    """Conv2d(3,3,stride=2,pad=1) as a dense matrix over flat features.

    Input flat index is (h*W + w)*C + c (channel fastest) when
    `in_channels_fastest`, else c*H*W + h*W + w (NCHW flat, used for layer 1 so
    no host transpose is needed).  Output is always HWC-flat (channel fastest).
    Returns T of shape (Hi*Wi*Cin, Ho*Wo*Cout) with out_flat = in_flat @ T.
    """
    Cout, Cin, _, _ = w_np.shape
    Ho = (Hi + 2 - 3) // 2 + 1
    Wo = (Wi + 2 - 3) // 2 + 1
    if in_channels_fastest:
        T = np.zeros((Hi, Wi, Cin, Ho, Wo, Cout), np.float32)
    else:
        T = np.zeros((Cin, Hi, Wi, Ho, Wo, Cout), np.float32)
    for kh in range(3):
        for kw in range(3):
            wk = w_np[:, :, kh, kw].T                      # (Cin, Cout)
            for ho in range(Ho):
                hi = 2 * ho + kh - 1
                if not (0 <= hi < Hi):
                    continue
                for wo in range(Wo):
                    wi = 2 * wo + kw - 1
                    if not (0 <= wi < Wi):
                        continue
                    if in_channels_fastest:
                        T[hi, wi, :, ho, wo, :] = wk
                    else:
                        T[:, hi, wi, ho, wo, :] = wk
    return T.reshape(-1, Ho * Wo * Cout), (Ho, Wo)


def prepare_params(params, img_size, num_classes):
    """One-time lowering of PyTorch-style params into kernel operands.

    Each block's eval-mode BN scale/shift is folded into the NEXT layer's
    dense matrix and bias:  y = a*s + h  =>  y @ T + b = a @ (s[:,None]*T) + (h@T + b).
    """
    assert num_classes <= 128
    Hi = Wi = img_size

    # Raw dense operators + flattened per-feature BN scale/shift, all f32.
    raw = []
    for li, (w, b, scale, shift) in enumerate(params["blocks"]):
        w_np = np.asarray(w, np.float32)
        T, (Ho, Wo) = _conv_to_dense(w_np, Hi, Wi, in_channels_fastest=(li > 0))
        rep = Ho * Wo
        raw.append([
            T,
            np.tile(np.asarray(b, np.float32), rep),
            np.tile(np.asarray(scale, np.float32), rep),
            np.tile(np.asarray(shift, np.float32), rep),
        ])
        Hi, Wi = Ho, Wo

    # FC layer: reorder feature columns from PyTorch CHW-flatten to HWC-flatten,
    # then pad the class dimension to 128 lanes (lane-dense output store).
    ds = Hi  # == Wi == ceil(img_size / 2**4)
    c_last = np.asarray(params["blocks"][-1][0]).shape[0]
    wf = np.asarray(params["fc_w"], np.float32)             # (num_classes, C*ds*ds)
    wf = wf.reshape(num_classes, c_last, ds, ds).transpose(0, 2, 3, 1)
    wf = wf.reshape(num_classes, ds * ds * c_last)
    cpad = 128
    fcw = np.zeros((ds * ds * c_last, cpad), np.float32)
    fcw[:, :num_classes] = wf.T
    fcb = np.full((cpad,), -1e30, np.float32)                # padded classes -> prob 0
    fcb[:num_classes] = np.asarray(params["fc_b"], np.float32)

    # Fold each block's BN scale/shift into the following matmul (host-side, f32).
    for li in range(4):
        _, _, s_l, h_l = raw[li]
        if li + 1 < 4:
            T_n = raw[li + 1][0]
            raw[li + 1][0] = s_l[:, None] * T_n
            raw[li + 1][1] = raw[li + 1][1] + h_l @ T_n
        else:
            fcb = fcb + h_l @ fcw
            fcw = s_l[:, None] * fcw

    layers = tuple(
        (jnp.asarray(T, jnp.bfloat16), jnp.asarray(b.reshape(1, -1), jnp.float32))
        for T, b, _, _ in raw
    )
    return layers, jnp.asarray(fcw, jnp.bfloat16), jnp.asarray(fcb.reshape(1, -1), jnp.float32)


# --------------------------------- model ----------------------------------- #

def init_params(key, channels, img_size, num_classes):
    chans = [channels, 16, 32, 64, 128]
    ds = int(math.ceil(img_size / 2 ** 4))
    eps = 0.8  # BatchNorm2d(out_filters, 0.8) -> eps=0.8
    params = {"blocks": []}
    keys = jax.random.split(key, 4 * 4 + 2)
    ki = 0
    for li in range(4):
        cin, cout = chans[li], chans[li + 1]
        w = 0.1 * jax.random.normal(keys[ki], (cout, cin, 3, 3), jnp.float32); ki += 1
        b = 0.05 * jax.random.normal(keys[ki], (cout,), jnp.float32); ki += 1
        if li == 0:  # first block has bn=False -> identity affine
            scale = jnp.ones((cout,), jnp.float32)
            shift = jnp.zeros((cout,), jnp.float32)
            ki += 2
        else:
            gamma = 1.0 + 0.1 * jax.random.normal(keys[ki], (cout,), jnp.float32); ki += 1
            beta = 0.1 * jax.random.normal(keys[ki], (cout,), jnp.float32); ki += 1
            run_mean = jnp.zeros((cout,), jnp.float32)   # fresh-module running stats
            run_var = jnp.ones((cout,), jnp.float32)
            scale = gamma / jnp.sqrt(run_var + eps)
            shift = beta - run_mean * scale
        params["blocks"].append((w, b, scale, shift))
    feat = 128 * ds * ds
    params["fc_w"] = 0.1 * jax.random.normal(keys[ki], (num_classes, feat), jnp.float32); ki += 1
    params["fc_b"] = 0.05 * jax.random.normal(keys[ki], (num_classes,), jnp.float32)
    return params


def classifier_forward(prepared, img_nchw, num_classes, tile_n=256):
    """tile_n=256 fills the v6e/v7x MXU M dim (multiple of 128 for v5e); at
    large serving batch 512-1024 further amortizes per-grid-step overhead."""
    n, c, h, w = img_nchw.shape
    # Layer-1 Toeplitz is built over NCHW-flat ordering -> reshape only, no transpose.
    x = img_nchw.reshape(n, c * h * w).astype(jnp.bfloat16)
    n_pad = ((n + tile_n - 1) // tile_n) * tile_n
    if n_pad != n:
        x = jnp.pad(x, ((0, n_pad - n), (0, 0)))
    probs_pad = fused_classifier(prepared, x, tile_n)
    return probs_pad[:n, :num_classes]


# ---------------------------------- main ------------------------------------ #

if __name__ == "__main__":
    batch, channels, img_size, num_classes = 2, 1, 16, 10
    key = jax.random.PRNGKey(0)
    kx, kp = jax.random.split(key)
    x = jax.random.normal(kx, (batch, channels, img_size, img_size), jnp.float32)

    params = init_params(kp, channels, img_size, num_classes)
    prepared = prepare_params(params, img_size, num_classes)

    fwd = jax.jit(lambda img: classifier_forward(prepared, img, num_classes))
    probs = jax.block_until_ready(fwd(x))

    assert probs.shape == (batch, num_classes)
    assert bool(jnp.all(jnp.isfinite(probs)))
    # softmax rows sum to 1 (padded classes carry exactly zero probability)
    assert bool(jnp.allclose(jnp.sum(probs, axis=1), 1.0, atol=1e-5))
    print("KERNEL_OK")
</pallas_src>

<mosaic_0001>
module attributes {stable_mosaic.version = 11 : i64} {
  func.func @_fused_classifier_kernel(%arg0: i32, %arg1: memref<256x256xbf16, #tpu.memory_space<vmem>>, %arg2: memref<256x1024xbf16, #tpu.memory_space<vmem>>, %arg3: memref<1x1024xf32, #tpu.memory_space<vmem>>, %arg4: memref<1024x512xbf16, #tpu.memory_space<vmem>>, %arg5: memref<1x512xf32, #tpu.memory_space<vmem>>, %arg6: memref<512x256xbf16, #tpu.memory_space<vmem>>, %arg7: memref<1x256xf32, #tpu.memory_space<vmem>>, %arg8: memref<256x128xbf16, #tpu.memory_space<vmem>>, %arg9: memref<1x128xf32, #tpu.memory_space<vmem>>, %arg10: memref<128x128xbf16, #tpu.memory_space<vmem>>, %arg11: memref<1x128xf32, #tpu.memory_space<vmem>>, %arg12: memref<256x128xf32, #tpu.memory_space<vmem>>) attributes {dimension_semantics = [#tpu.dimension_semantics<parallel>], iteration_bounds = array<i64: 1>, scalar_prefetch = 0 : i64, scratch_operands = 0 : i64, tpu.core_type = #tpu.core_type<tc>, window_params = [{transform_indices = @transform_0, window_bounds = array<i64: 256, 256>}, {pipeline_mode = #tpu.pipeline_mode<synchronous>, transform_indices = @transform_1, window_bounds = array<i64: 256, 1024>}, {pipeline_mode = #tpu.pipeline_mode<synchronous>, transform_indices = @transform_2, window_bounds = array<i64: 1, 1024>}, {pipeline_mode = #tpu.pipeline_mode<synchronous>, transform_indices = @transform_3, window_bounds = array<i64: 1024, 512>}, {pipeline_mode = #tpu.pipeline_mode<synchronous>, transform_indices = @transform_4, window_bounds = array<i64: 1, 512>}, {pipeline_mode = #tpu.pipeline_mode<synchronous>, transform_indices = @transform_5, window_bounds = array<i64: 512, 256>}, {pipeline_mode = #tpu.pipeline_mode<synchronous>, transform_indices = @transform_6, window_bounds = array<i64: 1, 256>}, {pipeline_mode = #tpu.pipeline_mode<synchronous>, transform_indices = @transform_7, window_bounds = array<i64: 256, 128>}, {pipeline_mode = #tpu.pipeline_mode<synchronous>, transform_indices = @transform_8, window_bounds = array<i64: 1, 128>}, {pipeline_mode = #tpu.pipeline_mode<synchronous>, transform_indices = @transform_9, window_bounds = array<i64: 128, 128>}, {pipeline_mode = #tpu.pipeline_mode<synchronous>, transform_indices = @transform_10, window_bounds = array<i64: 1, 128>}, {transform_indices = @transform_11, window_bounds = array<i64: 256, 128>}]} {
    %c0 = arith.constant 0 : index
    %c0_0 = arith.constant 0 : index
    %0 = vector.load %arg1[%c0, %c0_0] : memref<256x256xbf16, #tpu.memory_space<vmem>>, vector<256x256xbf16>
    %c0_1 = arith.constant 0 : index
    %c0_2 = arith.constant 0 : index
    %1 = vector.load %arg2[%c0_1, %c0_2] : memref<256x1024xbf16, #tpu.memory_space<vmem>>, vector<256x1024xbf16>
    %cst = arith.constant dense<0.000000e+00> : vector<256x1024xf32>
    %2 = tpu.matmul %0, %1, %cst {dimension_numbers = #tpu.dot_dimension_numbers<[1], [0], [0], [1], [0, 0, 1, 1], [], []>} : vector<256x256xbf16>, vector<256x1024xbf16>, vector<256x1024xf32> -> vector<256x1024xf32>
    %c0_3 = arith.constant 0 : index
    %c0_4 = arith.constant 0 : index
    %3 = vector.load %arg3[%c0_3, %c0_4] : memref<1x1024xf32, #tpu.memory_space<vmem>>, vector<1x1024xf32>
    %4 = vector.broadcast %3 : vector<1x1024xf32> to vector<256x1024xf32>
    %5 = arith.addf %2, %4 : vector<256x1024xf32>
    %cst_5 = arith.constant 2.000000e-01 : f32
    %6 = vector.broadcast %cst_5 : f32 to vector<256x1024xf32>
    %7 = arith.mulf %6, %5 : vector<256x1024xf32>
    %8 = arith.maximumf %5, %7 : vector<256x1024xf32>
    %9 = arith.truncf %8 : vector<256x1024xf32> to vector<256x1024xbf16>
    %c0_6 = arith.constant 0 : index
    %c0_7 = arith.constant 0 : index
    %10 = vector.load %arg4[%c0_6, %c0_7] : memref<1024x512xbf16, #tpu.memory_space<vmem>>, vector<1024x512xbf16>
    %cst_8 = arith.constant dense<0.000000e+00> : vector<256x512xf32>
    %11 = tpu.matmul %9, %10, %cst_8 {dimension_numbers = #tpu.dot_dimension_numbers<[1], [0], [0], [1], [0, 0, 1, 1], [], []>} : vector<256x1024xbf16>, vector<1024x512xbf16>, vector<256x512xf32> -> vector<256x512xf32>
    %c0_9 = arith.constant 0 : index
    %c0_10 = arith.constant 0 : index
    %12 = vector.load %arg5[%c0_9, %c0_10] : memref<1x512xf32, #tpu.memory_space<vmem>>, vector<1x512xf32>
    %13 = vector.broadcast %12 : vector<1x512xf32> to vector<256x512xf32>
    %14 = arith.addf %11, %13 : vector<256x512xf32>
    %cst_11 = arith.constant 2.000000e-01 : f32
    %15 = vector.broadcast %cst_11 : f32 to vector<256x512xf32>
    %16 = arith.mulf %15, %14 : vector<256x512xf32>
    %17 = arith.maximumf %14, %16 : vector<256x512xf32>
    %18 = arith.truncf %17 : vector<256x512xf32> to vector<256x512xbf16>
    %c0_12 = arith.constant 0 : index
    %c0_13 = arith.constant 0 : index
    %19 = vector.load %arg6[%c0_12, %c0_13] : memref<512x256xbf16, #tpu.memory_space<vmem>>, vector<512x256xbf16>
    %cst_14 = arith.constant dense<0.000000e+00> : vector<256x256xf32>
    %20 = tpu.matmul %18, %19, %cst_14 {dimension_numbers = #tpu.dot_dimension_numbers<[1], [0], [0], [1], [0, 0, 1, 1], [], []>} : vector<256x512xbf16>, vector<512x256xbf16>, vector<256x256xf32> -> vector<256x256xf32>
    %c0_15 = arith.constant 0 : index
    %c0_16 = arith.constant 0 : index
    %21 = vector.load %arg7[%c0_15, %c0_16] : memref<1x256xf32, #tpu.memory_space<vmem>>, vector<1x256xf32>
    %22 = vector.broadcast %21 : vector<1x256xf32> to vector<256x256xf32>
    %23 = arith.addf %20, %22 : vector<256x256xf32>
    %cst_17 = arith.constant 2.000000e-01 : f32
    %24 = vector.broadcast %cst_17 : f32 to vector<256x256xf32>
    %25 = arith.mulf %24, %23 : vector<256x256xf32>
    %26 = arith.maximumf %23, %25 : vector<256x256xf32>
    %27 = arith.truncf %26 : vector<256x256xf32> to vector<256x256xbf16>
    %c0_18 = arith.constant 0 : index
    %c0_19 = arith.constant 0 : index
    %28 = vector.load %arg8[%c0_18, %c0_19] : memref<256x128xbf16, #tpu.memory_space<vmem>>, vector<256x128xbf16>
    %cst_20 = arith.constant dense<0.000000e+00> : vector<256x128xf32>
    %29 = tpu.matmul %27, %28, %cst_20 {dimension_numbers = #tpu.dot_dimension_numbers<[1], [0], [0], [1], [0, 0, 1, 1], [], []>} : vector<256x256xbf16>, vector<256x128xbf16>, vector<256x128xf32> -> vector<256x128xf32>
    %c0_21 = arith.constant 0 : index
    %c0_22 = arith.constant 0 : index
    %30 = vector.load %arg9[%c0_21, %c0_22] : memref<1x128xf32, #tpu.memory_space<vmem>>, vector<1x128xf32>
    %31 = vector.broadcast %30 : vector<1x128xf32> to vector<256x128xf32>
    %32 = arith.addf %29, %31 : vector<256x128xf32>
    %cst_23 = arith.constant 2.000000e-01 : f32
    %33 = vector.broadcast %cst_23 : f32 to vector<256x128xf32>
    %34 = arith.mulf %33, %32 : vector<256x128xf32>
    %35 = arith.maximumf %32, %34 : vector<256x128xf32>
    %36 = arith.truncf %35 : vector<256x128xf32> to vector<256x128xbf16>
    %c0_24 = arith.constant 0 : index
    %c0_25 = arith.constant 0 : index
    %37 = vector.load %arg10[%c0_24, %c0_25] : memref<128x128xbf16, #tpu.memory_space<vmem>>, vector<128x128xbf16>
    %cst_26 = arith.constant dense<0.000000e+00> : vector<256x128xf32>
    %38 = tpu.matmul %36, %37, %cst_26 {dimension_numbers = #tpu.dot_dimension_numbers<[1], [0], [0], [1], [0, 0, 1, 1], [], []>} : vector<256x128xbf16>, vector<128x128xbf16>, vector<256x128xf32> -> vector<256x128xf32>
    %c0_27 = arith.constant 0 : index
    %c0_28 = arith.constant 0 : index
    %39 = vector.load %arg11[%c0_27, %c0_28] : memref<1x128xf32, #tpu.memory_space<vmem>>, vector<1x128xf32>
    %40 = vector.broadcast %39 : vector<1x128xf32> to vector<256x128xf32>
    %41 = arith.addf %38, %40 : vector<256x128xf32>
    %cst_29 = arith.constant dense<0xFF800000> : vector<256xf32>
    %42 = vector.multi_reduction <maximumf>, %41, %cst_29 [1] : vector<256x128xf32> to vector<256xf32>
    %43 = vector.shape_cast %42 : vector<256xf32> to vector<256x1xf32>
    %44 = vector.broadcast %43 : vector<256x1xf32> to vector<256x128xf32>
    %45 = arith.subf %41, %44 : vector<256x128xf32>
    %46 = math.exp %45 : vector<256x128xf32>
    %cst_30 = arith.constant dense<0.000000e+00> : vector<256xf32>
    %47 = vector.multi_reduction <add>, %46, %cst_30 [1] : vector<256x128xf32> to vector<256xf32>
    %48 = vector.shape_cast %47 : vector<256xf32> to vector<256x1xf32>
    %49 = vector.broadcast %48 : vector<256x1xf32> to vector<256x128xf32>
    %50 = arith.divf %46, %49 : vector<256x128xf32>
    %c0_31 = arith.constant 0 : index
    %c0_32 = arith.constant 0 : index
    %51 = vector.load %arg12[%c0_31, %c0_32] : memref<256x128xf32, #tpu.memory_space<vmem>>, vector<256x128xf32>
    tpu.vector_store %arg12[%c0_31, %c0_32], %50 {strides = array<i32>} : memref<256x128xf32, #tpu.memory_space<vmem>>, vector<256x128xf32>,
    return
  }
  func.func @transform_0(%arg0: i32) -> (i32, i32) {
    %c0_i32 = arith.constant 0 : i32
    %c0_i32_0 = arith.constant 0 : i32
    return %arg0, %c0_i32 : i32, i32
  }
  func.func @transform_1(%arg0: i32) -> (i32, i32) {
    %c0_i32 = arith.constant 0 : i32
    %c0_i32_0 = arith.constant 0 : i32
    %c0_i32_1 = arith.constant 0 : i32
    return %c0_i32, %c0_i32_0 : i32, i32
  }
  func.func @transform_2(%arg0: i32) -> (i32, i32) {
    %c0_i32 = arith.constant 0 : i32
    %c0_i32_0 = arith.constant 0 : i32
    %c0_i32_1 = arith.constant 0 : i32
    return %c0_i32, %c0_i32_0 : i32, i32
  }
  func.func @transform_3(%arg0: i32) -> (i32, i32) {
    %c0_i32 = arith.constant 0 : i32
    %c0_i32_0 = arith.constant 0 : i32
    %c0_i32_1 = arith.constant 0 : i32
    return %c0_i32, %c0_i32_0 : i32, i32
  }
  func.func @transform_4(%arg0: i32) -> (i32, i32) {
    %c0_i32 = arith.constant 0 : i32
    %c0_i32_0 = arith.constant 0 : i32
    %c0_i32_1 = arith.constant 0 : i32
    return %c0_i32, %c0_i32_0 : i32, i32
  }
  func.func @transform_5(%arg0: i32) -> (i32, i32) {
    %c0_i32 = arith.constant 0 : i32
    %c0_i32_0 = arith.constant 0 : i32
    %c0_i32_1 = arith.constant 0 : i32
    return %c0_i32, %c0_i32_0 : i32, i32
  }
  func.func @transform_6(%arg0: i32) -> (i32, i32) {
    %c0_i32 = arith.constant 0 : i32
    %c0_i32_0 = arith.constant 0 : i32
    %c0_i32_1 = arith.constant 0 : i32
    return %c0_i32, %c0_i32_0 : i32, i32
  }
  func.func @transform_7(%arg0: i32) -> (i32, i32) {
    %c0_i32 = arith.constant 0 : i32
    %c0_i32_0 = arith.constant 0 : i32
    %c0_i32_1 = arith.constant 0 : i32
    return %c0_i32, %c0_i32_0 : i32, i32
  }
  func.func @transform_8(%arg0: i32) -> (i32, i32) {
    %c0_i32 = arith.constant 0 : i32
    %c0_i32_0 = arith.constant 0 : i32
    %c0_i32_1 = arith.constant 0 : i32
    return %c0_i32, %c0_i32_0 : i32, i32
  }
  func.func @transform_9(%arg0: i32) -> (i32, i32) {
    %c0_i32 = arith.constant 0 : i32
    %c0_i32_0 = arith.constant 0 : i32
    %c0_i32_1 = arith.constant 0 : i32
    return %c0_i32, %c0_i32_0 : i32, i32
  }
  func.func @transform_10(%arg0: i32) -> (i32, i32) {
    %c0_i32 = arith.constant 0 : i32
    %c0_i32_0 = arith.constant 0 : i32
    %c0_i32_1 = arith.constant 0 : i32
    return %c0_i32, %c0_i32_0 : i32, i32
  }
  func.func @transform_11(%arg0: i32) -> (i32, i32) {
    %c0_i32 = arith.constant 0 : i32
    %c0_i32_0 = arith.constant 0 : i32
    return %arg0, %c0_i32 : i32, i32
  }
}

</mosaic_0001>

<bundles_post_ra>
// kernel: _lambda_.1
= control target key start
LH: loop header
LB: loop body
LE: loop exit
PB: predicated region body
PF: predicated region fallthrough
CT: control target
= control target key end

     0   :  { %s13198_s1 = inlined_call_operand.vmem [shape: bf16[256,1024], index: 1, kind: input, shape index: {}]   ;;  %s13199_s0 = inlined_call_operand.vmem [shape: bf16[256,256], index: 0, kind: input, shape index: {}]   ;;  %s13200_s3 = inlined_call_operand.vmem [shape: bf16[1024,512], index: 3, kind: input, shape index: {}]   ;;  %s13201_s2 = inlined_call_operand.vmem [shape: f32[1,1024], index: 2, kind: input, shape index: {}]   ;;  %s13202_s5 = inlined_call_operand.vmem [shape: bf16[512,256], index: 5, kind: input, shape index: {}]   ;;  %s13203_s4 = inlined_call_operand.vmem [shape: f32[1,512], index: 4, kind: input, shape index: {}]   ;;  %s13204_s7 = inlined_call_operand.vmem [shape: bf16[256,128], index: 7, kind: input, shape index: {}]   ;;  %s13205_s6 = inlined_call_operand.vmem [shape: f32[1,256], index: 6, kind: input, shape index: {}]   ;;  %s13206_s9 = inlined_call_operand.vmem [shape: bf16[128,128], index: 9, kind: input, shape index: {}]   ;;  %s13207_s8 = inlined_call_operand.vmem [shape: f32[1,128], index: 8, kind: input, shape index: {}]   ;;  %s13208_s10 = inlined_call_operand.vmem [shape: f32[1,128], index: 10, kind: input, shape index: {}]   ;;  %s13209_s11 = inlined_call_operand.vmem [shape: f32[256,128], index: 11, kind: output, shape index: {}]  }
   0x1   :  { %v71_v0 = vld [vmem:[%s13198_s1] sm:$0xff]  ;;  %v72_v2 = vld [vmem:[%s13198_s1 + $0x8] sm:$0xff] }
   0x2   :  { %v75_v1 = vld [vmem:[%s13198_s1 + $0x20] sm:$0xff]  ;;  %v76_v4 = vld [vmem:[%s13198_s1 + $0x28] sm:$0xff] }
   0x3   :  { %v7782_v3 = vcombine.high %v71_v0, %v75_v1  ;;  %v7781_v5 = vcombine.low %v71_v0, %v75_v1  ;;  %v79_v6 = vld [vmem:[%s13198_s1 + $0x40] sm:$0xff]  ;;  %v7784_v8 = vcombine.high %v72_v2, %v76_v4  ;;  %v7783_v9 = vcombine.low %v72_v2, %v76_v4  ;;  %v80_v11 = vld [vmem:[%s13198_s1 + $0x48] sm:$0xff] }
   0x4   :  { %v83_v7 = vld [vmem:[%s13198_s1 + $0x60] sm:$0xff]  ;;  %v84_v12 = vld [vmem:[%s13198_s1 + $0x68] sm:$0xff] }
   0x5   :  { %v7790_v10 = vcombine.high %v79_v6, %v83_v7  ;;  %v87_v13 = vld [vmem:[%s13198_s1 + $0x80] sm:$0xff]  ;;  %1041 = vmatprep.subr.bf16.mxu0 %v7782_v3  ;;  %v7792_v14 = vcombine.high %v80_v11, %v84_v12  ;;  %v88_v16 = vld [vmem:[%s13198_s1 + $0x88] sm:$0xff]  ;;  %1234 = vmatprep.subr.bf16.mxu1 %v7784_v8  ;;  %v7789_v18 = vcombine.low %v79_v6, %v83_v7 }
   0x6   :  { %v91_v15 = vld [vmem:[%s13198_s1 + $0xa0] sm:$0xff]  ;;  %v92_v17 = vld [vmem:[%s13198_s1 + $0xa8] sm:$0xff]  ;;  %1042 = vmatpush1.bf16.msra.mxu0 %v7781_v5  ;;  %1235 = vmatpush1.bf16.msra.mxu1 %v7783_v9  ;;  %v7791_v19 = vcombine.low %v80_v11, %v84_v12 }
   0x7   :  { %1043 = vmatprep.subr.bf16.mxu0 %v7790_v10  ;;  %v7798_v20 = vcombine.high %v87_v13, %v91_v15  ;;  %1236 = vmatprep.subr.bf16.mxu1 %v7792_v14  ;;  %v7800_v21 = vcombine.high %v88_v16, %v92_v17  ;;  %v95_v22 = vld [vmem:[%s13198_s1 + $0xc0] sm:$0xff]  ;;  %v96_v24 = vld [vmem:[%s13198_s1 + $0xc8] sm:$0xff]  ;;  %v7797_v26 = vcombine.low %v87_v13, %v91_v15 }
   0x8   :  { %v99_v23 = vld [vmem:[%s13198_s1 + $0xe0] sm:$0xff]  ;;  %v100_v25 = vld [vmem:[%s13198_s1 + $0xe8] sm:$0xff]  ;;  %v7799_v27 = vcombine.low %v88_v16, %v92_v17 }
   0x9   :  { %v7806_v28 = vcombine.high %v95_v22, %v99_v23  ;;  %v7808_v29 = vcombine.high %v96_v24, %v100_v25  ;;  %v103_v30 = vld [vmem:[%s13198_s1 + $0x100] sm:$0xff]  ;;  %v104_v32 = vld [vmem:[%s13198_s1 + $0x108] sm:$0xff]  ;;  %v7805_v34 = vcombine.low %v95_v22, %v99_v23  ;;  %v7807_v35 = vcombine.low %v96_v24, %v100_v25 }
   0xa   :  { %1044 = vmatpush1.bf16.msra.mxu0 %v7789_v18  ;;  %1237 = vmatpush1.bf16.msra.mxu1 %v7791_v19  ;;  %v107_v31 = vld [vmem:[%s13198_s1 + $0x120] sm:$0xff]  ;;  %v108_v33 = vld [vmem:[%s13198_s1 + $0x128] sm:$0xff] }
   0xb   :  { %1045 = vmatprep.subr.bf16.mxu0 %v7798_v20  ;;  %1238 = vmatprep.subr.bf16.mxu1 %v7800_v21  ;;  %v7814_v36 = vcombine.high %v103_v30, %v107_v31  ;;  %v7816_v37 = vcombine.high %v104_v32, %v108_v33  ;;  %v111_v38 = vld [vmem:[%s13198_s1 + $0x140] sm:$0xff]  ;;  %v112_v40 = vld [vmem:[%s13198_s1 + $0x148] sm:$0xff]  ;;  %v7813_v42 = vcombine.low %v103_v30, %v107_v31 }
   0xc   :  { %v115_v39 = vld [vmem:[%s13198_s1 + $0x160] sm:$0xff]  ;;  %v116_v41 = vld [vmem:[%s13198_s1 + $0x168] sm:$0xff]  ;;  %v7815_v43 = vcombine.low %v104_v32, %v108_v33 }
   0xd   :  { %v7822_v44 = vcombine.high %v111_v38, %v115_v39  ;;  %v7824_v45 = vcombine.high %v112_v40, %v116_v41  ;;  %v119_v46 = vld [vmem:[%s13198_s1 + $0x180] sm:$0xff]  ;;  %v120_v48 = vld [vmem:[%s13198_s1 + $0x188] sm:$0xff]  ;;  %v7821_v50 = vcombine.low %v111_v38, %v115_v39  ;;  %v7823_v51 = vcombine.low %v112_v40, %v116_v41 }
   0xe   :  { %1046 = vmatpush1.bf16.msra.mxu0 %v7797_v26  ;;  %1239 = vmatpush1.bf16.msra.mxu1 %v7799_v27  ;;  %v123_v47 = vld [vmem:[%s13198_s1 + $0x1a0] sm:$0xff]  ;;  %v124_v49 = vld [vmem:[%s13198_s1 + $0x1a8] sm:$0xff] }
   0xf   :  { %1047 = vmatprep.subr.bf16.mxu0 %v7806_v28  ;;  %1240 = vmatprep.subr.bf16.mxu1 %v7808_v29  ;;  %v7830_v52 = vcombine.high %v119_v46, %v123_v47  ;;  %v127_v53 = vld [vmem:[%s13198_s1 + $0x1c0] sm:$0xff]  ;;  %v7832_v54 = vcombine.high %v120_v48, %v124_v49  ;;  %v128_v56 = vld [vmem:[%s13198_s1 + $0x1c8] sm:$0xff]  ;;  %v7829_v59 = vcombine.low %v119_v46, %v123_v47 }
  0x10   :  { %v131_v55 = vld [vmem:[%s13198_s1 + $0x1e0] sm:$0xff]  ;;  %v132_v58 = vld [vmem:[%s13198_s1 + $0x1e8] sm:$0xff]  ;;  %v7831_v60 = vcombine.low %v120_v48, %v124_v49 }
  0x11   :  { %v9111_v57 = vld [vmem:[%s13199_s0 + $0x4] ss:$8 sps:$4 sm:$0xff]   ;;  %v7838_v61 = vcombine.high %v127_v53, %v131_v55  ;;  %v7840_v62 = vcombine.high %v128_v56, %v132_v58  ;;  %v7837_v3 = vcombine.low %v127_v53, %v131_v55  ;;  %v7839_v4 = vcombine.low %v128_v56, %v132_v58 }
  0x12   :  { %1048 = vmatpush1.bf16.msra.mxu0 %v7805_v34  ;;  %1241 = vmatpush1.bf16.msra.mxu1 %v7807_v35  ;;  %v135_v63 = vld [vmem:[%s13198_s1 + $0x200] sm:$0xff]  ;;  %v136_v1 = vld [vmem:[%s13198_s1 + $0x208] sm:$0xff] }
  0x13   :  { %1049 = vmatprep.subr.bf16.mxu0 %v7814_v36  ;;  %1242 = vmatprep.subr.bf16.mxu1 %v7816_v37  ;;  %v139_v0 = vld [vmem:[%s13198_s1 + $0x220] sm:$0xff]  ;;  %v140_v2 = vld [vmem:[%s13198_s1 + $0x228] sm:$0xff] }
  0x14   :  { %1073 = vmatprep.mubr.bf16.mxu0 %v9111_v57  ;;  %1266 = vmatprep.mubr.bf16.mxu1 %v9111_v57  ;;  %v7846_v5 = vcombine.high %v135_v63, %v139_v0  ;;  %v7848_v6 = vcombine.high %v136_v1, %v140_v2  ;;  %v143_v7 = vld [vmem:[%s13198_s1 + $0x240] sm:$0xff]  ;;  %v144_v9 = vld [vmem:[%s13198_s1 + $0x248] sm:$0xff]  ;;  %v7845_v11 = vcombine.low %v135_v63, %v139_v0  ;;  %v73_v63 = vld [vmem:[%s13198_s1 + $0x10] sm:$0xff] }
  0x15   :  { %v147_v8 = vld [vmem:[%s13198_s1 + $0x260] sm:$0xff]  ;;  %v148_v10 = vld [vmem:[%s13198_s1 + $0x268] sm:$0xff]  ;;  %v7847_v12 = vcombine.low %v136_v1, %v140_v2  ;;  %v77_v0 = vld [vmem:[%s13198_s1 + $0x30] sm:$0xff] }
  0x16   :  { %1050 = vmatpush1.bf16.msra.mxu0 %v7813_v42  ;;  %1243 = vmatpush1.bf16.msra.mxu1 %v7815_v43  ;;  %v7854_v13 = vcombine.high %v143_v7, %v147_v8  ;;  %v7856_v14 = vcombine.high %v144_v9, %v148_v10  ;;  %v151_v15 = vld [vmem:[%s13198_s1 + $0x280] sm:$0xff]  ;;  %v152_v17 = vld [vmem:[%s13198_s1 + $0x288] sm:$0xff]  ;;  %v7853_v19 = vcombine.low %v143_v7, %v147_v8  ;;  %v74_v1 = vld [vmem:[%s13198_s1 + $0x18] sm:$0xff] }
  0x17   :  { %1051 = vmatprep.subr.bf16.mxu0 %v7822_v44  ;;  %1244 = vmatprep.subr.bf16.mxu1 %v7824_v45  ;;  %v155_v16 = vld [vmem:[%s13198_s1 + $0x2a0] sm:$0xff]  ;;  %v156_v18 = vld [vmem:[%s13198_s1 + $0x2a8] sm:$0xff]  ;;  %v7855_v20 = vcombine.low %v144_v9, %v148_v10  ;;  %v78_v2 = vld [vmem:[%s13198_s1 + $0x38] sm:$0xff]  ;;  %v7785_v10 = vcombine.low %v73_v63, %v77_v0 }
  0x18   :  { %v7862_v21 = vcombine.high %v151_v15, %v155_v16  ;;  %v7864_v22 = vcombine.high %v152_v17, %v156_v18  ;;  %v159_v23 = vld [vmem:[%s13198_s1 + $0x2c0] sm:$0xff]  ;;  %v160_v25 = vld [vmem:[%s13198_s1 + $0x2c8] sm:$0xff]  ;;  %v7861_v27 = vcombine.low %v151_v15, %v155_v16  ;;  %v7863_v28 = vcombine.low %v152_v17, %v156_v18  ;;  %v81_v8 = vld [vmem:[%s13198_s1 + $0x50] sm:$0xff] }
  0x19   :  { %v163_v24 = vld [vmem:[%s13198_s1 + $0x2e0] sm:$0xff]  ;;  %v164_v26 = vld [vmem:[%s13198_s1 + $0x2e8] sm:$0xff]  ;;  %v85_v9 = vld [vmem:[%s13198_s1 + $0x70] sm:$0xff]  ;;  %v7787_v17 = vcombine.low %v74_v1, %v78_v2 }
  0x1a   :  { %1052 = vmatpush1.bf16.msra.mxu0 %v7821_v50  ;;  %1245 = vmatpush1.bf16.msra.mxu1 %v7823_v51  ;;  %v7870_v29 = vcombine.high %v159_v23, %v163_v24  ;;  %v7872_v30 = vcombine.high %v160_v25, %v164_v26  ;;  %v167_v31 = vld [vmem:[%s13198_s1 + $0x300] sm:$0xff]  ;;  %v168_v33 = vld [vmem:[%s13198_s1 + $0x308] sm:$0xff]  ;;  %v7869_v35 = vcombine.low %v159_v23, %v163_v24  ;;  %v89_v15 = vld [vmem:[%s13198_s1 + $0x90] sm:$0xff] }
  0x1b   :  { %1053 = vmatprep.subr.bf16.mxu0 %v7830_v52  ;;  %1246 = vmatprep.subr.bf16.mxu1 %v7832_v54  ;;  %v171_v32 = vld [vmem:[%s13198_s1 + $0x320] sm:$0xff]  ;;  %v172_v34 = vld [vmem:[%s13198_s1 + $0x328] sm:$0xff]  ;;  %v7871_v36 = vcombine.low %v160_v25, %v164_v26  ;;  %v93_v16 = vld [vmem:[%s13198_s1 + $0xb0] sm:$0xff] }
  0x1c   :  { %v7878_v37 = vcombine.high %v167_v31, %v171_v32  ;;  %v7880_v38 = vcombine.high %v168_v33, %v172_v34  ;;  %v175_v39 = vld [vmem:[%s13198_s1 + $0x340] sm:$0xff]  ;;  %v176_v41 = vld [vmem:[%s13198_s1 + $0x348] sm:$0xff]  ;;  %v7877_v43 = vcombine.low %v167_v31, %v171_v32  ;;  %v7879_v44 = vcombine.low %v168_v33, %v172_v34  ;;  %v97_v24 = vld [vmem:[%s13198_s1 + $0xd0] sm:$0xff] }
  0x1d   :  { %v179_v40 = vld [vmem:[%s13198_s1 + $0x360] sm:$0xff]  ;;  %v180_v42 = vld [vmem:[%s13198_s1 + $0x368] sm:$0xff]  ;;  %v7802_v23 = vcombine.high %v89_v15, %v93_v16  ;;  %v101_v25 = vld [vmem:[%s13198_s1 + $0xf0] sm:$0xff]  ;;  %v7801_v31 = vcombine.low %v89_v15, %v93_v16 }
  0x1e   :  { %1054 = vmatpush1.bf16.msra.mxu0 %v7829_v59  ;;  %1247 = vmatpush1.bf16.msra.mxu1 %v7831_v60  ;;  %v7886_v45 = vcombine.high %v175_v39, %v179_v40  ;;  %v7888_v46 = vcombine.high %v176_v41, %v180_v42  ;;  %v183_v47 = vld [vmem:[%s13198_s1 + $0x380] sm:$0xff]  ;;  %v184_v49 = vld [vmem:[%s13198_s1 + $0x388] sm:$0xff]  ;;  %v7885_v51 = vcombine.low %v175_v39, %v179_v40  ;;  %v105_v32 = vld [vmem:[%s13198_s1 + $0x110] sm:$0xff] }
  0x1f   :  { %1055 = vmatprep.subr.bf16.mxu0 %v7838_v61  ;;  %1248 = vmatprep.subr.bf16.mxu1 %v7840_v62  ;;  %v187_v48 = vld [vmem:[%s13198_s1 + $0x3a0] sm:$0xff]  ;;  %v188_v50 = vld [vmem:[%s13198_s1 + $0x3a8] sm:$0xff]  ;;  %v7887_v52 = vcombine.low %v176_v41, %v180_v42  ;;  %v109_v33 = vld [vmem:[%s13198_s1 + $0x130] sm:$0xff]  ;;  %v7810_v34 = vcombine.high %v97_v24, %v101_v25  ;;  %v7809_v40 = vcombine.low %v97_v24, %v101_v25 }
  0x20   :  { %v7894_v53 = vcombine.high %v183_v47, %v187_v48  ;;  %v191_v54 = vld [vmem:[%s13198_s1 + $0x3c0] sm:$0xff]  ;;  %v7896_v55 = vcombine.high %v184_v49, %v188_v50  ;;  %v192_v57 = vld [vmem:[%s13198_s1 + $0x3c8] sm:$0xff]  ;;  %v7893_v59 = vcombine.low %v183_v47, %v187_v48  ;;  %v7895_v60 = vcombine.low %v184_v49, %v188_v50  ;;  %v113_v41 = vld [vmem:[%s13198_s1 + $0x150] sm:$0xff] }
  0x21   :  { %v195_v56 = vld [vmem:[%s13198_s1 + $0x3e0] sm:$0xff]  ;;  %v196_v58 = vld [vmem:[%s13198_s1 + $0x3e8] sm:$0xff]  ;;  %v117_v42 = vld [vmem:[%s13198_s1 + $0x170] sm:$0xff]  ;;  %v7817_v49 = vcombine.low %v105_v32, %v109_v33 }
  0x22   :  { %1056 = vmatpush1.bf16.msra.mxu0 %v7837_v3  ;;  %1249 = vmatpush1.bf16.msra.mxu1 %v7839_v4  ;;  %v7902_v61 = vcombine.high %v191_v54, %v195_v56  ;;  %v7904_v62 = vcombine.high %v192_v57, %v196_v58  ;;  %v7901_v3 = vcombine.low %v191_v54, %v195_v56  ;;  %v9113_v7 = vld [vmem:[%s13199_s0] ss:$8 sps:$4 sm:$0xff]   ;;  %v9117_v26 = vld [vmem:[%s13199_s0 + $0x24] ss:$8 sps:$4 sm:$0xff]   ;;  %v118_v47 = vld [vmem:[%s13198_s1 + $0x178] sm:$0xff] }
  0x23   :  { %1057 = vmatprep.subr.bf16.mxu0 %v7846_v5  ;;  %1250 = vmatprep.subr.bf16.mxu1 %v7848_v6  ;;  %v7903_v4 = vcombine.low %v192_v57, %v196_v58  ;;  %v7786_v5 = vcombine.high %v73_v63, %v77_v0  ;;  %v7788_v6 = vcombine.high %v74_v1, %v78_v2  ;;  %v9119_v39 = vld [vmem:[%s13199_s0 + $0x20] ss:$8 sps:$4 sm:$0xff]   ;;  %v121_v50 = vld [vmem:[%s13198_s1 + $0x190] sm:$0xff]  ;;  %v126_v56 = vld [vmem:[%s13198_s1 + $0x1b8] sm:$0xff] }
  0x24   :  { %v10162_v57 = vld [vmem:[%s13199_s0 + $0x30] ss:$8 sps:$4 sm:$0xff]   ;;  %v7825_v58 = vcombine.low %v113_v41, %v117_v42  ;;  %v10211_v15 = vld [vmem:[%s13199_s0 + $0x54] ss:$8 sps:$4 sm:$0xff]  }
  0x25   :  { %v130_v0 = vld [vmem:[%s13198_s1 + $0x1d8] sm:$0xff] }
  0x26   :  { %1058 = vmatpush1.bf16.msra.mxu0 %v7845_v11  ;;  %1251 = vmatpush1.bf16.msra.mxu1 %v7847_v12  ;;  %v82_v11 = vld [vmem:[%s13198_s1 + $0x58] sm:$0xff] }
  0x27   :  { %1059 = vmatprep.subr.bf16.mxu0 %v7854_v13  ;;  %1252 = vmatprep.subr.bf16.mxu1 %v7856_v14  ;;  %v86_v12 = vld [vmem:[%s13198_s1 + $0x78] sm:$0xff]  ;;  %v7794_v14 = vcombine.high %v81_v8, %v85_v9 }
  0x28   :  { %v9114_v13 = vld [vmem:[%s13199_s0 + $0x14] ss:$8 sps:$4 sm:$0xff]   ;;  %v7796_v18 = vcombine.high %v82_v11, %v86_v12 }
  0x29   :  { %v134_v1 = vld [vmem:[%s13198_s1 + $0x1f8] sm:$0xff] }
  0x2a   :  { %1060 = vmatpush1.bf16.msra.mxu0 %v7853_v19  ;;  %1253 = vmatpush1.bf16.msra.mxu1 %v7855_v20  ;;  %v7793_v19 = vcombine.low %v81_v8, %v85_v9  ;;  %v90_v20 = vld [vmem:[%s13198_s1 + $0x98] sm:$0xff]  ;;  %v7844_v8 = vcombine.high %v130_v0, %v134_v1 }
  0x2b   :  { %1061 = vmatprep.subr.bf16.mxu0 %v7862_v21  ;;  %1254 = vmatprep.subr.bf16.mxu1 %v7864_v22  ;;  %v94_v21 = vld [vmem:[%s13198_s1 + $0xb8] sm:$0xff] }
  0x2c   :  { %v9116_v22 = vld [vmem:[%s13199_s0 + $0x10] ss:$8 sps:$4 sm:$0xff]  }
  0x2d   :  { %v138_v9 = vld [vmem:[%s13198_s1 + $0x218] sm:$0xff] }
  0x2e   :  { %1062 = vmatpush1.bf16.msra.mxu0 %v7861_v27  ;;  %1255 = vmatpush1.bf16.msra.mxu1 %v7863_v28  ;;  %v7795_v27 = vcombine.low %v82_v11, %v86_v12  ;;  %v98_v28 = vld [vmem:[%s13198_s1 + $0xd8] sm:$0xff]  ;;  %v10200_v11 = vld [vmem:[%s13199_s0 + $0x40] ss:$8 sps:$4 sm:$0xff]  }
  0x2f   :  { %1063 = vmatprep.subr.bf16.mxu0 %v7870_v29  ;;  %1256 = vmatprep.subr.bf16.mxu1 %v7872_v30  ;;  %v102_v29 = vld [vmem:[%s13198_s1 + $0xf8] sm:$0xff]  ;;  %v7804_v30 = vcombine.high %v90_v20, %v94_v21 }
  0x32   :  { %1064 = vmatpush1.bf16.msra.mxu0 %v7869_v35  ;;  %1257 = vmatpush1.bf16.msra.mxu1 %v7871_v36  ;;  %v7803_v35 = vcombine.low %v90_v20, %v94_v21  ;;  %v7812_v36 = vcombine.high %v98_v28, %v102_v29 }
  0x33   :  { %1065 = vmatprep.subr.bf16.mxu0 %v7878_v37  ;;  %1258 = vmatprep.subr.bf16.mxu1 %v7880_v38  ;;  %v106_v37 = vld [vmem:[%s13198_s1 + $0x118] sm:$0xff] }
  0x34   :  { %v110_v38 = vld [vmem:[%s13198_s1 + $0x138] sm:$0xff] }
  0x35   :  { %v7820_v48 = vcombine.high %v106_v37, %v110_v38 }
  0x36   :  { %1066 = vmatpush1.bf16.msra.mxu0 %v7877_v43  ;;  %1259 = vmatpush1.bf16.msra.mxu1 %v7879_v44  ;;  %v10137_v43 = vld [vmem:[%s13199_s0 + $0x34] ss:$8 sps:$4 sm:$0xff]   ;;  %v7818_v44 = vcombine.high %v105_v32, %v109_v33  ;;  %v10249_v33 = vld [vmem:[%s13199_s0 + $0x64] ss:$8 sps:$4 sm:$0xff]  }
  0x37   :  { %1067 = vmatprep.subr.bf16.mxu0 %v7886_v45  ;;  %1260 = vmatprep.subr.bf16.mxu1 %v7888_v46  ;;  %v7811_v45 = vcombine.low %v98_v28, %v102_v29  ;;  %v114_v46 = vld [vmem:[%s13198_s1 + $0x158] sm:$0xff]  ;;  %v165_v32 = vld [vmem:[%s13198_s1 + $0x2f0] sm:$0xff] }
  0x38   :  { %v7828_v54 = vcombine.high %v114_v46, %v118_v47  ;;  %v7827_v63 = vcombine.low %v114_v46, %v118_v47  ;;  %v158_v28 = vld [vmem:[%s13198_s1 + $0x2b8] sm:$0xff] }
  0x39   :  { %v10238_v29 = vld [vmem:[%s13199_s0 + $0x50] ss:$8 sps:$4 sm:$0xff]  }
  0x3a   :  { %1068 = vmatpush1.bf16.msra.mxu0 %v7885_v51  ;;  %1261 = vmatpush1.bf16.msra.mxu1 %v7887_v52  ;;  %v125_v51 = vld [vmem:[%s13198_s1 + $0x1b0] sm:$0xff]  ;;  %v7826_v52 = vcombine.high %v113_v41, %v117_v42  ;;  %v170_v46 = vld [vmem:[%s13198_s1 + $0x318] sm:$0xff] }
  0x3b   :  { %1069 = vmatprep.subr.bf16.mxu0 %v7894_v53  ;;  %1262 = vmatprep.subr.bf16.mxu1 %v7896_v55  ;;  %v7819_v53 = vcombine.low %v106_v37, %v110_v38  ;;  %v122_v55 = vld [vmem:[%s13198_s1 + $0x198] sm:$0xff]  ;;  %v173_v41 = vld [vmem:[%s13198_s1 + $0x330] sm:$0xff] }
  0x3c   :  { %v7836_v2 = vcombine.high %v122_v55, %v126_v56  ;;  %v166_v37 = vld [vmem:[%s13198_s1 + $0x2f8] sm:$0xff] }
  0x3d   :  { %v174_v47 = vld [vmem:[%s13198_s1 + $0x338] sm:$0xff] }
  0x3e   :  { %1070 = vmatpush1.bf16.msra.mxu0 %v7893_v59  ;;  %1263 = vmatpush1.bf16.msra.mxu1 %v7895_v60  ;;  %v129_v59 = vld [vmem:[%s13198_s1 + $0x1d0] sm:$0xff] }
  0x3f   :  { %1071 = vmatprep.subr.bf16.mxu0 %v7902_v61  ;;  %1264 = vmatprep.subr.bf16.mxu1 %v7904_v62  ;;  %v133_v60 = vld [vmem:[%s13198_s1 + $0x1f0] sm:$0xff]  ;;  %v10173_v61 = vld [vmem:[%s13199_s0 + $0x44] ss:$8 sps:$4 sm:$0xff]   ;;  %v7834_v62 = vcombine.high %v121_v50, %v125_v51 }
  0x40   :  { %v7841_v12 = vcombine.low %v129_v59, %v133_v60 }
  0x42   :  { %1072 = vmatpush1.bf16.msra.mxu0 %v7901_v3  ;;  %1265 = vmatpush1.bf16.msra.mxu1 %v7903_v4  ;;  %v7833_v3 = vcombine.low %v121_v50, %v125_v51  ;;  %v137_v4 = vld [vmem:[%s13198_s1 + $0x210] sm:$0xff] }
  0x43   :  { %1427 = vmatprep.subr.bf16.mxu0 %v7786_v5  ;;  %1620 = vmatprep.subr.bf16.mxu1 %v7788_v6  ;;  %v141_v5 = vld [vmem:[%s13198_s1 + $0x230] sm:$0xff]  ;;  %v7842_v6 = vcombine.high %v129_v59, %v133_v60 }
  0x44   :  { %v7850_v16 = vcombine.high %v137_v4, %v141_v5  ;;  %v7849_v21 = vcombine.low %v137_v4, %v141_v5  ;;  %v177_v50 = vld [vmem:[%s13198_s1 + $0x350] sm:$0xff] }
  0x45   :  { %1074 = vmatmul.mubr.bf16.vlgmr.msra.gmra.mrb[0].mxu0 %v9113_v7  ;;  %1267 = vmatmul.mubr.bf16.vlgmr.msra.gmra.mrb[0].mxu1 %v9113_v7  ;;  %v7835_v7 = vcombine.low %v122_v55, %v126_v56  ;;  %v181_v51 = vld [vmem:[%s13198_s1 + $0x370] sm:$0xff]  ;;  %v178_v55 = vld [vmem:[%s13198_s1 + $0x358] sm:$0xff] }
  0x46   :  { %1428 = vmatpush1.bf16.msra.mxu0 %v7785_v10  ;;  %1083 = vmatprep.mubr.bf16.mxu0 %v9114_v13  ;;  %v142_v10 = vld [vmem:[%s13198_s1 + $0x238] sm:$0xff]  ;;  %v185_v60 = vld [vmem:[%s13198_s1 + $0x390] sm:$0xff]  ;;  %v7889_v5 = vcombine.low %v177_v50, %v181_v51 }
  0x47   :  { %1276 = vmatprep.mubr.bf16.mxu1 %v9114_v13  ;;  %1429 = vmatprep.subr.bf16.mxu0 %v7794_v14  ;;  %v145_v13 = vld [vmem:[%s13198_s1 + $0x250] sm:$0xff]  ;;  %v7852_v20 = vcombine.high %v138_v9, %v142_v10  ;;  %v7851_v25 = vcombine.low %v138_v9, %v142_v10  ;;  %v182_v56 = vld [vmem:[%s13198_s1 + $0x378] sm:$0xff] }
  0x48   :  { %1621 = vmatpush1.bf16.msra.mxu1 %v7787_v17  ;;  %v149_v14 = vld [vmem:[%s13198_s1 + $0x270] sm:$0xff]  ;;  %v7843_v17 = vcombine.low %v130_v0, %v134_v1  ;;  %v7883_v0 = vcombine.low %v170_v46, %v174_v47  ;;  %v7892_v1 = vcombine.high %v178_v55, %v182_v56  ;;  %v7891_v10 = vcombine.low %v178_v55, %v182_v56 }
  0x49   :  { %1622 = vmatprep.subr.bf16.mxu1 %v7796_v18  ;;  %v146_v18 = vld [vmem:[%s13198_s1 + $0x258] sm:$0xff]  ;;  %v7858_v24 = vcombine.high %v145_v13, %v149_v14  ;;  %v9165_v55 = vld [vmem:[%s13200_s3 + $0x40] ss:$16 sps:$4 sm:$0xff]   ;;  %v9170_v56 = vld [vmem:[%s13200_s3 + $0x64] ss:$16 sps:$4 sm:$0xff]  }
  0x4a   :  { %1430 = vmatpush1.bf16.msra.mxu0 %v7793_v19  ;;  %v150_v19 = vld [vmem:[%s13198_s1 + $0x278] sm:$0xff] }
  0x4b   :  { %1431 = vmatprep.subr.bf16.mxu0 %v7802_v23  ;;  %v157_v23 = vld [vmem:[%s13198_s1 + $0x2b0] sm:$0xff] }
  0x4c   :  { %1623 = vmatpush1.bf16.msra.mxu1 %v7795_v27  ;;  %v154_v27 = vld [vmem:[%s13198_s1 + $0x298] sm:$0xff] }
  0x4d   :  { %1084 = vmatmul.mubr.bf16.gmra.mrb[4].mxu0 %v9116_v22  ;;  %1624 = vmatprep.subr.bf16.mxu1 %v7804_v30  ;;  %v7857_v30 = vcombine.low %v145_v13, %v149_v14  ;;  %v7868_v38 = vcombine.high %v154_v27, %v158_v28  ;;  %v10314_v4 = vld [vmem:[%s13199_s0 + $0x70] ss:$8 sps:$4 sm:$0xff]  }
  0x4e   :  { %1277 = vmatmul.mubr.bf16.gmra.mrb[4].mxu1 %v9116_v22  ;;  %1093 = vmatprep.mubr.bf16.mxu0 %v9117_v26  ;;  %v153_v22 = vld [vmem:[%s13198_s1 + $0x290] sm:$0xff]  ;;  %v198_v13 = vld [vmem:[%s13198_s1 + $0x3f8] sm:$0xff] }
  0x4f   :  { %1286 = vmatprep.mubr.bf16.mxu1 %v9117_v26  ;;  %1432 = vmatpush1.bf16.msra.mxu0 %v7801_v31  ;;  %v7860_v26 = vcombine.high %v146_v18, %v150_v19  ;;  %v161_v31 = vld [vmem:[%s13198_s1 + $0x2d0] sm:$0xff] }
  0x50   :  { %1433 = vmatprep.subr.bf16.mxu0 %v7810_v34  ;;  %1625 = vmatpush1.bf16.msra.mxu1 %v7803_v35  ;;  %v7866_v34 = vcombine.high %v153_v22, %v157_v23  ;;  %v7859_v35 = vcombine.low %v146_v18, %v150_v19  ;;  %v7874_v42 = vcombine.high %v161_v31, %v165_v32 }
  0x51   :  { %1626 = vmatprep.subr.bf16.mxu1 %v7812_v36  ;;  %v162_v36 = vld [vmem:[%s13198_s1 + $0x2d8] sm:$0xff] }
  0x53   :  { %1434 = vmatpush1.bf16.msra.mxu0 %v7809_v40  ;;  %v169_v40 = vld [vmem:[%s13198_s1 + $0x310] sm:$0xff] }
  0x54   :  { %1435 = vmatprep.subr.bf16.mxu0 %v7818_v44  ;;  %1627 = vmatpush1.bf16.msra.mxu1 %v7811_v45  ;;  %v7867_v44 = vcombine.low %v154_v27, %v158_v28  ;;  %v7876_v45 = vcombine.high %v162_v36, %v166_v37  ;;  %v7881_v59 = vcombine.low %v169_v40, %v173_v41  ;;  %v10365_v27 = vld [vmem:[%s13199_s0 + $0xa4] ss:$8 sps:$4 sm:$0xff]   ;;  %v10374_v28 = vld [vmem:[%s13199_s0 + $0xa0] ss:$8 sps:$4 sm:$0xff]  }
  0x55   :  { %1094 = vmatmul.mubr.bf16.gmra.mrb[8].mxu0 %v9119_v39  ;;  %1628 = vmatprep.subr.bf16.mxu1 %v7820_v48  ;;  %v10276_v48 = vld [vmem:[%s13199_s0 + $0x60] ss:$8 sps:$4 sm:$0xff]  }
  0x56   :  { %1287 = vmatmul.mubr.bf16.gmra.mrb[8].mxu1 %v9119_v39  ;;  %1103 = vmatprep.mubr.bf16.mxu0 %v10137_v43  ;;  %v7865_v39 = vcombine.low %v153_v22, %v157_v23  ;;  %v10348_v23 = vld [vmem:[%s13199_s0 + $0x94] ss:$8 sps:$4 sm:$0xff]  }
  0x57   :  { %1296 = vmatprep.mubr.bf16.mxu1 %v10137_v43  ;;  %1436 = vmatpush1.bf16.msra.mxu0 %v7817_v49  ;;  %v7873_v49 = vcombine.low %v161_v31, %v165_v32  ;;  %v10388_v31 = vld [vmem:[%s13199_s0 + $0xb0] ss:$8 sps:$4 sm:$0xff]   ;;  %v10393_v32 = vld [vmem:[%s13199_s0 + $0xc4] ss:$8 sps:$4 sm:$0xff]  }
  0x58   :  { %1437 = vmatprep.subr.bf16.mxu0 %v7826_v52  ;;  %1629 = vmatpush1.bf16.msra.mxu1 %v7819_v53  ;;  %v10287_v52 = vld [vmem:[%s13199_s0 + $0x74] ss:$8 sps:$4 sm:$0xff]   ;;  %v7882_v53 = vcombine.high %v169_v40, %v173_v41  ;;  %v10444_v40 = vld [vmem:[%s13199_s0 + $0xf0] ss:$8 sps:$4 sm:$0xff]   ;;  %v9791_v41 = vld [vmem:[%s13199_s0 + $0x4] ss:$8 sps:$4 sm:$0xff]  }
  0x59   :  { %1630 = vmatprep.subr.bf16.mxu1 %v7828_v54  ;;  %v7875_v54 = vcombine.low %v162_v36, %v166_v37  ;;  %v10416_v36 = vld [vmem:[%s13199_s0 + $0xd0] ss:$8 sps:$4 sm:$0xff]   ;;  %v10421_v37 = vld [vmem:[%s13199_s0 + $0xe4] ss:$8 sps:$4 sm:$0xff]  }
  0x5b   :  { %1438 = vmatpush1.bf16.msra.mxu0 %v7825_v58  ;;  %v7884_v58 = vcombine.high %v170_v46, %v174_v47  ;;  %v9792_v46 = vld [vmem:[%s13199_s0] ss:$8 sps:$4 sm:$0xff]   ;;  %v9191_v47 = vld [vmem:[%s13200_s3 + $0x2c] ss:$16 sps:$4 sm:$0xff]  }
  0x5c   :  { %1439 = vmatprep.subr.bf16.mxu0 %v7834_v62  ;;  %1631 = vmatpush1.bf16.msra.mxu1 %v7827_v63  ;;  %v189_v62 = vld [vmem:[%s13198_s1 + $0x3b0] sm:$0xff]  ;;  %v7890_v63 = vcombine.high %v177_v50, %v181_v51 }
  0x5d   :  { %1104 = vmatmul.mubr.bf16.gmra.mrb[12].mxu0 %v10162_v57  ;;  %1632 = vmatprep.subr.bf16.mxu1 %v7836_v2  ;;  %v186_v2 = vld [vmem:[%s13198_s1 + $0x398] sm:$0xff]  ;;  %v7898_v9 = vcombine.high %v185_v60, %v189_v62  ;;  %v9167_v51 = vld [vmem:[%s13200_s3 + $0x44] ss:$16 sps:$4 sm:$0xff]  }
  0x5e   :  { %1297 = vmatmul.mubr.bf16.gmra.mrb[12].mxu1 %v10162_v57  ;;  %1113 = vmatprep.mubr.bf16.mxu0 %v10173_v61  ;;  %v9793_v50 = vld [vmem:[%s13199_s0 + $0x14] ss:$8 sps:$4 sm:$0xff]  }
  0x5f   :  { %1306 = vmatprep.mubr.bf16.mxu1 %v10173_v61  ;;  %1440 = vmatpush1.bf16.msra.mxu0 %v7833_v3  ;;  %v190_v3 = vld [vmem:[%s13198_s1 + $0x3b8] sm:$0xff] }
  0x60   :  { %1441 = vmatprep.subr.bf16.mxu0 %v7842_v6  ;;  %1633 = vmatpush1.bf16.msra.mxu1 %v7835_v7  ;;  %v193_v6 = vld [vmem:[%s13198_s1 + $0x3d0] sm:$0xff]  ;;  %v7900_v14 = vcombine.high %v186_v2, %v190_v3  ;;  %v7899_v18 = vcombine.low %v186_v2, %v190_v3  ;;  %v9206_v2 = vld [vmem:[%s13200_s3 + $0x8c] ss:$16 sps:$4 sm:$0xff]  }
  0x61   :  { %1634 = vmatprep.subr.bf16.mxu1 %v7844_v8  ;;  %v197_v7 = vld [vmem:[%s13198_s1 + $0x3f0] sm:$0xff]  ;;  %v10325_v8 = vld [vmem:[%s13199_s0 + $0x84] ss:$8 sps:$4 sm:$0xff]  }
  0x62   :  { %v7905_v22 = vcombine.low %v193_v6, %v197_v7  ;;  %v9171_v3 = vld [vmem:[%s13200_s3 + $0x80] ss:$16 sps:$4 sm:$0xff]  }
  0x63   :  { %1442 = vmatpush1.bf16.msra.mxu0 %v7841_v12  ;;  %v194_v12 = vld [vmem:[%s13198_s1 + $0x3d8] sm:$0xff] }
  0x64   :  { %1443 = vmatprep.subr.bf16.mxu0 %v7850_v16  ;;  %1635 = vmatpush1.bf16.msra.mxu1 %v7843_v17  ;;  %v7897_v16 = vcombine.low %v185_v60, %v189_v62  ;;  %v7906_v17 = vcombine.high %v193_v6, %v197_v7  ;;  %v7908_v19 = vcombine.high %v194_v12, %v198_v13  ;;  %v9200_v60 = vld [vmem:[%s13200_s3 + $0x6c] ss:$16 sps:$4 sm:$0xff]   ;;  %v9204_v6 = vld [vmem:[%s13200_s3 + $0x88] ss:$16 sps:$4 sm:$0xff]  }
  0x65   :  { %1114 = vmatmul.mubr.bf16.gmra.mrb[16].mxu0 %v10200_v11  ;;  %1636 = vmatprep.subr.bf16.mxu1 %v7852_v20  ;;  %v9161_v20 = vld [vmem:[%s13200_s3 + $0x4] ss:$16 sps:$4 sm:$0xff]   ;;  %v9796_v7 = vld [vmem:[%s13199_s0 + $0x20] ss:$8 sps:$4 sm:$0xff]  }
  0x66   :  { %1307 = vmatmul.mubr.bf16.gmra.mrb[16].mxu1 %v10200_v11  ;;  %1123 = vmatprep.mubr.bf16.mxu0 %v10211_v15  ;;  %v9795_v62 = vld [vmem:[%s13199_s0 + $0x24] ss:$8 sps:$4 sm:$0xff]  }
  0x67   :  { %1316 = vmatprep.mubr.bf16.mxu1 %v10211_v15  ;;  %1444 = vmatpush1.bf16.msra.mxu0 %v7849_v21  ;;  %v10343_v21 = vld [vmem:[%s13199_s0 + $0x80] ss:$8 sps:$4 sm:$0xff]  }
  0x68   :  { %1445 = vmatprep.subr.bf16.mxu0 %v7858_v24  ;;  %1637 = vmatpush1.bf16.msra.mxu1 %v7851_v25  ;;  %v7907_v24 = vcombine.low %v194_v12, %v198_v13  ;;  %v9188_v25 = vld [vmem:[%s13200_s3 + $0xc] ss:$16 sps:$4 sm:$0xff]   ;;  %v9179_v12 = vld [vmem:[%s13200_s3 + $0xc4] ss:$16 sps:$4 sm:$0xff]   ;;  %v9207_v13 = vld [vmem:[%s13200_s3 + $0xa8] ss:$16 sps:$4 sm:$0xff]  }
  0x69   :  { %1638 = vmatprep.subr.bf16.mxu1 %v7860_v26  ;;  %v10360_v26 = vld [vmem:[%s13199_s0 + $0x90] ss:$8 sps:$4 sm:$0xff]  }
  0x6b   :  { %1446 = vmatpush1.bf16.msra.mxu0 %v7857_v30  ;;  %v10379_v30 = vld [vmem:[%s13199_s0 + $0xb4] ss:$8 sps:$4 sm:$0xff]  }
  0x6c   :  { %1447 = vmatprep.subr.bf16.mxu0 %v7866_v34  ;;  %1639 = vmatpush1.bf16.msra.mxu1 %v7859_v35  ;;  %v10402_v34 = vld [vmem:[%s13199_s0 + $0xc0] ss:$8 sps:$4 sm:$0xff]   ;;  %v10407_v35 = vld [vmem:[%s13199_s0 + $0xd4] ss:$8 sps:$4 sm:$0xff]  }
  0x6d   :  { %1124 = vmatmul.mubr.bf16.gmra.mrb[20].mxu0 %v10238_v29  ;;  %1640 = vmatprep.subr.bf16.mxu1 %v7868_v38  ;;  %v10430_v38 = vld [vmem:[%s13199_s0 + $0xe0] ss:$8 sps:$4 sm:$0xff]  }
  0x6e   :  { %1317 = vmatmul.mubr.bf16.gmra.mrb[20].mxu1 %v10238_v29  ;;  %1133 = vmatprep.mubr.bf16.mxu0 %v10249_v33 }
  0x6f   :  { %1326 = vmatprep.mubr.bf16.mxu1 %v10249_v33  ;;  %1448 = vmatpush1.bf16.msra.mxu0 %v7865_v39  ;;  %v10435_v39 = vld [vmem:[%s13199_s0 + $0xf4] ss:$8 sps:$4 sm:$0xff]  }
  0x70   :  { %1449 = vmatprep.subr.bf16.mxu0 %v7874_v42  ;;  %1641 = vmatpush1.bf16.msra.mxu1 %v7867_v44  ;;  %v9159_v42 = vld [vmem:[%s13200_s3] ss:$16 sps:$4 sm:$0xff]   ;;  %v9164_v44 = vld [vmem:[%s13200_s3 + $0x24] ss:$16 sps:$4 sm:$0xff]  }
  0x71   :  { %1642 = vmatprep.subr.bf16.mxu1 %v7876_v45  ;;  %v9186_v45 = vld [vmem:[%s13200_s3 + $0x8] ss:$16 sps:$4 sm:$0xff]  }
  0x73   :  { %1450 = vmatpush1.bf16.msra.mxu0 %v7873_v49  ;;  %v9162_v49 = vld [vmem:[%s13200_s3 + $0x20] ss:$16 sps:$4 sm:$0xff]  }
  0x74   :  { %1451 = vmatprep.subr.bf16.mxu0 %v7882_v53  ;;  %1643 = vmatpush1.bf16.msra.mxu1 %v7875_v54  ;;  %v9189_v53 = vld [vmem:[%s13200_s3 + $0x28] ss:$16 sps:$4 sm:$0xff]   ;;  %v9197_v54 = vld [vmem:[%s13200_s3 + $0x4c] ss:$16 sps:$4 sm:$0xff]  }
  0x75   :  { %1134 = vmatmul.mubr.bf16.gmra.mrb[24].mxu0 %v10276_v48  ;;  %1644 = vmatprep.subr.bf16.mxu1 %v7884_v58  ;;  %v9195_v58 = vld [vmem:[%s13200_s3 + $0x48] ss:$16 sps:$4 sm:$0xff]  }
  0x76   :  { %1327 = vmatmul.mubr.bf16.gmra.mrb[24].mxu1 %v10276_v48  ;;  %1143 = vmatprep.mubr.bf16.mxu0 %v10287_v52 }
  0x77   :  { %1336 = vmatprep.mubr.bf16.mxu1 %v10287_v52  ;;  %1452 = vmatpush1.bf16.msra.mxu0 %v7881_v59  ;;  %v9794_v59 = vld [vmem:[%s13199_s0 + $0x10] ss:$8 sps:$4 sm:$0xff]  }
  0x78   :  { %1453 = vmatprep.subr.bf16.mxu0 %v7890_v63  ;;  %1645 = vmatpush1.bf16.msra.mxu1 %v7883_v0  ;;  %v9168_v63 = vld [vmem:[%s13200_s3 + $0x60] ss:$16 sps:$4 sm:$0xff]   ;;  %v9173_v0 = vld [vmem:[%s13200_s3 + $0x84] ss:$16 sps:$4 sm:$0xff]  }
  0x79   :  { %1646 = vmatprep.subr.bf16.mxu1 %v7892_v1  ;;  %v9198_v1 = vld [vmem:[%s13200_s3 + $0x68] ss:$16 sps:$4 sm:$0xff]  }
  0x7b   :  { %1454 = vmatpush1.bf16.msra.mxu0 %v7889_v5  ;;  %v9176_v5 = vld [vmem:[%s13200_s3 + $0xa4] ss:$16 sps:$4 sm:$0xff]  }
  0x7c   :  { %1455 = vmatprep.subr.bf16.mxu0 %v7898_v9  ;;  %1647 = vmatpush1.bf16.msra.mxu1 %v7891_v10  ;;  %v9209_v9 = vld [vmem:[%s13200_s3 + $0xac] ss:$16 sps:$4 sm:$0xff]   ;;  %v9174_v10 = vld [vmem:[%s13200_s3 + $0xa0] ss:$16 sps:$4 sm:$0xff]  }
  0x7d   :  { %1144 = vmatmul.mubr.bf16.gmra.mrb[28].mxu0 %v10314_v4  ;;  %1648 = vmatprep.subr.bf16.mxu1 %v7900_v14  ;;  %v9177_v14 = vld [vmem:[%s13200_s3 + $0xc0] ss:$16 sps:$4 sm:$0xff]  }
  0x7e   :  { %1337 = vmatmul.mubr.bf16.gmra.mrb[28].mxu1 %v10314_v4  ;;  %1153 = vmatprep.mubr.bf16.mxu0 %v10325_v8 }
  0x7f   :  { %1346 = vmatprep.mubr.bf16.mxu1 %v10325_v8  ;;  %1456 = vmatpush1.bf16.msra.mxu0 %v7897_v16  ;;  %v9182_v16 = vld [vmem:[%s13200_s3 + $0xe4] ss:$16 sps:$4 sm:$0xff]  }
  0x80   :  { %1457 = vmatprep.subr.bf16.mxu0 %v7906_v17  ;;  %1649 = vmatpush1.bf16.msra.mxu1 %v7899_v18  ;;  %v9213_v17 = vld [vmem:[%s13200_s3 + $0xc8] ss:$16 sps:$4 sm:$0xff]   ;;  %v9218_v18 = vld [vmem:[%s13200_s3 + $0xec] ss:$16 sps:$4 sm:$0xff]  }
  0x81   :  { %1650 = vmatprep.subr.bf16.mxu1 %v7908_v19  ;;  %v9180_v19 = vld [vmem:[%s13200_s3 + $0xe0] ss:$16 sps:$4 sm:$0xff]  }
  0x83   :  { %1458 = vmatpush1.bf16.msra.mxu0 %v7905_v22  ;;  %v9216_v22 = vld [vmem:[%s13200_s3 + $0xe8] ss:$16 sps:$4 sm:$0xff]  }
  0x84   :  { %1651 = vmatpush1.bf16.msra.mxu1 %v7907_v24  ;;  %4011 = vmatprep.subr.bf16.mxu0 %v9161_v20  ;;  %v9185_v20 = vld [vmem:[%s13200_s3 + $0x104] ss:$16 sps:$4 sm:$0xff]  }
  0x85   :  { %1154 = vmatmul.mubr.bf16.gmra.mrb[32].mxu0 %v10343_v21  ;;  %4783 = vmatprep.subr.bf16.mxu1 %v9188_v25  ;;  %v9194_v24 = vld [vmem:[%s13200_s3 + $0x124] ss:$16 sps:$4 sm:$0xff]   ;;  %v9222_v25 = vld [vmem:[%s13200_s3 + $0x108] ss:$16 sps:$4 sm:$0xff]  }
  0x86   :  { %1347 = vmatmul.mubr.bf16.gmra.mrb[32].mxu1 %v10343_v21  ;;  %1163 = vmatprep.mubr.bf16.mxu0 %v10348_v23 }
  0x87   :  { %1356 = vmatprep.mubr.bf16.mxu1 %v10348_v23 }
  0x8d   :  { %1164 = vmatmul.mubr.bf16.gmra.mrb[36].mxu0 %v10360_v26 }
  0x8e   :  { %1357 = vmatmul.mubr.bf16.gmra.mrb[36].mxu1 %v10360_v26  ;;  %1173 = vmatprep.mubr.bf16.mxu0 %v10365_v27 }
  0x8f   :  { %1366 = vmatprep.mubr.bf16.mxu1 %v10365_v27 }
  0x95   :  { %1174 = vmatmul.mubr.bf16.gmra.mrb[40].mxu0 %v10374_v28 }
  0x96   :  { %1367 = vmatmul.mubr.bf16.gmra.mrb[40].mxu1 %v10374_v28  ;;  %1183 = vmatprep.mubr.bf16.mxu0 %v10379_v30 }
  0x97   :  { %1376 = vmatprep.mubr.bf16.mxu1 %v10379_v30 }
  0x9d   :  { %1184 = vmatmul.mubr.bf16.gmra.mrb[44].mxu0 %v10388_v31 }
  0x9e   :  { %1377 = vmatmul.mubr.bf16.gmra.mrb[44].mxu1 %v10388_v31  ;;  %1193 = vmatprep.mubr.bf16.mxu0 %v10393_v32 }
  0x9f   :  { %1386 = vmatprep.mubr.bf16.mxu1 %v10393_v32 }
  0xa5   :  { %1194 = vmatmul.mubr.bf16.gmra.mrb[48].mxu0 %v10402_v34 }
  0xa6   :  { %1387 = vmatmul.mubr.bf16.gmra.mrb[48].mxu1 %v10402_v34  ;;  %1203 = vmatprep.mubr.bf16.mxu0 %v10407_v35 }
  0xa7   :  { %1396 = vmatprep.mubr.bf16.mxu1 %v10407_v35 }
  0xad   :  { %1204 = vmatmul.mubr.bf16.gmra.mrb[52].mxu0 %v10416_v36 }
  0xae   :  { %1397 = vmatmul.mubr.bf16.gmra.mrb[52].mxu1 %v10416_v36  ;;  %1213 = vmatprep.mubr.bf16.mxu0 %v10421_v37 }
  0xaf   :  { %1406 = vmatprep.mubr.bf16.mxu1 %v10421_v37 }
  0xb5   :  { %1214 = vmatmul.mubr.bf16.gmra.mrb[56].mxu0 %v10430_v38 }
  0xb6   :  { %1407 = vmatmul.mubr.bf16.gmra.mrb[56].mxu1 %v10430_v38  ;;  %1223 = vmatprep.mubr.bf16.mxu0 %v10435_v39 }
  0xb7   :  { %1416 = vmatprep.mubr.bf16.mxu1 %v10435_v39 }
  0xbd   :  { %1224 = vmatmul.mubr.bf16.gmra.mrb[60].mxu0 %v10444_v40 }
  0xbe   :  { %1417 = vmatmul.mubr.bf16.gmra.mrb[60].mxu1 %v10444_v40  ;;  %1459 = vmatprep.mubr.bf16.mxu0 %v9791_v41 }
  0xbf   :  { %1652 = vmatprep.mubr.bf16.mxu1 %v9791_v41  ;;  %v9227_v41 = vld [vmem:[%s13200_s3 + $0x12c] ss:$16 sps:$4 sm:$0xff]  }
  0xc5   :  { %1460 = vmatmul.mubr.bf16.vlgmr.msra.gmra.mrb[64].mxu0 %v9792_v46 }
  0xc6   :  { %1653 = vmatmul.mubr.bf16.vlgmr.msra.gmra.mrb[64].mxu1 %v9792_v46  ;;  %4012 = vmatpush1.bf16.msra.mxu0 %v9159_v42  ;;  %v9192_v42 = vld [vmem:[%s13200_s3 + $0x120] ss:$16 sps:$4 sm:$0xff]   ;;  %v9212_v46 = vld [vmem:[%s13200_s3 + $0x164] ss:$16 sps:$4 sm:$0xff]  }
  0xc7   :  { %1469 = vmatprep.mubr.bf16.mxu0 %v9793_v50  ;;  %1662 = vmatprep.mubr.bf16.mxu1 %v9793_v50  ;;  %v9210_v50 = vld [vmem:[%s13200_s3 + $0x160] ss:$16 sps:$4 sm:$0xff]  }
  0xc8   :  { %4013 = vmatprep.subr.bf16.mxu0 %v9164_v44  ;;  %4784 = vmatpush1.bf16.msra.mxu1 %v9186_v45  ;;  %v9203_v44 = vld [vmem:[%s13200_s3 + $0x144] ss:$16 sps:$4 sm:$0xff]   ;;  %v9225_v45 = vld [vmem:[%s13200_s3 + $0x128] ss:$16 sps:$4 sm:$0xff]  }
  0xc9   :  { %4785 = vmatprep.subr.bf16.mxu1 %v9191_v47  ;;  %v9231_v47 = vld [vmem:[%s13200_s3 + $0x148] ss:$16 sps:$4 sm:$0xff]  }
  0xca   :  { %4014 = vmatpush1.bf16.msra.mxu0 %v9162_v49  ;;  %v9236_v49 = vld [vmem:[%s13200_s3 + $0x16c] ss:$16 sps:$4 sm:$0xff]  }
  0xcb   :  { %4015 = vmatprep.subr.bf16.mxu0 %v9167_v51  ;;  %v9221_v51 = vld [vmem:[%s13200_s3 + $0x184] ss:$16 sps:$4 sm:$0xff]  }
  0xcc   :  { %4786 = vmatpush1.bf16.msra.mxu1 %v9189_v53  ;;  %v9234_v53 = vld [vmem:[%s13200_s3 + $0x168] ss:$16 sps:$4 sm:$0xff]  }
  0xcd   :  { %1470 = vmatmul.mubr.bf16.gmra.mrb[68].mxu0 %v9794_v59  ;;  %4787 = vmatprep.subr.bf16.mxu1 %v9197_v54  ;;  %v9230_v54 = vld [vmem:[%s13200_s3 + $0x1a4] ss:$16 sps:$4 sm:$0xff]  }
  0xce   :  { %1663 = vmatmul.mubr.bf16.gmra.mrb[68].mxu1 %v9794_v59  ;;  %1479 = vmatprep.mubr.bf16.mxu0 %v9795_v62  ;;  %v9239_v59 = vld [vmem:[%s13200_s3 + $0x1c4] ss:$16 sps:$4 sm:$0xff]  }
  0xcf   :  { %1672 = vmatprep.mubr.bf16.mxu1 %v9795_v62  ;;  %4016 = vmatpush1.bf16.msra.mxu0 %v9165_v55  ;;  %v9240_v55 = vld [vmem:[%s13200_s3 + $0x188] ss:$16 sps:$4 sm:$0xff]   ;;  %v9248_v62 = vld [vmem:[%s13200_s3 + $0x1e4] ss:$16 sps:$4 sm:$0xff]  }
  0xd0   :  { %4017 = vmatprep.subr.bf16.mxu0 %v9170_v56  ;;  %4788 = vmatpush1.bf16.msra.mxu1 %v9195_v58  ;;  %v9245_v56 = vld [vmem:[%s13200_s3 + $0x1ac] ss:$16 sps:$4 sm:$0xff]   ;;  %v9228_v58 = vld [vmem:[%s13200_s3 + $0x1a0] ss:$16 sps:$4 sm:$0xff]  }
  0xd1   :  { %4789 = vmatprep.subr.bf16.mxu1 %v9200_v60  ;;  %v9243_v60 = vld [vmem:[%s13200_s3 + $0x1a8] ss:$16 sps:$4 sm:$0xff]  }
  0xd3   :  { %4018 = vmatpush1.bf16.msra.mxu0 %v9168_v63  ;;  %v9249_v63 = vld [vmem:[%s13200_s3 + $0x1c8] ss:$16 sps:$4 sm:$0xff]  }
  0xd4   :  { %4019 = vmatprep.subr.bf16.mxu0 %v9173_v0  ;;  %4790 = vmatpush1.bf16.msra.mxu1 %v9198_v1  ;;  %v9254_v0 = vld [vmem:[%s13200_s3 + $0x1ec] ss:$16 sps:$4 sm:$0xff]   ;;  %v9246_v1 = vld [vmem:[%s13200_s3 + $0x1e0] ss:$16 sps:$4 sm:$0xff]  }
  0xd5   :  { %1480 = vmatmul.mubr.bf16.gmra.mrb[72].mxu0 %v9796_v7  ;;  %4791 = vmatprep.subr.bf16.mxu1 %v9206_v2  ;;  %v9252_v2 = vld [vmem:[%s13200_s3 + $0x1e8] ss:$16 sps:$4 sm:$0xff]  }
  0xd6   :  { %1673 = vmatmul.mubr.bf16.gmra.mrb[72].mxu1 %v9796_v7  ;;  %1489 = vmatprep.mubr.bf16.mxu0 %v10137_v43 }
  0xd7   :  { %1682 = vmatprep.mubr.bf16.mxu1 %v10137_v43  ;;  %4020 = vmatpush1.bf16.msra.mxu0 %v9171_v3  ;;  %v9215_v43 = vld [vmem:[%s13200_s3 + $0xcc] ss:$16 sps:$4 sm:$0xff]   ;;  %v9257_v3 = vld [vmem:[%s13200_s3 + $0x204] ss:$16 sps:$4 sm:$0xff]  }
  0xd8   :  { %4021 = vmatprep.subr.bf16.mxu0 %v9176_v5  ;;  %4792 = vmatpush1.bf16.msra.mxu1 %v9204_v6 }
  0xd9   :  { %4793 = vmatprep.subr.bf16.mxu1 %v9209_v9 }
  0xdb   :  { %4022 = vmatpush1.bf16.msra.mxu0 %v9174_v10 }
  0xdc   :  { %4023 = vmatprep.subr.bf16.mxu0 %v9179_v12  ;;  %4794 = vmatpush1.bf16.msra.mxu1 %v9207_v13 }
  0xdd   :  { %1490 = vmatmul.mubr.bf16.gmra.mrb[76].mxu0 %v10162_v57  ;;  %4795 = vmatprep.subr.bf16.mxu1 %v9215_v43 }
  0xde   :  { %1683 = vmatmul.mubr.bf16.gmra.mrb[76].mxu1 %v10162_v57  ;;  %1499 = vmatprep.mubr.bf16.mxu0 %v10173_v61  ;;  %v9224_v57 = vld [vmem:[%s13200_s3 + $0x10c] ss:$16 sps:$4 sm:$0xff]  }
  0xdf   :  { %1692 = vmatprep.mubr.bf16.mxu1 %v10173_v61  ;;  %4024 = vmatpush1.bf16.msra.mxu0 %v9177_v14  ;;  %v9183_v61 = vld [vmem:[%s13200_s3 + $0x100] ss:$16 sps:$4 sm:$0xff]  }
  0xe0   :  { %4025 = vmatprep.subr.bf16.mxu0 %v9182_v16  ;;  %4796 = vmatpush1.bf16.msra.mxu1 %v9213_v17 }
  0xe1   :  { %4797 = vmatprep.subr.bf16.mxu1 %v9218_v18 }
  0xe3   :  { %4026 = vmatpush1.bf16.msra.mxu0 %v9180_v19 }
  0xe4   :  { %4027 = vmatprep.subr.bf16.mxu0 %v9185_v20  ;;  %4798 = vmatpush1.bf16.msra.mxu1 %v9216_v22 }
  0xe5   :  { %1500 = vmatmul.mubr.bf16.gmra.mrb[80].mxu0 %v10200_v11  ;;  %4799 = vmatprep.subr.bf16.mxu1 %v9224_v57 }
  0xe6   :  { %1693 = vmatmul.mubr.bf16.gmra.mrb[80].mxu1 %v10200_v11  ;;  %1509 = vmatprep.mubr.bf16.mxu0 %v10211_v15  ;;  %v9233_v11 = vld [vmem:[%s13200_s3 + $0x14c] ss:$16 sps:$4 sm:$0xff]  }
  0xe7   :  { %1702 = vmatprep.mubr.bf16.mxu1 %v10211_v15  ;;  %4028 = vmatpush1.bf16.msra.mxu0 %v9183_v61  ;;  %v9201_v15 = vld [vmem:[%s13200_s3 + $0x140] ss:$16 sps:$4 sm:$0xff]  }
  0xe8   :  { %4029 = vmatprep.subr.bf16.mxu0 %v9194_v24  ;;  %4800 = vmatpush1.bf16.msra.mxu1 %v9222_v25 }
  0xe9   :  { %4801 = vmatprep.subr.bf16.mxu1 %v9227_v41 }
  0xeb   :  { %4030 = vmatpush1.bf16.msra.mxu0 %v9192_v42 }
  0xec   :  { %4031 = vmatprep.subr.bf16.mxu0 %v9203_v44  ;;  %4802 = vmatpush1.bf16.msra.mxu1 %v9225_v45 }
  0xed   :  { %1510 = vmatmul.mubr.bf16.gmra.mrb[84].mxu0 %v10238_v29  ;;  %4803 = vmatprep.subr.bf16.mxu1 %v9233_v11 }
  0xee   :  { %1703 = vmatmul.mubr.bf16.gmra.mrb[84].mxu1 %v10238_v29  ;;  %1519 = vmatprep.mubr.bf16.mxu0 %v10249_v33  ;;  %v9242_v29 = vld [vmem:[%s13200_s3 + $0x18c] ss:$16 sps:$4 sm:$0xff]  }
  0xef   :  { %1712 = vmatprep.mubr.bf16.mxu1 %v10249_v33  ;;  %4032 = vmatpush1.bf16.msra.mxu0 %v9201_v15  ;;  %v9219_v33 = vld [vmem:[%s13200_s3 + $0x180] ss:$16 sps:$4 sm:$0xff]  }
  0xf0   :  { %4033 = vmatprep.subr.bf16.mxu0 %v9212_v46  ;;  %4804 = vmatpush1.bf16.msra.mxu1 %v9231_v47 }
  0xf1   :  { %4805 = vmatprep.subr.bf16.mxu1 %v9236_v49 }
  0xf3   :  { %4034 = vmatpush1.bf16.msra.mxu0 %v9210_v50 }
  0xf4   :  { %4035 = vmatprep.subr.bf16.mxu0 %v9221_v51  ;;  %4806 = vmatpush1.bf16.msra.mxu1 %v9234_v53 }
  0xf5   :  { %1520 = vmatmul.mubr.bf16.gmra.mrb[88].mxu0 %v10276_v48  ;;  %4807 = vmatprep.subr.bf16.mxu1 %v9242_v29 }
  0xf6   :  { %1713 = vmatmul.mubr.bf16.gmra.mrb[88].mxu1 %v10276_v48  ;;  %1529 = vmatprep.mubr.bf16.mxu0 %v10287_v52  ;;  %v9251_v48 = vld [vmem:[%s13200_s3 + $0x1cc] ss:$16 sps:$4 sm:$0xff]  }
  0xf7   :  { %1722 = vmatprep.mubr.bf16.mxu1 %v10287_v52  ;;  %4036 = vmatpush1.bf16.msra.mxu0 %v9219_v33  ;;  %v9237_v52 = vld [vmem:[%s13200_s3 + $0x1c0] ss:$16 sps:$4 sm:$0xff]  }
  0xf8   :  { %4037 = vmatprep.subr.bf16.mxu0 %v9230_v54  ;;  %4808 = vmatpush1.bf16.msra.mxu1 %v9240_v55 }
  0xf9   :  { %4809 = vmatprep.subr.bf16.mxu1 %v9245_v56 }
  0xfb   :  { %4038 = vmatpush1.bf16.msra.mxu0 %v9228_v58 }
  0xfc   :  { %4039 = vmatprep.subr.bf16.mxu0 %v9239_v59  ;;  %4810 = vmatpush1.bf16.msra.mxu1 %v9243_v60 }
  0xfd   :  { %1530 = vmatmul.mubr.bf16.gmra.mrb[92].mxu0 %v10314_v4  ;;  %4811 = vmatprep.subr.bf16.mxu1 %v9251_v48 }
  0xfe   :  { %1723 = vmatmul.mubr.bf16.gmra.mrb[92].mxu1 %v10314_v4  ;;  %1539 = vmatprep.mubr.bf16.mxu0 %v10325_v8  ;;  %v9284_v4 = vld [vmem:[%s13200_s3 + $0x20c] ss:$16 sps:$4 sm:$0xff]  }
  0xff   :  { %1732 = vmatprep.mubr.bf16.mxu1 %v10325_v8  ;;  %4040 = vmatpush1.bf16.msra.mxu0 %v9237_v52  ;;  %v201_v8 = vlaneseq }
 0x100   :  { %4041 = vmatprep.subr.bf16.mxu0 %v9248_v62  ;;  %4812 = vmatpush1.bf16.msra.mxu1 %v9249_v63 }
 0x101   :  { %4813 = vmatprep.subr.bf16.mxu1 %v9254_v0  ;;  %v10685_v5 = vshrl.u32 %v201_v8, 7 }
 0x103   :  { %4042 = vmatpush1.bf16.msra.mxu0 %v9246_v1  ;;  %13257 = vst [vmem:[#allocation2_spill] sm:$0xff] %v10685_v5  ;;  %v10691_v6 = vsub.s32 0, %v10685_v5  ;;  %v13211_v7 = vsub.s32 2, %v10685_v5  ;;  %v13210_v9 = vsub.s32 3, %v10685_v5 }
 0x104   :  { %4814 = vmatpush1.bf16.msra.mxu1 %v9252_v2  ;;  %4204 = vmatprep.subr.bf16.mxu0 %v9257_v3 }
 0x105   :  { %1540 = vmatmul.mubr.bf16.gmra.mrb[96].mxu0 %v10343_v21  ;;  %4976 = vmatprep.subr.bf16.mxu1 %v9284_v4  ;;  %13258 = vst [vmem:[#allocation3_spill] sm:$0xff] %v10691_v6 }
 0x106   :  { %1733 = vmatmul.mubr.bf16.gmra.mrb[96].mxu1 %v10343_v21  ;;  %1549 = vmatprep.mubr.bf16.mxu0 %v10348_v23  ;;  %v199_v21 = vld [vmem:[%s13201_s2] sm:$0xff] }
 0x107   :  { %1742 = vmatprep.mubr.bf16.mxu1 %v10348_v23  ;;  %v10697_v23 = vsub.s32 1, %v10685_v5  ;;  %v10712_v10 = vrot.slane %v199_v21, %v13211_v7  ;;  %v10717_v12 = vrot.slane %v199_v21, %v13210_v9 }
 0x109   :  { %13259 = vst [vmem:[#allocation4_spill] sm:$0xff] %v10697_v23 }
 0x10d   :  { %1550 = vmatmul.mubr.bf16.gmra.mrb[100].mxu0 %v10360_v26 }
 0x10e   :  { %1743 = vmatmul.mubr.bf16.gmra.mrb[100].mxu1 %v10360_v26  ;;  %1559 = vmatprep.mubr.bf16.mxu0 %v10365_v27  ;;  %v10703_v26 = vrot.slane %v199_v21, %v10691_v6 }
 0x10f   :  { %1752 = vmatprep.mubr.bf16.mxu1 %v10365_v27  ;;  %v10707_v27 = vrot.slane %v199_v21, %v10697_v23 }
 0x115   :  { %1560 = vmatmul.mubr.bf16.gmra.mrb[104].mxu0 %v10374_v28 }
 0x116   :  { %1753 = vmatmul.mubr.bf16.gmra.mrb[104].mxu1 %v10374_v28  ;;  %1569 = vmatprep.mubr.bf16.mxu0 %v10379_v30 }
 0x117   :  { %1762 = vmatprep.mubr.bf16.mxu1 %v10379_v30 }
 0x118   :  { %v1075_v13 = vpop.f32.mrb[0].mxu0  ;;  %v1268_v28 = vpop.f32.mrb[0].mxu1 }
 0x119   :  { %v1076_v43 = vadd.f32 %v1075_v13, %v10703_v26  ;;  %v1077_v14 = vpop.f32.mrb[1].mxu0  ;;  %v1269_v18 = vadd.f32 %v1268_v28, %v10712_v10  ;;  %v1270_v19 = vpop.f32.mrb[1].mxu1 }
 0x11a   :  { %v1078_v16 = vadd.f32 %v1077_v14, %v10707_v27  ;;  %v1079_v17 = vpop.f32.mrb[2].mxu0  ;;  %v1271_v30 = vadd.f32 %v1270_v19, %v10717_v12  ;;  %v1272_v61 = vpop.f32.mrb[2].mxu1 }
 0x11b   :  { %v1813_v20 = vmul.f32 0.2, %v1076_v43  ;;  %v1080_v22 = vadd.f32 %v1079_v17, %v10703_v26  ;;  %v1081_v57 = vpop.f32.mrb[3].mxu0  ;;  %v1815_v41 = vmul.f32 0.2, %v1269_v18  ;;  %v1273_v42 = vadd.f32 %v1272_v61, %v10712_v10  ;;  %v1274_v44 = vpop.f32.mrb[3].mxu1 }
 0x11c   :  { %v1814_v24 = vmul.f32 0.2, %v1078_v16  ;;  %v1082_v25 = vadd.f32 %v1081_v57, %v10707_v27  ;;  %v1816_v11 = vmul.f32 0.2, %v1271_v30  ;;  %v1275_v15 = vadd.f32 %v1274_v44, %v10717_v12 }
 0x11d   :  { %v1821_v45 = vmul.f32 0.2, %v1080_v22  ;;  %1570 = vmatmul.mubr.bf16.gmra.mrb[108].mxu0 %v10388_v31  ;;  %v2071_v47 = vmax.f32 %v1269_v18, %v1815_v41  ;;  %v1823_v49 = vmul.f32 0.2, %v1273_v42  ;;  %v2069_v50 = vmax.f32 %v1076_v43, %v1813_v20 }
 0x11e   :  { %v1822_v46 = vmul.f32 0.2, %v1082_v25  ;;  %1763 = vmatmul.mubr.bf16.gmra.mrb[108].mxu1 %v10388_v31  ;;  %1579 = vmatprep.mubr.bf16.mxu0 %v10393_v32  ;;  %v2072_v53 = vmax.f32 %v1271_v30, %v1816_v11  ;;  %v1824_v29 = vmul.f32 0.2, %v1275_v15  ;;  %v2070_v33 = vmax.f32 %v1078_v16, %v1814_v24 }
 0x11f   :  { %v2077_v51 = vmax.f32 %v1080_v22, %v1821_v45  ;;  %1772 = vmatprep.mubr.bf16.mxu1 %v10393_v32  ;;  %v2079_v56 = vmax.f32 %v1273_v42, %v1823_v49 }
 0x120   :  { %v2078_v54 = vmax.f32 %v1082_v25, %v1822_v46  ;;  %v1085_v55 = vpop.f32.mrb[4].mxu0  ;;  %v2080_v31 = vmax.f32 %v1275_v15, %v1824_v29 }
 0x121   :  { %v10731_v58 = vpack.c.bf16 %v2077_v51, %v2069_v50  ;;  %v1086_v59 = vadd.f32 %v1085_v55, %v10703_v26  ;;  %v1087_v60 = vpop.f32.mrb[5].mxu0  ;;  %v1278_v48 = vpop.f32.mrb[4].mxu1  ;;  %v10737_v0 = vpack.c.bf16 %v2079_v56, %v2071_v47 }
 0x122   :  { %v1088_v52 = vadd.f32 %v1087_v60, %v10707_v27  ;;  %v1089_v62 = vpop.f32.mrb[6].mxu0  ;;  %v10735_v63 = vpack.c.bf16 %v2078_v54, %v2070_v33  ;;  %v1279_v32 = vadd.f32 %v1278_v48, %v10712_v10  ;;  %v1280_v1 = vpop.f32.mrb[5].mxu1  ;;  %v10742_v13 = vpack.c.bf16 %v2080_v31, %v2072_v53 }
 0x123   :  { %v1829_v2 = vmul.f32 0.2, %v1086_v59  ;;  %v1090_v3 = vadd.f32 %v1089_v62, %v10703_v26  ;;  %v1091_v4 = vpop.f32.mrb[7].mxu0  ;;  %v1281_v8 = vadd.f32 %v1280_v1, %v10717_v12  ;;  %v1282_v21 = vpop.f32.mrb[6].mxu1 }
 0x124   :  { %v1830_v43 = vmul.f32 0.2, %v1088_v52  ;;  %v1092_v14 = vadd.f32 %v1091_v4, %v10707_v27  ;;  %v1831_v28 = vmul.f32 0.2, %v1279_v32  ;;  %v1283_v16 = vadd.f32 %v1282_v21, %v10712_v10  ;;  %v1284_v17 = vpop.f32.mrb[7].mxu1 }
 0x125   :  { %v1837_v18 = vmul.f32 0.2, %v1090_v3  ;;  %1580 = vmatmul.mubr.bf16.gmra.mrb[112].mxu0 %v10402_v34  ;;  %v1832_v19 = vmul.f32 0.2, %v1281_v8  ;;  %v1285_v20 = vadd.f32 %v1284_v17, %v10717_v12  ;;  %v2085_v61 = vmax.f32 %v1086_v59, %v1829_v2 }
 0x126   :  { %v1838_v22 = vmul.f32 0.2, %v1092_v14  ;;  %1773 = vmatmul.mubr.bf16.gmra.mrb[112].mxu1 %v10402_v34  ;;  %1589 = vmatprep.mubr.bf16.mxu0 %v10407_v35  ;;  %v2087_v57 = vmax.f32 %v1279_v32, %v1831_v28  ;;  %v1839_v30 = vmul.f32 0.2, %v1283_v16  ;;  %v2086_v42 = vmax.f32 %v1088_v52, %v1830_v43 }
 0x127   :  { %v2093_v24 = vmax.f32 %v1090_v3, %v1837_v18  ;;  %1782 = vmatprep.mubr.bf16.mxu1 %v10407_v35  ;;  %v2088_v25 = vmax.f32 %v1281_v8, %v1832_v19  ;;  %v1840_v41 = vmul.f32 0.2, %v1285_v20 }
 0x128   :  { %v2094_v44 = vmax.f32 %v1092_v14, %v1838_v22  ;;  %v1095_v45 = vpop.f32.mrb[8].mxu0  ;;  %v2095_v11 = vmax.f32 %v1283_v16, %v1839_v30 }
 0x129   :  { %v1096_v15 = vadd.f32 %v1095_v45, %v10703_v26  ;;  %v1097_v46 = vpop.f32.mrb[9].mxu0  ;;  %v10752_v47 = vpack.c.bf16 %v2093_v24, %v2085_v61  ;;  %v2096_v34 = vmax.f32 %v1285_v20, %v1840_v41  ;;  %v1288_v49 = vpop.f32.mrb[8].mxu1 }
 0x12a   :  { %v1098_v50 = vadd.f32 %v1097_v46, %v10707_v27  ;;  %v1099_v51 = vpop.f32.mrb[10].mxu0  ;;  %v10755_v53 = vpack.c.bf16 %v2094_v44, %v2086_v42  ;;  %v1289_v35 = vadd.f32 %v1288_v49, %v10712_v10  ;;  %v1290_v29 = vpop.f32.mrb[9].mxu1  ;;  %v10758_v33 = vpack.c.bf16 %v2095_v11, %v2087_v57 }
 0x12b   :  { %v1845_v54 = vmul.f32 0.2, %v1096_v15  ;;  %v1100_v55 = vadd.f32 %v1099_v51, %v10703_v26  ;;  %v1101_v56 = vpop.f32.mrb[11].mxu0  ;;  %v1291_v59 = vadd.f32 %v1290_v29, %v10717_v12  ;;  %v1292_v60 = vpop.f32.mrb[10].mxu1  ;;  %v10762_v31 = vpack.c.bf16 %v2096_v34, %v2088_v25 }
 0x12c   :  { %v1846_v48 = vmul.f32 0.2, %v1098_v50  ;;  %v1102_v52 = vadd.f32 %v1101_v56, %v10707_v27  ;;  %v1847_v62 = vmul.f32 0.2, %v1289_v35  ;;  %v1293_v32 = vadd.f32 %v1292_v60, %v10712_v10  ;;  %v1294_v1 = vpop.f32.mrb[11].mxu1 }
 0x12d   :  { %v1853_v2 = vmul.f32 0.2, %v1100_v55  ;;  %1590 = vmatmul.mubr.bf16.gmra.mrb[116].mxu0 %v10416_v36  ;;  %v1848_v3 = vmul.f32 0.2, %v1291_v59  ;;  %v1295_v4 = vadd.f32 %v1294_v1, %v10717_v12  ;;  %v2101_v14 = vmax.f32 %v1096_v15, %v1845_v54 }
 0x12e   :  { %v1854_v8 = vmul.f32 0.2, %v1102_v52  ;;  %1783 = vmatmul.mubr.bf16.gmra.mrb[116].mxu1 %v10416_v36  ;;  %1599 = vmatprep.mubr.bf16.mxu0 %v10421_v37  ;;  %v2103_v21 = vmax.f32 %v1289_v35, %v1847_v62  ;;  %v1855_v43 = vmul.f32 0.2, %v1293_v32  ;;  %v2102_v18 = vmax.f32 %v1098_v50, %v1846_v48 }
 0x12f   :  { %v2109_v28 = vmax.f32 %v1100_v55, %v1853_v2  ;;  %1792 = vmatprep.mubr.bf16.mxu1 %v10421_v37  ;;  %v2104_v16 = vmax.f32 %v1291_v59, %v1848_v3  ;;  %v1856_v17 = vmul.f32 0.2, %v1295_v4 }
 0x130   :  { %v2110_v19 = vmax.f32 %v1102_v52, %v1854_v8  ;;  %v1105_v20 = vpop.f32.mrb[12].mxu0  ;;  %v2111_v22 = vmax.f32 %v1293_v32, %v1855_v43 }
 0x131   :  { %v1106_v57 = vadd.f32 %v1105_v20, %v10703_v26  ;;  %v1107_v30 = vpop.f32.mrb[13].mxu0  ;;  %v10772_v61 = vpack.c.bf16 %v2109_v28, %v2101_v14  ;;  %v2112_v36 = vmax.f32 %v1295_v4, %v1856_v17  ;;  %v1298_v24 = vpop.f32.mrb[12].mxu1 }
 0x132   :  { %v1108_v25 = vadd.f32 %v1107_v30, %v10707_v27  ;;  %v1109_v41 = vpop.f32.mrb[14].mxu0  ;;  %v10775_v42 = vpack.c.bf16 %v2110_v19, %v2102_v18  ;;  %v1299_v37 = vadd.f32 %v1298_v24, %v10712_v10  ;;  %v1300_v44 = vpop.f32.mrb[13].mxu1  ;;  %v10778_v45 = vpack.c.bf16 %v2111_v22, %v2103_v21 }
 0x133   :  { %v1861_v11 = vmul.f32 0.2, %v1106_v57  ;;  %v1110_v15 = vadd.f32 %v1109_v41, %v10703_v26  ;;  %v1111_v46 = vpop.f32.mrb[15].mxu0  ;;  %v1301_v34 = vadd.f32 %v1300_v44, %v10717_v12  ;;  %v1302_v49 = vpop.f32.mrb[14].mxu1  ;;  %v10782_v50 = vpack.c.bf16 %v2112_v36, %v2104_v16 }
 0x134   :  { %v1862_v51 = vmul.f32 0.2, %v1108_v25  ;;  %v1112_v35 = vadd.f32 %v1111_v46, %v10707_v27  ;;  %v1863_v29 = vmul.f32 0.2, %v1299_v37  ;;  %v1303_v54 = vadd.f32 %v1302_v49, %v10712_v10  ;;  %v1304_v55 = vpop.f32.mrb[15].mxu1 }
 0x135   :  { %v1869_v56 = vmul.f32 0.2, %v1110_v15  ;;  %1600 = vmatmul.mubr.bf16.gmra.mrb[120].mxu0 %v10430_v38  ;;  %v1864_v59 = vmul.f32 0.2, %v1301_v34  ;;  %v1305_v60 = vadd.f32 %v1304_v55, %v10717_v12  ;;  %v2117_v32 = vmax.f32 %v1106_v57, %v1861_v11 }
 0x136   :  { %v1870_v48 = vmul.f32 0.2, %v1112_v35  ;;  %1793 = vmatmul.mubr.bf16.gmra.mrb[120].mxu1 %v10430_v38  ;;  %1609 = vmatprep.mubr.bf16.mxu0 %v10435_v39  ;;  %v2119_v52 = vmax.f32 %v1299_v37, %v1863_v29  ;;  %v1871_v62 = vmul.f32 0.2, %v1303_v54  ;;  %v2118_v4 = vmax.f32 %v1108_v25, %v1862_v51 }
 0x137   :  { %v2125_v1 = vmax.f32 %v1110_v15, %v1869_v56  ;;  %1802 = vmatprep.mubr.bf16.mxu1 %v10435_v39  ;;  %v2120_v2 = vmax.f32 %v1301_v34, %v1864_v59  ;;  %v1872_v3 = vmul.f32 0.2, %v1305_v60 }
 0x138   :  { %v2126_v8 = vmax.f32 %v1112_v35, %v1870_v48  ;;  %v1115_v21 = vpop.f32.mrb[16].mxu0  ;;  %v2127_v43 = vmax.f32 %v1303_v54, %v1871_v62 }
 0x139   :  { %v1116_v14 = vadd.f32 %v1115_v21, %v10703_v26  ;;  %v1117_v28 = vpop.f32.mrb[17].mxu0  ;;  %v10792_v16 = vpack.c.bf16 %v2125_v1, %v2117_v32  ;;  %v2128_v38 = vmax.f32 %v1305_v60, %v1872_v3  ;;  %v1308_v17 = vpop.f32.mrb[16].mxu1 }
 0x13a   :  { %v1118_v18 = vadd.f32 %v1117_v28, %v10707_v27  ;;  %v1119_v19 = vpop.f32.mrb[18].mxu0  ;;  %v10795_v20 = vpack.c.bf16 %v2126_v8, %v2118_v4  ;;  %v1309_v39 = vadd.f32 %v1308_v17, %v10712_v10  ;;  %v1310_v22 = vpop.f32.mrb[17].mxu1  ;;  %v10798_v57 = vpack.c.bf16 %v2127_v43, %v2119_v52 }
 0x13b   :  { %v1877_v30 = vmul.f32 0.2, %v1116_v14  ;;  %v1120_v36 = vadd.f32 %v1119_v19, %v10703_v26  ;;  %v1121_v24 = vpop.f32.mrb[19].mxu0  ;;  %v1311_v25 = vadd.f32 %v1310_v22, %v10717_v12  ;;  %v1312_v41 = vpop.f32.mrb[18].mxu1  ;;  %v10802_v37 = vpack.c.bf16 %v2128_v38, %v2120_v2 }
 0x13c   :  { %v1878_v44 = vmul.f32 0.2, %v1118_v18  ;;  %v1122_v11 = vadd.f32 %v1121_v24, %v10707_v27  ;;  %v1879_v15 = vmul.f32 0.2, %v1309_v39  ;;  %v1313_v46 = vadd.f32 %v1312_v41, %v10712_v10  ;;  %v1314_v34 = vpop.f32.mrb[19].mxu1 }
 0x13d   :  { %v1885_v49 = vmul.f32 0.2, %v1120_v36  ;;  %1610 = vmatmul.mubr.bf16.gmra.mrb[124].mxu0 %v10444_v40  ;;  %v1880_v51 = vmul.f32 0.2, %v1311_v25  ;;  %v1315_v35 = vadd.f32 %v1314_v34, %v10717_v12  ;;  %v2133_v56 = vmax.f32 %v1116_v14, %v1877_v30  ;;  %v9260_v14 = vld [vmem:[%s13200_s3 + $0x224] ss:$16 sps:$4 sm:$0xff]  }
 0x13e   :  { %v1886_v29 = vmul.f32 0.2, %v1122_v11  ;;  %1803 = vmatmul.mubr.bf16.gmra.mrb[124].mxu1 %v10444_v40  ;;  %4043 = vmatprep.mubr.bf16.mxu0 %v10735_v63  ;;  %v2135_v54 = vmax.f32 %v1309_v39, %v1879_v15  ;;  %v1887_v55 = vmul.f32 0.2, %v1313_v46  ;;  %v2134_v52 = vmax.f32 %v1118_v18, %v1878_v44  ;;  %v9282_v30 = vld [vmem:[%s13200_s3 + $0x208] ss:$16 sps:$4 sm:$0xff]  }
 0x13f   :  { %v2141_v59 = vmax.f32 %v1120_v36, %v1885_v49  ;;  %4815 = vmatprep.mubr.bf16.mxu1 %v10735_v63  ;;  %v2136_v60 = vmax.f32 %v1311_v25, %v1880_v51  ;;  %v1888_v48 = vmul.f32 0.2, %v1315_v35  ;;  %v9255_v63 = vld [vmem:[%s13200_s3 + $0x200] ss:$16 sps:$4 sm:$0xff]   ;;  %v9287_v49 = vld [vmem:[%s13200_s3 + $0x22c] ss:$16 sps:$4 sm:$0xff]  }
 0x140   :  { %v2142_v62 = vmax.f32 %v1122_v11, %v1886_v29  ;;  %v1125_v32 = vpop.f32.mrb[20].mxu0  ;;  %v2143_v1 = vmax.f32 %v1313_v46, %v1887_v55 }
 0x141   :  { %v1126_v2 = vadd.f32 %v1125_v32, %v10703_v26  ;;  %v1127_v3 = vpop.f32.mrb[21].mxu0  ;;  %v10812_v4 = vpack.c.bf16 %v2141_v59, %v2133_v56  ;;  %v2144_v40 = vmax.f32 %v1315_v35, %v1888_v48  ;;  %v1318_v8 = vpop.f32.mrb[20].mxu1 }
 0x142   :  { %v1128_v21 = vadd.f32 %v1127_v3, %v10707_v27  ;;  %v1129_v43 = vpop.f32.mrb[22].mxu0  ;;  %v10821_v28 = vpack.c.bf16 %v2142_v62, %v2134_v52  ;;  %v1319_v38 = vadd.f32 %v1318_v8, %v10712_v10  ;;  %v1320_v17 = vpop.f32.mrb[21].mxu1  ;;  %v10824_v18 = vpack.c.bf16 %v2143_v1, %v2135_v54 }
 0x143   :  { %v1893_v19 = vmul.f32 0.2, %v1126_v2  ;;  %v1130_v39 = vadd.f32 %v1129_v43, %v10703_v26  ;;  %v1131_v22 = vpop.f32.mrb[23].mxu0  ;;  %v1321_v36 = vadd.f32 %v1320_v17, %v10717_v12  ;;  %v1322_v24 = vpop.f32.mrb[22].mxu1  ;;  %v10831_v25 = vpack.c.bf16 %v2144_v40, %v2136_v60  ;;  %v9258_v60 = vld [vmem:[%s13200_s3 + $0x220] ss:$16 sps:$4 sm:$0xff]  }
 0x144   :  { %v1894_v41 = vmul.f32 0.2, %v1128_v21  ;;  %v1132_v44 = vadd.f32 %v1131_v22, %v10707_v27  ;;  %v1895_v11 = vmul.f32 0.2, %v1319_v38  ;;  %v1323_v15 = vadd.f32 %v1322_v24, %v10712_v10  ;;  %v1324_v46 = vpop.f32.mrb[23].mxu1 }
 0x145   :  { %v1901_v34 = vmul.f32 0.2, %v1130_v39  ;;  %4044 = vmatmul.mubr.bf16.vlgmr.msra.gmra.mrb[128].mxu0 %v10731_v58  ;;  %v1896_v51 = vmul.f32 0.2, %v1321_v36  ;;  %v1325_v35 = vadd.f32 %v1324_v46, %v10717_v12  ;;  %v2149_v56 = vmax.f32 %v1126_v2, %v1893_v19  ;;  %v9285_v2 = vld [vmem:[%s13200_s3 + $0x228] ss:$16 sps:$4 sm:$0xff]  }
 0x146   :  { %v1902_v29 = vmul.f32 0.2, %v1132_v44  ;;  %4816 = vmatmul.mubr.bf16.vlgmr.msra.gmra.mrb[128].mxu1 %v10731_v58  ;;  %4053 = vmatprep.mubr.bf16.mxu0 %v10755_v53  ;;  %v2151_v54 = vmax.f32 %v1319_v38, %v1895_v11  ;;  %v1903_v55 = vmul.f32 0.2, %v1323_v15  ;;  %v2150_v62 = vmax.f32 %v1128_v21, %v1894_v41  ;;  %v9263_v58 = vld [vmem:[%s13200_s3 + $0x244] ss:$16 sps:$4 sm:$0xff]  }
 0x147   :  { %v2157_v59 = vmax.f32 %v1130_v39, %v1901_v34  ;;  %4205 = vmatpush1.bf16.msra.mxu0 %v9255_v63  ;;  %4825 = vmatprep.mubr.bf16.mxu1 %v10755_v53  ;;  %v2152_v48 = vmax.f32 %v1321_v36, %v1896_v51  ;;  %v1904_v52 = vmul.f32 0.2, %v1325_v35  ;;  %v9293_v21 = vld [vmem:[%s13200_s3 + $0x24c] ss:$16 sps:$4 sm:$0xff]   ;;  %v9261_v17 = vld [vmem:[%s13200_s3 + $0x240] ss:$16 sps:$4 sm:$0xff]  }
 0x148   :  { %v2158_v32 = vmax.f32 %v1132_v44, %v1902_v29  ;;  %v1135_v1 = vpop.f32.mrb[24].mxu0  ;;  %4206 = vmatprep.subr.bf16.mxu0 %v9260_v14  ;;  %4977 = vmatpush1.bf16.msra.mxu1 %v9282_v30  ;;  %v2159_v53 = vmax.f32 %v1323_v15, %v1903_v55  ;;  %v9266_v19 = vld [vmem:[%s13200_s3 + $0x264] ss:$16 sps:$4 sm:$0xff]   ;;  %v9291_v11 = vld [vmem:[%s13200_s3 + $0x248] ss:$16 sps:$4 sm:$0xff]  }
 0x149   :  { %v1136_v3 = vadd.f32 %v1135_v1, %v10703_v26  ;;  %v1137_v40 = vpop.f32.mrb[25].mxu0  ;;  %v10853_v8 = vpack.c.bf16 %v2157_v59, %v2149_v56  ;;  %4978 = vmatprep.subr.bf16.mxu1 %v9287_v49  ;;  %v2160_v43 = vmax.f32 %v1325_v35, %v1904_v52  ;;  %v1328_v63 = vpop.f32.mrb[24].mxu1  ;;  %v9296_v56 = vld [vmem:[%s13200_s3 + $0x26c] ss:$16 sps:$4 sm:$0xff]  }
 0x14a   :  { %v1138_v14 = vadd.f32 %v1137_v40, %v10707_v27  ;;  %v1139_v38 = vpop.f32.mrb[26].mxu0  ;;  %v10865_v39 = vpack.c.bf16 %v2158_v32, %v2150_v62  ;;  %v1329_v22 = vadd.f32 %v1328_v63, %v10712_v10  ;;  %v1330_v30 = vpop.f32.mrb[25].mxu1  ;;  %v10868_v36 = vpack.c.bf16 %v2159_v53, %v2151_v54 }
 0x14b   :  { %v1909_v24 = vmul.f32 0.2, %v1136_v3  ;;  %v1140_v41 = vadd.f32 %v1139_v38, %v10703_v26  ;;  %v1141_v44 = vpop.f32.mrb[27].mxu0  ;;  %4207 = vmatpush1.bf16.msra.mxu0 %v9258_v60  ;;  %v1331_v15 = vadd.f32 %v1330_v30, %v10717_v12  ;;  %v1332_v46 = vpop.f32.mrb[26].mxu1  ;;  %v10875_v34 = vpack.c.bf16 %v2160_v43, %v2152_v48 }
 0x14c   :  { %v1910_v49 = vmul.f32 0.2, %v1138_v14  ;;  %v1142_v51 = vadd.f32 %v1141_v44, %v10707_v27  ;;  %4208 = vmatprep.subr.bf16.mxu0 %v9263_v58  ;;  %4979 = vmatpush1.bf16.msra.mxu1 %v9285_v2  ;;  %v1911_v35 = vmul.f32 0.2, %v1329_v22  ;;  %v1333_v29 = vadd.f32 %v1332_v46, %v10712_v10  ;;  %v1334_v54 = vpop.f32.mrb[27].mxu1 }
 0x14d   :  { %v1917_v55 = vmul.f32 0.2, %v1140_v41  ;;  %4054 = vmatmul.mubr.bf16.gmra.mrb[132].mxu0 %v10752_v47  ;;  %4980 = vmatprep.subr.bf16.mxu1 %v9293_v21  ;;  %v1912_v59 = vmul.f32 0.2, %v1331_v15  ;;  %v1335_v60 = vadd.f32 %v1334_v54, %v10717_v12  ;;  %v2165_v32 = vmax.f32 %v1136_v3, %v1909_v24  ;;  %v9264_v58 = vld [vmem:[%s13200_s3 + $0x260] ss:$16 sps:$4 sm:$0xff]  }
 0x14e   :  { %v1918_v48 = vmul.f32 0.2, %v1142_v51  ;;  %4826 = vmatmul.mubr.bf16.gmra.mrb[132].mxu1 %v10752_v47  ;;  %4063 = vmatprep.mubr.bf16.mxu0 %v10775_v42  ;;  %v2167_v52 = vmax.f32 %v1329_v22, %v1911_v35  ;;  %v1919_v62 = vmul.f32 0.2, %v1333_v29  ;;  %v2166_v40 = vmax.f32 %v1138_v14, %v1910_v49  ;;  %v9269_v47 = vld [vmem:[%s13200_s3 + $0x284] ss:$16 sps:$4 sm:$0xff]  }
 0x14f   :  { %v2173_v1 = vmax.f32 %v1140_v41, %v1917_v55  ;;  %4835 = vmatprep.mubr.bf16.mxu1 %v10775_v42  ;;  %4209 = vmatpush1.bf16.msra.mxu0 %v9261_v17  ;;  %v2168_v2 = vmax.f32 %v1331_v15, %v1912_v59  ;;  %v1920_v53 = vmul.f32 0.2, %v1335_v60  ;;  %v9294_v42 = vld [vmem:[%s13200_s3 + $0x268] ss:$16 sps:$4 sm:$0xff]   ;;  %v9302_v14 = vld [vmem:[%s13200_s3 + $0x28c] ss:$16 sps:$4 sm:$0xff]  }
 0x150   :  { %v2174_v21 = vmax.f32 %v1142_v51, %v1918_v48  ;;  %v1145_v43 = vpop.f32.mrb[28].mxu0  ;;  %4210 = vmatprep.subr.bf16.mxu0 %v9266_v19  ;;  %4981 = vmatpush1.bf16.msra.mxu1 %v9291_v11  ;;  %v2175_v3 = vmax.f32 %v1333_v29, %v1919_v62  ;;  %v9267_v41 = vld [vmem:[%s13200_s3 + $0x280] ss:$16 sps:$4 sm:$0xff]   ;;  %v9272_v44 = vld [vmem:[%s13200_s3 + $0x2a4] ss:$16 sps:$4 sm:$0xff]  }
 0x151   :  { %v1146_v63 = vadd.f32 %v1145_v43, %v10703_v26  ;;  %v1147_v38 = vpop.f32.mrb[29].mxu0  ;;  %v10897_v17 = vpack.c.bf16 %v2173_v1, %v2165_v32  ;;  %4982 = vmatprep.subr.bf16.mxu1 %v9296_v56  ;;  %v2176_v19 = vmax.f32 %v1335_v60, %v1920_v53  ;;  %v1338_v22 = vpop.f32.mrb[28].mxu1  ;;  %v9300_v54 = vld [vmem:[%s13200_s3 + $0x288] ss:$16 sps:$4 sm:$0xff]  }
 0x152   :  { %v1148_v30 = vadd.f32 %v1147_v38, %v10707_v27  ;;  %v1149_v24 = vpop.f32.mrb[30].mxu0  ;;  %v10909_v11 = vpack.c.bf16 %v2174_v21, %v2166_v40  ;;  %v1339_v15 = vadd.f32 %v1338_v22, %v10712_v10  ;;  %v1340_v46 = vpop.f32.mrb[29].mxu1  ;;  %v10912_v49 = vpack.c.bf16 %v2175_v3, %v2167_v52  ;;  %v9270_v3 = vld [vmem:[%s13200_s3 + $0x2a0] ss:$16 sps:$4 sm:$0xff]  }
 0x153   :  { %v1925_v51 = vmul.f32 0.2, %v1146_v63  ;;  %v1150_v35 = vadd.f32 %v1149_v24, %v10703_v26  ;;  %v1151_v29 = vpop.f32.mrb[31].mxu0  ;;  %4211 = vmatpush1.bf16.msra.mxu0 %v9264_v58  ;;  %v1341_v55 = vadd.f32 %v1340_v46, %v10717_v12  ;;  %v1342_v56 = vpop.f32.mrb[30].mxu1  ;;  %v10919_v59 = vpack.c.bf16 %v2176_v19, %v2168_v2  ;;  %v9305_v58 = vld [vmem:[%s13200_s3 + $0x2ac] ss:$16 sps:$4 sm:$0xff]  }
 0x154   :  { %v1926_v60 = vmul.f32 0.2, %v1148_v30  ;;  %v1152_v48 = vadd.f32 %v1151_v29, %v10707_v27  ;;  %4212 = vmatprep.subr.bf16.mxu0 %v9269_v47  ;;  %4983 = vmatpush1.bf16.msra.mxu1 %v9294_v42  ;;  %v1927_v52 = vmul.f32 0.2, %v1339_v15  ;;  %v1343_v62 = vadd.f32 %v1342_v56, %v10712_v10  ;;  %v1344_v32 = vpop.f32.mrb[31].mxu1 }
 0x155   :  { %v1933_v1 = vmul.f32 0.2, %v1150_v35  ;;  %4064 = vmatmul.mubr.bf16.gmra.mrb[136].mxu0 %v10772_v61  ;;  %4984 = vmatprep.subr.bf16.mxu1 %v9302_v14  ;;  %v1928_v53 = vmul.f32 0.2, %v1341_v55  ;;  %v1345_v2 = vadd.f32 %v1344_v32, %v10717_v12  ;;  %v2181_v47 = vmax.f32 %v1146_v63, %v1925_v51  ;;  %v9278_v56 = vld [vmem:[%s13200_s3 + $0x2e4] ss:$16 sps:$4 sm:$0xff]  }
 0x156   :  { %v1934_v40 = vmul.f32 0.2, %v1152_v48  ;;  %4836 = vmatmul.mubr.bf16.gmra.mrb[136].mxu1 %v10772_v61  ;;  %4073 = vmatprep.mubr.bf16.mxu0 %v10795_v20  ;;  %v2183_v21 = vmax.f32 %v1339_v15, %v1927_v52  ;;  %v1935_v43 = vmul.f32 0.2, %v1343_v62  ;;  %v2182_v19 = vmax.f32 %v1148_v30, %v1926_v60  ;;  %v9275_v61 = vld [vmem:[%s13200_s3 + $0x2c4] ss:$16 sps:$4 sm:$0xff]  }
 0x157   :  { %v2189_v42 = vmax.f32 %v1150_v35, %v1933_v1  ;;  %4845 = vmatprep.mubr.bf16.mxu1 %v10795_v20  ;;  %4213 = vmatpush1.bf16.msra.mxu0 %v9267_v41  ;;  %v2184_v38 = vmax.f32 %v1341_v55, %v1928_v53  ;;  %v1936_v14 = vmul.f32 0.2, %v1345_v2  ;;  %v9303_v20 = vld [vmem:[%s13200_s3 + $0x2a8] ss:$16 sps:$4 sm:$0xff]   ;;  %v9311_v30 = vld [vmem:[%s13200_s3 + $0x2cc] ss:$16 sps:$4 sm:$0xff]  }
 0x158   :  { %v2190_v22 = vmax.f32 %v1152_v48, %v1934_v40  ;;  %v1155_v24 = vpop.f32.mrb[32].mxu0  ;;  %4214 = vmatprep.subr.bf16.mxu0 %v9272_v44  ;;  %4985 = vmatpush1.bf16.msra.mxu1 %v9300_v54  ;;  %v2191_v63 = vmax.f32 %v1343_v62, %v1935_v43  ;;  %v9273_v54 = vld [vmem:[%s13200_s3 + $0x2c0] ss:$16 sps:$4 sm:$0xff]  }
 0x159   :  { %v1156_v41 = vadd.f32 %v1155_v24, %v10703_v26  ;;  %v1157_v15 = vpop.f32.mrb[33].mxu0  ;;  %v10941_v46 = vpack.c.bf16 %v2189_v42, %v2181_v47  ;;  %4986 = vmatprep.subr.bf16.mxu1 %v9305_v58  ;;  %v2192_v44 = vmax.f32 %v1345_v2, %v1936_v14  ;;  %v1348_v51 = vpop.f32.mrb[32].mxu1  ;;  %v9309_v58 = vld [vmem:[%s13200_s3 + $0x2c8] ss:$16 sps:$4 sm:$0xff]  }
 0x15a   :  { %v1158_v35 = vadd.f32 %v1157_v15, %v10707_v27  ;;  %v1159_v29 = vpop.f32.mrb[34].mxu0  ;;  %v10950_v55 = vpack.c.bf16 %v2190_v22, %v2182_v19  ;;  %v1349_v60 = vadd.f32 %v1348_v51, %v10712_v10  ;;  %v1350_v48 = vpop.f32.mrb[33].mxu1  ;;  %v10956_v52 = vpack.c.bf16 %v2191_v63, %v2183_v21 }
 0x15b   :  { %v1941_v62 = vmul.f32 0.2, %v1156_v41  ;;  %v1160_v32 = vadd.f32 %v1159_v29, %v10703_v26  ;;  %v1161_v1 = vpop.f32.mrb[35].mxu0  ;;  %4215 = vmatpush1.bf16.msra.mxu0 %v9270_v3  ;;  %v1351_v53 = vadd.f32 %v1350_v48, %v10717_v12  ;;  %v1352_v2 = vpop.f32.mrb[34].mxu1  ;;  %v10963_v40 = vpack.c.bf16 %v2192_v44, %v2184_v38  ;;  %v9314_v3 = vld [vmem:[%s13200_s3 + $0x2ec] ss:$16 sps:$4 sm:$0xff]  }
 0x15c   :  { %v1942_v43 = vmul.f32 0.2, %v1158_v35  ;;  %v1162_v47 = vadd.f32 %v1161_v1, %v10707_v27  ;;  %4216 = vmatprep.subr.bf16.mxu0 %v9275_v61  ;;  %4987 = vmatpush1.bf16.msra.mxu1 %v9303_v20  ;;  %v1943_v21 = vmul.f32 0.2, %v1349_v60  ;;  %v1353_v42 = vadd.f32 %v1352_v2, %v10712_v10  ;;  %v1354_v14 = vpop.f32.mrb[35].mxu1 }
 0x15d   :  { %v1949_v19 = vmul.f32 0.2, %v1160_v32  ;;  %4074 = vmatmul.mubr.bf16.gmra.mrb[140].mxu0 %v10792_v16  ;;  %4988 = vmatprep.subr.bf16.mxu1 %v9311_v30  ;;  %v1944_v22 = vmul.f32 0.2, %v1351_v53  ;;  %v1355_v38 = vadd.f32 %v1354_v14, %v10717_v12  ;;  %v2197_v63 = vmax.f32 %v1156_v41, %v1941_v62  ;;  %v9276_v30 = vld [vmem:[%s13200_s3 + $0x2e0] ss:$16 sps:$4 sm:$0xff]  }
 0x15e   :  { %v1950_v24 = vmul.f32 0.2, %v1162_v47  ;;  %4846 = vmatmul.mubr.bf16.gmra.mrb[140].mxu1 %v10792_v16  ;;  %4083 = vmatprep.mubr.bf16.mxu0 %v10821_v28  ;;  %v2199_v61 = vmax.f32 %v1349_v60, %v1943_v21  ;;  %v1951_v20 = vmul.f32 0.2, %v1353_v42  ;;  %v2198_v29 = vmax.f32 %v1158_v35, %v1942_v43  ;;  %v9281_v16 = vld [vmem:[%s13200_s3 + $0x304] ss:$16 sps:$4 sm:$0xff]  }
 0x15f   :  { %v2205_v15 = vmax.f32 %v1160_v32, %v1949_v19  ;;  %4855 = vmatprep.mubr.bf16.mxu1 %v10821_v28  ;;  %4217 = vmatpush1.bf16.msra.mxu0 %v9273_v54  ;;  %v2200_v44 = vmax.f32 %v1351_v53, %v1944_v22  ;;  %v1952_v51 = vmul.f32 0.2, %v1355_v38  ;;  %v9312_v28 = vld [vmem:[%s13200_s3 + $0x2e8] ss:$16 sps:$4 sm:$0xff]   ;;  %v9320_v35 = vld [vmem:[%s13200_s3 + $0x30c] ss:$16 sps:$4 sm:$0xff]  }
 0x160   :  { %v2206_v48 = vmax.f32 %v1162_v47, %v1950_v24  ;;  %v1165_v1 = vpop.f32.mrb[36].mxu0  ;;  %4218 = vmatprep.subr.bf16.mxu0 %v9278_v56  ;;  %4989 = vmatpush1.bf16.msra.mxu1 %v9309_v58  ;;  %v2207_v41 = vmax.f32 %v1353_v42, %v1951_v20  ;;  %v9279_v43 = vld [vmem:[%s13200_s3 + $0x300] ss:$16 sps:$4 sm:$0xff]   ;;  %v9290_v47 = vld [vmem:[%s13200_s3 + $0x324] ss:$16 sps:$4 sm:$0xff]  }
 0x161   :  { %v1166_v54 = vadd.f32 %v1165_v1, %v10703_v26  ;;  %v1167_v60 = vpop.f32.mrb[37].mxu0  ;;  %v10985_v62 = vpack.c.bf16 %v2205_v15, %v2197_v63  ;;  %4990 = vmatprep.subr.bf16.mxu1 %v9314_v3  ;;  %v2208_v56 = vmax.f32 %v1355_v38, %v1952_v51  ;;  %v1358_v32 = vpop.f32.mrb[36].mxu1  ;;  %v9318_v38 = vld [vmem:[%s13200_s3 + $0x308] ss:$16 sps:$4 sm:$0xff]  }
 0x162   :  { %v1168_v53 = vadd.f32 %v1167_v60, %v10707_v27  ;;  %v1169_v58 = vpop.f32.mrb[38].mxu0  ;;  %v10991_v2 = vpack.c.bf16 %v2206_v48, %v2198_v29  ;;  %v1359_v21 = vadd.f32 %v1358_v32, %v10712_v10  ;;  %v1360_v42 = vpop.f32.mrb[37].mxu1  ;;  %v11000_v14 = vpack.c.bf16 %v2207_v41, %v2199_v61 }
 0x163   :  { %v1957_v19 = vmul.f32 0.2, %v1166_v54  ;;  %v1170_v3 = vadd.f32 %v1169_v58, %v10703_v26  ;;  %v1171_v22 = vpop.f32.mrb[39].mxu0  ;;  %4219 = vmatpush1.bf16.msra.mxu0 %v9276_v30  ;;  %v1361_v24 = vadd.f32 %v1360_v42, %v10717_v12  ;;  %v1362_v20 = vpop.f32.mrb[38].mxu1  ;;  %v11007_v63 = vpack.c.bf16 %v2208_v56, %v2200_v44  ;;  %v9323_v30 = vld [vmem:[%s13200_s3 + $0x32c] ss:$16 sps:$4 sm:$0xff]  }
 0x164   :  { %v1958_v15 = vmul.f32 0.2, %v1168_v53  ;;  %v1172_v51 = vadd.f32 %v1171_v22, %v10707_v27  ;;  %4220 = vmatprep.subr.bf16.mxu0 %v9281_v16  ;;  %4991 = vmatpush1.bf16.msra.mxu1 %v9312_v28  ;;  %v1959_v61 = vmul.f32 0.2, %v1359_v21  ;;  %v1363_v29 = vadd.f32 %v1362_v20, %v10712_v10  ;;  %v1364_v48 = vpop.f32.mrb[39].mxu1 }
 0x165   :  { %v1965_v1 = vmul.f32 0.2, %v1170_v3  ;;  %4084 = vmatmul.mubr.bf16.gmra.mrb[144].mxu0 %v10812_v4  ;;  %4992 = vmatprep.subr.bf16.mxu1 %v9320_v35  ;;  %v1960_v41 = vmul.f32 0.2, %v1361_v24  ;;  %v1365_v44 = vadd.f32 %v1364_v48, %v10717_v12  ;;  %v2213_v56 = vmax.f32 %v1166_v54, %v1957_v19  ;;  %v9288_v35 = vld [vmem:[%s13200_s3 + $0x320] ss:$16 sps:$4 sm:$0xff]  }
 0x166   :  { %v1966_v60 = vmul.f32 0.2, %v1172_v51  ;;  %4856 = vmatmul.mubr.bf16.gmra.mrb[144].mxu1 %v10812_v4  ;;  %4093 = vmatprep.mubr.bf16.mxu0 %v10865_v39  ;;  %v2215_v16 = vmax.f32 %v1359_v21, %v1959_v61  ;;  %v1967_v28 = vmul.f32 0.2, %v1363_v29  ;;  %v2214_v22 = vmax.f32 %v1168_v53, %v1958_v15  ;;  %v9299_v4 = vld [vmem:[%s13200_s3 + $0x344] ss:$16 sps:$4 sm:$0xff]  }
 0x167   :  { %v2221_v32 = vmax.f32 %v1170_v3, %v1965_v1  ;;  %4865 = vmatprep.mubr.bf16.mxu1 %v10865_v39  ;;  %4221 = vmatpush1.bf16.msra.mxu0 %v9279_v43  ;;  %v2216_v58 = vmax.f32 %v1361_v24, %v1960_v41  ;;  %v1968_v42 = vmul.f32 0.2, %v1365_v44  ;;  %v9321_v39 = vld [vmem:[%s13200_s3 + $0x328] ss:$16 sps:$4 sm:$0xff]   ;;  %v9329_v53 = vld [vmem:[%s13200_s3 + $0x34c] ss:$16 sps:$4 sm:$0xff]  }
 0x168   :  { %v2222_v20 = vmax.f32 %v1172_v51, %v1966_v60  ;;  %v1175_v48 = vpop.f32.mrb[40].mxu0  ;;  %4222 = vmatprep.subr.bf16.mxu0 %v9290_v47  ;;  %4993 = vmatpush1.bf16.msra.mxu1 %v9318_v38  ;;  %v2223_v54 = vmax.f32 %v1363_v29, %v1967_v28  ;;  %v9297_v51 = vld [vmem:[%s13200_s3 + $0x340] ss:$16 sps:$4 sm:$0xff]   ;;  %v9308_v61 = vld [vmem:[%s13200_s3 + $0x364] ss:$16 sps:$4 sm:$0xff]  }
 0x169   :  { %v1176_v43 = vadd.f32 %v1175_v48, %v10703_v26  ;;  %v1177_v21 = vpop.f32.mrb[41].mxu0  ;;  %v11029_v19 = vpack.c.bf16 %v2221_v32, %v2213_v56  ;;  %4994 = vmatprep.subr.bf16.mxu1 %v9323_v30  ;;  %v2224_v47 = vmax.f32 %v1365_v44, %v1968_v42  ;;  %v1368_v3 = vpop.f32.mrb[40].mxu1  ;;  %v9327_v28 = vld [vmem:[%s13200_s3 + $0x348] ss:$16 sps:$4 sm:$0xff]  }
 0x16a   :  { %v1178_v24 = vadd.f32 %v1177_v21, %v10707_v27  ;;  %v1179_v38 = vpop.f32.mrb[42].mxu0  ;;  %v11035_v15 = vpack.c.bf16 %v2222_v20, %v2214_v22  ;;  %v1369_v29 = vadd.f32 %v1368_v3, %v10712_v10  ;;  %v1370_v1 = vpop.f32.mrb[41].mxu1  ;;  %v11044_v30 = vpack.c.bf16 %v2223_v54, %v2215_v16 }
 0x16b   :  { %v1973_v41 = vmul.f32 0.2, %v1176_v43  ;;  %v1180_v44 = vadd.f32 %v1179_v38, %v10703_v26  ;;  %v1181_v60 = vpop.f32.mrb[43].mxu0  ;;  %4223 = vmatpush1.bf16.msra.mxu0 %v9288_v35  ;;  %v1371_v56 = vadd.f32 %v1370_v1, %v10717_v12  ;;  %v1372_v32 = vpop.f32.mrb[42].mxu1  ;;  %v11051_v42 = vpack.c.bf16 %v2224_v47, %v2216_v58  ;;  %v9332_v35 = vld [vmem:[%s13200_s3 + $0x36c] ss:$16 sps:$4 sm:$0xff]  }
 0x16c   :  { %13260 = vst [vmem:[#allocation5_spill] sm:$0xff] %v11044_v30  ;;  %v1974_v22 = vmul.f32 0.2, %v1178_v24  ;;  %v1182_v20 = vadd.f32 %v1181_v60, %v10707_v27  ;;  %4224 = vmatprep.subr.bf16.mxu0 %v9299_v4  ;;  %4995 = vmatpush1.bf16.msra.mxu1 %v9321_v39  ;;  %v1975_v16 = vmul.f32 0.2, %v1369_v29  ;;  %v1373_v48 = vadd.f32 %v1372_v32, %v10712_v10  ;;  %v1374_v54 = vpop.f32.mrb[43].mxu1 }
 0x16d   :  { %v1981_v21 = vmul.f32 0.2, %v1180_v44  ;;  %4094 = vmatmul.mubr.bf16.gmra.mrb[148].mxu0 %v10853_v8  ;;  %4996 = vmatprep.subr.bf16.mxu1 %v9329_v53  ;;  %v1976_v3 = vmul.f32 0.2, %v1371_v56  ;;  %v1375_v58 = vadd.f32 %v1374_v54, %v10717_v12  ;;  %v2229_v38 = vmax.f32 %v1176_v43, %v1973_v41  ;;  %v9306_v53 = vld [vmem:[%s13200_s3 + $0x360] ss:$16 sps:$4 sm:$0xff]  }
 0x16e   :  { %v1982_v47 = vmul.f32 0.2, %v1182_v20  ;;  %4866 = vmatmul.mubr.bf16.gmra.mrb[148].mxu1 %v10853_v8  ;;  %4103 = vmatprep.mubr.bf16.mxu0 %v10909_v11  ;;  %v2231_v4 = vmax.f32 %v1369_v29, %v1975_v16  ;;  %v1983_v39 = vmul.f32 0.2, %v1373_v48  ;;  %v2230_v9 = vmax.f32 %v1178_v24, %v1974_v22  ;;  %v9317_v8 = vld [vmem:[%s13200_s3 + $0x384] ss:$16 sps:$4 sm:$0xff]  }
 0x16f   :  { %v2237_v1 = vmax.f32 %v1180_v44, %v1981_v21  ;;  %4875 = vmatprep.mubr.bf16.mxu1 %v10909_v11  ;;  %4225 = vmatpush1.bf16.msra.mxu0 %v9297_v51  ;;  %v2232_v60 = vmax.f32 %v1371_v56, %v1976_v3  ;;  %v1984_v32 = vmul.f32 0.2, %v1375_v58  ;;  %v9330_v11 = vld [vmem:[%s13200_s3 + $0x368] ss:$16 sps:$4 sm:$0xff]   ;;  %v9338_v24 = vld [vmem:[%s13200_s3 + $0x38c] ss:$16 sps:$4 sm:$0xff]  }
 0x170   :  { %v2238_v54 = vmax.f32 %v1182_v20, %v1982_v47  ;;  %v1185_v7 = vpop.f32.mrb[44].mxu0  ;;  %4226 = vmatprep.subr.bf16.mxu0 %v9308_v61  ;;  %4997 = vmatpush1.bf16.msra.mxu1 %v9327_v28  ;;  %v2239_v43 = vmax.f32 %v1373_v48, %v1983_v39  ;;  %v9315_v20 = vld [vmem:[%s13200_s3 + $0x380] ss:$16 sps:$4 sm:$0xff]  }
 0x171   :  { %v1186_v51 = vadd.f32 %v1185_v7, %v10703_v26  ;;  %v1187_v29 = vpop.f32.mrb[45].mxu0  ;;  %v11073_v41 = vpack.c.bf16 %v2237_v1, %v2229_v38  ;;  %4998 = vmatprep.subr.bf16.mxu1 %v9332_v35  ;;  %v2240_v61 = vmax.f32 %v1375_v58, %v1984_v32  ;;  %v1378_v44 = vpop.f32.mrb[44].mxu1  ;;  %v9326_v7 = vld [vmem:[%s13200_s3 + $0x3a4] ss:$16 sps:$4 sm:$0xff]  }
 0x172   :  { %v1188_v56 = vadd.f32 %v1187_v29, %v10707_v27  ;;  %v1189_v28 = vpop.f32.mrb[46].mxu0  ;;  %v11079_v22 = vpack.c.bf16 %v2238_v54, %v2230_v9  ;;  %v11088_v16 = vadd.f32 %v1378_v44, %v10712_v10  ;;  %v1380_v48 = vpop.f32.mrb[45].mxu1  ;;  %v11090_v21 = vpack.c.bf16 %v2239_v43, %v2231_v4  ;;  %v9336_v9 = vld [vmem:[%s13200_s3 + $0x388] ss:$16 sps:$4 sm:$0xff]   ;;  %v9341_v4 = vld [vmem:[%s13200_s3 + $0x3ac] ss:$16 sps:$4 sm:$0xff]  }
 0x173   :  { %v1989_v35 = vmul.f32 0.2, %v1186_v51  ;;  %v1190_v3 = vadd.f32 %v1189_v28, %v10703_v26  ;;  %v1191_v58 = vpop.f32.mrb[47].mxu0  ;;  %4227 = vmatpush1.bf16.msra.mxu0 %v9306_v53  ;;  %v1381_v47 = vadd.f32 %v1380_v48, %v10717_v12  ;;  %v1382_v39 = vpop.f32.mrb[46].mxu1  ;;  %v11097_v38 = vpack.c.bf16 %v2240_v61, %v2232_v60 }
 0x174   :  { %13261 = vst [vmem:[#allocation6_spill] sm:$0xff] %v11090_v21  ;;  %v1990_v1 = vmul.f32 0.2, %v1188_v56  ;;  %v1192_v32 = vadd.f32 %v1191_v58, %v10707_v27  ;;  %4228 = vmatprep.subr.bf16.mxu0 %v9317_v8  ;;  %4999 = vmatpush1.bf16.msra.mxu1 %v9330_v11  ;;  %v11104_v53 = vadd.f32 %v1382_v39, %v10712_v10  ;;  %v1384_v54 = vpop.f32.mrb[47].mxu1  ;;  %v11108_v60 = vmul.f32 0.2, %v11088_v16 }
 0x175   :  { %13262 = vst [vmem:[#allocation7_spill] sm:$0xff] %v11097_v38  ;;  %v1997_v43 = vmul.f32 0.2, %v1190_v3  ;;  %4104 = vmatmul.mubr.bf16.gmra.mrb[152].mxu0 %v10897_v17  ;;  %5000 = vmatprep.subr.bf16.mxu1 %v9338_v24  ;;  %v1992_v29 = vmul.f32 0.2, %v1381_v47  ;;  %v1385_v61 = vadd.f32 %v1384_v54, %v10717_v12  ;;  %v2245_v44 = vmax.f32 %v1186_v51, %v1989_v35 }
 0x176   :  { %v1998_v8 = vmul.f32 0.2, %v1192_v32  ;;  %4876 = vmatmul.mubr.bf16.gmra.mrb[152].mxu1 %v10897_v17  ;;  %4113 = vmatprep.mubr.bf16.mxu0 %v10950_v55  ;;  %v11114_v11 = vmul.f32 0.2, %v11104_v53  ;;  %v9324_v24 = vld [vmem:[%s13200_s3 + $0x3a0] ss:$16 sps:$4 sm:$0xff]   ;;  %v2246_v39 = vmax.f32 %v1188_v56, %v1990_v1 }
 0x177   :  { %v2253_v28 = vmax.f32 %v1190_v3, %v1997_v43  ;;  %4885 = vmatprep.mubr.bf16.mxu1 %v10950_v55  ;;  %4229 = vmatpush1.bf16.msra.mxu0 %v9315_v20  ;;  %v2248_v48 = vmax.f32 %v1381_v47, %v1992_v29  ;;  %v2000_v58 = vmul.f32 0.2, %v1385_v61  ;;  %v9335_v17 = vld [vmem:[%s13200_s3 + $0x3c4] ss:$16 sps:$4 sm:$0xff]   ;;  %v9339_v55 = vld [vmem:[%s13200_s3 + $0x3a8] ss:$16 sps:$4 sm:$0xff]  }
 0x178   :  { %v2254_v54 = vmax.f32 %v1192_v32, %v1998_v8  ;;  %v1195_v23 = vpop.f32.mrb[48].mxu0  ;;  %4230 = vmatprep.subr.bf16.mxu0 %v9326_v7  ;;  %5001 = vmatpush1.bf16.msra.mxu1 %v9336_v9  ;;  %v9347_v56 = vld [vmem:[%s13200_s3 + $0x3cc] ss:$16 sps:$4 sm:$0xff]   ;;  %v2247_v7 = vmax.f32 %v11088_v16, %v11108_v60  ;;  %v2255_v43 = vmax.f32 %v11104_v53, %v11114_v11 }
 0x179   :  { %v1196_v51 = vadd.f32 %v1195_v23, %v10703_v26  ;;  %v1197_v20 = vpop.f32.mrb[49].mxu0  ;;  %v11127_v35 = vpack.c.bf16 %v2253_v28, %v2245_v44  ;;  %5002 = vmatprep.subr.bf16.mxu1 %v9341_v4  ;;  %v2256_v3 = vmax.f32 %v1385_v61, %v2000_v58  ;;  %v1388_v47 = vpop.f32.mrb[48].mxu1  ;;  %v9333_v23 = vld [vmem:[%s13200_s3 + $0x3c0] ss:$16 sps:$4 sm:$0xff]   ;;  %v9345_v4 = vld [vmem:[%s13200_s3 + $0x3c8] ss:$16 sps:$4 sm:$0xff]  }
 0x17a   :  { %v1198_v9 = vadd.f32 %v1197_v20, %v10707_v27  ;;  %v1199_v1 = vpop.f32.mrb[50].mxu0  ;;  %v11135_v32 = vpack.c.bf16 %v2254_v54, %v2246_v39  ;;  %v1389_v16 = vadd.f32 %v1388_v47, %v10712_v10  ;;  %v1390_v60 = vpop.f32.mrb[49].mxu1  ;;  %v9344_v44 = vld [vmem:[%s13200_s3 + $0x3e4] ss:$16 sps:$4 sm:$0xff]   ;;  %v11166_v21 = vpack.c.bf16 %v2255_v43, %v2247_v7 }
 0x17b   :  { %v2005_v29 = vmul.f32 0.2, %v1196_v51  ;;  %v1200_v61 = vadd.f32 %v1199_v1, %v10703_v26  ;;  %v1201_v8 = vpop.f32.mrb[51].mxu0  ;;  %4231 = vmatpush1.bf16.msra.mxu0 %v9324_v24  ;;  %v1391_v28 = vadd.f32 %v1390_v60, %v10717_v12  ;;  %v1392_v58 = vpop.f32.mrb[50].mxu1  ;;  %v11151_v39 = vpack.c.bf16 %v2256_v3, %v2248_v48  ;;  %v9350_v24 = vld [vmem:[%s13200_s3 + $0x3ec] ss:$16 sps:$4 sm:$0xff]  }
 0x17c   :  { %v2006_v54 = vmul.f32 0.2, %v1198_v9  ;;  %v1202_v53 = vadd.f32 %v1201_v8, %v10707_v27  ;;  %4232 = vmatprep.subr.bf16.mxu0 %v9335_v17  ;;  %5003 = vmatpush1.bf16.msra.mxu1 %v9339_v55  ;;  %v2007_v11 = vmul.f32 0.2, %v1389_v16  ;;  %v1393_v20 = vadd.f32 %v1392_v58, %v10712_v10  ;;  %v1394_v47 = vpop.f32.mrb[51].mxu1  ;;  %13264 = vst [vmem:[#allocation9_spill] sm:$0xff] %v11166_v21 }
 0x17d   :  { %13263 = vst [vmem:[#allocation8_spill] sm:$0xff] %v11151_v39  ;;  %v2013_v1 = vmul.f32 0.2, %v1200_v61  ;;  %4114 = vmatmul.mubr.bf16.gmra.mrb[156].mxu0 %v10941_v46  ;;  %5004 = vmatprep.subr.bf16.mxu1 %v9347_v56  ;;  %v2008_v60 = vmul.f32 0.2, %v1391_v28  ;;  %v1395_v48 = vadd.f32 %v1394_v47, %v10717_v12  ;;  %v2261_v3 = vmax.f32 %v1196_v51, %v2005_v29 }
 0x17e   :  { %v2014_v6 = vmul.f32 0.2, %v1202_v53  ;;  %4886 = vmatmul.mubr.bf16.gmra.mrb[156].mxu1 %v10941_v46  ;;  %4123 = vmatprep.mubr.bf16.mxu0 %v10991_v2  ;;  %v2263_v17 = vmax.f32 %v1389_v16, %v2007_v11  ;;  %v2015_v55 = vmul.f32 0.2, %v1393_v20  ;;  %v9342_v56 = vld [vmem:[%s13200_s3 + $0x3e0] ss:$16 sps:$4 sm:$0xff]   ;;  %v2262_v51 = vmax.f32 %v1198_v9, %v2006_v54 }
 0x17f   :  { %v2269_v8 = vmax.f32 %v1200_v61, %v2013_v1  ;;  %4895 = vmatprep.mubr.bf16.mxu1 %v10991_v2  ;;  %4233 = vmatpush1.bf16.msra.mxu0 %v9333_v23  ;;  %v2264_v58 = vmax.f32 %v1391_v28, %v2008_v60  ;;  %v2016_v39 = vmul.f32 0.2, %v1395_v48  ;;  %v9348_v46 = vld [vmem:[%s13200_s3 + $0x3e8] ss:$16 sps:$4 sm:$0xff]   ;;  %v9353_v2 = vld [vmem:[%s13200_s3 + $0x404] ss:$16 sps:$4 sm:$0xff]  }
 0x180   :  { %v2270_v29 = vmax.f32 %v1202_v53, %v2014_v6  ;;  %v1205_v47 = vpop.f32.mrb[52].mxu0  ;;  %4234 = vmatprep.subr.bf16.mxu0 %v9344_v44  ;;  %5005 = vmatpush1.bf16.msra.mxu1 %v9345_v4  ;;  %v2271_v23 = vmax.f32 %v1393_v20, %v2015_v55 }
 0x181   :  { %v1206_v16 = vadd.f32 %v1205_v47, %v10703_v26  ;;  %v1207_v61 = vpop.f32.mrb[53].mxu0  ;;  %v11175_v28 = vpack.c.bf16 %v2269_v8, %v2261_v3  ;;  %5006 = vmatprep.subr.bf16.mxu1 %v9350_v24  ;;  %v2272_v7 = vmax.f32 %v1395_v48, %v2016_v39  ;;  %v1398_v6 = vpop.f32.mrb[52].mxu1 }
 0x182   :  { %v1208_v9 = vadd.f32 %v1207_v61, %v10707_v27  ;;  %v1209_v4 = vpop.f32.mrb[54].mxu0  ;;  %v11178_v43 = vpack.c.bf16 %v2270_v29, %v2262_v51  ;;  %v1399_v44 = vadd.f32 %v1398_v6, %v10712_v10  ;;  %v1400_v54 = vpop.f32.mrb[53].mxu1  ;;  %v11181_v53 = vpack.c.bf16 %v2271_v23, %v2263_v17 }
 0x183   :  { %v2021_v11 = vmul.f32 0.2, %v1206_v16  ;;  %v1210_v20 = vadd.f32 %v1209_v4, %v10703_v26  ;;  %v1211_v1 = vpop.f32.mrb[55].mxu0  ;;  %4235 = vmatpush1.bf16.msra.mxu0 %v9342_v56  ;;  %v1401_v60 = vadd.f32 %v1400_v54, %v10717_v12  ;;  %v1402_v24 = vpop.f32.mrb[54].mxu1  ;;  %v11185_v39 = vpack.c.bf16 %v2272_v7, %v2264_v58 }
 0x184   :  { %13265 = vst [vmem:[#allocation10_spill] sm:$0xff] %v11181_v53  ;;  %v2022_v48 = vmul.f32 0.2, %v1208_v9  ;;  %v1212_v3 = vadd.f32 %v1211_v1, %v10707_v27  ;;  %5007 = vmatpush1.bf16.msra.mxu1 %v9348_v46  ;;  %4397 = vmatprep.subr.bf16.mxu0 %v9353_v2  ;;  %v2023_v55 = vmul.f32 0.2, %v1399_v44  ;;  %v1403_v8 = vadd.f32 %v1402_v24, %v10712_v10  ;;  %v1404_v17 = vpop.f32.mrb[55].mxu1 }
 0x185   :  { %13266 = vst [vmem:[#allocation11_spill] sm:$0xff] %v11185_v39  ;;  %v2029_v51 = vmul.f32 0.2, %v1210_v20  ;;  %4124 = vmatmul.mubr.bf16.gmra.mrb[160].mxu0 %v10985_v62  ;;  %v2024_v29 = vmul.f32 0.2, %v1401_v60  ;;  %v1405_v56 = vadd.f32 %v1404_v17, %v10717_v12  ;;  %v2277_v2 = vmax.f32 %v1206_v16, %v2021_v11 }
 0x186   :  { %v2030_v47 = vmul.f32 0.2, %v1212_v3  ;;  %4896 = vmatmul.mubr.bf16.gmra.mrb[160].mxu1 %v10985_v62  ;;  %4133 = vmatprep.mubr.bf16.mxu0 %v11035_v15  ;;  %v2279_v58 = vmax.f32 %v1399_v44, %v2023_v55  ;;  %v2031_v23 = vmul.f32 0.2, %v1403_v8  ;;  %v9380_v46 = vld [vmem:[%s13200_s3 + $0x40c] ss:$16 sps:$4 sm:$0xff]   ;;  %v2278_v4 = vmax.f32 %v1208_v9, %v2022_v48 }
 0x187   :  { %v2285_v61 = vmax.f32 %v1210_v20, %v2029_v51  ;;  %4905 = vmatprep.mubr.bf16.mxu1 %v11035_v15  ;;  %v2280_v7 = vmax.f32 %v1401_v60, %v2024_v29  ;;  %v2032_v6 = vmul.f32 0.2, %v1405_v56  ;;  %v219_v24 = vsub.s32 4, %v10685_v5  ;;  %5169 = vmatprep.subr.bf16.mxu1 %v9380_v46 }
 0x188   :  { %v2286_v54 = vmax.f32 %v1212_v3, %v2030_v47  ;;  %v1215_v1 = vpop.f32.mrb[56].mxu0  ;;  %v2287_v62 = vmax.f32 %v1403_v8, %v2031_v23  ;;  %v223_v17 = vsub.s32 5, %v10685_v5 }
 0x189   :  { %v1216_v44 = vadd.f32 %v1215_v1, %v10703_v26  ;;  %v1217_v55 = vpop.f32.mrb[57].mxu0  ;;  %v11200_v53 = vpack.c.bf16 %v2285_v61, %v2277_v2  ;;  %v2288_v16 = vmax.f32 %v1405_v56, %v2032_v6  ;;  %v1408_v11 = vpop.f32.mrb[56].mxu1 }
 0x18a   :  { %v1218_v15 = vadd.f32 %v1217_v55, %v10707_v27  ;;  %v1219_v20 = vpop.f32.mrb[58].mxu0  ;;  %v11203_v60 = vpack.c.bf16 %v2286_v54, %v2278_v4  ;;  %v1409_v9 = vadd.f32 %v1408_v11, %v10712_v10  ;;  %v1410_v48 = vpop.f32.mrb[57].mxu1  ;;  %v11206_v3 = vpack.c.bf16 %v2287_v62, %v2279_v58  ;;  %v9797_v58 = vld [vmem:[%s13201_s2] sm:$0xff] }
 0x18b   :  { %v2037_v8 = vmul.f32 0.2, %v1216_v44  ;;  %v1220_v51 = vadd.f32 %v1219_v20, %v10703_v26  ;;  %v1221_v29 = vpop.f32.mrb[59].mxu0  ;;  %v1411_v47 = vadd.f32 %v1410_v48, %v10717_v12  ;;  %v1412_v23 = vpop.f32.mrb[58].mxu1  ;;  %v11210_v46 = vpack.c.bf16 %v2288_v16, %v2280_v7 }
 0x18c   :  { %13267 = vst [vmem:[#allocation12_spill] sm:$0xff] %v11206_v3  ;;  %v2038_v56 = vmul.f32 0.2, %v1218_v15  ;;  %v1222_v2 = vadd.f32 %v1221_v29, %v10707_v27  ;;  %v2039_v61 = vmul.f32 0.2, %v1409_v9  ;;  %v1413_v6 = vadd.f32 %v1412_v23, %v10712_v10  ;;  %v1414_v4 = vpop.f32.mrb[59].mxu1 }
 0x18d   :  { %13268 = vst [vmem:[#allocation13_spill] sm:$0xff] %v11210_v46  ;;  %v2045_v54 = vmul.f32 0.2, %v1220_v51  ;;  %4134 = vmatmul.mubr.bf16.gmra.mrb[164].mxu0 %v11029_v19  ;;  %v11218_v1 = vrot.slane %v9797_v58, %v219_v24  ;;  %v2040_v62 = vmul.f32 0.2, %v1411_v47  ;;  %v1415_v7 = vadd.f32 %v1414_v4, %v10717_v12 }
 0x18e   :  { %v2046_v55 = vmul.f32 0.2, %v1222_v2  ;;  %4906 = vmatmul.mubr.bf16.gmra.mrb[164].mxu1 %v11029_v19  ;;  %4143 = vmatprep.mubr.bf16.mxu0 %v11079_v22  ;;  %v11223_v16 = vrot.slane %v9797_v58, %v223_v17  ;;  %v2295_v11 = vmax.f32 %v1409_v9, %v2039_v61  ;;  %v2047_v20 = vmul.f32 0.2, %v1413_v6 }
 0x18f   :  { %v2293_v48 = vmax.f32 %v1216_v44, %v2037_v8  ;;  %v2301_v29 = vmax.f32 %v1220_v51, %v2045_v54  ;;  %4915 = vmatprep.mubr.bf16.mxu1 %v11079_v22  ;;  %v2296_v23 = vmax.f32 %v1411_v47, %v2040_v62  ;;  %v2048_v3 = vmul.f32 0.2, %v1415_v7 }
 0x190   :  { %v2294_v24 = vmax.f32 %v1218_v15, %v2038_v56  ;;  %v2302_v46 = vmax.f32 %v1222_v2, %v2046_v55  ;;  %v1225_v39 = vpop.f32.mrb[60].mxu0  ;;  %v2303_v21 = vmax.f32 %v1413_v6, %v2047_v20  ;;  %v227_v4 = vsub.s32 6, %v10685_v5 }
 0x191   :  { %v1226_v19 = vadd.f32 %v1225_v39, %v10703_v26  ;;  %v1227_v38 = vpop.f32.mrb[61].mxu0  ;;  %v11228_v30 = vpack.c.bf16 %v2301_v29, %v2293_v48  ;;  %v2304_v17 = vmax.f32 %v1415_v7, %v2048_v3  ;;  %v1418_v9 = vpop.f32.mrb[60].mxu1  ;;  %v231_v44 = vsub.s32 7, %v10685_v5 }
 0x192   :  { %v1228_v8 = vadd.f32 %v1227_v38, %v10707_v27  ;;  %v1229_v22 = vpop.f32.mrb[62].mxu0  ;;  %v11232_v51 = vpack.c.bf16 %v2302_v46, %v2294_v24  ;;  %v1419_v15 = vadd.f32 %v1418_v9, %v10712_v10  ;;  %v1420_v47 = vpop.f32.mrb[61].mxu1  ;;  %v11235_v56 = vpack.c.bf16 %v2303_v21, %v2295_v11 }
 0x193   :  { %v2053_v2 = vmul.f32 0.2, %v1226_v19  ;;  %v1230_v39 = vadd.f32 %v1229_v22, %v10703_v26  ;;  %v1231_v61 = vpop.f32.mrb[63].mxu0  ;;  %v1421_v6 = vadd.f32 %v1420_v47, %v10717_v12  ;;  %v1422_v3 = vpop.f32.mrb[62].mxu1  ;;  %v11239_v54 = vpack.c.bf16 %v2304_v17, %v2296_v23 }
 0x194   :  { %v2054_v62 = vmul.f32 0.2, %v1228_v8  ;;  %v1232_v38 = vadd.f32 %v1231_v61, %v10707_v27  ;;  %v2055_v7 = vmul.f32 0.2, %v1419_v15  ;;  %v1423_v46 = vadd.f32 %v1422_v3, %v10712_v10  ;;  %v1424_v55 = vpop.f32.mrb[63].mxu1 }
 0x195   :  { %v2061_v20 = vmul.f32 0.2, %v1230_v39  ;;  %4144 = vmatmul.mubr.bf16.gmra.mrb[168].mxu0 %v11073_v41  ;;  %v2056_v21 = vmul.f32 0.2, %v1421_v6  ;;  %v1425_v11 = vadd.f32 %v1424_v55, %v10717_v12  ;;  %v11245_v26 = vrot.slane %v9797_v58, %v227_v4 }
 0x196   :  { %v2062_v48 = vmul.f32 0.2, %v1232_v38  ;;  %4916 = vmatmul.mubr.bf16.gmra.mrb[168].mxu1 %v11073_v41  ;;  %4153 = vmatprep.mubr.bf16.mxu0 %v11135_v32  ;;  %v2311_v29 = vmax.f32 %v1419_v15, %v2055_v7  ;;  %v2063_v23 = vmul.f32 0.2, %v1423_v46  ;;  %v11249_v27 = vrot.slane %v9797_v58, %v231_v44 }
 0x197   :  { %v2309_v24 = vmax.f32 %v1226_v19, %v2053_v2  ;;  %v2317_v10 = vmax.f32 %v1230_v39, %v2061_v20  ;;  %4925 = vmatprep.mubr.bf16.mxu1 %v11135_v32  ;;  %v2312_v17 = vmax.f32 %v1421_v6, %v2056_v21  ;;  %v2064_v9 = vmul.f32 0.2, %v1425_v11 }
 0x198   :  { %v2310_v22 = vmax.f32 %v1228_v8, %v2054_v62  ;;  %v2318_v47 = vmax.f32 %v1232_v38, %v2062_v48  ;;  %v1461_v12 = vpop.f32.mrb[64].mxu0  ;;  %v2319_v4 = vmax.f32 %v1423_v46, %v2063_v23 }
 0x199   :  { %v1462_v61 = vadd.f32 %v1461_v12, %v11218_v1  ;;  %v1463_v3 = vpop.f32.mrb[65].mxu0  ;;  %v11253_v41 = vpack.c.bf16 %v2317_v10, %v2309_v24  ;;  %v2320_v55 = vmax.f32 %v1425_v11, %v2064_v9  ;;  %v1654_v15 = vpop.f32.mrb[64].mxu1 }
 0x19a   :  { %v1464_v58 = vadd.f32 %v1463_v3, %v11223_v16  ;;  %v1465_v44 = vpop.f32.mrb[66].mxu0  ;;  %v11256_v19 = vpack.c.bf16 %v2318_v47, %v2310_v22  ;;  %v1655_v32 = vadd.f32 %v1654_v15, %v11245_v26  ;;  %v1656_v2 = vpop.f32.mrb[65].mxu1  ;;  %v11259_v39 = vpack.c.bf16 %v2319_v4, %v2311_v29 }
 0x19b   :  { %v1817_v8 = vmul.f32 0.2, %v1462_v61  ;;  %v1466_v6 = vadd.f32 %v1465_v44, %v11218_v1  ;;  %v1467_v62 = vpop.f32.mrb[67].mxu0  ;;  %v1657_v38 = vadd.f32 %v1656_v2, %v11249_v27  ;;  %v1658_v7 = vpop.f32.mrb[66].mxu1  ;;  %v11263_v46 = vpack.c.bf16 %v2320_v55, %v2312_v17 }
 0x19c   :  { %v1818_v20 = vmul.f32 0.2, %v1464_v58  ;;  %v1468_v21 = vadd.f32 %v1467_v62, %v11223_v16  ;;  %v1819_v11 = vmul.f32 0.2, %v1655_v32  ;;  %v1659_v48 = vadd.f32 %v1658_v7, %v11245_v26  ;;  %v1660_v23 = vpop.f32.mrb[67].mxu1 }
 0x19d   :  { %v1825_v24 = vmul.f32 0.2, %v1466_v6  ;;  %4154 = vmatmul.mubr.bf16.gmra.mrb[172].mxu0 %v11127_v35  ;;  %v1820_v29 = vmul.f32 0.2, %v1657_v38  ;;  %v1661_v10 = vadd.f32 %v1660_v23, %v11249_v27  ;;  %v2073_v47 = vmax.f32 %v1462_v61, %v1817_v8 }
 0x19e   :  { %v1826_v9 = vmul.f32 0.2, %v1468_v21  ;;  %4926 = vmatmul.mubr.bf16.gmra.mrb[172].mxu1 %v11127_v35  ;;  %4163 = vmatprep.mubr.bf16.mxu0 %v11178_v43  ;;  %v2075_v17 = vmax.f32 %v1655_v32, %v1819_v11  ;;  %v1827_v22 = vmul.f32 0.2, %v1659_v48  ;;  %v2074_v55 = vmax.f32 %v1464_v58, %v1818_v20 }
 0x19f   :  { %v2081_v12 = vmax.f32 %v1466_v6, %v1825_v24  ;;  %4935 = vmatprep.mubr.bf16.mxu1 %v11178_v43  ;;  %v2076_v4 = vmax.f32 %v1657_v38, %v1820_v29  ;;  %v1828_v3 = vmul.f32 0.2, %v1661_v10 }
 0x1a0   :  { %v2082_v15 = vmax.f32 %v1468_v21, %v1826_v9  ;;  %v1471_v44 = vpop.f32.mrb[68].mxu0  ;;  %v2083_v2 = vmax.f32 %v1659_v48, %v1827_v22 }
 0x1a1   :  { %v11272_v62 = vpack.c.bf16 %v2081_v12, %v2073_v47  ;;  %v1472_v7 = vadd.f32 %v1471_v44, %v11218_v1  ;;  %v1473_v23 = vpop.f32.mrb[69].mxu0  ;;  %v2084_v35 = vmax.f32 %v1661_v10, %v1828_v3  ;;  %v1664_v5 = vpop.f32.mrb[68].mxu1 }
 0x1a2   :  { %v1474_v32 = vadd.f32 %v1473_v23, %v11223_v16  ;;  %v1475_v11 = vpop.f32.mrb[70].mxu0  ;;  %v11276_v61 = vpack.c.bf16 %v2083_v2, %v2075_v17  ;;  %v1665_v43 = vadd.f32 %v1664_v5, %v11245_v26  ;;  %v1666_v8 = vpop.f32.mrb[69].mxu1  ;;  %v11279_v6 = vpack.c.bf16 %v2082_v15, %v2074_v55 }
 0x1a3   :  { %v1833_v58 = vmul.f32 0.2, %v1472_v7  ;;  %v1476_v38 = vadd.f32 %v1475_v11, %v11218_v1  ;;  %v1477_v20 = vpop.f32.mrb[71].mxu0  ;;  %v1667_v21 = vadd.f32 %v1666_v8, %v11249_v27  ;;  %v1668_v48 = vpop.f32.mrb[70].mxu1  ;;  %v11283_v24 = vpack.c.bf16 %v2084_v35, %v2076_v4 }
 0x1a4   :  { %13269 = vst [vmem:[#allocation14_spill] sm:$0xff] %v11276_v61  ;;  %v1834_v29 = vmul.f32 0.2, %v1474_v32  ;;  %v1478_v10 = vadd.f32 %v1477_v20, %v11223_v16  ;;  %v1835_v9 = vmul.f32 0.2, %v1665_v43  ;;  %v1669_v17 = vadd.f32 %v1668_v48, %v11245_v26  ;;  %v1670_v22 = vpop.f32.mrb[71].mxu1 }
 0x1a5   :  { %13270 = vst [vmem:[#allocation15_spill] sm:$0xff] %v11283_v24  ;;  %v1841_v5 = vmul.f32 0.2, %v1476_v38  ;;  %4164 = vmatmul.mubr.bf16.gmra.mrb[176].mxu0 %v11175_v28  ;;  %v1836_v47 = vmul.f32 0.2, %v1667_v21  ;;  %v1671_v12 = vadd.f32 %v1670_v22, %v11249_v27  ;;  %v2089_v15 = vmax.f32 %v1472_v7, %v1833_v58 }
 0x1a6   :  { %v1842_v3 = vmul.f32 0.2, %v1478_v10  ;;  %4936 = vmatmul.mubr.bf16.gmra.mrb[176].mxu1 %v11175_v28  ;;  %4173 = vmatprep.mubr.bf16.mxu0 %v11203_v60  ;;  %v2091_v4 = vmax.f32 %v1665_v43, %v1835_v9  ;;  %v1843_v55 = vmul.f32 0.2, %v1669_v17  ;;  %v2090_v35 = vmax.f32 %v1474_v32, %v1834_v29 }
 0x1a7   :  { %v2097_v44 = vmax.f32 %v1476_v38, %v1841_v5  ;;  %4945 = vmatprep.mubr.bf16.mxu1 %v11203_v60  ;;  %v2092_v2 = vmax.f32 %v1667_v21, %v1836_v47  ;;  %v1844_v23 = vmul.f32 0.2, %v1671_v12 }
 0x1a8   :  { %v2098_v11 = vmax.f32 %v1478_v10, %v1842_v3  ;;  %v1481_v8 = vpop.f32.mrb[72].mxu0  ;;  %v2099_v20 = vmax.f32 %v1669_v17, %v1843_v55 }
 0x1a9   :  { %v1482_v48 = vadd.f32 %v1481_v8, %v11218_v1  ;;  %v1483_v22 = vpop.f32.mrb[73].mxu0  ;;  %v2100_v61 = vmax.f32 %v1671_v12, %v1844_v23  ;;  %v1674_v24 = vpop.f32.mrb[72].mxu1  ;;  %v11293_v28 = vpack.c.bf16 %v2097_v44, %v2089_v15 }
 0x1aa   :  { %v1484_v43 = vadd.f32 %v1483_v22, %v11223_v16  ;;  %v1485_v9 = vpop.f32.mrb[74].mxu0  ;;  %v1675_v7 = vadd.f32 %v1674_v24, %v11245_v26  ;;  %v1676_v58 = vpop.f32.mrb[73].mxu1  ;;  %v11297_v60 = vpack.c.bf16 %v2098_v11, %v2090_v35  ;;  %v11299_v38 = vpack.c.bf16 %v2099_v20, %v2091_v4 }
 0x1ab   :  { %v1849_v32 = vmul.f32 0.2, %v1482_v48  ;;  %v1486_v21 = vadd.f32 %v1485_v9, %v11218_v1  ;;  %v1487_v29 = vpop.f32.mrb[75].mxu0  ;;  %v1677_v10 = vadd.f32 %v1676_v58, %v11249_v27  ;;  %v1678_v17 = vpop.f32.mrb[74].mxu1  ;;  %v11303_v5 = vpack.c.bf16 %v2100_v61, %v2092_v2 }
 0x1ac   :  { %13271 = vst [vmem:[#allocation16_spill] sm:$0xff] %v11299_v38  ;;  %v1850_v47 = vmul.f32 0.2, %v1484_v43  ;;  %v1488_v12 = vadd.f32 %v1487_v29, %v11223_v16  ;;  %v1851_v3 = vmul.f32 0.2, %v1675_v7  ;;  %v1679_v24 = vadd.f32 %v1678_v17, %v11245_v26  ;;  %v1680_v55 = vpop.f32.mrb[75].mxu1 }
 0x1ad   :  { %13272 = vst [vmem:[#allocation17_spill] sm:$0xff] %v11303_v5  ;;  %v1857_v15 = vmul.f32 0.2, %v1486_v21  ;;  %4174 = vmatmul.mubr.bf16.gmra.mrb[180].mxu0 %v11200_v53  ;;  %v1852_v4 = vmul.f32 0.2, %v1677_v10  ;;  %v1681_v44 = vadd.f32 %v1680_v55, %v11249_v27  ;;  %v2105_v35 = vmax.f32 %v1482_v48, %v1849_v32 }
 0x1ae   :  { %v1858_v23 = vmul.f32 0.2, %v1488_v12  ;;  %4946 = vmatmul.mubr.bf16.gmra.mrb[180].mxu1 %v11200_v53  ;;  %4183 = vmatprep.mubr.bf16.mxu0 %v11232_v51  ;;  %v2107_v61 = vmax.f32 %v1675_v7, %v1851_v3  ;;  %v1859_v2 = vmul.f32 0.2, %v1679_v24  ;;  %v2106_v22 = vmax.f32 %v1484_v43, %v1850_v47 }
 0x1af   :  { %v2113_v11 = vmax.f32 %v1486_v21, %v1857_v15  ;;  %4955 = vmatprep.mubr.bf16.mxu1 %v11232_v51  ;;  %v2108_v8 = vmax.f32 %v1677_v10, %v1852_v4  ;;  %v1860_v20 = vmul.f32 0.2, %v1681_v44 }
 0x1b0   :  { %v2114_v9 = vmax.f32 %v1488_v12, %v1858_v23  ;;  %v1491_v58 = vpop.f32.mrb[76].mxu0  ;;  %v2115_v29 = vmax.f32 %v1679_v24, %v1859_v2 }
 0x1b1   :  { %v1492_v17 = vadd.f32 %v1491_v58, %v11218_v1  ;;  %v1493_v55 = vpop.f32.mrb[77].mxu0  ;;  %v2116_v38 = vmax.f32 %v1681_v44, %v1860_v20  ;;  %v1684_v5 = vpop.f32.mrb[76].mxu1  ;;  %v11313_v53 = vpack.c.bf16 %v2113_v11, %v2105_v35 }
 0x1b2   :  { %v1494_v7 = vadd.f32 %v1493_v55, %v11223_v16  ;;  %v1495_v3 = vpop.f32.mrb[78].mxu0  ;;  %v1685_v48 = vadd.f32 %v1684_v5, %v11245_v26  ;;  %v1686_v32 = vpop.f32.mrb[77].mxu1  ;;  %v11317_v51 = vpack.c.bf16 %v2114_v9, %v2106_v22  ;;  %v11319_v21 = vpack.c.bf16 %v2115_v29, %v2107_v61 }
 0x1b3   :  { %v1865_v43 = vmul.f32 0.2, %v1492_v17  ;;  %v1496_v10 = vadd.f32 %v1495_v3, %v11218_v1  ;;  %v1497_v47 = vpop.f32.mrb[79].mxu0  ;;  %v1687_v12 = vadd.f32 %v1686_v32, %v11249_v27  ;;  %v1688_v24 = vpop.f32.mrb[78].mxu1  ;;  %v11323_v15 = vpack.c.bf16 %v2116_v38, %v2108_v8 }
 0x1b4   :  { %13273 = vst [vmem:[#allocation18_spill] sm:$0xff] %v11319_v21  ;;  %v1866_v4 = vmul.f32 0.2, %v1494_v7  ;;  %v1498_v44 = vadd.f32 %v1497_v47, %v11223_v16  ;;  %v1867_v23 = vmul.f32 0.2, %v1685_v48  ;;  %v1689_v5 = vadd.f32 %v1688_v24, %v11245_v26  ;;  %v1690_v2 = vpop.f32.mrb[79].mxu1 }
 0x1b5   :  { %13274 = vst [vmem:[#allocation19_spill] sm:$0xff] %v11323_v15  ;;  %v1873_v35 = vmul.f32 0.2, %v1496_v10  ;;  %4184 = vmatmul.mubr.bf16.gmra.mrb[184].mxu0 %v11228_v30  ;;  %v1868_v61 = vmul.f32 0.2, %v1687_v12  ;;  %v1691_v11 = vadd.f32 %v1690_v2, %v11249_v27  ;;  %v2121_v22 = vmax.f32 %v1492_v17, %v1865_v43 }
 0x1b6   :  { %v1874_v20 = vmul.f32 0.2, %v1498_v44  ;;  %4956 = vmatmul.mubr.bf16.gmra.mrb[184].mxu1 %v11228_v30  ;;  %4193 = vmatprep.mubr.bf16.mxu0 %v11256_v19  ;;  %v2123_v38 = vmax.f32 %v1685_v48, %v1867_v23  ;;  %v1875_v8 = vmul.f32 0.2, %v1689_v5  ;;  %v2122_v55 = vmax.f32 %v1494_v7, %v1866_v4 }
 0x1b7   :  { %v2129_v9 = vmax.f32 %v1496_v10, %v1873_v35  ;;  %4965 = vmatprep.mubr.bf16.mxu1 %v11256_v19  ;;  %v2124_v58 = vmax.f32 %v1687_v12, %v1868_v61  ;;  %v1876_v29 = vmul.f32 0.2, %v1691_v11 }
 0x1b8   :  { %v2130_v3 = vmax.f32 %v1498_v44, %v1874_v20  ;;  %v1501_v32 = vpop.f32.mrb[80].mxu0  ;;  %v2131_v47 = vmax.f32 %v1689_v5, %v1875_v8 }
 0x1b9   :  { %v1502_v24 = vadd.f32 %v1501_v32, %v11218_v1  ;;  %v1503_v2 = vpop.f32.mrb[81].mxu0  ;;  %v2132_v21 = vmax.f32 %v1691_v11, %v1876_v29  ;;  %v1694_v15 = vpop.f32.mrb[80].mxu1  ;;  %v11333_v30 = vpack.c.bf16 %v2129_v9, %v2121_v22 }
 0x1ba   :  { %v1504_v48 = vadd.f32 %v1503_v2, %v11223_v16  ;;  %v1505_v23 = vpop.f32.mrb[82].mxu0  ;;  %v1695_v17 = vadd.f32 %v1694_v15, %v11245_v26  ;;  %v1696_v43 = vpop.f32.mrb[81].mxu1  ;;  %v11337_v19 = vpack.c.bf16 %v2130_v3, %v2122_v55  ;;  %v11339_v10 = vpack.c.bf16 %v2131_v47, %v2123_v38 }
 0x1bb   :  { %v1881_v7 = vmul.f32 0.2, %v1502_v24  ;;  %v1506_v12 = vadd.f32 %v1505_v23, %v11218_v1  ;;  %v1507_v4 = vpop.f32.mrb[83].mxu0  ;;  %v1697_v44 = vadd.f32 %v1696_v43, %v11249_v27  ;;  %v1698_v5 = vpop.f32.mrb[82].mxu1  ;;  %v11343_v35 = vpack.c.bf16 %v2132_v21, %v2124_v58 }
 0x1bc   :  { %13275 = vst [vmem:[#allocation20_spill] sm:$0xff] %v11339_v10  ;;  %v1882_v61 = vmul.f32 0.2, %v1504_v48  ;;  %v1508_v11 = vadd.f32 %v1507_v4, %v11223_v16  ;;  %v1883_v20 = vmul.f32 0.2, %v1695_v17  ;;  %v1699_v15 = vadd.f32 %v1698_v5, %v11245_v26  ;;  %v1700_v8 = vpop.f32.mrb[83].mxu1 }
 0x1bd   :  { %13276 = vst [vmem:[#allocation21_spill] sm:$0xff] %v11343_v35  ;;  %v1889_v22 = vmul.f32 0.2, %v1506_v12  ;;  %4194 = vmatmul.mubr.bf16.gmra.mrb[188].mxu0 %v11253_v41  ;;  %v1884_v38 = vmul.f32 0.2, %v1697_v44  ;;  %v1701_v9 = vadd.f32 %v1700_v8, %v11249_v27  ;;  %v2137_v55 = vmax.f32 %v1502_v24, %v1881_v7 }
 0x1be   :  { %v1890_v29 = vmul.f32 0.2, %v1508_v11  ;;  %4966 = vmatmul.mubr.bf16.gmra.mrb[188].mxu1 %v11253_v41  ;;  %4236 = vmatprep.mubr.bf16.mxu0 %v10742_v13  ;;  %v2139_v21 = vmax.f32 %v1695_v17, %v1883_v20  ;;  %v1891_v58 = vmul.f32 0.2, %v1699_v15  ;;  %v2138_v2 = vmax.f32 %v1504_v48, %v1882_v61  ;;  %v9356_v24 = vld [vmem:[%s13200_s3 + $0x424] ss:$16 sps:$4 sm:$0xff]  }
 0x1bf   :  { %v2145_v3 = vmax.f32 %v1506_v12, %v1889_v22  ;;  %5008 = vmatprep.mubr.bf16.mxu1 %v10742_v13  ;;  %v2140_v32 = vmax.f32 %v1697_v44, %v1884_v38  ;;  %v1892_v47 = vmul.f32 0.2, %v1701_v9  ;;  %v9351_v13 = vld [vmem:[%s13200_s3 + $0x400] ss:$16 sps:$4 sm:$0xff]   ;;  %v9378_v22 = vld [vmem:[%s13200_s3 + $0x408] ss:$16 sps:$4 sm:$0xff]  }
 0x1c0   :  { %v2146_v23 = vmax.f32 %v1508_v11, %v1890_v29  ;;  %v1511_v43 = vpop.f32.mrb[84].mxu0  ;;  %v2147_v4 = vmax.f32 %v1699_v15, %v1891_v58 }
 0x1c1   :  { %v1512_v5 = vadd.f32 %v1511_v43, %v11218_v1  ;;  %v1513_v8 = vpop.f32.mrb[85].mxu0  ;;  %v2148_v10 = vmax.f32 %v1701_v9, %v1892_v47  ;;  %v1704_v35 = vpop.f32.mrb[84].mxu1  ;;  %v11353_v41 = vpack.c.bf16 %v2145_v3, %v2137_v55 }
 0x1c2   :  { %v1514_v17 = vadd.f32 %v1513_v8, %v11223_v16  ;;  %v1515_v20 = vpop.f32.mrb[86].mxu0  ;;  %v1705_v48 = vadd.f32 %v1704_v35, %v11245_v26  ;;  %v1706_v7 = vpop.f32.mrb[85].mxu1  ;;  %v11363_v12 = vpack.c.bf16 %v2146_v23, %v2138_v2  ;;  %v11365_v44 = vpack.c.bf16 %v2147_v4, %v2139_v21  ;;  %v9383_v2 = vld [vmem:[%s13200_s3 + $0x42c] ss:$16 sps:$4 sm:$0xff]  }
 0x1c3   :  { %v1897_v61 = vmul.f32 0.2, %v1512_v5  ;;  %v1516_v11 = vadd.f32 %v1515_v20, %v11218_v1  ;;  %v1517_v15 = vpop.f32.mrb[87].mxu0  ;;  %v1707_v38 = vadd.f32 %v1706_v7, %v11249_v27  ;;  %v1708_v9 = vpop.f32.mrb[86].mxu1  ;;  %v11372_v29 = vpack.c.bf16 %v2148_v10, %v2140_v32  ;;  %v9354_v7 = vld [vmem:[%s13200_s3 + $0x420] ss:$16 sps:$4 sm:$0xff]  }
 0x1c4   :  { %13277 = vst [vmem:[#allocation22_spill] sm:$0xff] %v11365_v44  ;;  %v1898_v58 = vmul.f32 0.2, %v1514_v17  ;;  %v1518_v35 = vadd.f32 %v1517_v15, %v11223_v16  ;;  %v1899_v55 = vmul.f32 0.2, %v1705_v48  ;;  %v1709_v21 = vadd.f32 %v1708_v9, %v11245_v26  ;;  %v1710_v3 = vpop.f32.mrb[87].mxu1 }
 0x1c5   :  { %13278 = vst [vmem:[#allocation23_spill] sm:$0xff] %v11372_v29  ;;  %v1905_v47 = vmul.f32 0.2, %v1516_v11  ;;  %4237 = vmatmul.mubr.bf16.vlgmr.msra.gmra.mrb[128].mxu0 %v10737_v0  ;;  %v1900_v23 = vmul.f32 0.2, %v1707_v38  ;;  %v1711_v43 = vadd.f32 %v1710_v3, %v11249_v27  ;;  %v2153_v8 = vmax.f32 %v1512_v5, %v1897_v61 }
 0x1c6   :  { %v1906_v4 = vmul.f32 0.2, %v1518_v35  ;;  %5009 = vmatmul.mubr.bf16.vlgmr.msra.gmra.mrb[128].mxu1 %v10737_v0  ;;  %4246 = vmatprep.mubr.bf16.mxu0 %v10762_v31  ;;  %v2155_v10 = vmax.f32 %v1705_v48, %v1899_v55  ;;  %v1907_v32 = vmul.f32 0.2, %v1709_v21  ;;  %v2154_v44 = vmax.f32 %v1514_v17, %v1898_v58  ;;  %v9359_v0 = vld [vmem:[%s13200_s3 + $0x444] ss:$16 sps:$4 sm:$0xff]  }
 0x1c7   :  { %v2161_v20 = vmax.f32 %v1516_v11, %v1905_v47  ;;  %4398 = vmatpush1.bf16.msra.mxu0 %v9351_v13  ;;  %5018 = vmatprep.mubr.bf16.mxu1 %v10762_v31  ;;  %v2156_v15 = vmax.f32 %v1707_v38, %v1900_v23  ;;  %v1908_v9 = vmul.f32 0.2, %v1711_v43  ;;  %v9381_v5 = vld [vmem:[%s13200_s3 + $0x428] ss:$16 sps:$4 sm:$0xff]   ;;  %v9389_v17 = vld [vmem:[%s13200_s3 + $0x44c] ss:$16 sps:$4 sm:$0xff]  }
 0x1c8   :  { %v2162_v3 = vmax.f32 %v1518_v35, %v1906_v4  ;;  %v1521_v29 = vpop.f32.mrb[88].mxu0  ;;  %4399 = vmatprep.subr.bf16.mxu0 %v9356_v24  ;;  %5170 = vmatpush1.bf16.msra.mxu1 %v9378_v22  ;;  %v2163_v31 = vmax.f32 %v1709_v21, %v1907_v32  ;;  %v9357_v58 = vld [vmem:[%s13200_s3 + $0x440] ss:$16 sps:$4 sm:$0xff]   ;;  %v9387_v4 = vld [vmem:[%s13200_s3 + $0x448] ss:$16 sps:$4 sm:$0xff]  }
 0x1c9   :  { %v11394_v13 = vadd.f32 %v1521_v29, %v11218_v1  ;;  %v1523_v48 = vpop.f32.mrb[89].mxu0  ;;  %5171 = vmatprep.subr.bf16.mxu1 %v9383_v2  ;;  %v2164_v24 = vmax.f32 %v1711_v43, %v1908_v9  ;;  %v1714_v61 = vpop.f32.mrb[88].mxu1  ;;  %v11399_v11 = vpack.c.bf16 %v2161_v20, %v2153_v8  ;;  %v9362_v29 = vld [vmem:[%s13200_s3 + $0x464] ss:$16 sps:$4 sm:$0xff]  }
 0x1ca   :  { %v11402_v22 = vadd.f32 %v1523_v48, %v11223_v16  ;;  %v1525_v38 = vpop.f32.mrb[90].mxu0  ;;  %v1715_v35 = vadd.f32 %v1714_v61, %v11245_v26  ;;  %v1716_v55 = vpop.f32.mrb[89].mxu1  ;;  %v11411_v21 = vpack.c.bf16 %v2162_v3, %v2154_v44  ;;  %v11413_v47 = vpack.c.bf16 %v2163_v31, %v2155_v10  ;;  %v9392_v48 = vld [vmem:[%s13200_s3 + $0x46c] ss:$16 sps:$4 sm:$0xff]  }
 0x1cb   :  { %v1913_v2 = vmul.f32 0.2, %v11394_v13  ;;  %v1526_v23 = vadd.f32 %v1525_v38, %v11218_v1  ;;  %v1527_v43 = vpop.f32.mrb[91].mxu0  ;;  %4400 = vmatpush1.bf16.msra.mxu0 %v9354_v7  ;;  %v1717_v32 = vadd.f32 %v1716_v55, %v11249_v27  ;;  %v1718_v8 = vpop.f32.mrb[90].mxu1  ;;  %v11421_v20 = vpack.c.bf16 %v2164_v24, %v2156_v15 }
 0x1cc   :  { %13279 = vst [vmem:[#allocation24_spill] sm:$0xff] %v11413_v47  ;;  %v1914_v44 = vmul.f32 0.2, %v11402_v22  ;;  %v1528_v10 = vadd.f32 %v1527_v43, %v11223_v16  ;;  %4401 = vmatprep.subr.bf16.mxu0 %v9359_v0  ;;  %5172 = vmatpush1.bf16.msra.mxu1 %v9381_v5  ;;  %v1915_v9 = vmul.f32 0.2, %v1715_v35  ;;  %v1719_v3 = vadd.f32 %v1718_v8, %v11245_v26  ;;  %v1720_v31 = vpop.f32.mrb[91].mxu1 }
 0x1cd   :  { %13280 = vst [vmem:[#allocation25_spill] sm:$0xff] %v11421_v20  ;;  %v1921_v7 = vmul.f32 0.2, %v1526_v23  ;;  %4247 = vmatmul.mubr.bf16.gmra.mrb[132].mxu0 %v10758_v33  ;;  %5173 = vmatprep.subr.bf16.mxu1 %v9389_v17  ;;  %v1916_v15 = vmul.f32 0.2, %v1717_v32  ;;  %v1721_v24 = vadd.f32 %v1720_v31, %v11249_v27  ;;  %v2169_v38 = vmax.f32 %v11394_v13, %v1913_v2 }
 0x1ce   :  { %v1922_v61 = vmul.f32 0.2, %v1528_v10  ;;  %5019 = vmatmul.mubr.bf16.gmra.mrb[132].mxu1 %v10758_v33  ;;  %4256 = vmatprep.mubr.bf16.mxu0 %v10782_v50  ;;  %v2171_v0 = vmax.f32 %v1715_v35, %v1915_v9  ;;  %v1923_v5 = vmul.f32 0.2, %v1719_v3  ;;  %v9360_v17 = vld [vmem:[%s13200_s3 + $0x460] ss:$16 sps:$4 sm:$0xff]   ;;  %v2170_v31 = vmax.f32 %v11402_v22, %v1914_v44 }
 0x1cf   :  { %v2177_v55 = vmax.f32 %v1526_v23, %v1921_v7  ;;  %5028 = vmatprep.mubr.bf16.mxu1 %v10782_v50  ;;  %4402 = vmatpush1.bf16.msra.mxu0 %v9357_v58  ;;  %v2172_v43 = vmax.f32 %v1717_v32, %v1916_v15  ;;  %v1924_v8 = vmul.f32 0.2, %v1721_v24  ;;  %v9365_v35 = vld [vmem:[%s13200_s3 + $0x484] ss:$16 sps:$4 sm:$0xff]   ;;  %v9390_v50 = vld [vmem:[%s13200_s3 + $0x468] ss:$16 sps:$4 sm:$0xff]  }
 0x1d0   :  { %v2178_v47 = vmax.f32 %v1528_v10, %v1922_v61  ;;  %v1531_v33 = vpop.f32.mrb[92].mxu0  ;;  %4403 = vmatprep.subr.bf16.mxu0 %v9362_v29  ;;  %5174 = vmatpush1.bf16.msra.mxu1 %v9387_v4  ;;  %v2179_v13 = vmax.f32 %v1719_v3, %v1923_v5  ;;  %v9398_v22 = vld [vmem:[%s13200_s3 + $0x48c] ss:$16 sps:$4 sm:$0xff]   ;;  %v9363_v10 = vld [vmem:[%s13200_s3 + $0x480] ss:$16 sps:$4 sm:$0xff]  }
 0x1d1   :  { %v11446_v58 = vadd.f32 %v1531_v33, %v11218_v1  ;;  %v1533_v2 = vpop.f32.mrb[93].mxu0  ;;  %5175 = vmatprep.subr.bf16.mxu1 %v9392_v48  ;;  %v2180_v29 = vmax.f32 %v1721_v24, %v1924_v8  ;;  %v1724_v23 = vpop.f32.mrb[92].mxu1  ;;  %v11451_v32 = vpack.c.bf16 %v2177_v55, %v2169_v38  ;;  %v9368_v9 = vld [vmem:[%s13200_s3 + $0x4a4] ss:$16 sps:$4 sm:$0xff]   ;;  %v9396_v38 = vld [vmem:[%s13200_s3 + $0x488] ss:$16 sps:$4 sm:$0xff]  }
 0x1d2   :  { %v11454_v4 = vadd.f32 %v1533_v2, %v11223_v16  ;;  %v1535_v44 = vpop.f32.mrb[94].mxu0  ;;  %v1725_v3 = vadd.f32 %v1724_v23, %v11245_v26  ;;  %v1726_v7 = vpop.f32.mrb[93].mxu1  ;;  %v11463_v48 = vpack.c.bf16 %v2178_v47, %v2170_v31  ;;  %v11465_v15 = vpack.c.bf16 %v2179_v13, %v2171_v0  ;;  %v9401_v23 = vld [vmem:[%s13200_s3 + $0x4ac] ss:$16 sps:$4 sm:$0xff]  }
 0x1d3   :  { %v1929_v24 = vmul.f32 0.2, %v11446_v58  ;;  %v1536_v61 = vadd.f32 %v1535_v44, %v11218_v1  ;;  %v1537_v5 = vpop.f32.mrb[95].mxu0  ;;  %4404 = vmatpush1.bf16.msra.mxu0 %v9360_v17  ;;  %v1727_v55 = vadd.f32 %v1726_v7, %v11249_v27  ;;  %v1728_v8 = vpop.f32.mrb[94].mxu1  ;;  %v11473_v33 = vpack.c.bf16 %v2180_v29, %v2172_v43 }
 0x1d4   :  { %13281 = vst [vmem:[#allocation26_spill] sm:$0xff] %v11465_v15  ;;  %v1930_v47 = vmul.f32 0.2, %v11454_v4  ;;  %v1538_v0 = vadd.f32 %v1537_v5, %v11223_v16  ;;  %4405 = vmatprep.subr.bf16.mxu0 %v9365_v35  ;;  %5176 = vmatpush1.bf16.msra.mxu1 %v9390_v50  ;;  %v1931_v31 = vmul.f32 0.2, %v1725_v3  ;;  %v1729_v13 = vadd.f32 %v1728_v8, %v11245_v26  ;;  %v1730_v2 = vpop.f32.mrb[95].mxu1 }
 0x1d5   :  { %13282 = vst [vmem:[#allocation27_spill] sm:$0xff] %v11473_v33  ;;  %v1937_v17 = vmul.f32 0.2, %v1536_v61  ;;  %4257 = vmatmul.mubr.bf16.gmra.mrb[136].mxu0 %v10778_v45  ;;  %5177 = vmatprep.subr.bf16.mxu1 %v9398_v22  ;;  %v1932_v43 = vmul.f32 0.2, %v1727_v55  ;;  %v1731_v29 = vadd.f32 %v1730_v2, %v11249_v27  ;;  %v2185_v7 = vmax.f32 %v11446_v58, %v1929_v24 }
 0x1d6   :  { %v1938_v44 = vmul.f32 0.2, %v1538_v0  ;;  %5029 = vmatmul.mubr.bf16.gmra.mrb[136].mxu1 %v10778_v45  ;;  %4266 = vmatprep.mubr.bf16.mxu0 %v10802_v37  ;;  %v2187_v35 = vmax.f32 %v1725_v3, %v1931_v31  ;;  %v1939_v50 = vmul.f32 0.2, %v1729_v13  ;;  %v9366_v22 = vld [vmem:[%s13200_s3 + $0x4a0] ss:$16 sps:$4 sm:$0xff]   ;;  %v2186_v2 = vmax.f32 %v11454_v4, %v1930_v47 }
 0x1d7   :  { %v2193_v5 = vmax.f32 %v1536_v61, %v1937_v17  ;;  %5038 = vmatprep.mubr.bf16.mxu1 %v10802_v37  ;;  %4406 = vmatpush1.bf16.msra.mxu0 %v9363_v10  ;;  %v2188_v8 = vmax.f32 %v1727_v55, %v1932_v43  ;;  %v1940_v15 = vmul.f32 0.2, %v1731_v29  ;;  %v9371_v3 = vld [vmem:[%s13200_s3 + $0x4c4] ss:$16 sps:$4 sm:$0xff]   ;;  %v9399_v37 = vld [vmem:[%s13200_s3 + $0x4a8] ss:$16 sps:$4 sm:$0xff]  }
 0x1d8   :  { %v2194_v33 = vmax.f32 %v1538_v0, %v1938_v44  ;;  %v1541_v45 = vpop.f32.mrb[96].mxu0  ;;  %4407 = vmatprep.subr.bf16.mxu0 %v9368_v9  ;;  %5178 = vmatpush1.bf16.msra.mxu1 %v9396_v38  ;;  %v2195_v58 = vmax.f32 %v1729_v13, %v1939_v50  ;;  %v9407_v4 = vld [vmem:[%s13200_s3 + $0x4cc] ss:$16 sps:$4 sm:$0xff]   ;;  %v9369_v0 = vld [vmem:[%s13200_s3 + $0x4c0] ss:$16 sps:$4 sm:$0xff]  }
 0x1d9   :  { %v11498_v10 = vadd.f32 %v1541_v45, %v11218_v1  ;;  %v1543_v24 = vpop.f32.mrb[97].mxu0  ;;  %5179 = vmatprep.subr.bf16.mxu1 %v9401_v23  ;;  %v2196_v9 = vmax.f32 %v1731_v29, %v1940_v15  ;;  %v1734_v61 = vpop.f32.mrb[96].mxu1  ;;  %v11503_v55 = vpack.c.bf16 %v2193_v5, %v2185_v7  ;;  %v9374_v31 = vld [vmem:[%s13200_s3 + $0x4e4] ss:$16 sps:$4 sm:$0xff]   ;;  %v9405_v50 = vld [vmem:[%s13200_s3 + $0x4c8] ss:$16 sps:$4 sm:$0xff]  }
 0x1da   :  { %v11506_v38 = vadd.f32 %v1543_v24, %v11223_v16  ;;  %v1545_v47 = vpop.f32.mrb[98].mxu0  ;;  %v1735_v13 = vadd.f32 %v1734_v61, %v11245_v26  ;;  %v1736_v17 = vpop.f32.mrb[97].mxu1  ;;  %v11515_v23 = vpack.c.bf16 %v2194_v33, %v2186_v2  ;;  %v11517_v15 = vpack.c.bf16 %v2195_v58, %v2187_v35  ;;  %v9410_v61 = vld [vmem:[%s13200_s3 + $0x4ec] ss:$16 sps:$4 sm:$0xff]  }
 0x1db   :  { %v1945_v43 = vmul.f32 0.2, %v11498_v10  ;;  %v1546_v29 = vadd.f32 %v1545_v47, %v11218_v1  ;;  %v1547_v44 = vpop.f32.mrb[99].mxu0  ;;  %4408 = vmatpush1.bf16.msra.mxu0 %v9366_v22  ;;  %v1737_v7 = vadd.f32 %v1736_v17, %v11249_v27  ;;  %v1738_v5 = vpop.f32.mrb[98].mxu1  ;;  %v11525_v45 = vpack.c.bf16 %v2196_v9, %v2188_v8 }
 0x1dc   :  { %13283 = vst [vmem:[#allocation28_spill] sm:$0xff] %v11517_v15  ;;  %v1946_v33 = vmul.f32 0.2, %v11506_v38  ;;  %v1548_v35 = vadd.f32 %v1547_v44, %v11223_v16  ;;  %4409 = vmatprep.subr.bf16.mxu0 %v9371_v3  ;;  %5180 = vmatpush1.bf16.msra.mxu1 %v9399_v37  ;;  %v1947_v2 = vmul.f32 0.2, %v1735_v13  ;;  %v1739_v58 = vadd.f32 %v1738_v5, %v11245_v26  ;;  %v1740_v24 = vpop.f32.mrb[99].mxu1 }
 0x1dd   :  { %13284 = vst [vmem:[#allocation29_spill] sm:$0xff] %v11525_v45  ;;  %v1953_v22 = vmul.f32 0.2, %v1546_v29  ;;  %4267 = vmatmul.mubr.bf16.gmra.mrb[140].mxu0 %v10798_v57  ;;  %5181 = vmatprep.subr.bf16.mxu1 %v9407_v4  ;;  %v1948_v8 = vmul.f32 0.2, %v1737_v7  ;;  %v1741_v9 = vadd.f32 %v1740_v24, %v11249_v27  ;;  %v2201_v17 = vmax.f32 %v11498_v10, %v1945_v43 }
 0x1de   :  { %v1954_v47 = vmul.f32 0.2, %v1548_v35  ;;  %5039 = vmatmul.mubr.bf16.gmra.mrb[140].mxu1 %v10798_v57  ;;  %4276 = vmatprep.mubr.bf16.mxu0 %v10831_v25  ;;  %v2203_v3 = vmax.f32 %v1735_v13, %v1947_v2  ;;  %v1955_v37 = vmul.f32 0.2, %v1739_v58  ;;  %v9372_v4 = vld [vmem:[%s13200_s3 + $0x4e0] ss:$16 sps:$4 sm:$0xff]   ;;  %v2202_v24 = vmax.f32 %v11506_v38, %v1946_v33 }
 0x1df   :  { %v2209_v44 = vmax.f32 %v1546_v29, %v1953_v22  ;;  %5048 = vmatprep.mubr.bf16.mxu1 %v10831_v25  ;;  %4410 = vmatpush1.bf16.msra.mxu0 %v9369_v0  ;;  %v2204_v5 = vmax.f32 %v1737_v7, %v1948_v8  ;;  %v1956_v15 = vmul.f32 0.2, %v1741_v9  ;;  %v9377_v13 = vld [vmem:[%s13200_s3 + $0x504] ss:$16 sps:$4 sm:$0xff]   ;;  %v9408_v25 = vld [vmem:[%s13200_s3 + $0x4e8] ss:$16 sps:$4 sm:$0xff]  }
 0x1e0   :  { %v2210_v45 = vmax.f32 %v1548_v35, %v1954_v47  ;;  %v1551_v57 = vpop.f32.mrb[100].mxu0  ;;  %4411 = vmatprep.subr.bf16.mxu0 %v9374_v31  ;;  %5182 = vmatpush1.bf16.msra.mxu1 %v9405_v50  ;;  %v2211_v10 = vmax.f32 %v1739_v58, %v1955_v37  ;;  %v9416_v38 = vld [vmem:[%s13200_s3 + $0x50c] ss:$16 sps:$4 sm:$0xff]   ;;  %v9375_v35 = vld [vmem:[%s13200_s3 + $0x500] ss:$16 sps:$4 sm:$0xff]  }
 0x1e1   :  { %v11550_v0 = vadd.f32 %v1551_v57, %v11218_v1  ;;  %v1553_v43 = vpop.f32.mrb[101].mxu0  ;;  %5183 = vmatprep.subr.bf16.mxu1 %v9410_v61  ;;  %v2212_v31 = vmax.f32 %v1741_v9, %v1956_v15  ;;  %v1744_v29 = vpop.f32.mrb[100].mxu1  ;;  %v11555_v7 = vpack.c.bf16 %v2209_v44, %v2201_v17  ;;  %v9386_v2 = vld [vmem:[%s13200_s3 + $0x524] ss:$16 sps:$4 sm:$0xff]   ;;  %v9414_v37 = vld [vmem:[%s13200_s3 + $0x508] ss:$16 sps:$4 sm:$0xff]  }
 0x1e2   :  { %v11558_v50 = vadd.f32 %v1553_v43, %v11223_v16  ;;  %v1555_v33 = vpop.f32.mrb[102].mxu0  ;;  %v1745_v58 = vadd.f32 %v1744_v29, %v11245_v26  ;;  %v1746_v22 = vpop.f32.mrb[101].mxu1  ;;  %v11567_v61 = vpack.c.bf16 %v2210_v45, %v2202_v24  ;;  %v11569_v15 = vpack.c.bf16 %v2211_v10, %v2203_v3  ;;  %v9419_v29 = vld [vmem:[%s13200_s3 + $0x52c] ss:$16 sps:$4 sm:$0xff]  }
 0x1e3   :  { %v1961_v8 = vmul.f32 0.2, %v11550_v0  ;;  %v1556_v9 = vadd.f32 %v1555_v33, %v11218_v1  ;;  %v1557_v47 = vpop.f32.mrb[103].mxu0  ;;  %4412 = vmatpush1.bf16.msra.mxu0 %v9372_v4  ;;  %v1747_v17 = vadd.f32 %v1746_v22, %v11249_v27  ;;  %v1748_v44 = vpop.f32.mrb[102].mxu1  ;;  %v11577_v57 = vpack.c.bf16 %v2212_v31, %v2204_v5 }
 0x1e4   :  { %13285 = vst [vmem:[#allocation30_spill] sm:$0xff] %v11569_v15  ;;  %v1962_v45 = vmul.f32 0.2, %v11558_v50  ;;  %v1558_v3 = vadd.f32 %v1557_v47, %v11223_v16  ;;  %4413 = vmatprep.subr.bf16.mxu0 %v9377_v13  ;;  %5184 = vmatpush1.bf16.msra.mxu1 %v9408_v25  ;;  %v1963_v24 = vmul.f32 0.2, %v1745_v58  ;;  %v1749_v10 = vadd.f32 %v1748_v44, %v11245_v26  ;;  %v1750_v43 = vpop.f32.mrb[103].mxu1 }
 0x1e5   :  { %13286 = vst [vmem:[#allocation31_spill] sm:$0xff] %v11577_v57  ;;  %v1969_v4 = vmul.f32 0.2, %v1556_v9  ;;  %4277 = vmatmul.mubr.bf16.gmra.mrb[144].mxu0 %v10824_v18  ;;  %5185 = vmatprep.subr.bf16.mxu1 %v9416_v38  ;;  %v1964_v5 = vmul.f32 0.2, %v1747_v17  ;;  %v1751_v31 = vadd.f32 %v1750_v43, %v11249_v27  ;;  %v2217_v22 = vmax.f32 %v11550_v0, %v1961_v8 }
 0x1e6   :  { %v1970_v33 = vmul.f32 0.2, %v1558_v3  ;;  %5049 = vmatmul.mubr.bf16.gmra.mrb[144].mxu1 %v10824_v18  ;;  %4286 = vmatprep.mubr.bf16.mxu0 %v10875_v34  ;;  %v2219_v13 = vmax.f32 %v1745_v58, %v1963_v24  ;;  %v1971_v25 = vmul.f32 0.2, %v1749_v10  ;;  %v9384_v38 = vld [vmem:[%s13200_s3 + $0x520] ss:$16 sps:$4 sm:$0xff]   ;;  %v2218_v43 = vmax.f32 %v11558_v50, %v1962_v45 }
 0x1e7   :  { %v2225_v47 = vmax.f32 %v1556_v9, %v1969_v4  ;;  %5058 = vmatprep.mubr.bf16.mxu1 %v10875_v34  ;;  %4414 = vmatpush1.bf16.msra.mxu0 %v9375_v35  ;;  %v2220_v44 = vmax.f32 %v1747_v17, %v1964_v5  ;;  %v1972_v15 = vmul.f32 0.2, %v1751_v31  ;;  %v9395_v58 = vld [vmem:[%s13200_s3 + $0x544] ss:$16 sps:$4 sm:$0xff]   ;;  %v9417_v34 = vld [vmem:[%s13200_s3 + $0x528] ss:$16 sps:$4 sm:$0xff]  }
 0x1e8   :  { %v2226_v57 = vmax.f32 %v1558_v3, %v1970_v33  ;;  %v1561_v18 = vpop.f32.mrb[104].mxu0  ;;  %4415 = vmatprep.subr.bf16.mxu0 %v9386_v2  ;;  %5186 = vmatpush1.bf16.msra.mxu1 %v9414_v37  ;;  %v2227_v0 = vmax.f32 %v1749_v10, %v1971_v25  ;;  %v9425_v50 = vld [vmem:[%s13200_s3 + $0x54c] ss:$16 sps:$4 sm:$0xff]   ;;  %v9393_v3 = vld [vmem:[%s13200_s3 + $0x540] ss:$16 sps:$4 sm:$0xff]  }
 0x1e9   :  { %v11602_v35 = vadd.f32 %v1561_v18, %v11218_v1  ;;  %v1563_v8 = vpop.f32.mrb[105].mxu0  ;;  %5187 = vmatprep.subr.bf16.mxu1 %v9419_v29  ;;  %v2228_v2 = vmax.f32 %v1751_v31, %v1972_v15  ;;  %v1754_v9 = vpop.f32.mrb[104].mxu1  ;;  %v11607_v17 = vpack.c.bf16 %v2225_v47, %v2217_v22  ;;  %v9404_v24 = vld [vmem:[%s13200_s3 + $0x564] ss:$16 sps:$4 sm:$0xff]   ;;  %v9423_v25 = vld [vmem:[%s13200_s3 + $0x548] ss:$16 sps:$4 sm:$0xff]  }
 0x1ea   :  { %v11610_v37 = vadd.f32 %v1563_v8, %v11223_v16  ;;  %v1565_v45 = vpop.f32.mrb[106].mxu0  ;;  %v1755_v10 = vadd.f32 %v1754_v9, %v11245_v26  ;;  %v1756_v4 = vpop.f32.mrb[105].mxu1  ;;  %v11619_v29 = vpack.c.bf16 %v2226_v57, %v2218_v43  ;;  %v11621_v15 = vpack.c.bf16 %v2227_v0, %v2219_v13  ;;  %v9428_v9 = vld [vmem:[%s13200_s3 + $0x56c] ss:$16 sps:$4 sm:$0xff]  }
 0x1eb   :  { %v1977_v5 = vmul.f32 0.2, %v11602_v35  ;;  %v1566_v31 = vadd.f32 %v1565_v45, %v11218_v1  ;;  %v1567_v33 = vpop.f32.mrb[107].mxu0  ;;  %4416 = vmatpush1.bf16.msra.mxu0 %v9384_v38  ;;  %v1757_v22 = vadd.f32 %v1756_v4, %v11249_v27  ;;  %v1758_v47 = vpop.f32.mrb[106].mxu1  ;;  %v11629_v18 = vpack.c.bf16 %v2228_v2, %v2220_v44 }
 0x1ec   :  { %13287 = vst [vmem:[#allocation32_spill] sm:$0xff] %v11621_v15  ;;  %v1978_v57 = vmul.f32 0.2, %v11610_v37  ;;  %v1568_v13 = vadd.f32 %v1567_v33, %v11223_v16  ;;  %4417 = vmatprep.subr.bf16.mxu0 %v9395_v58  ;;  %5188 = vmatpush1.bf16.msra.mxu1 %v9417_v34  ;;  %v1979_v43 = vmul.f32 0.2, %v1755_v10  ;;  %v1759_v0 = vadd.f32 %v1758_v47, %v11245_v26  ;;  %v1760_v8 = vpop.f32.mrb[107].mxu1 }
 0x1ed   :  { %13288 = vst [vmem:[#allocation33_spill] sm:$0xff] %v11629_v18  ;;  %v1985_v38 = vmul.f32 0.2, %v1566_v31  ;;  %4287 = vmatmul.mubr.bf16.gmra.mrb[148].mxu0 %v10868_v36  ;;  %5189 = vmatprep.subr.bf16.mxu1 %v9425_v50  ;;  %v1980_v44 = vmul.f32 0.2, %v1757_v22  ;;  %v1761_v2 = vadd.f32 %v1760_v8, %v11249_v27  ;;  %v2233_v4 = vmax.f32 %v11602_v35, %v1977_v5 }
 0x1ee   :  { %v1986_v45 = vmul.f32 0.2, %v1568_v13  ;;  %5059 = vmatmul.mubr.bf16.gmra.mrb[148].mxu1 %v10868_v36  ;;  %4296 = vmatprep.mubr.bf16.mxu0 %v10919_v59  ;;  %v2235_v58 = vmax.f32 %v1755_v10, %v1979_v43  ;;  %v1987_v34 = vmul.f32 0.2, %v1759_v0  ;;  %v9402_v50 = vld [vmem:[%s13200_s3 + $0x560] ss:$16 sps:$4 sm:$0xff]   ;;  %v2234_v8 = vmax.f32 %v11610_v37, %v1978_v57 }
 0x1ef   :  { %v2241_v33 = vmax.f32 %v1566_v31, %v1985_v38  ;;  %5068 = vmatprep.mubr.bf16.mxu1 %v10919_v59  ;;  %4418 = vmatpush1.bf16.msra.mxu0 %v9393_v3  ;;  %v2236_v47 = vmax.f32 %v1757_v22, %v1980_v44  ;;  %v1988_v15 = vmul.f32 0.2, %v1761_v2  ;;  %v9413_v10 = vld [vmem:[%s13200_s3 + $0x584] ss:$16 sps:$4 sm:$0xff]   ;;  %v9426_v59 = vld [vmem:[%s13200_s3 + $0x568] ss:$16 sps:$4 sm:$0xff]  }
 0x1f0   :  { %v2242_v18 = vmax.f32 %v1568_v13, %v1986_v45  ;;  %v1571_v36 = vpop.f32.mrb[108].mxu0  ;;  %4419 = vmatprep.subr.bf16.mxu0 %v9404_v24  ;;  %5190 = vmatpush1.bf16.msra.mxu1 %v9423_v25  ;;  %v2243_v35 = vmax.f32 %v1759_v0, %v1987_v34  ;;  %v9434_v37 = vld [vmem:[%s13200_s3 + $0x58c] ss:$16 sps:$4 sm:$0xff]   ;;  %v9411_v13 = vld [vmem:[%s13200_s3 + $0x580] ss:$16 sps:$4 sm:$0xff]  }
 0x1f1   :  { %v11654_v3 = vadd.f32 %v1571_v36, %v11218_v1  ;;  %v1573_v5 = vpop.f32.mrb[109].mxu0  ;;  %5191 = vmatprep.subr.bf16.mxu1 %v9428_v9  ;;  %v2244_v24 = vmax.f32 %v1761_v2, %v1988_v15  ;;  %v1764_v31 = vpop.f32.mrb[108].mxu1  ;;  %v11659_v22 = vpack.c.bf16 %v2241_v33, %v2233_v4  ;;  %v9422_v43 = vld [vmem:[%s13200_s3 + $0x5a4] ss:$16 sps:$4 sm:$0xff]   ;;  %v9432_v34 = vld [vmem:[%s13200_s3 + $0x588] ss:$16 sps:$4 sm:$0xff]  }
 0x1f2   :  { %v11662_v25 = vadd.f32 %v1573_v5, %v11223_v16  ;;  %v1575_v57 = vpop.f32.mrb[110].mxu0  ;;  %v1765_v0 = vadd.f32 %v1764_v31, %v11245_v26  ;;  %v1766_v38 = vpop.f32.mrb[109].mxu1  ;;  %v11671_v9 = vpack.c.bf16 %v2242_v18, %v2234_v8  ;;  %v11673_v15 = vpack.c.bf16 %v2243_v35, %v2235_v58  ;;  %v9437_v31 = vld [vmem:[%s13200_s3 + $0x5ac] ss:$16 sps:$4 sm:$0xff]  }
 0x1f3   :  { %v1993_v44 = vmul.f32 0.2, %v11654_v3  ;;  %v1576_v2 = vadd.f32 %v1575_v57, %v11218_v1  ;;  %v1577_v45 = vpop.f32.mrb[111].mxu0  ;;  %4420 = vmatpush1.bf16.msra.mxu0 %v9402_v50  ;;  %v1767_v4 = vadd.f32 %v1766_v38, %v11249_v27  ;;  %v1768_v33 = vpop.f32.mrb[110].mxu1  ;;  %v11681_v36 = vpack.c.bf16 %v2244_v24, %v2236_v47 }
 0x1f4   :  { %13289 = vst [vmem:[#allocation34_spill] sm:$0xff] %v11673_v15  ;;  %v1994_v18 = vmul.f32 0.2, %v11662_v25  ;;  %v1578_v58 = vadd.f32 %v1577_v45, %v11223_v16  ;;  %4421 = vmatprep.subr.bf16.mxu0 %v9413_v10  ;;  %5192 = vmatpush1.bf16.msra.mxu1 %v9426_v59  ;;  %v1995_v8 = vmul.f32 0.2, %v1765_v0  ;;  %v1769_v35 = vadd.f32 %v1768_v33, %v11245_v26  ;;  %v1770_v5 = vpop.f32.mrb[111].mxu1 }
 0x1f5   :  { %13290 = vst [vmem:[#allocation35_spill] sm:$0xff] %v11681_v36  ;;  %v2001_v50 = vmul.f32 0.2, %v1576_v2  ;;  %4297 = vmatmul.mubr.bf16.gmra.mrb[152].mxu0 %v10912_v49  ;;  %5193 = vmatprep.subr.bf16.mxu1 %v9434_v37  ;;  %v1996_v47 = vmul.f32 0.2, %v1767_v4  ;;  %v1771_v24 = vadd.f32 %v1770_v5, %v11249_v27  ;;  %v2249_v38 = vmax.f32 %v11654_v3, %v1993_v44 }
 0x1f6   :  { %v2002_v57 = vmul.f32 0.2, %v1578_v58  ;;  %5069 = vmatmul.mubr.bf16.gmra.mrb[152].mxu1 %v10912_v49  ;;  %4306 = vmatprep.mubr.bf16.mxu0 %v10963_v40  ;;  %v2251_v10 = vmax.f32 %v1765_v0, %v1995_v8  ;;  %v2003_v59 = vmul.f32 0.2, %v1769_v35  ;;  %v9420_v37 = vld [vmem:[%s13200_s3 + $0x5a0] ss:$16 sps:$4 sm:$0xff]   ;;  %v2250_v5 = vmax.f32 %v11662_v25, %v1994_v18 }
 0x1f7   :  { %v2257_v45 = vmax.f32 %v1576_v2, %v2001_v50  ;;  %5078 = vmatprep.mubr.bf16.mxu1 %v10963_v40  ;;  %4422 = vmatpush1.bf16.msra.mxu0 %v9411_v13  ;;  %v2252_v33 = vmax.f32 %v1767_v4, %v1996_v47  ;;  %v2004_v15 = vmul.f32 0.2, %v1771_v24  ;;  %v9431_v0 = vld [vmem:[%s13200_s3 + $0x5c4] ss:$16 sps:$4 sm:$0xff]   ;;  %v9435_v40 = vld [vmem:[%s13200_s3 + $0x5a8] ss:$16 sps:$4 sm:$0xff]  }
 0x1f8   :  { %v2258_v36 = vmax.f32 %v1578_v58, %v2002_v57  ;;  %v1581_v49 = vpop.f32.mrb[112].mxu0  ;;  %4423 = vmatprep.subr.bf16.mxu0 %v9422_v43  ;;  %5194 = vmatpush1.bf16.msra.mxu1 %v9432_v34  ;;  %v2259_v3 = vmax.f32 %v1769_v35, %v2003_v59  ;;  %v9443_v25 = vld [vmem:[%s13200_s3 + $0x5cc] ss:$16 sps:$4 sm:$0xff]   ;;  %v9429_v58 = vld [vmem:[%s13200_s3 + $0x5c0] ss:$16 sps:$4 sm:$0xff]  }
 0x1f9   :  { %v1582_v13 = vadd.f32 %v1581_v49, %v11218_v1  ;;  %v1583_v44 = vpop.f32.mrb[113].mxu0  ;;  %5195 = vmatprep.subr.bf16.mxu1 %v9437_v31  ;;  %v2260_v2 = vmax.f32 %v1771_v24, %v2004_v15  ;;  %v1774_v43 = vpop.f32.mrb[112].mxu1  ;;  %v11709_v4 = vpack.c.bf16 %v2257_v45, %v2249_v38  ;;  %v9440_v8 = vld [vmem:[%s13200_s3 + $0x5e4] ss:$16 sps:$4 sm:$0xff]   ;;  %v9441_v59 = vld [vmem:[%s13200_s3 + $0x5c8] ss:$16 sps:$4 sm:$0xff]  }
 0x1fa   :  { %v1584_v18 = vadd.f32 %v1583_v44, %v11223_v16  ;;  %v1585_v34 = vpop.f32.mrb[114].mxu0  ;;  %v1775_v35 = vadd.f32 %v1774_v43, %v11245_v26  ;;  %v1776_v50 = vpop.f32.mrb[113].mxu1  ;;  %v11719_v31 = vpack.c.bf16 %v2258_v36, %v2250_v5  ;;  %v11721_v15 = vpack.c.bf16 %v2259_v3, %v2251_v10 }
 0x1fb   :  { %v2009_v47 = vmul.f32 0.2, %v1582_v13  ;;  %v1586_v24 = vadd.f32 %v1585_v34, %v11218_v1  ;;  %v1587_v57 = vpop.f32.mrb[115].mxu0  ;;  %4424 = vmatpush1.bf16.msra.mxu0 %v9420_v37  ;;  %v1777_v38 = vadd.f32 %v1776_v50, %v11249_v27  ;;  %v1778_v45 = vpop.f32.mrb[114].mxu1  ;;  %v11728_v49 = vpack.c.bf16 %v2260_v2, %v2252_v33  ;;  %v9446_v37 = vld [vmem:[%s13200_s3 + $0x5ec] ss:$16 sps:$4 sm:$0xff]  }
 0x1fc   :  { %13291 = vst [vmem:[#allocation36_spill] sm:$0xff] %v11721_v15  ;;  %v2010_v44 = vmul.f32 0.2, %v1584_v18  ;;  %v1588_v36 = vadd.f32 %v1587_v57, %v11223_v16  ;;  %4425 = vmatprep.subr.bf16.mxu0 %v9431_v0  ;;  %5196 = vmatpush1.bf16.msra.mxu1 %v9435_v40  ;;  %v2011_v10 = vmul.f32 0.2, %v1775_v35  ;;  %v1779_v5 = vadd.f32 %v1778_v45, %v11245_v26  ;;  %v1780_v3 = vpop.f32.mrb[115].mxu1 }
 0x1fd   :  { %13292 = vst [vmem:[#allocation37_spill] sm:$0xff] %v11728_v49  ;;  %v2017_v43 = vmul.f32 0.2, %v1586_v24  ;;  %4307 = vmatmul.mubr.bf16.gmra.mrb[156].mxu0 %v10956_v52  ;;  %5197 = vmatprep.subr.bf16.mxu1 %v9443_v25  ;;  %v2012_v34 = vmul.f32 0.2, %v1777_v38  ;;  %v1781_v33 = vadd.f32 %v1780_v3, %v11249_v27  ;;  %v2265_v50 = vmax.f32 %v1582_v13, %v2009_v47 }
 0x1fe   :  { %v2018_v2 = vmul.f32 0.2, %v1588_v36  ;;  %5079 = vmatmul.mubr.bf16.gmra.mrb[156].mxu1 %v10956_v52  ;;  %4316 = vmatprep.mubr.bf16.mxu0 %v11007_v63  ;;  %v2267_v0 = vmax.f32 %v1775_v35, %v2011_v10  ;;  %v2019_v40 = vmul.f32 0.2, %v1779_v5  ;;  %v9438_v25 = vld [vmem:[%s13200_s3 + $0x5e0] ss:$16 sps:$4 sm:$0xff]   ;;  %v2266_v49 = vmax.f32 %v1584_v18, %v2010_v44 }
 0x1ff   :  { %v2273_v57 = vmax.f32 %v1586_v24, %v2017_v43  ;;  %5088 = vmatprep.mubr.bf16.mxu1 %v11007_v63  ;;  %4426 = vmatpush1.bf16.msra.mxu0 %v9429_v58  ;;  %v2268_v45 = vmax.f32 %v1777_v38, %v2012_v34  ;;  %v2020_v15 = vmul.f32 0.2, %v1781_v33  ;;  %v9444_v52 = vld [vmem:[%s13200_s3 + $0x5e8] ss:$16 sps:$4 sm:$0xff]   ;;  %v9449_v63 = vld [vmem:[%s13200_s3 + $0x604] ss:$16 sps:$4 sm:$0xff]  }
 0x200   :  { %v2274_v3 = vmax.f32 %v1588_v36, %v2018_v2  ;;  %v1591_v20 = vpop.f32.mrb[116].mxu0  ;;  %4427 = vmatprep.subr.bf16.mxu0 %v9440_v8  ;;  %5198 = vmatpush1.bf16.msra.mxu1 %v9441_v59  ;;  %v2275_v13 = vmax.f32 %v1779_v5, %v2019_v40 }
 0x201   :  { %v1592_v58 = vadd.f32 %v1591_v20, %v11218_v1  ;;  %v1593_v35 = vpop.f32.mrb[117].mxu0  ;;  %5199 = vmatprep.subr.bf16.mxu1 %v9446_v37  ;;  %v2276_v47 = vmax.f32 %v1781_v33, %v2020_v15  ;;  %v1784_v24 = vpop.f32.mrb[116].mxu1  ;;  %v11750_v18 = vpack.c.bf16 %v2273_v57, %v2265_v50 }
 0x202   :  { %v1594_v8 = vadd.f32 %v1593_v35, %v11223_v16  ;;  %v1595_v59 = vpop.f32.mrb[118].mxu0  ;;  %v1785_v38 = vadd.f32 %v1784_v24, %v11245_v26  ;;  %v1786_v44 = vpop.f32.mrb[117].mxu1  ;;  %v11754_v36 = vpack.c.bf16 %v2274_v3, %v2266_v49  ;;  %v11756_v10 = vpack.c.bf16 %v2275_v13, %v2267_v0  ;;  %v9476_v24 = vld [vmem:[%s13200_s3 + $0x60c] ss:$16 sps:$4 sm:$0xff]  }
 0x203   :  { %v2025_v43 = vmul.f32 0.2, %v1592_v58  ;;  %v1596_v5 = vadd.f32 %v1595_v59, %v11218_v1  ;;  %v1597_v20 = vpop.f32.mrb[119].mxu0  ;;  %4428 = vmatpush1.bf16.msra.mxu0 %v9438_v25  ;;  %v1787_v15 = vadd.f32 %v1786_v44, %v11249_v27  ;;  %v1788_v37 = vpop.f32.mrb[118].mxu1  ;;  %v11760_v34 = vpack.c.bf16 %v2276_v47, %v2268_v45 }
 0x204   :  { %13293 = vst [vmem:[#allocation38_spill] sm:$0xff] %v11756_v10  ;;  %v2026_v33 = vmul.f32 0.2, %v1594_v8  ;;  %v1598_v2 = vadd.f32 %v1597_v20, %v11223_v16  ;;  %5200 = vmatpush1.bf16.msra.mxu1 %v9444_v52  ;;  %4590 = vmatprep.subr.bf16.mxu0 %v9449_v63  ;;  %v2027_v40 = vmul.f32 0.2, %v1785_v38  ;;  %v1789_v49 = vadd.f32 %v1788_v37, %v11245_v26  ;;  %v1790_v0 = vpop.f32.mrb[119].mxu1 }
 0x205   :  { %13294 = vst [vmem:[#allocation39_spill] sm:$0xff] %v11760_v34  ;;  %v2033_v50 = vmul.f32 0.2, %v1596_v5  ;;  %4317 = vmatmul.mubr.bf16.gmra.mrb[160].mxu0 %v11000_v14  ;;  %v2028_v57 = vmul.f32 0.2, %v1787_v15  ;;  %v1791_v25 = vadd.f32 %v1790_v0, %v11249_v27  ;;  %v2281_v35 = vmax.f32 %v1592_v58, %v2025_v43  ;;  %5362 = vmatprep.subr.bf16.mxu1 %v9476_v24 }
 0x206   :  { %v2034_v3 = vmul.f32 0.2, %v1598_v2  ;;  %5089 = vmatmul.mubr.bf16.gmra.mrb[160].mxu1 %v11000_v14  ;;  %4326 = vmatprep.mubr.bf16.mxu0 %v11051_v42  ;;  %v2283_v45 = vmax.f32 %v1785_v38, %v2027_v40  ;;  %v2035_v13 = vmul.f32 0.2, %v1789_v49  ;;  %v2282_v59 = vmax.f32 %v1594_v8, %v2026_v33 }
 0x207   :  { %v2289_v52 = vmax.f32 %v1596_v5, %v2033_v50  ;;  %5098 = vmatprep.mubr.bf16.mxu1 %v11051_v42  ;;  %v2284_v63 = vmax.f32 %v1787_v15, %v2028_v57  ;;  %v2036_v47 = vmul.f32 0.2, %v1791_v25 }
 0x208   :  { %v2290_v44 = vmax.f32 %v1598_v2, %v2034_v3  ;;  %v1601_v20 = vpop.f32.mrb[120].mxu0  ;;  %v2291_v37 = vmax.f32 %v1789_v49, %v2035_v13 }
 0x209   :  { %v1602_v14 = vadd.f32 %v1601_v20, %v11218_v1  ;;  %v1603_v0 = vpop.f32.mrb[121].mxu0  ;;  %v2292_v10 = vmax.f32 %v1791_v25, %v2036_v47  ;;  %v1794_v38 = vpop.f32.mrb[120].mxu1  ;;  %v11773_v58 = vpack.c.bf16 %v2289_v52, %v2281_v35 }
 0x20a   :  { %v1604_v42 = vadd.f32 %v1603_v0, %v11223_v16  ;;  %v1605_v43 = vpop.f32.mrb[122].mxu0  ;;  %v1795_v5 = vadd.f32 %v1794_v38, %v11245_v26  ;;  %v1796_v15 = vpop.f32.mrb[121].mxu1  ;;  %v11777_v40 = vpack.c.bf16 %v2290_v44, %v2282_v59  ;;  %v11779_v8 = vpack.c.bf16 %v2291_v37, %v2283_v45  ;;  %v13299_v59 = vld [vmem:[#allocation5_spill] sm:$0xff]  ;;  %v13300_v37 = vld [vmem:[#allocation7_spill] sm:$0xff] }
 0x20b   :  { %13295 = vst [vmem:[#allocation40_spill] sm:$0xff] %v11773_v58  ;;  %v2041_v33 = vmul.f32 0.2, %v1602_v14  ;;  %v1606_v2 = vadd.f32 %v1605_v43, %v11218_v1  ;;  %v1607_v49 = vpop.f32.mrb[123].mxu0  ;;  %v1797_v50 = vadd.f32 %v1796_v15, %v11249_v27  ;;  %v1798_v57 = vpop.f32.mrb[122].mxu1  ;;  %v11783_v25 = vpack.c.bf16 %v2292_v10, %v2284_v63 }
 0x20c   :  { %13296 = vst [vmem:[#allocation41_spill] sm:$0xff] %v11777_v40  ;;  %13297 = vst [vmem:[#allocation42_spill] sm:$0xff] %v11779_v8  ;;  %v2042_v3 = vmul.f32 0.2, %v1604_v42  ;;  %v1608_v13 = vadd.f32 %v1607_v49, %v11223_v16  ;;  %v2043_v35 = vmul.f32 0.2, %v1795_v5  ;;  %v1799_v52 = vadd.f32 %v1798_v57, %v11245_v26 }
 0x20d   :  { %13298 = vst [vmem:[#allocation43_spill] sm:$0xff] %v11783_v25  ;;  %v1800_v47 = vpop.f32.mrb[123].mxu1  ;;  %v2049_v24 = vmul.f32 0.2, %v1606_v2  ;;  %4327 = vmatmul.mubr.bf16.gmra.mrb[164].mxu0 %v13299_v59  ;;  %v2044_v45 = vmul.f32 0.2, %v1797_v50  ;;  %v2297_v0 = vmax.f32 %v1602_v14, %v2041_v33 }
 0x20e   :  { %v1801_v44 = vadd.f32 %v1800_v47, %v11249_v27  ;;  %v2050_v20 = vmul.f32 0.2, %v1608_v13  ;;  %5099 = vmatmul.mubr.bf16.gmra.mrb[164].mxu1 %v13299_v59  ;;  %4336 = vmatprep.mubr.bf16.mxu0 %v13300_v37  ;;  %v2299_v10 = vmax.f32 %v1795_v5, %v2043_v35  ;;  %v2051_v63 = vmul.f32 0.2, %v1799_v52 }
 0x20f   :  { %v2305_v38 = vmax.f32 %v1606_v2, %v2049_v24  ;;  %5108 = vmatprep.mubr.bf16.mxu1 %v13300_v37  ;;  %v2300_v43 = vmax.f32 %v1797_v50, %v2044_v45  ;;  %v2298_v49 = vmax.f32 %v1604_v42, %v2042_v3 }
 0x210   :  { %v2052_v15 = vmul.f32 0.2, %v1801_v44  ;;  %v2306_v57 = vmax.f32 %v1608_v13, %v2050_v20  ;;  %v1611_v8 = vpop.f32.mrb[124].mxu0  ;;  %v2307_v25 = vmax.f32 %v1799_v52, %v2051_v63 }
 0x211   :  { %v1612_v34 = vadd.f32 %v1611_v8, %v11218_v1  ;;  %v1613_v47 = vpop.f32.mrb[125].mxu0  ;;  %v1804_v40 = vpop.f32.mrb[124].mxu1  ;;  %v11793_v59 = vpack.c.bf16 %v2305_v38, %v2297_v0  ;;  %v13301_v0 = vld [vmem:[#allocation6_spill] sm:$0xff]  ;;  %v13302_v38 = vld [vmem:[#allocation8_spill] sm:$0xff] }
 0x212   :  { %v2308_v58 = vmax.f32 %v1801_v44, %v2052_v15  ;;  %v1614_v5 = vadd.f32 %v1613_v47, %v11223_v16  ;;  %v1615_v35 = vpop.f32.mrb[126].mxu0  ;;  %v1805_v14 = vadd.f32 %v1804_v40, %v11245_v26  ;;  %v1806_v33 = vpop.f32.mrb[125].mxu1  ;;  %v11797_v2 = vpack.c.bf16 %v2306_v57, %v2298_v49 }
 0x213   :  { %v11799_v50 = vpack.c.bf16 %v2307_v25, %v2299_v10  ;;  %v2057_v42 = vmul.f32 0.2, %v1612_v34  ;;  %v1616_v3 = vadd.f32 %v1615_v35, %v11218_v1  ;;  %v1617_v13 = vpop.f32.mrb[127].mxu0  ;;  %v1807_v8 = vadd.f32 %v1806_v33, %v11249_v27  ;;  %v1808_v52 = vpop.f32.mrb[126].mxu1 }
 0x214   :  { %v11803_v24 = vpack.c.bf16 %v2308_v58, %v2300_v43  ;;  %v2058_v45 = vmul.f32 0.2, %v1614_v5  ;;  %v1618_v44 = vadd.f32 %v1617_v13, %v11223_v16  ;;  %v2059_v20 = vmul.f32 0.2, %v1805_v14  ;;  %v1810_v37 = vpop.f32.mrb[127].mxu1 }
 0x215   :  { %v1809_v40 = vadd.f32 %v1808_v52, %v11245_v26  ;;  %v2065_v63 = vmul.f32 0.2, %v1616_v3  ;;  %4337 = vmatmul.mubr.bf16.gmra.mrb[168].mxu0 %v13301_v0  ;;  %v2060_v25 = vmul.f32 0.2, %v1807_v8  ;;  %v1811_v10 = vadd.f32 %v1810_v37, %v11249_v27 }
 0x216   :  { %v2066_v1 = vmul.f32 0.2, %v1618_v44  ;;  %5109 = vmatmul.mubr.bf16.gmra.mrb[168].mxu1 %v13301_v0  ;;  %4346 = vmatprep.mubr.bf16.mxu0 %v13302_v38  ;;  %v2315_v58 = vmax.f32 %v1805_v14, %v2059_v20  ;;  %v2313_v15 = vmax.f32 %v1612_v34, %v2057_v42  ;;  %v2314_v57 = vmax.f32 %v1614_v5, %v2058_v45  ;;  %v13303_v14 = vld [vmem:[#allocation9_spill] sm:$0xff]  ;;  %v13304_v34 = vld [vmem:[#allocation11_spill] sm:$0xff]  ;;  %v13305_v5 = vld [vmem:[#allocation10_spill] sm:$0xff] }
 0x217   :  { %v2067_v43 = vmul.f32 0.2, %v1809_v40  ;;  %v2321_v49 = vmax.f32 %v1616_v3, %v2065_v63  ;;  %5118 = vmatprep.mubr.bf16.mxu1 %v13302_v38  ;;  %v2316_v16 = vmax.f32 %v1807_v8, %v2060_v25  ;;  %v2068_v26 = vmul.f32 0.2, %v1811_v10  ;;  %v13306_v42 = vld [vmem:[#allocation13_spill] sm:$0xff]  ;;  %v13307_v3 = vld [vmem:[#allocation12_spill] sm:$0xff] }
 0x218   :  { %v2322_v47 = vmax.f32 %v1618_v44, %v2066_v1  ;;  %v9455_v8 = vld [vmem:[%s13200_s3 + $0x644] ss:$16 sps:$4 sm:$0xff]   ;;  %v9477_v45 = vld [vmem:[%s13200_s3 + $0x628] ss:$16 sps:$4 sm:$0xff]   ;;  %v9456_v63 = vld [vmem:[%s13200_s3 + $0x660] ss:$16 sps:$4 sm:$0xff]  }
 0x219   :  { %v2323_v35 = vmax.f32 %v1809_v40, %v2067_v43  ;;  %v2324_v33 = vmax.f32 %v1811_v10, %v2068_v26  ;;  %v11812_v13 = vpack.c.bf16 %v2321_v49, %v2313_v15  ;;  %v9458_v44 = vld [vmem:[%s13200_s3 + $0x664] ss:$16 sps:$4 sm:$0xff]   ;;  %v9483_v20 = vld [vmem:[%s13200_s3 + $0x648] ss:$16 sps:$4 sm:$0xff]   ;;  %v9488_v40 = vld [vmem:[%s13200_s3 + $0x66c] ss:$16 sps:$4 sm:$0xff]  }
 0x21a   :  { %v11814_v27 = vpack.c.bf16 %v2322_v47, %v2314_v57  ;;  %v9461_v0 = vld [vmem:[%s13200_s3 + $0x684] ss:$16 sps:$4 sm:$0xff]   ;;  %v9486_v25 = vld [vmem:[%s13200_s3 + $0x668] ss:$16 sps:$4 sm:$0xff]   ;;  %v9497_v38 = vld [vmem:[%s13200_s3 + $0x6ac] ss:$16 sps:$4 sm:$0xff]  }
 0x21b   :  { %v11816_v52 = vpack.c.bf16 %v2323_v35, %v2315_v58  ;;  %v11818_v37 = vpack.c.bf16 %v2324_v33, %v2316_v16  ;;  %v9464_v10 = vld [vmem:[%s13200_s3 + $0x6a4] ss:$16 sps:$4 sm:$0xff]   ;;  %v9492_v1 = vld [vmem:[%s13200_s3 + $0x688] ss:$16 sps:$4 sm:$0xff]   ;;  %v9462_v58 = vld [vmem:[%s13200_s3 + $0x6a0] ss:$16 sps:$4 sm:$0xff]  }
 0x21c   :  { %v9467_v43 = vld [vmem:[%s13200_s3 + $0x6c4] ss:$16 sps:$4 sm:$0xff]   ;;  %v9495_v15 = vld [vmem:[%s13200_s3 + $0x6a8] ss:$16 sps:$4 sm:$0xff]   ;;  %v9506_v26 = vld [vmem:[%s13200_s3 + $0x6ec] ss:$16 sps:$4 sm:$0xff]  }
 0x21d   :  { %4347 = vmatmul.mubr.bf16.gmra.mrb[172].mxu0 %v13303_v14  ;;  %v9470_v49 = vld [vmem:[%s13200_s3 + $0x6e4] ss:$16 sps:$4 sm:$0xff]   ;;  %v9501_v16 = vld [vmem:[%s13200_s3 + $0x6c8] ss:$16 sps:$4 sm:$0xff]   ;;  %v9468_v57 = vld [vmem:[%s13200_s3 + $0x6e0] ss:$16 sps:$4 sm:$0xff]  }
 0x21e   :  { %5119 = vmatmul.mubr.bf16.gmra.mrb[172].mxu1 %v13303_v14  ;;  %4356 = vmatprep.mubr.bf16.mxu0 %v13304_v34  ;;  %v9473_v47 = vld [vmem:[%s13200_s3 + $0x704] ss:$16 sps:$4 sm:$0xff]   ;;  %v9504_v35 = vld [vmem:[%s13200_s3 + $0x6e8] ss:$16 sps:$4 sm:$0xff]  }
 0x21f   :  { %5128 = vmatprep.mubr.bf16.mxu1 %v13304_v34  ;;  %v9482_v33 = vld [vmem:[%s13200_s3 + $0x724] ss:$16 sps:$4 sm:$0xff]   ;;  %v9510_v14 = vld [vmem:[%s13200_s3 + $0x708] ss:$16 sps:$4 sm:$0xff]   ;;  %v9515_v34 = vld [vmem:[%s13200_s3 + $0x72c] ss:$16 sps:$4 sm:$0xff]  }
 0x225   :  { %4357 = vmatmul.mubr.bf16.gmra.mrb[176].mxu0 %v13305_v5 }
 0x226   :  { %5129 = vmatmul.mubr.bf16.gmra.mrb[176].mxu1 %v13305_v5  ;;  %4366 = vmatprep.mubr.bf16.mxu0 %v13306_v42  ;;  %v9480_v5 = vld [vmem:[%s13200_s3 + $0x720] ss:$16 sps:$4 sm:$0xff]  }
 0x227   :  { %5138 = vmatprep.mubr.bf16.mxu1 %v13306_v42  ;;  %v9491_v42 = vld [vmem:[%s13200_s3 + $0x744] ss:$16 sps:$4 sm:$0xff]  }
 0x22d   :  { %4367 = vmatmul.mubr.bf16.gmra.mrb[180].mxu0 %v13307_v3 }
 0x22e   :  { %5139 = vmatmul.mubr.bf16.gmra.mrb[180].mxu1 %v13307_v3  ;;  %4376 = vmatprep.mubr.bf16.mxu0 %v11239_v54  ;;  %v9513_v3 = vld [vmem:[%s13200_s3 + $0x728] ss:$16 sps:$4 sm:$0xff]  }
 0x22f   :  { %5148 = vmatprep.mubr.bf16.mxu1 %v11239_v54  ;;  %v9447_v54 = vld [vmem:[%s13200_s3 + $0x600] ss:$16 sps:$4 sm:$0xff]  }
 0x235   :  { %4377 = vmatmul.mubr.bf16.gmra.mrb[184].mxu0 %v11235_v56 }
 0x236   :  { %5149 = vmatmul.mubr.bf16.gmra.mrb[184].mxu1 %v11235_v56  ;;  %4386 = vmatprep.mubr.bf16.mxu0 %v11263_v46  ;;  %v9452_v56 = vld [vmem:[%s13200_s3 + $0x624] ss:$16 sps:$4 sm:$0xff]  }
 0x237   :  { %5158 = vmatprep.mubr.bf16.mxu1 %v11263_v46  ;;  %v9474_v46 = vld [vmem:[%s13200_s3 + $0x608] ss:$16 sps:$4 sm:$0xff]  }
 0x23d   :  { %4387 = vmatmul.mubr.bf16.gmra.mrb[188].mxu0 %v11259_v39 }
 0x23e   :  { %5159 = vmatmul.mubr.bf16.gmra.mrb[188].mxu1 %v11259_v39  ;;  %4429 = vmatprep.mubr.bf16.mxu0 %v11279_v6  ;;  %v9479_v39 = vld [vmem:[%s13200_s3 + $0x62c] ss:$16 sps:$4 sm:$0xff]  }
 0x23f   :  { %5201 = vmatprep.mubr.bf16.mxu1 %v11279_v6  ;;  %v9450_v6 = vld [vmem:[%s13200_s3 + $0x620] ss:$16 sps:$4 sm:$0xff]  }
 0x245   :  { %4430 = vmatmul.mubr.bf16.vlgmr.msra.gmra.mrb[128].mxu0 %v11272_v62 }
 0x246   :  { %5202 = vmatmul.mubr.bf16.vlgmr.msra.gmra.mrb[128].mxu1 %v11272_v62  ;;  %4439 = vmatprep.mubr.bf16.mxu0 %v11297_v60  ;;  %v9485_v62 = vld [vmem:[%s13200_s3 + $0x64c] ss:$16 sps:$4 sm:$0xff]  }
 0x247   :  { %4591 = vmatpush1.bf16.msra.mxu0 %v9447_v54  ;;  %5211 = vmatprep.mubr.bf16.mxu1 %v11297_v60  ;;  %v9453_v60 = vld [vmem:[%s13200_s3 + $0x640] ss:$16 sps:$4 sm:$0xff]   ;;  %v9500_v54 = vld [vmem:[%s13200_s3 + $0x764] ss:$16 sps:$4 sm:$0xff]  }
 0x248   :  { %4592 = vmatprep.subr.bf16.mxu0 %v9452_v56  ;;  %5363 = vmatpush1.bf16.msra.mxu1 %v9474_v46  ;;  %v9519_v56 = vld [vmem:[%s13200_s3 + $0x748] ss:$16 sps:$4 sm:$0xff]   ;;  %v9524_v46 = vld [vmem:[%s13200_s3 + $0x76c] ss:$16 sps:$4 sm:$0xff]  }
 0x249   :  { %5364 = vmatprep.subr.bf16.mxu1 %v9479_v39  ;;  %v9498_v39 = vld [vmem:[%s13200_s3 + $0x760] ss:$16 sps:$4 sm:$0xff]  }
 0x24b   :  { %4593 = vmatpush1.bf16.msra.mxu0 %v9450_v6  ;;  %v9509_v6 = vld [vmem:[%s13200_s3 + $0x784] ss:$16 sps:$4 sm:$0xff]  }
 0x24c   :  { %4594 = vmatprep.subr.bf16.mxu0 %v9455_v8  ;;  %5365 = vmatpush1.bf16.msra.mxu1 %v9477_v45  ;;  %v9522_v8 = vld [vmem:[%s13200_s3 + $0x768] ss:$16 sps:$4 sm:$0xff]   ;;  %v9518_v45 = vld [vmem:[%s13200_s3 + $0x7a4] ss:$16 sps:$4 sm:$0xff]  }
 0x24d   :  { %4440 = vmatmul.mubr.bf16.gmra.mrb[132].mxu0 %v11293_v28  ;;  %5366 = vmatprep.subr.bf16.mxu1 %v9485_v62  ;;  %v9528_v62 = vld [vmem:[%s13200_s3 + $0x788] ss:$16 sps:$4 sm:$0xff]  }
 0x24e   :  { %5212 = vmatmul.mubr.bf16.gmra.mrb[132].mxu1 %v11293_v28  ;;  %4449 = vmatprep.mubr.bf16.mxu0 %v11317_v51  ;;  %v9494_v28 = vld [vmem:[%s13200_s3 + $0x68c] ss:$16 sps:$4 sm:$0xff]  }
 0x24f   :  { %5221 = vmatprep.mubr.bf16.mxu1 %v11317_v51  ;;  %4595 = vmatpush1.bf16.msra.mxu0 %v9453_v60  ;;  %v9459_v51 = vld [vmem:[%s13200_s3 + $0x680] ss:$16 sps:$4 sm:$0xff]   ;;  %v9533_v60 = vld [vmem:[%s13200_s3 + $0x7ac] ss:$16 sps:$4 sm:$0xff]  }
 0x250   :  { %4596 = vmatprep.subr.bf16.mxu0 %v9458_v44  ;;  %5367 = vmatpush1.bf16.msra.mxu1 %v9483_v20  ;;  %v9516_v44 = vld [vmem:[%s13200_s3 + $0x7a0] ss:$16 sps:$4 sm:$0xff]   ;;  %v9527_v20 = vld [vmem:[%s13200_s3 + $0x7c4] ss:$16 sps:$4 sm:$0xff]  }
 0x251   :  { %5368 = vmatprep.subr.bf16.mxu1 %v9488_v40  ;;  %v9531_v40 = vld [vmem:[%s13200_s3 + $0x7a8] ss:$16 sps:$4 sm:$0xff]  }
 0x253   :  { %4597 = vmatpush1.bf16.msra.mxu0 %v9456_v63  ;;  %v9536_v63 = vld [vmem:[%s13200_s3 + $0x7e4] ss:$16 sps:$4 sm:$0xff]  }
 0x254   :  { %4598 = vmatprep.subr.bf16.mxu0 %v9461_v0  ;;  %5369 = vmatpush1.bf16.msra.mxu1 %v9486_v25  ;;  %v9537_v0 = vld [vmem:[%s13200_s3 + $0x7c8] ss:$16 sps:$4 sm:$0xff]   ;;  %v9542_v25 = vld [vmem:[%s13200_s3 + $0x7ec] ss:$16 sps:$4 sm:$0xff]  }
 0x255   :  { %4450 = vmatmul.mubr.bf16.gmra.mrb[136].mxu0 %v11313_v53  ;;  %5370 = vmatprep.subr.bf16.mxu1 %v9494_v28  ;;  %v9534_v28 = vld [vmem:[%s13200_s3 + $0x7e0] ss:$16 sps:$4 sm:$0xff]  }
 0x256   :  { %5222 = vmatmul.mubr.bf16.gmra.mrb[136].mxu1 %v11313_v53  ;;  %4459 = vmatprep.mubr.bf16.mxu0 %v11337_v19  ;;  %v9503_v53 = vld [vmem:[%s13200_s3 + $0x6cc] ss:$16 sps:$4 sm:$0xff]  }
 0x257   :  { %5231 = vmatprep.mubr.bf16.mxu1 %v11337_v19  ;;  %4599 = vmatpush1.bf16.msra.mxu0 %v9459_v51  ;;  %v9465_v19 = vld [vmem:[%s13200_s3 + $0x6c0] ss:$16 sps:$4 sm:$0xff]   ;;  %v9540_v51 = vld [vmem:[%s13200_s3 + $0x7e8] ss:$16 sps:$4 sm:$0xff]  }
 0x258   :  { %4600 = vmatprep.subr.bf16.mxu0 %v9464_v10  ;;  %5371 = vmatpush1.bf16.msra.mxu1 %v9492_v1  ;;  %v9557_v10 = vld [vmem:[%s13202_s5 + $0x44] ss:$8 sps:$4 sm:$0xff]   ;;  %v9555_v1 = vld [vmem:[%s13202_s5 + $0x40] ss:$8 sps:$4 sm:$0xff]  }
 0x259   :  { %5372 = vmatprep.subr.bf16.mxu1 %v9497_v38  ;;  %v9560_v38 = vld [vmem:[%s13202_s5 + $0x54] ss:$8 sps:$4 sm:$0xff]  }
 0x25b   :  { %4601 = vmatpush1.bf16.msra.mxu0 %v9462_v58  ;;  %v13315_v58 = vld [vmem:[#allocation18_spill] sm:$0xff] }
 0x25c   :  { %4602 = vmatprep.subr.bf16.mxu0 %v9467_v43  ;;  %5373 = vmatpush1.bf16.msra.mxu1 %v9495_v15  ;;  %v13316_v43 = vld [vmem:[#allocation21_spill] sm:$0xff] }
 0x25d   :  { %4460 = vmatmul.mubr.bf16.gmra.mrb[140].mxu0 %v11333_v30  ;;  %5374 = vmatprep.subr.bf16.mxu1 %v9503_v53  ;;  %v9558_v15 = vld [vmem:[%s13202_s5 + $0x50] ss:$8 sps:$4 sm:$0xff]   ;;  %v9563_v53 = vld [vmem:[%s13202_s5 + $0x64] ss:$8 sps:$4 sm:$0xff]  }
 0x25e   :  { %5232 = vmatmul.mubr.bf16.gmra.mrb[140].mxu1 %v11333_v30  ;;  %4469 = vmatprep.mubr.bf16.mxu0 %v11363_v12  ;;  %v9512_v30 = vld [vmem:[%s13200_s3 + $0x70c] ss:$16 sps:$4 sm:$0xff]  }
 0x25f   :  { %5241 = vmatprep.mubr.bf16.mxu1 %v11363_v12  ;;  %4603 = vmatpush1.bf16.msra.mxu0 %v9465_v19  ;;  %v9471_v12 = vld [vmem:[%s13200_s3 + $0x700] ss:$16 sps:$4 sm:$0xff]  }
 0x260   :  { %4604 = vmatprep.subr.bf16.mxu0 %v9470_v49  ;;  %5375 = vmatpush1.bf16.msra.mxu1 %v9501_v16  ;;  %v9561_v19 = vld [vmem:[%s13202_s5 + $0x60] ss:$8 sps:$4 sm:$0xff]   ;;  %v9566_v49 = vld [vmem:[%s13202_s5 + $0x74] ss:$8 sps:$4 sm:$0xff]  }
 0x261   :  { %5376 = vmatprep.subr.bf16.mxu1 %v9506_v26  ;;  %v13317_v16 = vld [vmem:[#allocation20_spill] sm:$0xff]  ;;  %v13318_v26 = vld [vmem:[#allocation23_spill] sm:$0xff] }
 0x263   :  { %4605 = vmatpush1.bf16.msra.mxu0 %v9468_v57  ;;  %v9564_v57 = vld [vmem:[%s13202_s5 + $0x70] ss:$8 sps:$4 sm:$0xff]  }
 0x264   :  { %4606 = vmatprep.subr.bf16.mxu0 %v9473_v47  ;;  %5377 = vmatpush1.bf16.msra.mxu1 %v9504_v35  ;;  %v9569_v47 = vld [vmem:[%s13202_s5 + $0x84] ss:$8 sps:$4 sm:$0xff]   ;;  %v9567_v35 = vld [vmem:[%s13202_s5 + $0x80] ss:$8 sps:$4 sm:$0xff]  }
 0x265   :  { %4470 = vmatmul.mubr.bf16.gmra.mrb[144].mxu0 %v11353_v41  ;;  %5378 = vmatprep.subr.bf16.mxu1 %v9512_v30  ;;  %v9572_v30 = vld [vmem:[%s13202_s5 + $0x94] ss:$8 sps:$4 sm:$0xff]  }
 0x266   :  { %5242 = vmatmul.mubr.bf16.gmra.mrb[144].mxu1 %v11353_v41  ;;  %4479 = vmatprep.mubr.bf16.mxu0 %v11411_v21  ;;  %v9521_v41 = vld [vmem:[%s13200_s3 + $0x74c] ss:$16 sps:$4 sm:$0xff]  }
 0x267   :  { %5251 = vmatprep.mubr.bf16.mxu1 %v11411_v21  ;;  %4607 = vmatpush1.bf16.msra.mxu0 %v9471_v12  ;;  %v9489_v21 = vld [vmem:[%s13200_s3 + $0x740] ss:$16 sps:$4 sm:$0xff]  }
 0x268   :  { %4608 = vmatprep.subr.bf16.mxu0 %v9482_v33  ;;  %5379 = vmatpush1.bf16.msra.mxu1 %v9510_v14  ;;  %v13319_v12 = vld [vmem:[#allocation22_spill] sm:$0xff]  ;;  %v13320_v33 = vld [vmem:[#allocation25_spill] sm:$0xff] }
 0x269   :  { %5380 = vmatprep.subr.bf16.mxu1 %v9515_v34  ;;  %v9570_v14 = vld [vmem:[%s13202_s5 + $0x90] ss:$8 sps:$4 sm:$0xff]   ;;  %v9575_v34 = vld [vmem:[%s13202_s5 + $0xa4] ss:$8 sps:$4 sm:$0xff]  }
 0x26b   :  { %4609 = vmatpush1.bf16.msra.mxu0 %v9480_v5  ;;  %v9573_v5 = vld [vmem:[%s13202_s5 + $0xa0] ss:$8 sps:$4 sm:$0xff]  }
 0x26c   :  { %4610 = vmatprep.subr.bf16.mxu0 %v9491_v42  ;;  %5381 = vmatpush1.bf16.msra.mxu1 %v9513_v3  ;;  %v9578_v42 = vld [vmem:[%s13202_s5 + $0xb4] ss:$8 sps:$4 sm:$0xff]  }
 0x26d   :  { %4480 = vmatmul.mubr.bf16.gmra.mrb[148].mxu0 %v11399_v11  ;;  %5382 = vmatprep.subr.bf16.mxu1 %v9521_v41  ;;  %v13321_v3 = vld [vmem:[#allocation24_spill] sm:$0xff]  ;;  %v13322_v41 = vld [vmem:[#allocation27_spill] sm:$0xff] }
 0x26e   :  { %5252 = vmatmul.mubr.bf16.gmra.mrb[148].mxu1 %v11399_v11  ;;  %4489 = vmatprep.mubr.bf16.mxu0 %v11463_v48  ;;  %v9530_v11 = vld [vmem:[%s13200_s3 + $0x78c] ss:$16 sps:$4 sm:$0xff]  }
 0x26f   :  { %5261 = vmatprep.mubr.bf16.mxu1 %v11463_v48  ;;  %4611 = vmatpush1.bf16.msra.mxu0 %v9489_v21  ;;  %v9507_v48 = vld [vmem:[%s13200_s3 + $0x780] ss:$16 sps:$4 sm:$0xff]  }
 0x270   :  { %4612 = vmatprep.subr.bf16.mxu0 %v9500_v54  ;;  %5383 = vmatpush1.bf16.msra.mxu1 %v9519_v56  ;;  %v9576_v21 = vld [vmem:[%s13202_s5 + $0xb0] ss:$8 sps:$4 sm:$0xff]   ;;  %v9581_v54 = vld [vmem:[%s13202_s5 + $0xc4] ss:$8 sps:$4 sm:$0xff]   ;;  %v9579_v56 = vld [vmem:[%s13202_s5 + $0xc0] ss:$8 sps:$4 sm:$0xff]  }
 0x271   :  { %5384 = vmatprep.subr.bf16.mxu1 %v9524_v46  ;;  %v9584_v46 = vld [vmem:[%s13202_s5 + $0xd4] ss:$8 sps:$4 sm:$0xff]  }
 0x273   :  { %4613 = vmatpush1.bf16.msra.mxu0 %v9498_v39  ;;  %v13323_v39 = vld [vmem:[#allocation26_spill] sm:$0xff] }
 0x274   :  { %4614 = vmatprep.subr.bf16.mxu0 %v9509_v6  ;;  %5385 = vmatpush1.bf16.msra.mxu1 %v9522_v8  ;;  %v13324_v6 = vld [vmem:[#allocation29_spill] sm:$0xff] }
 0x275   :  { %4490 = vmatmul.mubr.bf16.gmra.mrb[152].mxu0 %v11451_v32  ;;  %5386 = vmatprep.subr.bf16.mxu1 %v9530_v11  ;;  %v9582_v8 = vld [vmem:[%s13202_s5 + $0xd0] ss:$8 sps:$4 sm:$0xff]   ;;  %v9587_v11 = vld [vmem:[%s13202_s5 + $0xe4] ss:$8 sps:$4 sm:$0xff]  }
 0x276   :  { %5262 = vmatmul.mubr.bf16.gmra.mrb[152].mxu1 %v11451_v32  ;;  %4499 = vmatprep.mubr.bf16.mxu0 %v11515_v23  ;;  %v9539_v32 = vld [vmem:[%s13200_s3 + $0x7cc] ss:$16 sps:$4 sm:$0xff]  }
 0x277   :  { %5271 = vmatprep.mubr.bf16.mxu1 %v11515_v23  ;;  %4615 = vmatpush1.bf16.msra.mxu0 %v9507_v48  ;;  %v9525_v23 = vld [vmem:[%s13200_s3 + $0x7c0] ss:$16 sps:$4 sm:$0xff]  }
 0x278   :  { %4616 = vmatprep.subr.bf16.mxu0 %v9518_v45  ;;  %5387 = vmatpush1.bf16.msra.mxu1 %v9528_v62  ;;  %v9585_v48 = vld [vmem:[%s13202_s5 + $0xe0] ss:$8 sps:$4 sm:$0xff]   ;;  %v13325_v45 = vld [vmem:[#allocation28_spill] sm:$0xff] }
 0x279   :  { %5388 = vmatprep.subr.bf16.mxu1 %v9533_v60  ;;  %v13326_v62 = vld [vmem:[#allocation31_spill] sm:$0xff]  ;;  %v13327_v60 = vld [vmem:[#allocation30_spill] sm:$0xff] }
 0x27b   :  { %4617 = vmatpush1.bf16.msra.mxu0 %v9516_v44  ;;  %v13328_v44 = vld [vmem:[#allocation33_spill] sm:$0xff] }
 0x27c   :  { %4618 = vmatprep.subr.bf16.mxu0 %v9527_v20  ;;  %5389 = vmatpush1.bf16.msra.mxu1 %v9531_v40  ;;  %v13329_v20 = vld [vmem:[#allocation32_spill] sm:$0xff]  ;;  %v13330_v40 = vld [vmem:[#allocation35_spill] sm:$0xff] }
 0x27d   :  { %4500 = vmatmul.mubr.bf16.gmra.mrb[156].mxu0 %v11503_v55  ;;  %5390 = vmatprep.subr.bf16.mxu1 %v9539_v32  ;;  %v13331_v32 = vld [vmem:[#allocation34_spill] sm:$0xff] }
 0x27e   :  { %5272 = vmatmul.mubr.bf16.gmra.mrb[156].mxu1 %v11503_v55  ;;  %4509 = vmatprep.mubr.bf16.mxu0 %v11567_v61  ;;  %v13308_v55 = vld [vmem:[#allocation41_spill] sm:$0xff] }
 0x27f   :  { %5281 = vmatprep.mubr.bf16.mxu1 %v11567_v61  ;;  %4619 = vmatpush1.bf16.msra.mxu0 %v9525_v23  ;;  %v13309_v61 = vld [vmem:[#allocation40_spill] sm:$0xff]  ;;  %v13332_v23 = vld [vmem:[#allocation37_spill] sm:$0xff] }
 0x280   :  { %4620 = vmatprep.subr.bf16.mxu0 %v9536_v63  ;;  %5391 = vmatpush1.bf16.msra.mxu1 %v9537_v0  ;;  %v13333_v63 = vld [vmem:[#allocation36_spill] sm:$0xff]  ;;  %v13334_v0 = vld [vmem:[#allocation39_spill] sm:$0xff] }
 0x281   :  { %5392 = vmatprep.subr.bf16.mxu1 %v9542_v25  ;;  %v9590_v25 = vld [vmem:[%s13202_s5 + $0xf4] ss:$8 sps:$4 sm:$0xff]  }
 0x283   :  { %4621 = vmatpush1.bf16.msra.mxu0 %v9534_v28  ;;  %v9588_v28 = vld [vmem:[%s13202_s5 + $0xf0] ss:$8 sps:$4 sm:$0xff]  }
 0x284   :  { %5393 = vmatpush1.bf16.msra.mxu1 %v9540_v51  ;;  %v13335_v51 = vld [vmem:[#allocation38_spill] sm:$0xff] }
 0x285   :  { %4510 = vmatmul.mubr.bf16.gmra.mrb[160].mxu0 %v11555_v7 }
 0x286   :  { %5282 = vmatmul.mubr.bf16.gmra.mrb[160].mxu1 %v11555_v7  ;;  %4519 = vmatprep.mubr.bf16.mxu0 %v11619_v29  ;;  %v9545_v7 = vld [vmem:[%s13202_s5 + $0x4] ss:$8 sps:$4 sm:$0xff]  }
 0x287   :  { %5291 = vmatprep.mubr.bf16.mxu1 %v11619_v29  ;;  %6271 = vmatprep.subr.bf16.mxu0 %v9545_v7  ;;  %v9543_v29 = vld [vmem:[%s13202_s5] ss:$8 sps:$4 sm:$0xff]  }
 0x288   :  { %8439 = vmatprep.subr.bf16.mxu1 %v9545_v7  ;;  %v9593_v7 = vld [vmem:[%s13202_s5 + $0x104] ss:$8 sps:$4 sm:$0xff]  }
 0x28d   :  { %4520 = vmatmul.mubr.bf16.gmra.mrb[164].mxu0 %v11607_v17 }
 0x28e   :  { %5292 = vmatmul.mubr.bf16.gmra.mrb[164].mxu1 %v11607_v17  ;;  %4529 = vmatprep.mubr.bf16.mxu0 %v11671_v9  ;;  %v13310_v17 = vld [vmem:[#allocation15_spill] sm:$0xff] }
 0x28f   :  { %5301 = vmatprep.mubr.bf16.mxu1 %v11671_v9  ;;  %v13311_v9 = vld [vmem:[#allocation14_spill] sm:$0xff] }
 0x295   :  { %4530 = vmatmul.mubr.bf16.gmra.mrb[168].mxu0 %v11659_v22 }
 0x296   :  { %5302 = vmatmul.mubr.bf16.gmra.mrb[168].mxu1 %v11659_v22  ;;  %4539 = vmatprep.mubr.bf16.mxu0 %v11719_v31  ;;  %v9548_v22 = vld [vmem:[%s13202_s5 + $0x14] ss:$8 sps:$4 sm:$0xff]  }
 0x297   :  { %5311 = vmatprep.mubr.bf16.mxu1 %v11719_v31  ;;  %v9546_v31 = vld [vmem:[%s13202_s5 + $0x10] ss:$8 sps:$4 sm:$0xff]  }
 0x29d   :  { %4540 = vmatmul.mubr.bf16.gmra.mrb[172].mxu0 %v11709_v4 }
 0x29e   :  { %5312 = vmatmul.mubr.bf16.gmra.mrb[172].mxu1 %v11709_v4  ;;  %4549 = vmatprep.mubr.bf16.mxu0 %v11754_v36  ;;  %v13312_v4 = vld [vmem:[#allocation17_spill] sm:$0xff] }
 0x29f   :  { %5321 = vmatprep.mubr.bf16.mxu1 %v11754_v36  ;;  %v9549_v36 = vld [vmem:[%s13202_s5 + $0x20] ss:$8 sps:$4 sm:$0xff]  }
 0x2a5   :  { %4550 = vmatmul.mubr.bf16.gmra.mrb[176].mxu0 %v11750_v18 }
 0x2a6   :  { %5322 = vmatmul.mubr.bf16.gmra.mrb[176].mxu1 %v11750_v18  ;;  %4559 = vmatprep.mubr.bf16.mxu0 %v13308_v55  ;;  %v9551_v18 = vld [vmem:[%s13202_s5 + $0x24] ss:$8 sps:$4 sm:$0xff]  }
 0x2a7   :  { %5331 = vmatprep.mubr.bf16.mxu1 %v13308_v55  ;;  %v13336_v55 = vld [vmem:[#allocation43_spill] sm:$0xff] }
 0x2ad   :  { %4560 = vmatmul.mubr.bf16.gmra.mrb[180].mxu0 %v13309_v61 }
 0x2ae   :  { %5332 = vmatmul.mubr.bf16.gmra.mrb[180].mxu1 %v13309_v61  ;;  %4569 = vmatprep.mubr.bf16.mxu0 %v11797_v2  ;;  %v13337_v61 = vld [vmem:[#allocation42_spill] sm:$0xff] }
 0x2af   :  { %5341 = vmatprep.mubr.bf16.mxu1 %v11797_v2  ;;  %v13313_v2 = vld [vmem:[#allocation16_spill] sm:$0xff] }
 0x2b5   :  { %4570 = vmatmul.mubr.bf16.gmra.mrb[184].mxu0 %v11793_v59 }
 0x2b6   :  { %5342 = vmatmul.mubr.bf16.gmra.mrb[184].mxu1 %v11793_v59  ;;  %4579 = vmatprep.mubr.bf16.mxu0 %v11814_v27  ;;  %v9554_v59 = vld [vmem:[%s13202_s5 + $0x34] ss:$8 sps:$4 sm:$0xff]  }
 0x2b7   :  { %5351 = vmatprep.mubr.bf16.mxu1 %v11814_v27  ;;  %v9552_v27 = vld [vmem:[%s13202_s5 + $0x30] ss:$8 sps:$4 sm:$0xff]  }
 0x2bd   :  { %4580 = vmatmul.mubr.bf16.gmra.mrb[188].mxu0 %v11812_v13 }
 0x2be   :  { %5352 = vmatmul.mubr.bf16.gmra.mrb[188].mxu1 %v11812_v13  ;;  %4622 = vmatprep.mubr.bf16.mxu0 %v13310_v17  ;;  %v13314_v13 = vld [vmem:[#allocation19_spill] sm:$0xff] }
 0x2bf   :  { %5394 = vmatprep.mubr.bf16.mxu1 %v13310_v17  ;;  %v2709_v17 = vld [vmem:[%s13203_s4] sm:$0xf] }
 0x2c5   :  { %4623 = vmatmul.mubr.bf16.vlgmr.msra.gmra.mrb[128].mxu0 %v13311_v9 }
 0x2c6   :  { %5395 = vmatmul.mubr.bf16.vlgmr.msra.gmra.mrb[128].mxu1 %v13311_v9  ;;  %4632 = vmatprep.mubr.bf16.mxu0 %v13312_v4 }
 0x2c7   :  { %5404 = vmatprep.mubr.bf16.mxu1 %v13312_v4  ;;  %6272 = vmatpush1.bf16.msra.mxu0 %v9543_v29 }
 0x2c8   :  { %6273 = vmatprep.subr.bf16.mxu0 %v9548_v22  ;;  %8455 = vmatpush1.bf16.msra.mxu1 %v9543_v29  ;;  %v13338_v29 = vld [vmem:[#allocation3_spill] sm:$0xff] }
 0x2c9   :  { %8440 = vmatprep.subr.bf16.mxu1 %v9548_v22  ;;  %v12255_v22 = vrot.slane %v2709_v17, %v13338_v29 }
 0x2cb   :  { %6274 = vmatpush1.bf16.msra.mxu0 %v9546_v31 }
 0x2cc   :  { %6275 = vmatprep.subr.bf16.mxu0 %v9551_v18  ;;  %8456 = vmatpush1.bf16.msra.mxu1 %v9546_v31 }
 0x2cd   :  { %4633 = vmatmul.mubr.bf16.gmra.mrb[132].mxu0 %v13313_v2  ;;  %8441 = vmatprep.subr.bf16.mxu1 %v9551_v18 }
 0x2ce   :  { %5405 = vmatmul.mubr.bf16.gmra.mrb[132].mxu1 %v13313_v2  ;;  %4642 = vmatprep.mubr.bf16.mxu0 %v13314_v13 }
 0x2cf   :  { %5414 = vmatprep.mubr.bf16.mxu1 %v13314_v13  ;;  %6276 = vmatpush1.bf16.msra.mxu0 %v9549_v36 }
 0x2d0   :  { %6277 = vmatprep.subr.bf16.mxu0 %v9554_v59  ;;  %8457 = vmatpush1.bf16.msra.mxu1 %v9549_v36 }
 0x2d1   :  { %8442 = vmatprep.subr.bf16.mxu1 %v9554_v59 }
 0x2d3   :  { %6278 = vmatpush1.bf16.msra.mxu0 %v9552_v27 }
 0x2d4   :  { %6279 = vmatprep.subr.bf16.mxu0 %v9557_v10  ;;  %8458 = vmatpush1.bf16.msra.mxu1 %v9552_v27 }
 0x2d5   :  { %4643 = vmatmul.mubr.bf16.gmra.mrb[136].mxu0 %v13315_v58  ;;  %8443 = vmatprep.subr.bf16.mxu1 %v9557_v10 }
 0x2d6   :  { %5415 = vmatmul.mubr.bf16.gmra.mrb[136].mxu1 %v13315_v58  ;;  %4652 = vmatprep.mubr.bf16.mxu0 %v13316_v43 }
 0x2d7   :  { %5424 = vmatprep.mubr.bf16.mxu1 %v13316_v43  ;;  %6280 = vmatpush1.bf16.msra.mxu0 %v9555_v1 }
 0x2d8   :  { %6281 = vmatprep.subr.bf16.mxu0 %v9560_v38  ;;  %8459 = vmatpush1.bf16.msra.mxu1 %v9555_v1 }
 0x2d9   :  { %8444 = vmatprep.subr.bf16.mxu1 %v9560_v38 }
 0x2db   :  { %6282 = vmatpush1.bf16.msra.mxu0 %v9558_v15 }
 0x2dc   :  { %6283 = vmatprep.subr.bf16.mxu0 %v9563_v53  ;;  %8460 = vmatpush1.bf16.msra.mxu1 %v9558_v15 }
 0x2dd   :  { %4653 = vmatmul.mubr.bf16.gmra.mrb[140].mxu0 %v13317_v16  ;;  %8445 = vmatprep.subr.bf16.mxu1 %v9563_v53 }
 0x2de   :  { %5425 = vmatmul.mubr.bf16.gmra.mrb[140].mxu1 %v13317_v16  ;;  %4662 = vmatprep.mubr.bf16.mxu0 %v13318_v26 }
 0x2df   :  { %5434 = vmatprep.mubr.bf16.mxu1 %v13318_v26  ;;  %6284 = vmatpush1.bf16.msra.mxu0 %v9561_v19 }
 0x2e0   :  { %6285 = vmatprep.subr.bf16.mxu0 %v9566_v49  ;;  %8461 = vmatpush1.bf16.msra.mxu1 %v9561_v19 }
 0x2e1   :  { %8446 = vmatprep.subr.bf16.mxu1 %v9566_v49 }
 0x2e3   :  { %6286 = vmatpush1.bf16.msra.mxu0 %v9564_v57 }
 0x2e4   :  { %6287 = vmatprep.subr.bf16.mxu0 %v9569_v47  ;;  %8462 = vmatpush1.bf16.msra.mxu1 %v9564_v57 }
 0x2e5   :  { %4663 = vmatmul.mubr.bf16.gmra.mrb[144].mxu0 %v13319_v12  ;;  %8447 = vmatprep.subr.bf16.mxu1 %v9569_v47 }
 0x2e6   :  { %5435 = vmatmul.mubr.bf16.gmra.mrb[144].mxu1 %v13319_v12  ;;  %4672 = vmatprep.mubr.bf16.mxu0 %v13320_v33 }
 0x2e7   :  { %5444 = vmatprep.mubr.bf16.mxu1 %v13320_v33  ;;  %6288 = vmatpush1.bf16.msra.mxu0 %v9567_v35 }
 0x2e8   :  { %6289 = vmatprep.subr.bf16.mxu0 %v9572_v30  ;;  %8463 = vmatpush1.bf16.msra.mxu1 %v9567_v35 }
 0x2e9   :  { %8448 = vmatprep.subr.bf16.mxu1 %v9572_v30 }
 0x2eb   :  { %6290 = vmatpush1.bf16.msra.mxu0 %v9570_v14 }
 0x2ec   :  { %6291 = vmatprep.subr.bf16.mxu0 %v9575_v34  ;;  %8464 = vmatpush1.bf16.msra.mxu1 %v9570_v14 }
 0x2ed   :  { %4673 = vmatmul.mubr.bf16.gmra.mrb[148].mxu0 %v13321_v3  ;;  %8449 = vmatprep.subr.bf16.mxu1 %v9575_v34 }
 0x2ee   :  { %5445 = vmatmul.mubr.bf16.gmra.mrb[148].mxu1 %v13321_v3  ;;  %4682 = vmatprep.mubr.bf16.mxu0 %v13322_v41 }
 0x2ef   :  { %5454 = vmatprep.mubr.bf16.mxu1 %v13322_v41  ;;  %6292 = vmatpush1.bf16.msra.mxu0 %v9573_v5 }
 0x2f0   :  { %6293 = vmatprep.subr.bf16.mxu0 %v9578_v42  ;;  %8465 = vmatpush1.bf16.msra.mxu1 %v9573_v5 }
 0x2f1   :  { %8450 = vmatprep.subr.bf16.mxu1 %v9578_v42 }
 0x2f3   :  { %6294 = vmatpush1.bf16.msra.mxu0 %v9576_v21 }
 0x2f4   :  { %6295 = vmatprep.subr.bf16.mxu0 %v9581_v54  ;;  %8466 = vmatpush1.bf16.msra.mxu1 %v9576_v21 }
 0x2f5   :  { %4683 = vmatmul.mubr.bf16.gmra.mrb[152].mxu0 %v13323_v39  ;;  %8451 = vmatprep.subr.bf16.mxu1 %v9581_v54 }
 0x2f6   :  { %5455 = vmatmul.mubr.bf16.gmra.mrb[152].mxu1 %v13323_v39  ;;  %4692 = vmatprep.mubr.bf16.mxu0 %v13324_v6 }
 0x2f7   :  { %5464 = vmatprep.mubr.bf16.mxu1 %v13324_v6  ;;  %6296 = vmatpush1.bf16.msra.mxu0 %v9579_v56 }
 0x2f8   :  { %6297 = vmatprep.subr.bf16.mxu0 %v9584_v46  ;;  %8467 = vmatpush1.bf16.msra.mxu1 %v9579_v56 }
 0x2f9   :  { %8452 = vmatprep.subr.bf16.mxu1 %v9584_v46 }
 0x2fb   :  { %6298 = vmatpush1.bf16.msra.mxu0 %v9582_v8 }
 0x2fc   :  { %6299 = vmatprep.subr.bf16.mxu0 %v9587_v11  ;;  %8468 = vmatpush1.bf16.msra.mxu1 %v9582_v8 }
 0x2fd   :  { %4693 = vmatmul.mubr.bf16.gmra.mrb[156].mxu0 %v13325_v45  ;;  %8453 = vmatprep.subr.bf16.mxu1 %v9587_v11 }
 0x2fe   :  { %5465 = vmatmul.mubr.bf16.gmra.mrb[156].mxu1 %v13325_v45  ;;  %4702 = vmatprep.mubr.bf16.mxu0 %v13326_v62 }
 0x2ff   :  { %5474 = vmatprep.mubr.bf16.mxu1 %v13326_v62  ;;  %6300 = vmatpush1.bf16.msra.mxu0 %v9585_v48 }
 0x300   :  { %8469 = vmatpush1.bf16.msra.mxu1 %v9585_v48  ;;  %6301 = vmatprep.subr.bf16.mxu0 %v9590_v25 }
 0x301   :  { %8454 = vmatprep.subr.bf16.mxu1 %v9590_v25 }
 0x303   :  { %6302 = vmatpush1.bf16.msra.mxu0 %v9588_v28 }
 0x304   :  { %8470 = vmatpush1.bf16.msra.mxu1 %v9588_v28  ;;  %6464 = vmatprep.subr.bf16.mxu0 %v9593_v7  ;;  %v9596_v28 = vld [vmem:[%s13202_s5 + $0x114] ss:$8 sps:$4 sm:$0xff]  }
 0x305   :  { %4703 = vmatmul.mubr.bf16.gmra.mrb[160].mxu0 %v13327_v60 }
 0x306   :  { %5475 = vmatmul.mubr.bf16.gmra.mrb[160].mxu1 %v13327_v60  ;;  %4712 = vmatprep.mubr.bf16.mxu0 %v13328_v44 }
 0x307   :  { %5484 = vmatprep.mubr.bf16.mxu1 %v13328_v44 }
 0x30d   :  { %4713 = vmatmul.mubr.bf16.gmra.mrb[164].mxu0 %v13329_v20 }
 0x30e   :  { %5485 = vmatmul.mubr.bf16.gmra.mrb[164].mxu1 %v13329_v20  ;;  %4722 = vmatprep.mubr.bf16.mxu0 %v13330_v40 }
 0x30f   :  { %5494 = vmatprep.mubr.bf16.mxu1 %v13330_v40  ;;  %v9591_v40 = vld [vmem:[%s13202_s5 + $0x100] ss:$8 sps:$4 sm:$0xff]  }
 0x315   :  { %4723 = vmatmul.mubr.bf16.gmra.mrb[168].mxu0 %v13331_v32 }
 0x316   :  { %5495 = vmatmul.mubr.bf16.gmra.mrb[168].mxu1 %v13331_v32  ;;  %4732 = vmatprep.mubr.bf16.mxu0 %v13332_v23 }
 0x317   :  { %5504 = vmatprep.mubr.bf16.mxu1 %v13332_v23 }
 0x31d   :  { %4733 = vmatmul.mubr.bf16.gmra.mrb[172].mxu0 %v13333_v63 }
 0x31e   :  { %5505 = vmatmul.mubr.bf16.gmra.mrb[172].mxu1 %v13333_v63  ;;  %4742 = vmatprep.mubr.bf16.mxu0 %v13334_v0 }
 0x31f   :  { %5514 = vmatprep.mubr.bf16.mxu1 %v13334_v0 }
 0x325   :  { %4743 = vmatmul.mubr.bf16.gmra.mrb[176].mxu0 %v13335_v51 }
 0x326   :  { %5515 = vmatmul.mubr.bf16.gmra.mrb[176].mxu1 %v13335_v51  ;;  %4752 = vmatprep.mubr.bf16.mxu0 %v13336_v55 }
 0x327   :  { %5524 = vmatprep.mubr.bf16.mxu1 %v13336_v55 }
 0x32d   :  { %4753 = vmatmul.mubr.bf16.gmra.mrb[180].mxu0 %v13337_v61 }
 0x32e   :  { %5525 = vmatmul.mubr.bf16.gmra.mrb[180].mxu1 %v13337_v61  ;;  %4762 = vmatprep.mubr.bf16.mxu0 %v11803_v24 }
 0x32f   :  { %5534 = vmatprep.mubr.bf16.mxu1 %v11803_v24  ;;  %v13339_v24 = vld [vmem:[#allocation2_spill] sm:$0xff] }
 0x330   :  { %v13340_v9 = vsub.s32 2, %v13339_v24 }
 0x332   :  { %v12259_v4 = vrot.slane %v2709_v17, %v13340_v9 }
 0x335   :  { %4763 = vmatmul.mubr.bf16.gmra.mrb[184].mxu0 %v11799_v50 }
 0x336   :  { %5535 = vmatmul.mubr.bf16.gmra.mrb[184].mxu1 %v11799_v50  ;;  %4772 = vmatprep.mubr.bf16.mxu0 %v11818_v37  ;;  %v13341_v50 = vld [vmem:[#allocation4_spill] sm:$0xff] }
 0x337   :  { %5544 = vmatprep.mubr.bf16.mxu1 %v11818_v37  ;;  %v12262_v31 = vrot.slane %v2709_v17, %v13341_v50  ;;  %v13342_v37 = vsub.s32 3, %v13339_v24 }
 0x339   :  { %v12266_v18 = vrot.slane %v2709_v17, %v13342_v37 }
 0x33d   :  { %4773 = vmatmul.mubr.bf16.gmra.mrb[188].mxu0 %v11816_v52 }
 0x33e   :  { %5545 = vmatmul.mubr.bf16.gmra.mrb[188].mxu1 %v11816_v52 }
 0x398   :  { %v4624_v36 = vpop.f32.mrb[128].mxu0 }
 0x399   :  { %v8471_v52 = vadd.f32 %v4624_v36, %v12255_v22  ;;  %v5396_v59 = vpop.f32.mrb[128].mxu1  ;;  %v4626_v2 = vpop.f32.mrb[129].mxu0 }
 0x39a   :  { %v8535_v13 = vadd.f32 %v5396_v59, %v12259_v4  ;;  %v8472_v27 = vadd.f32 %v4626_v2, %v12262_v31  ;;  %v5398_v10 = vpop.f32.mrb[129].mxu1  ;;  %v4628_v1 = vpop.f32.mrb[130].mxu0  ;;  %v9594_v2 = vld [vmem:[%s13202_s5 + $0x110] ss:$8 sps:$4 sm:$0xff]  }
 0x39b   :  { %v5555_v38 = vmul.f32 0.2, %v8471_v52  ;;  %v8536_v58 = vadd.f32 %v5398_v10, %v12266_v18  ;;  %v8473_v43 = vadd.f32 %v4628_v1, %v12255_v22  ;;  %v5400_v15 = vpop.f32.mrb[130].mxu1  ;;  %v4630_v53 = vpop.f32.mrb[131].mxu0  ;;  %v9599_v1 = vld [vmem:[%s13202_s5 + $0x124] ss:$8 sps:$4 sm:$0xff]  }
 0x39c   :  { %v5557_v19 = vmul.f32 0.2, %v8535_v13  ;;  %v5556_v49 = vmul.f32 0.2, %v8472_v27  ;;  %v8537_v16 = vadd.f32 %v5400_v15, %v12259_v4  ;;  %v8474_v26 = vadd.f32 %v4630_v53, %v12262_v31  ;;  %v5402_v57 = vpop.f32.mrb[131].mxu1 }
 0x39d   :  { %v5558_v47 = vmul.f32 0.2, %v8536_v58  ;;  %v5559_v35 = vmul.f32 0.2, %v8473_v43  ;;  %v8538_v30 = vadd.f32 %v5402_v57, %v12266_v18  ;;  %v5683_v14 = vmax.f32 %v8471_v52, %v5555_v38 }
 0x39e   :  { %v5561_v12 = vmul.f32 0.2, %v8537_v16  ;;  %v5560_v33 = vmul.f32 0.2, %v8474_v26  ;;  %v5685_v42 = vmax.f32 %v8535_v13, %v5557_v19  ;;  %v5684_v3 = vmax.f32 %v8472_v27, %v5556_v49 }
 0x39f   :  { %v5687_v34 = vmax.f32 %v8473_v43, %v5559_v35  ;;  %v5562_v5 = vmul.f32 0.2, %v8538_v30  ;;  %v5686_v56 = vmax.f32 %v8536_v58, %v5558_v47 }
 0x3a0   :  { %v5689_v41 = vmax.f32 %v8537_v16, %v5561_v12  ;;  %v5688_v21 = vmax.f32 %v8474_v26, %v5560_v33  ;;  %v4634_v54 = vpop.f32.mrb[132].mxu0 }
 0x3a1   :  { %v5811_v46 = vpack.c.bf16 %v5687_v34, %v5683_v14  ;;  %v5690_v39 = vmax.f32 %v8538_v30, %v5562_v5  ;;  %v8475_v6 = vadd.f32 %v4634_v54, %v12255_v22  ;;  %v5406_v8 = vpop.f32.mrb[132].mxu1  ;;  %v4636_v11 = vpop.f32.mrb[133].mxu0  ;;  %v9597_v34 = vld [vmem:[%s13202_s5 + $0x120] ss:$8 sps:$4 sm:$0xff]  }
 0x3a2   :  { %v12277_v48 = vpack.c.bf16 %v5689_v41, %v5685_v42  ;;  %v8539_v45 = vadd.f32 %v5406_v8, %v12259_v4  ;;  %v8476_v62 = vadd.f32 %v4636_v11, %v12262_v31  ;;  %v5408_v60 = vpop.f32.mrb[133].mxu1  ;;  %v4638_v44 = vpop.f32.mrb[134].mxu0  ;;  %v5812_v20 = vpack.c.bf16 %v5688_v21, %v5684_v3 }
 0x3a3   :  { %v5563_v32 = vmul.f32 0.2, %v8475_v6  ;;  %v8540_v23 = vadd.f32 %v5408_v60, %v12266_v18  ;;  %v8477_v63 = vadd.f32 %v4638_v44, %v12255_v22  ;;  %v5410_v0 = vpop.f32.mrb[134].mxu1  ;;  %v4640_v25 = vpop.f32.mrb[135].mxu0  ;;  %v12289_v51 = vpack.c.bf16 %v5690_v39, %v5686_v56  ;;  %v9602_v56 = vld [vmem:[%s13202_s5 + $0x134] ss:$8 sps:$4 sm:$0xff]  }
 0x3a4   :  { %v5565_v55 = vmul.f32 0.2, %v8539_v45  ;;  %v5564_v7 = vmul.f32 0.2, %v8476_v62  ;;  %v8541_v61 = vadd.f32 %v5410_v0, %v12259_v4  ;;  %v8478_v17 = vadd.f32 %v4640_v25, %v12262_v31  ;;  %v5412_v24 = vpop.f32.mrb[135].mxu1  ;;  %6303 = vmatprep.mubr.bf16.mxu0 %v5812_v20 }
 0x3a5   :  { %v5566_v9 = vmul.f32 0.2, %v8540_v23  ;;  %v5567_v37 = vmul.f32 0.2, %v8477_v63  ;;  %v8542_v36 = vadd.f32 %v5412_v24, %v12266_v18  ;;  %6304 = vmatmul.mubr.bf16.vlgmr.msra.gmra.mrb[192].mxu0 %v5811_v46  ;;  %v5691_v13 = vmax.f32 %v8475_v6, %v5563_v32  ;;  %v9600_v32 = vld [vmem:[%s13202_s5 + $0x130] ss:$8 sps:$4 sm:$0xff]  }
 0x3a6   :  { %v5569_v52 = vmul.f32 0.2, %v8541_v61  ;;  %v5568_v59 = vmul.f32 0.2, %v8478_v17  ;;  %6465 = vmatpush1.bf16.msra.mxu0 %v9591_v40  ;;  %v5693_v38 = vmax.f32 %v8539_v45, %v5565_v55  ;;  %v5692_v58 = vmax.f32 %v8476_v62, %v5564_v7  ;;  %v9605_v25 = vld [vmem:[%s13202_s5 + $0x144] ss:$8 sps:$4 sm:$0xff]  }
 0x3a7   :  { %v5695_v27 = vmax.f32 %v8477_v63, %v5567_v37  ;;  %v5570_v10 = vmul.f32 0.2, %v8542_v36  ;;  %6466 = vmatprep.subr.bf16.mxu0 %v9596_v28  ;;  %v5694_v19 = vmax.f32 %v8540_v23, %v5566_v9 }
 0x3a8   :  { %v5697_v43 = vmax.f32 %v8541_v61, %v5569_v52  ;;  %v5696_v15 = vmax.f32 %v8478_v17, %v5568_v59  ;;  %v4644_v53 = vpop.f32.mrb[136].mxu0 }
 0x3a9   :  { %v5698_v49 = vmax.f32 %v8542_v36, %v5570_v10  ;;  %v8479_v16 = vadd.f32 %v4644_v53, %v12255_v22  ;;  %v5416_v26 = vpop.f32.mrb[136].mxu1  ;;  %v4646_v57 = vpop.f32.mrb[137].mxu0  ;;  %v5815_v47 = vpack.c.bf16 %v5695_v27, %v5691_v13 }
 0x3aa   :  { %v8543_v35 = vadd.f32 %v5416_v26, %v12259_v4  ;;  %v8480_v30 = vadd.f32 %v4646_v57, %v12262_v31  ;;  %v5418_v12 = vpop.f32.mrb[137].mxu1  ;;  %v4648_v33 = vpop.f32.mrb[138].mxu0  ;;  %v5816_v14 = vpack.c.bf16 %v5696_v15, %v5692_v58  ;;  %6467 = vmatpush1.bf16.msra.mxu0 %v9594_v2  ;;  %v12306_v5 = vpack.c.bf16 %v5697_v43, %v5693_v38  ;;  %v9603_v38 = vld [vmem:[%s13202_s5 + $0x140] ss:$8 sps:$4 sm:$0xff]  }
 0x3ab   :  { %v5571_v42 = vmul.f32 0.2, %v8479_v16  ;;  %v8544_v3 = vadd.f32 %v5418_v12, %v12266_v18  ;;  %v8481_v41 = vadd.f32 %v4648_v33, %v12255_v22  ;;  %v5420_v21 = vpop.f32.mrb[138].mxu1  ;;  %v4650_v54 = vpop.f32.mrb[139].mxu0  ;;  %6468 = vmatprep.subr.bf16.mxu0 %v9599_v1  ;;  %v12313_v46 = vpack.c.bf16 %v5698_v49, %v5694_v19 }
 0x3ac   :  { %v5573_v39 = vmul.f32 0.2, %v8543_v35  ;;  %v5572_v6 = vmul.f32 0.2, %v8480_v30  ;;  %v8545_v8 = vadd.f32 %v5420_v21, %v12259_v4  ;;  %v8482_v11 = vadd.f32 %v4650_v54, %v12262_v31  ;;  %v5422_v45 = vpop.f32.mrb[139].mxu1  ;;  %6313 = vmatprep.mubr.bf16.mxu0 %v5816_v14 }
 0x3ad   :  { %v5574_v62 = vmul.f32 0.2, %v8544_v3  ;;  %v5575_v60 = vmul.f32 0.2, %v8481_v41  ;;  %v8546_v44 = vadd.f32 %v5422_v45, %v12266_v18  ;;  %6314 = vmatmul.mubr.bf16.gmra.mrb[196].mxu0 %v5815_v47  ;;  %v5699_v23 = vmax.f32 %v8479_v16, %v5571_v42  ;;  %v9608_v16 = vld [vmem:[%s13202_s5 + $0x154] ss:$8 sps:$4 sm:$0xff]  }
 0x3ae   :  { %v5577_v20 = vmul.f32 0.2, %v8545_v8  ;;  %v5576_v40 = vmul.f32 0.2, %v8482_v11  ;;  %6469 = vmatpush1.bf16.msra.mxu0 %v9597_v34  ;;  %v5701_v28 = vmax.f32 %v8543_v35, %v5573_v39  ;;  %v5700_v55 = vmax.f32 %v8480_v30, %v5572_v6  ;;  %v9611_v39 = vld [vmem:[%s13202_s5 + $0x164] ss:$8 sps:$4 sm:$0xff]  }
 0x3af   :  { %v5703_v63 = vmax.f32 %v8481_v41, %v5575_v60  ;;  %v5578_v0 = vmul.f32 0.2, %v8546_v44  ;;  %6470 = vmatprep.subr.bf16.mxu0 %v9602_v56  ;;  %v5702_v24 = vmax.f32 %v8544_v3, %v5574_v62  ;;  %v9606_v41 = vld [vmem:[%s13202_s5 + $0x150] ss:$8 sps:$4 sm:$0xff]  }
 0x3b0   :  { %v5705_v7 = vmax.f32 %v8545_v8, %v5577_v20  ;;  %v5704_v61 = vmax.f32 %v8482_v11, %v5576_v40  ;;  %v4654_v17 = vpop.f32.mrb[140].mxu0 }
 0x3b1   :  { %v5706_v9 = vmax.f32 %v8546_v44, %v5578_v0  ;;  %v8483_v37 = vadd.f32 %v4654_v17, %v12255_v22  ;;  %v5426_v36 = vpop.f32.mrb[140].mxu1  ;;  %v4656_v52 = vpop.f32.mrb[141].mxu0  ;;  %v5819_v59 = vpack.c.bf16 %v5703_v63, %v5699_v23 }
 0x3b2   :  { %v8547_v2 = vadd.f32 %v5426_v36, %v12259_v4  ;;  %v8484_v13 = vadd.f32 %v4656_v52, %v12262_v31  ;;  %v5428_v27 = vpop.f32.mrb[141].mxu1  ;;  %v4658_v10 = vpop.f32.mrb[142].mxu0  ;;  %v5820_v1 = vpack.c.bf16 %v5704_v61, %v5700_v55  ;;  %6471 = vmatpush1.bf16.msra.mxu0 %v9600_v32  ;;  %v12330_v58 = vpack.c.bf16 %v5705_v7, %v5701_v28  ;;  %v9609_v7 = vld [vmem:[%s13202_s5 + $0x160] ss:$8 sps:$4 sm:$0xff]   ;;  %v9614_v52 = vld [vmem:[%s13202_s5 + $0x174] ss:$8 sps:$4 sm:$0xff]  }
 0x3b3   :  { %v5579_v43 = vmul.f32 0.2, %v8483_v37  ;;  %v8548_v15 = vadd.f32 %v5428_v27, %v12266_v18  ;;  %v8485_v53 = vadd.f32 %v4658_v10, %v12255_v22  ;;  %v5430_v19 = vpop.f32.mrb[142].mxu1  ;;  %v4660_v49 = vpop.f32.mrb[143].mxu0  ;;  %6472 = vmatprep.subr.bf16.mxu0 %v9605_v25  ;;  %v12337_v26 = vpack.c.bf16 %v5706_v9, %v5702_v24 }
 0x3b4   :  { %v5581_v57 = vmul.f32 0.2, %v8547_v2  ;;  %v5580_v47 = vmul.f32 0.2, %v8484_v13  ;;  %v8549_v35 = vadd.f32 %v5430_v19, %v12259_v4  ;;  %v8486_v30 = vadd.f32 %v4660_v49, %v12262_v31  ;;  %v5432_v12 = vpop.f32.mrb[143].mxu1  ;;  %6323 = vmatprep.mubr.bf16.mxu0 %v5820_v1 }
 0x3b5   :  { %v5582_v33 = vmul.f32 0.2, %v8548_v15  ;;  %v5583_v14 = vmul.f32 0.2, %v8485_v53  ;;  %v8550_v34 = vadd.f32 %v5432_v12, %v12266_v18  ;;  %6324 = vmatmul.mubr.bf16.gmra.mrb[200].mxu0 %v5819_v59  ;;  %v5707_v21 = vmax.f32 %v8483_v37, %v5579_v43  ;;  %v9612_v49 = vld [vmem:[%s13202_s5 + $0x170] ss:$8 sps:$4 sm:$0xff]  }
 0x3b6   :  { %v5585_v42 = vmul.f32 0.2, %v8549_v35  ;;  %v5584_v3 = vmul.f32 0.2, %v8486_v30  ;;  %6473 = vmatpush1.bf16.msra.mxu0 %v9603_v38  ;;  %v5709_v6 = vmax.f32 %v8547_v2, %v5581_v57  ;;  %v5708_v8 = vmax.f32 %v8484_v13, %v5580_v47 }
 0x3b7   :  { %v5711_v54 = vmax.f32 %v8485_v53, %v5583_v14  ;;  %v5586_v56 = vmul.f32 0.2, %v8550_v34  ;;  %6474 = vmatprep.subr.bf16.mxu0 %v9608_v16  ;;  %v5710_v60 = vmax.f32 %v8548_v15, %v5582_v33 }
 0x3b8   :  { %v5713_v11 = vmax.f32 %v8549_v35, %v5585_v42  ;;  %v5712_v45 = vmax.f32 %v8486_v30, %v5584_v3  ;;  %v4664_v62 = vpop.f32.mrb[144].mxu0  ;;  %v9617_v35 = vld [vmem:[%s13202_s5 + $0x184] ss:$8 sps:$4 sm:$0xff]  }
 0x3b9   :  { %v5714_v44 = vmax.f32 %v8550_v34, %v5586_v56  ;;  %v8487_v20 = vadd.f32 %v4664_v62, %v12255_v22  ;;  %v5436_v40 = vpop.f32.mrb[144].mxu1  ;;  %v4666_v32 = vpop.f32.mrb[145].mxu0  ;;  %v5823_v23 = vpack.c.bf16 %v5711_v54, %v5707_v21  ;;  %v9615_v62 = vld [vmem:[%s13202_s5 + $0x180] ss:$8 sps:$4 sm:$0xff]  }
 0x3ba   :  { %v8551_v63 = vadd.f32 %v5436_v40, %v12259_v4  ;;  %v8488_v0 = vadd.f32 %v4666_v32, %v12262_v31  ;;  %v5438_v25 = vpop.f32.mrb[145].mxu1  ;;  %v4668_v28 = vpop.f32.mrb[146].mxu0  ;;  %v5824_v55 = vpack.c.bf16 %v5712_v45, %v5708_v8  ;;  %6475 = vmatpush1.bf16.msra.mxu0 %v9606_v41  ;;  %v12354_v61 = vpack.c.bf16 %v5713_v11, %v5709_v6 }
 0x3bb   :  { %v5587_v17 = vmul.f32 0.2, %v8487_v20  ;;  %v8552_v24 = vadd.f32 %v5438_v25, %v12266_v18  ;;  %v8489_v9 = vadd.f32 %v4668_v28, %v12255_v22  ;;  %v5440_v37 = vpop.f32.mrb[146].mxu1  ;;  %v4670_v36 = vpop.f32.mrb[147].mxu0  ;;  %6476 = vmatprep.subr.bf16.mxu0 %v9611_v39  ;;  %v12361_v59 = vpack.c.bf16 %v5714_v44, %v5710_v60 }
 0x3bc   :  { %v5589_v2 = vmul.f32 0.2, %v8551_v63  ;;  %v5588_v13 = vmul.f32 0.2, %v8488_v0  ;;  %v8553_v27 = vadd.f32 %v5440_v37, %v12259_v4  ;;  %v8490_v10 = vadd.f32 %v4670_v36, %v12262_v31  ;;  %v5442_v1 = vpop.f32.mrb[147].mxu1  ;;  %6333 = vmatprep.mubr.bf16.mxu0 %v5824_v55 }
 0x3bd   :  { %v5590_v38 = vmul.f32 0.2, %v8552_v24  ;;  %v5591_v43 = vmul.f32 0.2, %v8489_v9  ;;  %v8554_v15 = vadd.f32 %v5442_v1, %v12266_v18  ;;  %6334 = vmatmul.mubr.bf16.gmra.mrb[204].mxu0 %v5823_v23  ;;  %v5715_v16 = vmax.f32 %v8487_v20, %v5587_v17  ;;  %v9623_v1 = vld [vmem:[%s13202_s5 + $0x1a4] ss:$8 sps:$4 sm:$0xff]  }
 0x3be   :  { %v5593_v53 = vmul.f32 0.2, %v8553_v27  ;;  %v5592_v19 = vmul.f32 0.2, %v8490_v10  ;;  %6477 = vmatpush1.bf16.msra.mxu0 %v9609_v7  ;;  %v5717_v30 = vmax.f32 %v8551_v63, %v5589_v2  ;;  %v5716_v12 = vmax.f32 %v8488_v0, %v5588_v13  ;;  %v9620_v63 = vld [vmem:[%s13202_s5 + $0x194] ss:$8 sps:$4 sm:$0xff]  }
 0x3bf   :  { %v5719_v57 = vmax.f32 %v8489_v9, %v5591_v43  ;;  %v5594_v47 = vmul.f32 0.2, %v8554_v15  ;;  %6478 = vmatprep.subr.bf16.mxu0 %v9614_v52  ;;  %v5718_v42 = vmax.f32 %v8552_v24, %v5590_v38  ;;  %v9618_v2 = vld [vmem:[%s13202_s5 + $0x190] ss:$8 sps:$4 sm:$0xff]  }
 0x3c0   :  { %v5721_v33 = vmax.f32 %v8553_v27, %v5593_v53  ;;  %v5720_v14 = vmax.f32 %v8490_v10, %v5592_v19  ;;  %v4674_v34 = vpop.f32.mrb[148].mxu0 }
 0x3c1   :  { %v5722_v3 = vmax.f32 %v8554_v15, %v5594_v47  ;;  %v8491_v41 = vadd.f32 %v4674_v34, %v12255_v22  ;;  %v5446_v21 = vpop.f32.mrb[148].mxu1  ;;  %v4676_v54 = vpop.f32.mrb[149].mxu0  ;;  %v5827_v56 = vpack.c.bf16 %v5719_v57, %v5715_v16 }
 0x3c2   :  { %v8555_v39 = vadd.f32 %v5446_v21, %v12259_v4  ;;  %v8492_v6 = vadd.f32 %v4676_v54, %v12262_v31  ;;  %v5448_v8 = vpop.f32.mrb[149].mxu1  ;;  %v4678_v11 = vpop.f32.mrb[150].mxu0  ;;  %v5828_v45 = vpack.c.bf16 %v5720_v14, %v5716_v12  ;;  %6479 = vmatpush1.bf16.msra.mxu0 %v9612_v49  ;;  %v12378_v60 = vpack.c.bf16 %v5721_v33, %v5717_v30 }
 0x3c3   :  { %v5595_v44 = vmul.f32 0.2, %v8491_v41  ;;  %v8556_v20 = vadd.f32 %v5448_v8, %v12266_v18  ;;  %v8493_v40 = vadd.f32 %v4678_v11, %v12255_v22  ;;  %v5450_v32 = vpop.f32.mrb[150].mxu1  ;;  %v4680_v23 = vpop.f32.mrb[151].mxu0  ;;  %6480 = vmatprep.subr.bf16.mxu0 %v9617_v35  ;;  %v12385_v0 = vpack.c.bf16 %v5722_v3, %v5718_v42  ;;  %v9621_v3 = vld [vmem:[%s13202_s5 + $0x1a0] ss:$8 sps:$4 sm:$0xff]  }
 0x3c4   :  { %v5597_v25 = vmul.f32 0.2, %v8555_v39  ;;  %v5596_v28 = vmul.f32 0.2, %v8492_v6  ;;  %v8557_v55 = vadd.f32 %v5450_v32, %v12259_v4  ;;  %v8494_v7 = vadd.f32 %v4680_v23, %v12262_v31  ;;  %v5452_v17 = vpop.f32.mrb[151].mxu1  ;;  %6343 = vmatprep.mubr.bf16.mxu0 %v5828_v45 }
 0x3c5   :  { %v5598_v24 = vmul.f32 0.2, %v8556_v20  ;;  %v5599_v9 = vmul.f32 0.2, %v8493_v40  ;;  %v8558_v37 = vadd.f32 %v5452_v17, %v12266_v18  ;;  %6344 = vmatmul.mubr.bf16.gmra.mrb[208].mxu0 %v5827_v56  ;;  %v5723_v13 = vmax.f32 %v8491_v41, %v5595_v44  ;;  %v9626_v8 = vld [vmem:[%s13202_s5 + $0x1b4] ss:$8 sps:$4 sm:$0xff]  }
 0x3c6   :  { %v5601_v36 = vmul.f32 0.2, %v8557_v55  ;;  %v5600_v52 = vmul.f32 0.2, %v8494_v7  ;;  %6481 = vmatpush1.bf16.msra.mxu0 %v9615_v62  ;;  %v5725_v38 = vmax.f32 %v8555_v39, %v5597_v25  ;;  %v5724_v43 = vmax.f32 %v8492_v6, %v5596_v28 }
 0x3c7   :  { %v5727_v27 = vmax.f32 %v8493_v40, %v5599_v9  ;;  %v5602_v10 = vmul.f32 0.2, %v8558_v37  ;;  %6482 = vmatprep.subr.bf16.mxu0 %v9620_v63  ;;  %v5726_v49 = vmax.f32 %v8556_v20, %v5598_v24  ;;  %v9629_v9 = vld [vmem:[%s13202_s5 + $0x1c4] ss:$8 sps:$4 sm:$0xff]  }
 0x3c8   :  { %v5729_v15 = vmax.f32 %v8557_v55, %v5601_v36  ;;  %v5728_v53 = vmax.f32 %v8494_v7, %v5600_v52  ;;  %v4684_v19 = vpop.f32.mrb[152].mxu0  ;;  %v9624_v55 = vld [vmem:[%s13202_s5 + $0x1b0] ss:$8 sps:$4 sm:$0xff]  }
 0x3c9   :  { %v5730_v16 = vmax.f32 %v8558_v37, %v5602_v10  ;;  %v8495_v57 = vadd.f32 %v4684_v19, %v12255_v22  ;;  %v5456_v47 = vpop.f32.mrb[152].mxu1  ;;  %v4686_v35 = vpop.f32.mrb[153].mxu0  ;;  %v5831_v30 = vpack.c.bf16 %v5727_v27, %v5723_v13 }
 0x3ca   :  { %v8559_v12 = vadd.f32 %v5456_v47, %v12259_v4  ;;  %v8496_v33 = vadd.f32 %v4686_v35, %v12262_v31  ;;  %v5458_v14 = vpop.f32.mrb[153].mxu1  ;;  %v4688_v34 = vpop.f32.mrb[154].mxu0  ;;  %v5832_v42 = vpack.c.bf16 %v5728_v53, %v5724_v43  ;;  %6483 = vmatpush1.bf16.msra.mxu0 %v9618_v2  ;;  %v12402_v41 = vpack.c.bf16 %v5729_v15, %v5725_v38  ;;  %v9627_v47 = vld [vmem:[%s13202_s5 + $0x1c0] ss:$8 sps:$4 sm:$0xff]  }
 0x3cb   :  { %v5603_v21 = vmul.f32 0.2, %v8495_v57  ;;  %v8560_v54 = vadd.f32 %v5458_v14, %v12266_v18  ;;  %v8497_v56 = vadd.f32 %v4688_v34, %v12255_v22  ;;  %v5460_v39 = vpop.f32.mrb[154].mxu1  ;;  %v4690_v6 = vpop.f32.mrb[155].mxu0  ;;  %6484 = vmatprep.subr.bf16.mxu0 %v9623_v1  ;;  %v12409_v11 = vpack.c.bf16 %v5730_v16, %v5726_v49 }
 0x3cc   :  { %v5605_v45 = vmul.f32 0.2, %v8559_v12  ;;  %v5604_v62 = vmul.f32 0.2, %v8496_v33  ;;  %v8561_v44 = vadd.f32 %v5460_v39, %v12259_v4  ;;  %v8498_v20 = vadd.f32 %v4690_v6, %v12262_v31  ;;  %v5462_v40 = vpop.f32.mrb[155].mxu1  ;;  %6353 = vmatprep.mubr.bf16.mxu0 %v5832_v42 }
 0x3cd   :  { %v5606_v32 = vmul.f32 0.2, %v8560_v54  ;;  %v5607_v23 = vmul.f32 0.2, %v8497_v56  ;;  %v8562_v63 = vadd.f32 %v5462_v40, %v12266_v18  ;;  %6354 = vmatmul.mubr.bf16.gmra.mrb[212].mxu0 %v5831_v30  ;;  %v5731_v7 = vmax.f32 %v8495_v57, %v5603_v21  ;;  %v9632_v42 = vld [vmem:[%s13202_s5 + $0x1d4] ss:$8 sps:$4 sm:$0xff]  }
 0x3ce   :  { %v5609_v25 = vmul.f32 0.2, %v8561_v44  ;;  %v5608_v28 = vmul.f32 0.2, %v8498_v20  ;;  %6485 = vmatpush1.bf16.msra.mxu0 %v9621_v3  ;;  %v5733_v37 = vmax.f32 %v8559_v12, %v5605_v45  ;;  %v5732_v36 = vmax.f32 %v8496_v33, %v5604_v62  ;;  %v9630_v40 = vld [vmem:[%s13202_s5 + $0x1d0] ss:$8 sps:$4 sm:$0xff]  }
 0x3cf   :  { %v5735_v17 = vmax.f32 %v8497_v56, %v5607_v23  ;;  %v5610_v24 = vmul.f32 0.2, %v8562_v63  ;;  %6486 = vmatprep.subr.bf16.mxu0 %v9626_v8  ;;  %v5734_v27 = vmax.f32 %v8560_v54, %v5606_v32 }
 0x3d0   :  { %v5737_v52 = vmax.f32 %v8561_v44, %v5609_v25  ;;  %v5736_v2 = vmax.f32 %v8498_v20, %v5608_v28  ;;  %v4694_v13 = vpop.f32.mrb[156].mxu0  ;;  %v9635_v25 = vld [vmem:[%s13202_s5 + $0x1e4] ss:$8 sps:$4 sm:$0xff]  }
 0x3d1   :  { %v5738_v10 = vmax.f32 %v8562_v63, %v5610_v24  ;;  %v8499_v1 = vadd.f32 %v4694_v13, %v12255_v22  ;;  %v5466_v38 = vpop.f32.mrb[156].mxu1  ;;  %v4696_v43 = vpop.f32.mrb[157].mxu0  ;;  %v5835_v15 = vpack.c.bf16 %v5735_v17, %v5731_v7 }
 0x3d2   :  { %v8563_v53 = vadd.f32 %v5466_v38, %v12259_v4  ;;  %v8500_v19 = vadd.f32 %v4696_v43, %v12262_v31  ;;  %v5468_v49 = vpop.f32.mrb[157].mxu1  ;;  %v4698_v16 = vpop.f32.mrb[158].mxu0  ;;  %v5836_v57 = vpack.c.bf16 %v5736_v2, %v5732_v36  ;;  %6487 = vmatpush1.bf16.msra.mxu0 %v9624_v55  ;;  %v12426_v35 = vpack.c.bf16 %v5737_v52, %v5733_v37 }
 0x3d3   :  { %v5611_v30 = vmul.f32 0.2, %v8499_v1  ;;  %v8564_v12 = vadd.f32 %v5468_v49, %v12266_v18  ;;  %v8501_v33 = vadd.f32 %v4698_v16, %v12255_v22  ;;  %v5470_v14 = vpop.f32.mrb[158].mxu1  ;;  %v4700_v34 = vpop.f32.mrb[159].mxu0  ;;  %6488 = vmatprep.subr.bf16.mxu0 %v9629_v9  ;;  %v12433_v3 = vpack.c.bf16 %v5738_v10, %v5734_v27 }
 0x3d4   :  { %v5613_v21 = vmul.f32 0.2, %v8563_v53  ;;  %v5612_v54 = vmul.f32 0.2, %v8500_v19  ;;  %v8565_v56 = vadd.f32 %v5470_v14, %v12259_v4  ;;  %v8502_v39 = vadd.f32 %v4700_v34, %v12262_v31  ;;  %v5472_v6 = vpop.f32.mrb[159].mxu1  ;;  %6363 = vmatprep.mubr.bf16.mxu0 %v5836_v57 }
 0x3d5   :  { %v5614_v8 = vmul.f32 0.2, %v8564_v12  ;;  %v5615_v45 = vmul.f32 0.2, %v8501_v33  ;;  %v8566_v62 = vadd.f32 %v5472_v6, %v12266_v18  ;;  %6364 = vmatmul.mubr.bf16.gmra.mrb[216].mxu0 %v5835_v15  ;;  %v5739_v32 = vmax.f32 %v8499_v1, %v5611_v30  ;;  %v9633_v15 = vld [vmem:[%s13202_s5 + $0x1e0] ss:$8 sps:$4 sm:$0xff]  }
 0x3d6   :  { %v5617_v44 = vmul.f32 0.2, %v8565_v56  ;;  %v5616_v20 = vmul.f32 0.2, %v8502_v39  ;;  %6489 = vmatpush1.bf16.msra.mxu0 %v9627_v47  ;;  %v5741_v28 = vmax.f32 %v8563_v53, %v5613_v21  ;;  %v5740_v55 = vmax.f32 %v8500_v19, %v5612_v54  ;;  %v9638_v30 = vld [vmem:[%s13202_s5 + $0x1f4] ss:$8 sps:$4 sm:$0xff]  }
 0x3d7   :  { %v5743_v23 = vmax.f32 %v8501_v33, %v5615_v45  ;;  %v5618_v63 = vmul.f32 0.2, %v8566_v62  ;;  %6490 = vmatprep.subr.bf16.mxu0 %v9632_v42  ;;  %v5742_v9 = vmax.f32 %v8564_v12, %v5614_v8  ;;  %v9636_v45 = vld [vmem:[%s13202_s5 + $0x1f0] ss:$8 sps:$4 sm:$0xff]  }
 0x3d8   :  { %v5745_v7 = vmax.f32 %v8565_v56, %v5617_v44  ;;  %v5744_v17 = vmax.f32 %v8502_v39, %v5616_v20  ;;  %v4704_v24 = vpop.f32.mrb[160].mxu0 }
 0x3d9   :  { %v5746_v37 = vmax.f32 %v8566_v62, %v5618_v63  ;;  %v8503_v36 = vadd.f32 %v4704_v24, %v12255_v22  ;;  %v5476_v52 = vpop.f32.mrb[160].mxu1  ;;  %v4706_v2 = vpop.f32.mrb[161].mxu0  ;;  %v5839_v13 = vpack.c.bf16 %v5743_v23, %v5739_v32 }
 0x3da   :  { %v8567_v27 = vadd.f32 %v5476_v52, %v12259_v4  ;;  %v8504_v10 = vadd.f32 %v4706_v2, %v12262_v31  ;;  %v5478_v1 = vpop.f32.mrb[161].mxu1  ;;  %v4708_v38 = vpop.f32.mrb[162].mxu0  ;;  %v5840_v43 = vpack.c.bf16 %v5744_v17, %v5740_v55  ;;  %6491 = vmatpush1.bf16.msra.mxu0 %v9630_v40  ;;  %v12450_v53 = vpack.c.bf16 %v5745_v7, %v5741_v28 }
 0x3db   :  { %v5619_v19 = vmul.f32 0.2, %v8503_v36  ;;  %v8568_v49 = vadd.f32 %v5478_v1, %v12266_v18  ;;  %v8505_v16 = vadd.f32 %v4708_v38, %v12255_v22  ;;  %v5480_v57 = vpop.f32.mrb[162].mxu1  ;;  %v4710_v47 = vpop.f32.mrb[163].mxu0  ;;  %6492 = vmatprep.subr.bf16.mxu0 %v9635_v25  ;;  %v12457_v12 = vpack.c.bf16 %v5746_v37, %v5742_v9 }
 0x3dc   :  { %v5621_v33 = vmul.f32 0.2, %v8567_v27  ;;  %v5620_v14 = vmul.f32 0.2, %v8504_v10  ;;  %v8569_v34 = vadd.f32 %v5480_v57, %v12259_v4  ;;  %v8506_v42 = vadd.f32 %v4710_v47, %v12262_v31  ;;  %v5482_v21 = vpop.f32.mrb[163].mxu1  ;;  %6373 = vmatprep.mubr.bf16.mxu0 %v5840_v43 }
 0x3dd   :  { %v5622_v54 = vmul.f32 0.2, %v8568_v49  ;;  %v5623_v56 = vmul.f32 0.2, %v8505_v16  ;;  %v8570_v39 = vadd.f32 %v5482_v21, %v12266_v18  ;;  %6374 = vmatmul.mubr.bf16.gmra.mrb[220].mxu0 %v5839_v13  ;;  %v5747_v62 = vmax.f32 %v8503_v36, %v5619_v19 }
 0x3de   :  { %v5625_v6 = vmul.f32 0.2, %v8569_v34  ;;  %v5624_v8 = vmul.f32 0.2, %v8506_v42  ;;  %6493 = vmatpush1.bf16.msra.mxu0 %v9633_v15  ;;  %v5749_v40 = vmax.f32 %v8567_v27, %v5621_v33  ;;  %v5748_v32 = vmax.f32 %v8504_v10, %v5620_v14 }
 0x3df   :  { %v5751_v44 = vmax.f32 %v8505_v16, %v5623_v56  ;;  %v5626_v20 = vmul.f32 0.2, %v8570_v39  ;;  %6494 = vmatprep.subr.bf16.mxu0 %v9638_v30  ;;  %v5750_v28 = vmax.f32 %v8568_v49, %v5622_v54 }
 0x3e0   :  { %v5753_v23 = vmax.f32 %v8569_v34, %v5625_v6  ;;  %v5752_v63 = vmax.f32 %v8506_v42, %v5624_v8  ;;  %v4714_v25 = vpop.f32.mrb[164].mxu0 }
 0x3e1   :  { %v5754_v55 = vmax.f32 %v8570_v39, %v5626_v20  ;;  %v8507_v7 = vadd.f32 %v4714_v25, %v12255_v22  ;;  %v5486_v17 = vpop.f32.mrb[164].mxu1  ;;  %v4716_v24 = vpop.f32.mrb[165].mxu0  ;;  %v5843_v9 = vpack.c.bf16 %v5751_v44, %v5747_v62 }
 0x3e2   :  { %v8571_v37 = vadd.f32 %v5486_v17, %v12259_v4  ;;  %v8508_v52 = vadd.f32 %v4716_v24, %v12262_v31  ;;  %v5488_v36 = vpop.f32.mrb[165].mxu1  ;;  %v4718_v2 = vpop.f32.mrb[166].mxu0  ;;  %v5844_v13 = vpack.c.bf16 %v5752_v63, %v5748_v32  ;;  %6495 = vmatpush1.bf16.msra.mxu0 %v9636_v45  ;;  %v12468_v27 = vpack.c.bf16 %v5753_v23, %v5749_v40 }
 0x3e3   :  { %v5627_v10 = vmul.f32 0.2, %v8507_v7  ;;  %v8572_v1 = vadd.f32 %v5488_v36, %v12266_v18  ;;  %v8509_v38 = vadd.f32 %v4718_v2, %v12255_v22  ;;  %v5490_v43 = vpop.f32.mrb[166].mxu1  ;;  %v4720_v15 = vpop.f32.mrb[167].mxu0  ;;  %v12472_v19 = vpack.c.bf16 %v5754_v55, %v5750_v28 }
 0x3e4   :  { %v5629_v49 = vmul.f32 0.2, %v8571_v37  ;;  %v5628_v16 = vmul.f32 0.2, %v8508_v52  ;;  %v8573_v57 = vadd.f32 %v5490_v43, %v12259_v4  ;;  %v8510_v47 = vadd.f32 %v4720_v15, %v12262_v31  ;;  %v5492_v30 = vpop.f32.mrb[167].mxu1  ;;  %6383 = vmatprep.mubr.bf16.mxu0 %v5844_v13 }
 0x3e5   :  { %v5630_v33 = vmul.f32 0.2, %v8572_v1  ;;  %v5631_v14 = vmul.f32 0.2, %v8509_v38  ;;  %v8574_v34 = vadd.f32 %v5492_v30, %v12266_v18  ;;  %6384 = vmatmul.mubr.bf16.gmra.mrb[224].mxu0 %v5843_v9  ;;  %v5755_v54 = vmax.f32 %v8507_v7, %v5627_v10 }
 0x3e6   :  { %v5633_v42 = vmul.f32 0.2, %v8573_v57  ;;  %v5632_v21 = vmul.f32 0.2, %v8510_v47  ;;  %v5757_v6 = vmax.f32 %v8571_v37, %v5629_v49  ;;  %v5756_v8 = vmax.f32 %v8508_v52, %v5628_v16 }
 0x3e7   :  { %v5759_v56 = vmax.f32 %v8509_v38, %v5631_v14  ;;  %v5634_v39 = vmul.f32 0.2, %v8574_v34  ;;  %v5758_v20 = vmax.f32 %v8572_v1, %v5630_v33 }
 0x3e8   :  { %v5761_v45 = vmax.f32 %v8573_v57, %v5633_v42  ;;  %v5760_v62 = vmax.f32 %v8510_v47, %v5632_v21  ;;  %v4724_v44 = vpop.f32.mrb[168].mxu0 }
 0x3e9   :  { %v5762_v40 = vmax.f32 %v8574_v34, %v5634_v39  ;;  %v8511_v32 = vadd.f32 %v4724_v44, %v12255_v22  ;;  %v5496_v23 = vpop.f32.mrb[168].mxu1  ;;  %v4726_v63 = vpop.f32.mrb[169].mxu0  ;;  %v5847_v25 = vpack.c.bf16 %v5759_v56, %v5755_v54 }
 0x3ea   :  { %v8575_v28 = vadd.f32 %v5496_v23, %v12259_v4  ;;  %v8512_v55 = vadd.f32 %v4726_v63, %v12262_v31  ;;  %v5498_v17 = vpop.f32.mrb[169].mxu1  ;;  %v4728_v7 = vpop.f32.mrb[170].mxu0  ;;  %v5848_v24 = vpack.c.bf16 %v5760_v62, %v5756_v8  ;;  %v12480_v9 = vpack.c.bf16 %v5761_v45, %v5757_v6 }
 0x3eb   :  { %v5635_v37 = vmul.f32 0.2, %v8511_v32  ;;  %v8576_v52 = vadd.f32 %v5498_v17, %v12266_v18  ;;  %v8513_v36 = vadd.f32 %v4728_v7, %v12255_v22  ;;  %v5500_v2 = vpop.f32.mrb[170].mxu1  ;;  %v4730_v13 = vpop.f32.mrb[171].mxu0  ;;  %v12484_v10 = vpack.c.bf16 %v5762_v40, %v5758_v20 }
 0x3ec   :  { %v5637_v1 = vmul.f32 0.2, %v8575_v28  ;;  %v5636_v38 = vmul.f32 0.2, %v8512_v55  ;;  %v8577_v43 = vadd.f32 %v5500_v2, %v12259_v4  ;;  %v8514_v15 = vadd.f32 %v4730_v13, %v12262_v31  ;;  %v5502_v49 = vpop.f32.mrb[171].mxu1  ;;  %6393 = vmatprep.mubr.bf16.mxu0 %v5848_v24 }
 0x3ed   :  { %v5638_v16 = vmul.f32 0.2, %v8576_v52  ;;  %v5639_v57 = vmul.f32 0.2, %v8513_v36  ;;  %v8578_v47 = vadd.f32 %v5502_v49, %v12266_v18  ;;  %6394 = vmatmul.mubr.bf16.gmra.mrb[228].mxu0 %v5847_v25  ;;  %v5763_v14 = vmax.f32 %v8511_v32, %v5635_v37 }
 0x3ee   :  { %v5641_v30 = vmul.f32 0.2, %v8577_v43  ;;  %v5640_v33 = vmul.f32 0.2, %v8514_v15  ;;  %v5765_v21 = vmax.f32 %v8575_v28, %v5637_v1  ;;  %v5764_v54 = vmax.f32 %v8512_v55, %v5636_v38 }
 0x3ef   :  { %v5767_v34 = vmax.f32 %v8513_v36, %v5639_v57  ;;  %v5642_v42 = vmul.f32 0.2, %v8578_v47  ;;  %v5766_v8 = vmax.f32 %v8576_v52, %v5638_v16 }
 0x3f0   :  { %v5769_v56 = vmax.f32 %v8577_v43, %v5641_v30  ;;  %v5768_v39 = vmax.f32 %v8514_v15, %v5640_v33  ;;  %v4734_v6 = vpop.f32.mrb[172].mxu0 }
 0x3f1   :  { %v5770_v45 = vmax.f32 %v8578_v47, %v5642_v42  ;;  %v8515_v62 = vadd.f32 %v4734_v6, %v12255_v22  ;;  %v5506_v44 = vpop.f32.mrb[172].mxu1  ;;  %v4736_v20 = vpop.f32.mrb[173].mxu0  ;;  %v5851_v40 = vpack.c.bf16 %v5767_v34, %v5763_v14 }
 0x3f2   :  { %v8579_v23 = vadd.f32 %v5506_v44, %v12259_v4  ;;  %v8516_v63 = vadd.f32 %v4736_v20, %v12262_v31  ;;  %v5508_v25 = vpop.f32.mrb[173].mxu1  ;;  %v4738_v32 = vpop.f32.mrb[174].mxu0  ;;  %v5852_v17 = vpack.c.bf16 %v5768_v39, %v5764_v54  ;;  %v12492_v7 = vpack.c.bf16 %v5769_v56, %v5765_v21 }
 0x3f3   :  { %v5643_v28 = vmul.f32 0.2, %v8515_v62  ;;  %v8580_v55 = vadd.f32 %v5508_v25, %v12266_v18  ;;  %v8517_v24 = vadd.f32 %v4738_v32, %v12255_v22  ;;  %v5510_v37 = vpop.f32.mrb[174].mxu1  ;;  %v4740_v52 = vpop.f32.mrb[175].mxu0  ;;  %v12496_v36 = vpack.c.bf16 %v5770_v45, %v5766_v8 }
 0x3f4   :  { %v5645_v2 = vmul.f32 0.2, %v8579_v23  ;;  %v5644_v13 = vmul.f32 0.2, %v8516_v63  ;;  %v8581_v1 = vadd.f32 %v5510_v37, %v12259_v4  ;;  %v8518_v38 = vadd.f32 %v4740_v52, %v12262_v31  ;;  %v5512_v43 = vpop.f32.mrb[175].mxu1  ;;  %6403 = vmatprep.mubr.bf16.mxu0 %v5852_v17 }
 0x3f5   :  { %v5646_v15 = vmul.f32 0.2, %v8580_v55  ;;  %v5647_v49 = vmul.f32 0.2, %v8517_v24  ;;  %v8582_v16 = vadd.f32 %v5512_v43, %v12266_v18  ;;  %6404 = vmatmul.mubr.bf16.gmra.mrb[232].mxu0 %v5851_v40  ;;  %v5771_v30 = vmax.f32 %v8515_v62, %v5643_v28 }
 0x3f6   :  { %v5649_v57 = vmul.f32 0.2, %v8581_v1  ;;  %v5648_v47 = vmul.f32 0.2, %v8518_v38  ;;  %v5773_v34 = vmax.f32 %v8579_v23, %v5645_v2  ;;  %v5772_v42 = vmax.f32 %v8516_v63, %v5644_v13 }
 0x3f7   :  { %v5775_v33 = vmax.f32 %v8517_v24, %v5647_v49  ;;  %v5650_v14 = vmul.f32 0.2, %v8582_v16  ;;  %v5774_v39 = vmax.f32 %v8580_v55, %v5646_v15 }
 0x3f8   :  { %v5777_v21 = vmax.f32 %v8581_v1, %v5649_v57  ;;  %v5776_v54 = vmax.f32 %v8518_v38, %v5648_v47  ;;  %v4744_v56 = vpop.f32.mrb[176].mxu0 }
 0x3f9   :  { %v5778_v6 = vmax.f32 %v8582_v16, %v5650_v14  ;;  %v8519_v8 = vadd.f32 %v4744_v56, %v12255_v22  ;;  %v5516_v45 = vpop.f32.mrb[176].mxu1  ;;  %v4746_v44 = vpop.f32.mrb[177].mxu0  ;;  %v5855_v20 = vpack.c.bf16 %v5775_v33, %v5771_v30 }
 0x3fa   :  { %v8583_v25 = vadd.f32 %v5516_v45, %v12259_v4  ;;  %v8520_v40 = vadd.f32 %v4746_v44, %v12262_v31  ;;  %v5518_v32 = vpop.f32.mrb[177].mxu1  ;;  %v4748_v62 = vpop.f32.mrb[178].mxu0  ;;  %v5856_v17 = vpack.c.bf16 %v5776_v54, %v5772_v42  ;;  %v12504_v28 = vpack.c.bf16 %v5777_v21, %v5773_v34  ;;  %v9639_v34 = vld [vmem:[%s13204_s7 + $0x40] sm:$0xff]  }
 0x3fb   :  { %v5651_v23 = vmul.f32 0.2, %v8519_v8  ;;  %v8584_v63 = vadd.f32 %v5518_v32, %v12266_v18  ;;  %v8521_v55 = vadd.f32 %v4748_v62, %v12255_v22  ;;  %v5520_v24 = vpop.f32.mrb[178].mxu1  ;;  %v4750_v37 = vpop.f32.mrb[179].mxu0  ;;  %v12508_v52 = vpack.c.bf16 %v5778_v6, %v5774_v39  ;;  %v9640_v6 = vld [vmem:[%s13204_s7] sm:$0xff]   ;;  %8255 = vmatprep.subr.bf16.mxu1 %v9639_v34  ;;  %v9643_v34 = vld [vmem:[%s13204_s7 + $0x50] sm:$0xff]  }
 0x3fc   :  { %v5653_v2 = vmul.f32 0.2, %v8583_v25  ;;  %v5652_v13 = vmul.f32 0.2, %v8520_v40  ;;  %v8585_v1 = vadd.f32 %v5520_v24, %v12259_v4  ;;  %v8522_v38 = vadd.f32 %v4750_v37, %v12262_v31  ;;  %v5522_v43 = vpop.f32.mrb[179].mxu1  ;;  %6413 = vmatprep.mubr.bf16.mxu0 %v5856_v17 }
 0x3fd   :  { %v5654_v15 = vmul.f32 0.2, %v8584_v63  ;;  %v5655_v49 = vmul.f32 0.2, %v8521_v55  ;;  %v8586_v16 = vadd.f32 %v5522_v43, %v12266_v18  ;;  %6414 = vmatmul.mubr.bf16.gmra.mrb[236].mxu0 %v5855_v20  ;;  %v5779_v30 = vmax.f32 %v8519_v8, %v5651_v23 }
 0x3fe   :  { %v5657_v57 = vmul.f32 0.2, %v8585_v1  ;;  %v5656_v47 = vmul.f32 0.2, %v8522_v38  ;;  %6496 = vmatprep.mubr.bf16.mxu0 %v12289_v51  ;;  %v5781_v42 = vmax.f32 %v8583_v25, %v5653_v2  ;;  %v5780_v21 = vmax.f32 %v8520_v40, %v5652_v13 }
 0x3ff   :  { %v5783_v33 = vmax.f32 %v8521_v55, %v5655_v49  ;;  %v5658_v14 = vmul.f32 0.2, %v8586_v16  ;;  %v5782_v45 = vmax.f32 %v8584_v63, %v5654_v15 }
 0x400   :  { %v5785_v54 = vmax.f32 %v8585_v1, %v5657_v57  ;;  %v5784_v56 = vmax.f32 %v8522_v38, %v5656_v47  ;;  %v4754_v39 = vpop.f32.mrb[180].mxu0  ;;  %v9641_v38 = vld [vmem:[%s13204_s7 + $0x48] sm:$0xff]  }
 0x401   :  { %v5859_v44 = vpack.c.bf16 %v5783_v33, %v5779_v30  ;;  %v5786_v20 = vmax.f32 %v8586_v16, %v5658_v14  ;;  %v8523_v51 = vadd.f32 %v4754_v39, %v12255_v22  ;;  %v5526_v8 = vpop.f32.mrb[180].mxu1  ;;  %v4756_v32 = vpop.f32.mrb[181].mxu0  ;;  %v9642_v47 = vld [vmem:[%s13204_s7 + $0x8] sm:$0xff]  }
 0x402   :  { %v8587_v62 = vadd.f32 %v5526_v8, %v12259_v4  ;;  %v8524_v25 = vadd.f32 %v4756_v32, %v12262_v31  ;;  %v5528_v40 = vpop.f32.mrb[181].mxu1  ;;  %v4758_v17 = vpop.f32.mrb[182].mxu0  ;;  %v5860_v23 = vpack.c.bf16 %v5784_v56, %v5780_v21  ;;  %v12523_v55 = vpack.c.bf16 %v5785_v54, %v5781_v42 }
 0x403   :  { %v5659_v24 = vmul.f32 0.2, %v8523_v51  ;;  %v8588_v37 = vadd.f32 %v5528_v40, %v12266_v18  ;;  %v8525_v63 = vadd.f32 %v4758_v17, %v12255_v22  ;;  %v5530_v2 = vpop.f32.mrb[182].mxu1  ;;  %v4760_v13 = vpop.f32.mrb[183].mxu0  ;;  %v12527_v1 = vpack.c.bf16 %v5786_v20, %v5782_v45 }
 0x404   :  { %v5661_v43 = vmul.f32 0.2, %v8587_v62  ;;  %v5660_v15 = vmul.f32 0.2, %v8524_v25  ;;  %v8589_v49 = vadd.f32 %v5530_v2, %v12259_v4  ;;  %v8526_v16 = vadd.f32 %v4760_v13, %v12262_v31  ;;  %v5532_v57 = vpop.f32.mrb[183].mxu1  ;;  %6423 = vmatprep.mubr.bf16.mxu1 %v5860_v23 }
 0x405   :  { %v5662_v30 = vmul.f32 0.2, %v8588_v37  ;;  %v5663_v33 = vmul.f32 0.2, %v8525_v63  ;;  %v8590_v14 = vadd.f32 %v5532_v57, %v12266_v18  ;;  %6424 = vmatmul.mubr.bf16.vlgmr.msra.gmra.mrb[192].mxu1 %v5859_v44  ;;  %6497 = vmatmul.mubr.bf16.vlgmr.msra.gmra.mrb[192].mxu0 %v12277_v48  ;;  %v5787_v54 = vmax.f32 %v8523_v51, %v5659_v24 }
 0x406   :  { %v5665_v42 = vmul.f32 0.2, %v8589_v49  ;;  %v5664_v21 = vmul.f32 0.2, %v8526_v16  ;;  %6506 = vmatprep.mubr.bf16.mxu0 %v12313_v46  ;;  %8256 = vmatpush3.bf16.msra.mxu1 %v9640_v6  ;;  %v5789_v45 = vmax.f32 %v8587_v62, %v5661_v43  ;;  %v5788_v20 = vmax.f32 %v8524_v25, %v5660_v15  ;;  %v9644_v62 = vld [vmem:[%s13204_s7 + $0x10] sm:$0xff]   ;;  %v9645_v25 = vld [vmem:[%s13204_s7 + $0x58] sm:$0xff]  }
 0x407   :  { %v5791_v56 = vmax.f32 %v8525_v63, %v5663_v33  ;;  %v5666_v39 = vmul.f32 0.2, %v8590_v14  ;;  %8257 = vmatprep.subr.bf16.mxu1 %v9641_v38  ;;  %v5790_v40 = vmax.f32 %v8588_v37, %v5662_v30 }
 0x408   :  { %v5793_v8 = vmax.f32 %v8589_v49, %v5665_v42  ;;  %v5792_v32 = vmax.f32 %v8526_v16, %v5664_v21  ;;  %v4764_v44 = vpop.f32.mrb[184].mxu0  ;;  %v9646_v21 = vld [vmem:[%s13204_s7 + $0x18] sm:$0xff]  }
 0x409   :  { %v5794_v48 = vmax.f32 %v8590_v14, %v5666_v39  ;;  %v8527_v17 = vadd.f32 %v4764_v44, %v12255_v22  ;;  %v5536_v23 = vpop.f32.mrb[184].mxu1  ;;  %v4766_v2 = vpop.f32.mrb[185].mxu0  ;;  %v5863_v13 = vpack.c.bf16 %v5791_v56, %v5787_v54  ;;  %v9647_v44 = vld [vmem:[%s13204_s7 + $0x60] sm:$0xff]  }
 0x40a   :  { %v8591_v57 = vadd.f32 %v5536_v23, %v12259_v4  ;;  %v8528_v46 = vadd.f32 %v4766_v2, %v12262_v31  ;;  %v5538_v6 = vpop.f32.mrb[185].mxu1  ;;  %v4768_v51 = vpop.f32.mrb[186].mxu0  ;;  %v5864_v24 = vpack.c.bf16 %v5792_v32, %v5788_v20  ;;  %v12546_v63 = vpack.c.bf16 %v5793_v8, %v5789_v45  ;;  %8258 = vmatpush3.bf16.msra.mxu1 %v9642_v47 }
 0x40b   :  { %v5667_v37 = vmul.f32 0.2, %v8527_v17  ;;  %v8592_v38 = vadd.f32 %v5538_v6, %v12266_v18  ;;  %v8529_v43 = vadd.f32 %v4768_v51, %v12255_v22  ;;  %v5540_v15 = vpop.f32.mrb[186].mxu1  ;;  %v4770_v49 = vpop.f32.mrb[187].mxu0  ;;  %v12556_v16 = vpack.c.bf16 %v5794_v48, %v5790_v40  ;;  %8259 = vmatprep.subr.bf16.mxu1 %v9643_v34 }
 0x40c   :  { %v5669_v30 = vmul.f32 0.2, %v8591_v57  ;;  %v5668_v47 = vmul.f32 0.2, %v8528_v46  ;;  %v8593_v33 = vadd.f32 %v5540_v15, %v12259_v4  ;;  %v8530_v14 = vadd.f32 %v4770_v49, %v12262_v31  ;;  %v5542_v42 = vpop.f32.mrb[187].mxu1  ;;  %6433 = vmatprep.mubr.bf16.mxu1 %v5864_v24 }
 0x40d   :  { %v5670_v54 = vmul.f32 0.2, %v8592_v38  ;;  %v5671_v56 = vmul.f32 0.2, %v8529_v43  ;;  %v8594_v39 = vadd.f32 %v5542_v42, %v12266_v18  ;;  %6434 = vmatmul.mubr.bf16.gmra.mrb[196].mxu1 %v5863_v13  ;;  %6507 = vmatmul.mubr.bf16.gmra.mrb[196].mxu0 %v12306_v5  ;;  %v5795_v20 = vmax.f32 %v8527_v17, %v5667_v37  ;;  %v9648_v5 = vld [vmem:[%s13204_s7 + $0x20] sm:$0xff]  }
 0x40e   :  { %v5673_v34 = vmul.f32 0.2, %v8593_v33  ;;  %v5672_v45 = vmul.f32 0.2, %v8530_v14  ;;  %6516 = vmatprep.mubr.bf16.mxu0 %v12337_v26  ;;  %8260 = vmatpush3.bf16.msra.mxu1 %v9644_v62  ;;  %v5797_v40 = vmax.f32 %v8591_v57, %v5669_v30  ;;  %v5796_v48 = vmax.f32 %v8528_v46, %v5668_v47 }
 0x40f   :  { %v5799_v8 = vmax.f32 %v8529_v43, %v5671_v56  ;;  %v5674_v32 = vmul.f32 0.2, %v8594_v39  ;;  %8261 = vmatprep.subr.bf16.mxu1 %v9645_v25  ;;  %v5798_v6 = vmax.f32 %v8592_v38, %v5670_v54 }
 0x410   :  { %v5801_v23 = vmax.f32 %v8593_v33, %v5673_v34  ;;  %v5800_v2 = vmax.f32 %v8530_v14, %v5672_v45  ;;  %v4774_v13 = vpop.f32.mrb[188].mxu0 }
 0x411   :  { %v5802_v26 = vmax.f32 %v8594_v39, %v5674_v32  ;;  %v8531_v17 = vadd.f32 %v4774_v13, %v12255_v22  ;;  %v5546_v51 = vpop.f32.mrb[188].mxu1  ;;  %v4776_v24 = vpop.f32.mrb[189].mxu0  ;;  %v5867_v62 = vpack.c.bf16 %v5799_v8, %v5795_v20 }
 0x412   :  { %v8595_v25 = vadd.f32 %v5546_v51, %v12259_v4  ;;  %v8532_v37 = vadd.f32 %v4776_v24, %v12262_v31  ;;  %v5548_v57 = vpop.f32.mrb[189].mxu1  ;;  %v4778_v46 = vpop.f32.mrb[190].mxu0  ;;  %v5868_v43 = vpack.c.bf16 %v5800_v2, %v5796_v48  ;;  %v12575_v15 = vpack.c.bf16 %v5801_v23, %v5797_v40  ;;  %8262 = vmatpush3.bf16.msra.mxu1 %v9646_v21  ;;  %v9655_v24 = vld [vmem:[%s13206_s9] sm:$0xff]  }
 0x413   :  { %v5675_v49 = vmul.f32 0.2, %v8531_v17  ;;  %v8596_v30 = vadd.f32 %v5548_v57, %v12266_v18  ;;  %v8533_v38 = vadd.f32 %v4778_v46, %v12255_v22  ;;  %v5550_v47 = vpop.f32.mrb[190].mxu1  ;;  %v4780_v33 = vpop.f32.mrb[191].mxu0  ;;  %v12579_v14 = vpack.c.bf16 %v5802_v26, %v5798_v6  ;;  %8263 = vmatprep.subr.bf16.mxu1 %v9647_v44 }
 0x414   :  { %v5677_v42 = vmul.f32 0.2, %v8595_v25  ;;  %v5676_v54 = vmul.f32 0.2, %v8532_v37  ;;  %v8597_v56 = vadd.f32 %v5550_v47, %v12259_v4  ;;  %v8534_v39 = vadd.f32 %v4780_v33, %v12262_v31  ;;  %v5552_v34 = vpop.f32.mrb[191].mxu1  ;;  %6443 = vmatprep.mubr.bf16.mxu1 %v5868_v43 }
 0x415   :  { %v5678_v45 = vmul.f32 0.2, %v8596_v30  ;;  %v5679_v21 = vmul.f32 0.2, %v8533_v38  ;;  %v8598_v20 = vadd.f32 %v5552_v34, %v12266_v18  ;;  %6444 = vmatmul.mubr.bf16.gmra.mrb[200].mxu1 %v5867_v62  ;;  %6517 = vmatmul.mubr.bf16.gmra.mrb[200].mxu0 %v12330_v58  ;;  %v5803_v32 = vmax.f32 %v8531_v17, %v5675_v49  ;;  %v9649_v58 = vld [vmem:[%s13204_s7 + $0x68] sm:$0xff]  }
 0x416   :  { %v5681_v22 = vmul.f32 0.2, %v8597_v56  ;;  %v5680_v8 = vmul.f32 0.2, %v8534_v39  ;;  %6526 = vmatprep.mubr.bf16.mxu0 %v12361_v59  ;;  %8264 = vmatpush3.bf16.msra.mxu1 %v9648_v5  ;;  %v5805_v4 = vmax.f32 %v8595_v25, %v5677_v42  ;;  %v5804_v48 = vmax.f32 %v8532_v37, %v5676_v54  ;;  %v9651_v59 = vld [vmem:[%s13204_s7 + $0x70] sm:$0xff]  }
 0x417   :  { %v5807_v44 = vmax.f32 %v8533_v38, %v5679_v21  ;;  %v5682_v40 = vmul.f32 0.2, %v8598_v20  ;;  %v5806_v2 = vmax.f32 %v8596_v30, %v5678_v45  ;;  %8265 = vmatprep.subr.bf16.mxu1 %v9649_v58 }
 0x418   :  { %v5809_v31 = vmax.f32 %v8597_v56, %v5681_v22  ;;  %v5808_v23 = vmax.f32 %v8534_v39, %v5680_v8 }
 0x419   :  { %v5810_v13 = vmax.f32 %v8598_v20, %v5682_v40  ;;  %v5871_v6 = vpack.c.bf16 %v5807_v44, %v5803_v32  ;;  %v9657_v32 = vld [vmem:[%s13206_s9 + $0x10] sm:$0xff]  }
 0x41a   :  { %v5872_v26 = vpack.c.bf16 %v5808_v23, %v5804_v48  ;;  %v5873_v18 = vpack.c.bf16 %v5809_v31, %v5805_v4 }
 0x41b   :  { %v5874_v51 = vpack.c.bf16 %v5810_v13, %v5806_v2 }
 0x41c   :  { %6453 = vmatprep.mubr.bf16.mxu1 %v5872_v26 }
 0x41d   :  { %6454 = vmatmul.mubr.bf16.gmra.mrb[204].mxu1 %v5871_v6  ;;  %6527 = vmatmul.mubr.bf16.gmra.mrb[204].mxu0 %v12354_v61  ;;  %v9650_v61 = vld [vmem:[%s13204_s7 + $0x28] sm:$0xff]  }
 0x41e   :  { %6536 = vmatprep.mubr.bf16.mxu0 %v12385_v0  ;;  %8266 = vmatpush3.bf16.msra.mxu1 %v9650_v61  ;;  %v9653_v0 = vld [vmem:[%s13204_s7 + $0x78] sm:$0xff]  }
 0x41f   :  { %8267 = vmatprep.subr.bf16.mxu1 %v9651_v59 }
 0x425   :  { %6537 = vmatmul.mubr.bf16.gmra.mrb[208].mxu0 %v12378_v60  ;;  %v9652_v60 = vld [vmem:[%s13204_s7 + $0x30] sm:$0xff]  }
 0x426   :  { %6546 = vmatprep.mubr.bf16.mxu0 %v12409_v11  ;;  %8268 = vmatpush3.bf16.msra.mxu1 %v9652_v60  ;;  %v5939_v11 = vld [vmem:[%s13205_s6] sm:$0x3] }
 0x427   :  { %8269 = vmatprep.subr.bf16.mxu1 %v9653_v0  ;;  %v9658_v0 = vld [vmem:[%s13206_s9 + $0x18] sm:$0xff]  }
 0x42d   :  { %6547 = vmatmul.mubr.bf16.gmra.mrb[212].mxu0 %v12402_v41  ;;  %v9654_v41 = vld [vmem:[%s13204_s7 + $0x38] sm:$0xff]  }
 0x42e   :  { %6556 = vmatprep.mubr.bf16.mxu0 %v12433_v3  ;;  %8270 = vmatpush3.bf16.msra.mxu1 %v9654_v41  ;;  %v12634_v3 = vrot.slane %v5939_v11, %v13341_v50 }
 0x42f   :  { %8391 = vmatprep.subr.bf16.mxu1 %v9655_v24 }
 0x435   :  { %6557 = vmatmul.mubr.bf16.gmra.mrb[216].mxu0 %v12426_v35  ;;  %v12631_v35 = vrot.slane %v5939_v11, %v13338_v29 }
 0x436   :  { %6566 = vmatprep.mubr.bf16.mxu0 %v12457_v12 }
 0x43d   :  { %6567 = vmatmul.mubr.bf16.gmra.mrb[220].mxu0 %v12450_v53 }
 0x43e   :  { %6576 = vmatprep.mubr.bf16.mxu0 %v12472_v19 }
 0x445   :  { %6577 = vmatmul.mubr.bf16.gmra.mrb[224].mxu0 %v12468_v27 }
 0x446   :  { %6586 = vmatprep.mubr.bf16.mxu0 %v12484_v10 }
 0x44d   :  { %6587 = vmatmul.mubr.bf16.gmra.mrb[228].mxu0 %v12480_v9 }
 0x44e   :  { %6596 = vmatprep.mubr.bf16.mxu0 %v12496_v36 }
 0x455   :  { %6597 = vmatmul.mubr.bf16.gmra.mrb[232].mxu0 %v12492_v7 }
 0x456   :  { %6606 = vmatprep.mubr.bf16.mxu0 %v12508_v52 }
 0x45d   :  { %6607 = vmatmul.mubr.bf16.gmra.mrb[236].mxu0 %v12504_v28 }
 0x45e   :  { %6616 = vmatprep.mubr.bf16.mxu0 %v12527_v1 }
 0x465   :  { %6617 = vmatmul.mubr.bf16.gmra.mrb[240].mxu0 %v12523_v55 }
 0x466   :  { %6626 = vmatprep.mubr.bf16.mxu0 %v12556_v16 }
 0x46d   :  { %6627 = vmatmul.mubr.bf16.gmra.mrb[244].mxu0 %v12546_v63 }
 0x46e   :  { %6636 = vmatprep.mubr.bf16.mxu0 %v12579_v14  ;;  %v9656_v14 = vld [vmem:[%s13206_s9 + $0x8] sm:$0xff]  }
 0x475   :  { %6637 = vmatmul.mubr.bf16.gmra.mrb[248].mxu0 %v12575_v15 }
 0x476   :  { %6646 = vmatprep.mubr.bf16.mxu0 %v5874_v51 }
 0x47d   :  { %6647 = vmatmul.mubr.bf16.gmra.mrb[252].mxu0 %v5873_v18 }
 0x4d8   :  { %v12636_v53 = vpop.f32.mrb[192].mxu1  ;;  %v6498_v12 = vpop.f32.mrb[192].mxu0 }
 0x4d9   :  { %v8599_v27 = vadd.f32 %v6498_v12, %v12631_v35  ;;  %v12639_v19 = vpop.f32.mrb[193].mxu1  ;;  %v6500_v9 = vpop.f32.mrb[193].mxu0 }
 0x4da   :  { %v8600_v10 = vadd.f32 %v6500_v9, %v12634_v3  ;;  %v12642_v7 = vpop.f32.mrb[194].mxu1  ;;  %v6502_v36 = vpop.f32.mrb[194].mxu0 }
 0x4db   :  { %v6657_v28 = vmul.f32 0.2, %v8599_v27  ;;  %v8601_v29 = vadd.f32 %v6502_v36, %v12631_v35  ;;  %v12645_v52 = vpop.f32.mrb[195].mxu1  ;;  %v6504_v50 = vpop.f32.mrb[195].mxu0 }
 0x4dc   :  { %v6658_v55 = vmul.f32 0.2, %v8600_v10  ;;  %v8602_v1 = vadd.f32 %v6504_v50, %v12634_v3 }
 0x4dd   :  { %v6659_v63 = vmul.f32 0.2, %v8601_v29  ;;  %v6721_v5 = vmax.f32 %v8599_v27, %v6657_v28 }
 0x4de   :  { %v6660_v16 = vmul.f32 0.2, %v8602_v1  ;;  %v6722_v62 = vmax.f32 %v8600_v10, %v6658_v55 }
 0x4df   :  { %v6723_v17 = vmax.f32 %v8601_v29, %v6659_v63 }
 0x4e0   :  { %v6724_v25 = vmax.f32 %v8602_v1, %v6660_v16  ;;  %v12651_v37 = vpop.f32.mrb[196].mxu1  ;;  %v6508_v57 = vpop.f32.mrb[196].mxu0 }
 0x4e1   :  { %v6785_v46 = vpack.c.bf16 %v6723_v17, %v6721_v5  ;;  %v8603_v43 = vadd.f32 %v6508_v57, %v12631_v35  ;;  %v12654_v15 = vpop.f32.mrb[197].mxu1  ;;  %v6510_v49 = vpop.f32.mrb[197].mxu0 }
 0x4e2   :  { %v8604_v30 = vadd.f32 %v6510_v49, %v12634_v3  ;;  %v12657_v38 = vpop.f32.mrb[198].mxu1  ;;  %v6512_v47 = vpop.f32.mrb[198].mxu0  ;;  %v6786_v33 = vpack.c.bf16 %v6724_v25, %v6722_v62 }
 0x4e3   :  { %v6661_v42 = vmul.f32 0.2, %v8603_v43  ;;  %v8605_v54 = vadd.f32 %v6512_v47, %v12631_v35  ;;  %v12663_v56 = vpop.f32.mrb[199].mxu1  ;;  %v6514_v39 = vpop.f32.mrb[199].mxu0 }
 0x4e4   :  { %v6662_v34 = vmul.f32 0.2, %v8604_v30  ;;  %v8606_v45 = vadd.f32 %v6514_v39, %v12634_v3  ;;  %6984 = vmatprep.mubr.bf16.mxu1 %v6786_v33 }
 0x4e5   :  { %v6663_v21 = vmul.f32 0.2, %v8605_v54  ;;  %6985 = vmatmul.mubr.bf16.vlgmr.msra.gmra.mrb[208].mxu1 %v6785_v46  ;;  %v6725_v22 = vmax.f32 %v8603_v43, %v6661_v42 }
 0x4e6   :  { %v6664_v20 = vmul.f32 0.2, %v8606_v45  ;;  %8392 = vmatpush3.bf16.msra.mxu1 %v9655_v24  ;;  %v6726_v44 = vmax.f32 %v8604_v30, %v6662_v34 }
 0x4e7   :  { %v6727_v8 = vmax.f32 %v8605_v54, %v6663_v21  ;;  %8393 = vmatprep.subr.bf16.mxu1 %v9656_v14 }
 0x4e8   :  { %v6728_v40 = vmax.f32 %v8606_v45, %v6664_v20  ;;  %v12669_v4 = vpop.f32.mrb[200].mxu1  ;;  %v6518_v48 = vpop.f32.mrb[200].mxu0 }
 0x4e9   :  { %v8607_v31 = vadd.f32 %v6518_v48, %v12631_v35  ;;  %v12672_v23 = vpop.f32.mrb[201].mxu1  ;;  %v6520_v2 = vpop.f32.mrb[201].mxu0  ;;  %v6787_v13 = vpack.c.bf16 %v6727_v8, %v6725_v22 }
 0x4ea   :  { %v8608_v6 = vadd.f32 %v6520_v2, %v12634_v3  ;;  %v12675_v26 = vpop.f32.mrb[202].mxu1  ;;  %v6522_v18 = vpop.f32.mrb[202].mxu0  ;;  %v6788_v51 = vpack.c.bf16 %v6728_v40, %v6726_v44  ;;  %8394 = vmatpush3.bf16.msra.mxu1 %v9656_v14 }
 0x4eb   :  { %v6665_v58 = vmul.f32 0.2, %v8607_v31  ;;  %v8609_v61 = vadd.f32 %v6522_v18, %v12631_v35  ;;  %v12678_v59 = vpop.f32.mrb[203].mxu1  ;;  %v6524_v60 = vpop.f32.mrb[203].mxu0  ;;  %8395 = vmatprep.subr.bf16.mxu1 %v9657_v32 }
 0x4ec   :  { %v6666_v41 = vmul.f32 0.2, %v8608_v6  ;;  %v8610_v11 = vadd.f32 %v6524_v60, %v12634_v3  ;;  %6992 = vmatprep.mubr.bf16.mxu1 %v6788_v51 }
 0x4ed   :  { %v6667_v12 = vmul.f32 0.2, %v8609_v61  ;;  %6993 = vmatmul.mubr.bf16.gmra.mrb[212].mxu1 %v6787_v13  ;;  %v6729_v9 = vmax.f32 %v8607_v31, %v6665_v58 }
 0x4ee   :  { %v6668_v27 = vmul.f32 0.2, %v8610_v11  ;;  %8396 = vmatpush3.bf16.msra.mxu1 %v9657_v32  ;;  %v6730_v36 = vmax.f32 %v8608_v6, %v6666_v41 }
 0x4ef   :  { %v6731_v10 = vmax.f32 %v8609_v61, %v6667_v12  ;;  %8397 = vmatprep.subr.bf16.mxu1 %v9658_v0 }
 0x4f0   :  { %v6732_v28 = vmax.f32 %v8610_v11, %v6668_v27  ;;  %v12684_v29 = vpop.f32.mrb[204].mxu1  ;;  %v6528_v50 = vpop.f32.mrb[204].mxu0 }
 0x4f1   :  { %v8611_v55 = vadd.f32 %v6528_v50, %v12631_v35  ;;  %v12687_v1 = vpop.f32.mrb[205].mxu1  ;;  %v6530_v63 = vpop.f32.mrb[205].mxu0  ;;  %v6789_v16 = vpack.c.bf16 %v6731_v10, %v6729_v9 }
 0x4f2   :  { %v8612_v5 = vadd.f32 %v6530_v63, %v12634_v3  ;;  %v12690_v17 = vpop.f32.mrb[206].mxu1  ;;  %v6532_v24 = vpop.f32.mrb[206].mxu0  ;;  %v6790_v62 = vpack.c.bf16 %v6732_v28, %v6730_v36  ;;  %8398 = vmatpush3.bf16.msra.mxu1 %v9658_v0 }
 0x4f3   :  { %v6669_v25 = vmul.f32 0.2, %v8611_v55  ;;  %v8613_v57 = vadd.f32 %v6532_v24, %v12631_v35  ;;  %v12693_v46 = vpop.f32.mrb[207].mxu1  ;;  %v6534_v43 = vpop.f32.mrb[207].mxu0 }
 0x4f4   :  { %v6670_v49 = vmul.f32 0.2, %v8612_v5  ;;  %v8614_v30 = vadd.f32 %v6534_v43, %v12634_v3  ;;  %7000 = vmatprep.mubr.bf16.mxu1 %v6790_v62 }
 0x4f5   :  { %v6671_v47 = vmul.f32 0.2, %v8613_v57  ;;  %7001 = vmatmul.mubr.bf16.gmra.mrb[216].mxu1 %v6789_v16  ;;  %v6733_v14 = vmax.f32 %v8611_v55, %v6669_v25 }
 0x4f6   :  { %v6672_v33 = vmul.f32 0.2, %v8614_v30  ;;  %v6734_v54 = vmax.f32 %v8612_v5, %v6670_v49 }
 0x4f7   :  { %v6735_v42 = vmax.f32 %v8613_v57, %v6671_v47 }
 0x4f8   :  { %v6736_v39 = vmax.f32 %v8614_v30, %v6672_v33  ;;  %v6538_v34 = vpop.f32.mrb[208].mxu0 }
 0x4f9   :  { %v8615_v45 = vadd.f32 %v6538_v34, %v12631_v35  ;;  %v6540_v21 = vpop.f32.mrb[209].mxu0  ;;  %v6791_v20 = vpack.c.bf16 %v6735_v42, %v6733_v14 }
 0x4fa   :  { %v8616_v22 = vadd.f32 %v6540_v21, %v12634_v3  ;;  %v6542_v8 = vpop.f32.mrb[210].mxu0  ;;  %v6792_v32 = vpack.c.bf16 %v6736_v39, %v6734_v54 }
 0x4fb   :  { %v6673_v44 = vmul.f32 0.2, %v8615_v45  ;;  %v8617_v40 = vadd.f32 %v6542_v8, %v12631_v35  ;;  %v6544_v48 = vpop.f32.mrb[211].mxu0 }
 0x4fc   :  { %v6674_v31 = vmul.f32 0.2, %v8616_v22  ;;  %v8618_v2 = vadd.f32 %v6544_v48, %v12634_v3  ;;  %7008 = vmatprep.mubr.bf16.mxu1 %v6792_v32 }
 0x4fd   :  { %v6675_v13 = vmul.f32 0.2, %v8617_v40  ;;  %7009 = vmatmul.mubr.bf16.gmra.mrb[220].mxu1 %v6791_v20  ;;  %v6737_v18 = vmax.f32 %v8615_v45, %v6673_v44 }
 0x4fe   :  { %v6676_v6 = vmul.f32 0.2, %v8618_v2  ;;  %v6738_v58 = vmax.f32 %v8616_v22, %v6674_v31 }
 0x4ff   :  { %v6739_v51 = vmax.f32 %v8617_v40, %v6675_v13 }
 0x500   :  { %v6740_v61 = vmax.f32 %v8618_v2, %v6676_v6  ;;  %v6548_v60 = vpop.f32.mrb[212].mxu0 }
 0x501   :  { %v8619_v0 = vadd.f32 %v6548_v60, %v12631_v35  ;;  %v6550_v41 = vpop.f32.mrb[213].mxu0  ;;  %v6793_v11 = vpack.c.bf16 %v6739_v51, %v6737_v18 }
 0x502   :  { %v8620_v12 = vadd.f32 %v6550_v41, %v12634_v3  ;;  %v6552_v27 = vpop.f32.mrb[214].mxu0  ;;  %v6794_v9 = vpack.c.bf16 %v6740_v61, %v6738_v58 }
 0x503   :  { %v6677_v10 = vmul.f32 0.2, %v8619_v0  ;;  %v8621_v36 = vadd.f32 %v6552_v27, %v12631_v35  ;;  %v6554_v28 = vpop.f32.mrb[215].mxu0 }
 0x504   :  { %v6678_v50 = vmul.f32 0.2, %v8620_v12  ;;  %v8622_v55 = vadd.f32 %v6554_v28, %v12634_v3  ;;  %7016 = vmatprep.mubr.bf16.mxu1 %v6794_v9 }
 0x505   :  { %v6679_v63 = vmul.f32 0.2, %v8621_v36  ;;  %7017 = vmatmul.mubr.bf16.gmra.mrb[224].mxu1 %v6793_v11  ;;  %v6741_v5 = vmax.f32 %v8619_v0, %v6677_v10 }
 0x506   :  { %v6680_v16 = vmul.f32 0.2, %v8622_v55  ;;  %v6742_v62 = vmax.f32 %v8620_v12, %v6678_v50 }
 0x507   :  { %v6743_v24 = vmax.f32 %v8621_v36, %v6679_v63 }
 0x508   :  { %v6744_v25 = vmax.f32 %v8622_v55, %v6680_v16  ;;  %v6558_v57 = vpop.f32.mrb[216].mxu0 }
 0x509   :  { %v8623_v43 = vadd.f32 %v6558_v57, %v12631_v35  ;;  %v6560_v49 = vpop.f32.mrb[217].mxu0  ;;  %v6795_v30 = vpack.c.bf16 %v6743_v24, %v6741_v5 }
 0x50a   :  { %v8624_v47 = vadd.f32 %v6560_v49, %v12634_v3  ;;  %v6562_v33 = vpop.f32.mrb[218].mxu0  ;;  %v6796_v14 = vpack.c.bf16 %v6744_v25, %v6742_v62 }
 0x50b   :  { %v6681_v42 = vmul.f32 0.2, %v8623_v43  ;;  %v8625_v54 = vadd.f32 %v6562_v33, %v12631_v35  ;;  %v6564_v39 = vpop.f32.mrb[219].mxu0 }
 0x50c   :  { %v6682_v34 = vmul.f32 0.2, %v8624_v47  ;;  %v8626_v45 = vadd.f32 %v6564_v39, %v12634_v3  ;;  %7024 = vmatprep.mubr.bf16.mxu1 %v6796_v14 }
 0x50d   :  { %v6683_v21 = vmul.f32 0.2, %v8625_v54  ;;  %7025 = vmatmul.mubr.bf16.gmra.mrb[228].mxu1 %v6795_v30  ;;  %v6745_v22 = vmax.f32 %v8623_v43, %v6681_v42 }
 0x50e   :  { %v6684_v20 = vmul.f32 0.2, %v8626_v45  ;;  %v6746_v32 = vmax.f32 %v8624_v47, %v6682_v34 }
 0x50f   :  { %v6747_v8 = vmax.f32 %v8625_v54, %v6683_v21 }
 0x510   :  { %v6748_v44 = vmax.f32 %v8626_v45, %v6684_v20  ;;  %v6568_v40 = vpop.f32.mrb[220].mxu0 }
 0x511   :  { %v8627_v48 = vadd.f32 %v6568_v40, %v12631_v35  ;;  %v6570_v31 = vpop.f32.mrb[221].mxu0  ;;  %v6797_v2 = vpack.c.bf16 %v6747_v8, %v6745_v22 }
 0x512   :  { %v8628_v13 = vadd.f32 %v6570_v31, %v12634_v3  ;;  %v6572_v6 = vpop.f32.mrb[222].mxu0  ;;  %v6798_v18 = vpack.c.bf16 %v6748_v44, %v6746_v32 }
 0x513   :  { %v6685_v51 = vmul.f32 0.2, %v8627_v48  ;;  %v8629_v58 = vadd.f32 %v6572_v6, %v12631_v35  ;;  %v6574_v61 = vpop.f32.mrb[223].mxu0 }
 0x514   :  { %v6686_v60 = vmul.f32 0.2, %v8628_v13  ;;  %v8630_v0 = vadd.f32 %v6574_v61, %v12634_v3  ;;  %7032 = vmatprep.mubr.bf16.mxu1 %v6798_v18 }
 0x515   :  { %v6687_v41 = vmul.f32 0.2, %v8629_v58  ;;  %7033 = vmatmul.mubr.bf16.gmra.mrb[232].mxu1 %v6797_v2  ;;  %v6749_v12 = vmax.f32 %v8627_v48, %v6685_v51 }
 0x516   :  { %v6688_v11 = vmul.f32 0.2, %v8630_v0  ;;  %v6750_v9 = vmax.f32 %v8628_v13, %v6686_v60 }
 0x517   :  { %v6751_v27 = vmax.f32 %v8629_v58, %v6687_v41 }
 0x518   :  { %v6752_v10 = vmax.f32 %v8630_v0, %v6688_v11  ;;  %v6578_v36 = vpop.f32.mrb[224].mxu0 }
 0x519   :  { %v8631_v28 = vadd.f32 %v6578_v36, %v12631_v35  ;;  %v6580_v50 = vpop.f32.mrb[225].mxu0  ;;  %v6799_v55 = vpack.c.bf16 %v6751_v27, %v6749_v12 }
 0x51a   :  { %v8632_v63 = vadd.f32 %v6580_v50, %v12634_v3  ;;  %v6582_v16 = vpop.f32.mrb[226].mxu0  ;;  %v6800_v5 = vpack.c.bf16 %v6752_v10, %v6750_v9 }
 0x51b   :  { %v6689_v24 = vmul.f32 0.2, %v8631_v28  ;;  %v8633_v62 = vadd.f32 %v6582_v16, %v12631_v35  ;;  %v6584_v25 = vpop.f32.mrb[227].mxu0 }
 0x51c   :  { %v6690_v57 = vmul.f32 0.2, %v8632_v63  ;;  %v8634_v43 = vadd.f32 %v6584_v25, %v12634_v3  ;;  %7040 = vmatprep.mubr.bf16.mxu1 %v6800_v5 }
 0x51d   :  { %v6691_v49 = vmul.f32 0.2, %v8633_v62  ;;  %7041 = vmatmul.mubr.bf16.gmra.mrb[236].mxu1 %v6799_v55  ;;  %v6753_v47 = vmax.f32 %v8631_v28, %v6689_v24 }
 0x51e   :  { %v6692_v30 = vmul.f32 0.2, %v8634_v43  ;;  %v6754_v14 = vmax.f32 %v8632_v63, %v6690_v57 }
 0x51f   :  { %v6755_v33 = vmax.f32 %v8633_v62, %v6691_v49 }
 0x520   :  { %v6756_v42 = vmax.f32 %v8634_v43, %v6692_v30  ;;  %v6588_v54 = vpop.f32.mrb[228].mxu0 }
 0x521   :  { %v8635_v39 = vadd.f32 %v6588_v54, %v12631_v35  ;;  %v6590_v34 = vpop.f32.mrb[229].mxu0  ;;  %v6801_v45 = vpack.c.bf16 %v6755_v33, %v6753_v47 }
 0x522   :  { %v8636_v21 = vadd.f32 %v6590_v34, %v12634_v3  ;;  %v6592_v20 = vpop.f32.mrb[230].mxu0  ;;  %v6802_v22 = vpack.c.bf16 %v6756_v42, %v6754_v14 }
 0x523   :  { %v6693_v8 = vmul.f32 0.2, %v8635_v39  ;;  %v8637_v32 = vadd.f32 %v6592_v20, %v12631_v35  ;;  %v6594_v44 = vpop.f32.mrb[231].mxu0 }
 0x524   :  { %v6694_v40 = vmul.f32 0.2, %v8636_v21  ;;  %v8638_v48 = vadd.f32 %v6594_v44, %v12634_v3  ;;  %7048 = vmatprep.mubr.bf16.mxu1 %v6802_v22 }
 0x525   :  { %v6695_v31 = vmul.f32 0.2, %v8637_v32  ;;  %7049 = vmatmul.mubr.bf16.gmra.mrb[240].mxu1 %v6801_v45  ;;  %v6757_v13 = vmax.f32 %v8635_v39, %v6693_v8  ;;  %v6428_v8 = vadd.f32 %v12639_v19, %v12634_v3 }
 0x526   :  { %v6696_v2 = vmul.f32 0.2, %v8638_v48  ;;  %v6758_v18 = vmax.f32 %v8636_v21, %v6694_v40  ;;  %v6426_v21 = vadd.f32 %v12636_v53, %v12631_v35 }
 0x527   :  { %v6759_v6 = vmax.f32 %v8637_v32, %v6695_v31 }
 0x528   :  { %v6760_v51 = vmax.f32 %v8638_v48, %v6696_v2  ;;  %v6598_v58 = vpop.f32.mrb[232].mxu0  ;;  %v6430_v48 = vadd.f32 %v12642_v7, %v12631_v35  ;;  %v9659_v7 = vld [vmem:[%s13206_s9 + $0x20] sm:$0xff]  }
 0x529   :  { %v8639_v61 = vadd.f32 %v6598_v58, %v12631_v35  ;;  %v6600_v60 = vpop.f32.mrb[233].mxu0  ;;  %v6803_v0 = vpack.c.bf16 %v6759_v6, %v6757_v13  ;;  %v6432_v6 = vadd.f32 %v12645_v52, %v12634_v3  ;;  %8399 = vmatprep.subr.bf16.mxu1 %v9659_v7 }
 0x52a   :  { %v8640_v41 = vadd.f32 %v6600_v60, %v12634_v3  ;;  %v6602_v11 = vpop.f32.mrb[234].mxu0  ;;  %v6804_v12 = vpack.c.bf16 %v6760_v51, %v6758_v18  ;;  %8400 = vmatpush3.bf16.msra.mxu1 %v9659_v7 }
 0x52b   :  { %v6697_v27 = vmul.f32 0.2, %v8639_v61  ;;  %v8641_v9 = vadd.f32 %v6602_v11, %v12631_v35  ;;  %v6604_v10 = vpop.f32.mrb[235].mxu0 }
 0x52c   :  { %v6698_v36 = vmul.f32 0.2, %v8640_v41  ;;  %v8642_v28 = vadd.f32 %v6604_v10, %v12634_v3  ;;  %7056 = vmatprep.mubr.bf16.mxu1 %v6804_v12  ;;  %v6436_v12 = vadd.f32 %v12651_v37, %v12631_v35  ;;  %v9660_v37 = vld [vmem:[%s13206_s9 + $0x28] sm:$0xff]  }
 0x52d   :  { %v6699_v50 = vmul.f32 0.2, %v8641_v9  ;;  %7057 = vmatmul.mubr.bf16.gmra.mrb[244].mxu1 %v6803_v0  ;;  %v6761_v63 = vmax.f32 %v8639_v61, %v6697_v27  ;;  %8401 = vmatprep.subr.bf16.mxu1 %v9660_v37 }
 0x52e   :  { %v6700_v55 = vmul.f32 0.2, %v8642_v28  ;;  %v6762_v5 = vmax.f32 %v8640_v41, %v6698_v36  ;;  %8402 = vmatpush3.bf16.msra.mxu1 %v9660_v37 }
 0x52f   :  { %v6763_v16 = vmax.f32 %v8641_v9, %v6699_v50  ;;  %v6438_v9 = vadd.f32 %v12654_v15, %v12634_v3  ;;  %v6440_v50 = vadd.f32 %v12657_v38, %v12631_v35 }
 0x530   :  { %v6764_v24 = vmax.f32 %v8642_v28, %v6700_v55  ;;  %v6608_v62 = vpop.f32.mrb[236].mxu0 }
 0x531   :  { %v8643_v25 = vadd.f32 %v6608_v62, %v12631_v35  ;;  %v6610_v57 = vpop.f32.mrb[237].mxu0  ;;  %v6805_v43 = vpack.c.bf16 %v6763_v16, %v6761_v63 }
 0x532   :  { %v8644_v49 = vadd.f32 %v6610_v57, %v12634_v3  ;;  %v6612_v30 = vpop.f32.mrb[238].mxu0  ;;  %v6806_v47 = vpack.c.bf16 %v6764_v24, %v6762_v5  ;;  %v6442_v5 = vadd.f32 %v12663_v56, %v12634_v3  ;;  %v6446_v56 = vadd.f32 %v12669_v4, %v12631_v35  ;;  %v9662_v4 = vld [vmem:[%s13206_s9 + $0x38] sm:$0xff]  }
 0x533   :  { %v6701_v33 = vmul.f32 0.2, %v8643_v25  ;;  %v8645_v14 = vadd.f32 %v6612_v30, %v12631_v35  ;;  %v6614_v42 = vpop.f32.mrb[239].mxu0 }
 0x534   :  { %v6702_v54 = vmul.f32 0.2, %v8644_v49  ;;  %v8646_v39 = vadd.f32 %v6614_v42, %v12634_v3  ;;  %7064 = vmatprep.mubr.bf16.mxu1 %v6806_v47  ;;  %v9661_v47 = vld [vmem:[%s13206_s9 + $0x30] sm:$0xff]  }
 0x535   :  { %v6703_v34 = vmul.f32 0.2, %v8645_v14  ;;  %7065 = vmatmul.mubr.bf16.gmra.mrb[248].mxu1 %v6805_v43  ;;  %v6765_v20 = vmax.f32 %v8643_v25, %v6701_v33  ;;  %8403 = vmatprep.subr.bf16.mxu1 %v9661_v47 }
 0x536   :  { %v6704_v45 = vmul.f32 0.2, %v8646_v39  ;;  %v6766_v32 = vmax.f32 %v8644_v49, %v6702_v54  ;;  %v6448_v54 = vadd.f32 %v12672_v23, %v12634_v3  ;;  %8404 = vmatpush3.bf16.msra.mxu1 %v9661_v47 }
 0x537   :  { %v6767_v22 = vmax.f32 %v8645_v14, %v6703_v34  ;;  %8405 = vmatprep.subr.bf16.mxu1 %v9662_v4 }
 0x538   :  { %v6768_v44 = vmax.f32 %v8646_v39, %v6704_v45  ;;  %v6618_v40 = vpop.f32.mrb[240].mxu0 }
 0x539   :  { %v6619_v31 = vadd.f32 %v6618_v40, %v6426_v21  ;;  %v6620_v2 = vpop.f32.mrb[241].mxu0  ;;  %v6807_v13 = vpack.c.bf16 %v6767_v22, %v6765_v20  ;;  %v6450_v21 = vadd.f32 %v12675_v26, %v12631_v35 }
 0x53a   :  { %v6621_v18 = vadd.f32 %v6620_v2, %v6428_v8  ;;  %v6622_v51 = vpop.f32.mrb[242].mxu0  ;;  %v6808_v53 = vpack.c.bf16 %v6768_v44, %v6766_v32  ;;  %v6452_v32 = vadd.f32 %v12678_v59, %v12634_v3  ;;  %8406 = vmatpush3.bf16.msra.mxu1 %v9662_v4  ;;  %v6458_v59 = vadd.f32 %v12687_v1, %v12634_v3 }
 0x53b   :  { %v6705_v58 = vmul.f32 0.2, %v6619_v31  ;;  %v6623_v61 = vadd.f32 %v6622_v51, %v6430_v48  ;;  %v6624_v60 = vpop.f32.mrb[243].mxu0  ;;  %v6456_v51 = vadd.f32 %v12684_v29, %v12631_v35 }
 0x53c   :  { %v6706_v0 = vmul.f32 0.2, %v6621_v18  ;;  %v6625_v19 = vadd.f32 %v6624_v60, %v6432_v6  ;;  %7072 = vmatprep.mubr.bf16.mxu1 %v6808_v53 }
 0x53d   :  { %v6707_v41 = vmul.f32 0.2, %v6623_v61  ;;  %7073 = vmatmul.mubr.bf16.gmra.mrb[252].mxu1 %v6807_v13  ;;  %v6769_v52 = vmax.f32 %v6619_v31, %v6705_v58 }
 0x53e   :  { %v6708_v11 = vmul.f32 0.2, %v6625_v19  ;;  %v6770_v10 = vmax.f32 %v6621_v18, %v6706_v0 }
 0x53f   :  { %v6771_v27 = vmax.f32 %v6623_v61, %v6707_v41 }
 0x540   :  { %v6772_v36 = vmax.f32 %v6625_v19, %v6708_v11  ;;  %v6628_v28 = vpop.f32.mrb[244].mxu0  ;;  %v6460_v19 = vadd.f32 %v12690_v17, %v12631_v35 }
 0x541   :  { %v6809_v55 = vpack.c.bf16 %v6771_v27, %v6769_v52  ;;  %v6629_v63 = vadd.f32 %v6628_v28, %v6436_v12  ;;  %v6630_v16 = vpop.f32.mrb[245].mxu0  ;;  %v6462_v12 = vadd.f32 %v12693_v46, %v12634_v3  ;;  %v12775_v46 = vld [vmem:[%s13207_s8] ss:$0 sm:$0xff] }
 0x542   :  { %v6631_v24 = vadd.f32 %v6630_v16, %v6438_v9  ;;  %v6632_v62 = vpop.f32.mrb[246].mxu0  ;;  %v6810_v15 = vpack.c.bf16 %v6772_v36, %v6770_v10 }
 0x543   :  { %v6709_v25 = vmul.f32 0.2, %v6629_v63  ;;  %v6633_v57 = vadd.f32 %v6632_v62, %v6440_v50  ;;  %v6634_v43 = vpop.f32.mrb[247].mxu0 }
 0x544   :  { %v6710_v49 = vmul.f32 0.2, %v6631_v24  ;;  %v6635_v30 = vadd.f32 %v6634_v43, %v6442_v5  ;;  %7080 = vmatprep.mubr.bf16.mxu1 %v6810_v15 }
 0x545   :  { %v6711_v38 = vmul.f32 0.2, %v6633_v57  ;;  %7081 = vmatmul.mubr.bf16.gmra.mrb[0].mxu1 %v6809_v55  ;;  %v6773_v14 = vmax.f32 %v6629_v63, %v6709_v25 }
 0x546   :  { %v6712_v33 = vmul.f32 0.2, %v6635_v30  ;;  %v6774_v39 = vmax.f32 %v6631_v24, %v6710_v49 }
 0x547   :  { %v6775_v42 = vmax.f32 %v6633_v57, %v6711_v38 }
 0x548   :  { %v6776_v34 = vmax.f32 %v6635_v30, %v6712_v33  ;;  %v6638_v45 = vpop.f32.mrb[248].mxu0 }
 0x549   :  { %v6811_v20 = vpack.c.bf16 %v6775_v42, %v6773_v14  ;;  %v6639_v22 = vadd.f32 %v6638_v45, %v6446_v56  ;;  %v6640_v8 = vpop.f32.mrb[249].mxu0 }
 0x54a   :  { %v6641_v44 = vadd.f32 %v6640_v8, %v6448_v54  ;;  %v6642_v40 = vpop.f32.mrb[250].mxu0  ;;  %v6812_v23 = vpack.c.bf16 %v6776_v34, %v6774_v39 }
 0x54b   :  { %v6713_v48 = vmul.f32 0.2, %v6639_v22  ;;  %v6643_v31 = vadd.f32 %v6642_v40, %v6450_v21  ;;  %v6644_v2 = vpop.f32.mrb[251].mxu0 }
 0x54c   :  { %v6714_v13 = vmul.f32 0.2, %v6641_v44  ;;  %v6645_v6 = vadd.f32 %v6644_v2, %v6452_v32  ;;  %7088 = vmatprep.mubr.bf16.mxu1 %v6812_v23 }
 0x54d   :  { %v6715_v26 = vmul.f32 0.2, %v6643_v31  ;;  %7089 = vmatmul.mubr.bf16.gmra.mrb[4].mxu1 %v6811_v20  ;;  %v6777_v53 = vmax.f32 %v6639_v22, %v6713_v48 }
 0x54e   :  { %v6716_v18 = vmul.f32 0.2, %v6645_v6  ;;  %v6778_v61 = vmax.f32 %v6641_v44, %v6714_v13 }
 0x54f   :  { %v6779_v58 = vmax.f32 %v6643_v31, %v6715_v26 }
 0x550   :  { %v6780_v60 = vmax.f32 %v6645_v6, %v6716_v18  ;;  %v6648_v0 = vpop.f32.mrb[252].mxu0 }
 0x551   :  { %v6813_v41 = vpack.c.bf16 %v6779_v58, %v6777_v53  ;;  %v6649_v7 = vadd.f32 %v6648_v0, %v6456_v51  ;;  %v6650_v11 = vpop.f32.mrb[253].mxu0 }
 0x552   :  { %v6651_v52 = vadd.f32 %v6650_v11, %v6458_v59  ;;  %v6652_v27 = vpop.f32.mrb[254].mxu0  ;;  %v6814_v29 = vpack.c.bf16 %v6780_v60, %v6778_v61 }
 0x553   :  { %v6717_v9 = vmul.f32 0.2, %v6649_v7  ;;  %v6653_v10 = vadd.f32 %v6652_v27, %v6460_v19  ;;  %v6654_v36 = vpop.f32.mrb[255].mxu0 }
 0x554   :  { %v6718_v28 = vmul.f32 0.2, %v6651_v52  ;;  %v6655_v1 = vadd.f32 %v6654_v36, %v6462_v12  ;;  %7096 = vmatprep.mubr.bf16.mxu1 %v6814_v29 }
 0x555   :  { %v6719_v50 = vmul.f32 0.2, %v6653_v10  ;;  %7097 = vmatmul.mubr.bf16.gmra.mrb[8].mxu1 %v6813_v41  ;;  %v6781_v63 = vmax.f32 %v6649_v7, %v6717_v9 }
 0x556   :  { %v6720_v55 = vmul.f32 0.2, %v6655_v1  ;;  %v6782_v17 = vmax.f32 %v6651_v52, %v6718_v28 }
 0x557   :  { %v6783_v35 = vmax.f32 %v6653_v10, %v6719_v50 }
 0x558   :  { %v6784_v16 = vmax.f32 %v6655_v1, %v6720_v55 }
 0x559   :  { %v6815_v37 = vpack.c.bf16 %v6783_v35, %v6781_v63 }
 0x55a   :  { %v6816_v5 = vpack.c.bf16 %v6784_v16, %v6782_v17 }
 0x55c   :  { %7104 = vmatprep.mubr.bf16.mxu1 %v6816_v5 }
 0x55d   :  { %7105 = vmatmul.mubr.bf16.gmra.mrb[12].mxu1 %v6815_v37 }
 0x5b8   :  { %v8271_v3 = vpop.f32.mrb[208].mxu1 }
 0x5b9   :  { %v8272_v24 = vpop.f32.mrb[209].mxu1 }
 0x5ba   :  { %v8273_v62 = vadd.f32 %v8272_v24, %v8271_v3  ;;  %v8274_v15 = vpop.f32.mrb[210].mxu1 }
 0x5bb   :  { %v8275_v25 = vpop.f32.mrb[211].mxu1 }
 0x5bc   :  { %v6987_v57 = vadd.f32 %v8273_v62, %v12775_v46  ;;  %v8276_v43 = vadd.f32 %v8275_v25, %v8274_v15 }
 0x5be   :  { %v7113_v49 = vmul.f32 0.2, %v6987_v57  ;;  %v6990_v30 = vadd.f32 %v8276_v43, %v12775_v46 }
 0x5c0   :  { %v7114_v38 = vmul.f32 0.2, %v6990_v30  ;;  %v8277_v47 = vpop.f32.mrb[212].mxu1  ;;  %v7145_v56 = vmax.f32 %v6987_v57, %v7113_v49 }
 0x5c1   :  { %v8278_v33 = vpop.f32.mrb[213].mxu1 }
 0x5c2   :  { %v7146_v14 = vmax.f32 %v6990_v30, %v7114_v38  ;;  %v8279_v42 = vadd.f32 %v8278_v33, %v8277_v47  ;;  %v8280_v54 = vpop.f32.mrb[214].mxu1 }
 0x5c3   :  { %v8281_v39 = vpop.f32.mrb[215].mxu1 }
 0x5c4   :  { %v6995_v34 = vadd.f32 %v8279_v42, %v12775_v46  ;;  %v8282_v45 = vadd.f32 %v8281_v39, %v8280_v54  ;;  %v7177_v21 = vpack.c.bf16 %v7146_v14, %v7145_v56 }
 0x5c6   :  { %v7115_v20 = vmul.f32 0.2, %v6995_v34  ;;  %v6998_v22 = vadd.f32 %v8282_v45, %v12775_v46  ;;  %8407 = vmatprep.mubr.bf16.mxu1 %v7177_v21 }
 0x5c8   :  { %v7116_v8 = vmul.f32 0.2, %v6998_v22  ;;  %v8283_v4 = vpop.f32.mrb[216].mxu1  ;;  %v7147_v44 = vmax.f32 %v6995_v34, %v7115_v20 }
 0x5c9   :  { %v8284_v32 = vpop.f32.mrb[217].mxu1 }
 0x5ca   :  { %v7148_v40 = vmax.f32 %v6998_v22, %v7116_v8  ;;  %v8285_v23 = vadd.f32 %v8284_v32, %v8283_v4  ;;  %v8286_v48 = vpop.f32.mrb[218].mxu1 }
 0x5cb   :  { %v8287_v31 = vpop.f32.mrb[219].mxu1 }
 0x5cc   :  { %v7178_v2 = vpack.c.bf16 %v7148_v40, %v7147_v44  ;;  %v7003_v13 = vadd.f32 %v8285_v23, %v12775_v46  ;;  %v8288_v6 = vadd.f32 %v8287_v31, %v8286_v48 }
 0x5ce   :  { %v7117_v26 = vmul.f32 0.2, %v7003_v13  ;;  %v7006_v18 = vadd.f32 %v8288_v6, %v12775_v46  ;;  %8408 = vmatmul.mubr.bf16.vlgmr.msra.gmra.mrb[16].mxu1 %v7178_v2 }
 0x5d0   :  { %v7118_v51 = vmul.f32 0.2, %v7006_v18  ;;  %v8289_v53 = vpop.f32.mrb[220].mxu1  ;;  %v7149_v59 = vmax.f32 %v7003_v13, %v7117_v26 }
 0x5d1   :  { %v8290_v58 = vpop.f32.mrb[221].mxu1 }
 0x5d2   :  { %v7150_v61 = vmax.f32 %v7006_v18, %v7118_v51  ;;  %v8291_v60 = vadd.f32 %v8290_v58, %v8289_v53  ;;  %v8292_v0 = vpop.f32.mrb[222].mxu1 }
 0x5d3   :  { %v8293_v19 = vpop.f32.mrb[223].mxu1 }
 0x5d4   :  { %v7011_v41 = vadd.f32 %v8291_v60, %v12775_v46  ;;  %v8294_v7 = vadd.f32 %v8293_v19, %v8292_v0  ;;  %v7179_v11 = vpack.c.bf16 %v7150_v61, %v7149_v59 }
 0x5d6   :  { %v7119_v12 = vmul.f32 0.2, %v7011_v41  ;;  %v7014_v52 = vadd.f32 %v8294_v7, %v12775_v46  ;;  %8411 = vmatprep.mubr.bf16.mxu1 %v7179_v11 }
 0x5d8   :  { %v7120_v27 = vmul.f32 0.2, %v7014_v52  ;;  %v8295_v29 = vpop.f32.mrb[224].mxu1  ;;  %v7151_v10 = vmax.f32 %v7011_v41, %v7119_v12 }
 0x5d9   :  { %v8296_v9 = vpop.f32.mrb[225].mxu1 }
 0x5da   :  { %v7152_v36 = vmax.f32 %v7014_v52, %v7120_v27  ;;  %v8297_v28 = vadd.f32 %v8296_v9, %v8295_v29  ;;  %v8298_v1 = vpop.f32.mrb[226].mxu1 }
 0x5db   :  { %v8299_v50 = vpop.f32.mrb[227].mxu1 }
 0x5dc   :  { %v7180_v55 = vpack.c.bf16 %v7152_v36, %v7151_v10  ;;  %v7019_v63 = vadd.f32 %v8297_v28, %v12775_v46  ;;  %v8300_v35 = vadd.f32 %v8299_v50, %v8298_v1 }
 0x5de   :  { %v7121_v17 = vmul.f32 0.2, %v7019_v63  ;;  %v7022_v16 = vadd.f32 %v8300_v35, %v12775_v46  ;;  %8412 = vmatmul.mubr.bf16.gmra.mrb[20].mxu1 %v7180_v55 }
 0x5e0   :  { %v7122_v37 = vmul.f32 0.2, %v7022_v16  ;;  %v8301_v5 = vpop.f32.mrb[228].mxu1  ;;  %v7153_v24 = vmax.f32 %v7019_v63, %v7121_v17 }
 0x5e1   :  { %v8302_v3 = vpop.f32.mrb[229].mxu1 }
 0x5e2   :  { %v7154_v62 = vmax.f32 %v7022_v16, %v7122_v37  ;;  %v8303_v15 = vadd.f32 %v8302_v3, %v8301_v5  ;;  %v8304_v25 = vpop.f32.mrb[230].mxu1 }
 0x5e3   :  { %v8305_v57 = vpop.f32.mrb[231].mxu1 }
 0x5e4   :  { %v7027_v43 = vadd.f32 %v8303_v15, %v12775_v46  ;;  %v8306_v49 = vadd.f32 %v8305_v57, %v8304_v25  ;;  %v7181_v30 = vpack.c.bf16 %v7154_v62, %v7153_v24 }
 0x5e6   :  { %v7123_v38 = vmul.f32 0.2, %v7027_v43  ;;  %v7030_v47 = vadd.f32 %v8306_v49, %v12775_v46  ;;  %8415 = vmatprep.mubr.bf16.mxu1 %v7181_v30 }
 0x5e8   :  { %v7124_v33 = vmul.f32 0.2, %v7030_v47  ;;  %v8307_v56 = vpop.f32.mrb[232].mxu1  ;;  %v7155_v42 = vmax.f32 %v7027_v43, %v7123_v38 }
 0x5e9   :  { %v8308_v14 = vpop.f32.mrb[233].mxu1 }
 0x5ea   :  { %v7156_v54 = vmax.f32 %v7030_v47, %v7124_v33  ;;  %v8309_v39 = vadd.f32 %v8308_v14, %v8307_v56  ;;  %v8310_v34 = vpop.f32.mrb[234].mxu1 }
 0x5eb   :  { %v8311_v45 = vpop.f32.mrb[235].mxu1 }
 0x5ec   :  { %v7182_v21 = vpack.c.bf16 %v7156_v54, %v7155_v42  ;;  %v7035_v20 = vadd.f32 %v8309_v39, %v12775_v46  ;;  %v8312_v22 = vadd.f32 %v8311_v45, %v8310_v34 }
 0x5ee   :  { %v7125_v8 = vmul.f32 0.2, %v7035_v20  ;;  %v7038_v4 = vadd.f32 %v8312_v22, %v12775_v46  ;;  %8416 = vmatmul.mubr.bf16.gmra.mrb[24].mxu1 %v7182_v21 }
 0x5f0   :  { %v7126_v32 = vmul.f32 0.2, %v7038_v4  ;;  %v8313_v44 = vpop.f32.mrb[236].mxu1  ;;  %v7157_v23 = vmax.f32 %v7035_v20, %v7125_v8 }
 0x5f1   :  { %v8314_v40 = vpop.f32.mrb[237].mxu1 }
 0x5f2   :  { %v7158_v48 = vmax.f32 %v7038_v4, %v7126_v32  ;;  %v8315_v31 = vadd.f32 %v8314_v40, %v8313_v44  ;;  %v8316_v2 = vpop.f32.mrb[238].mxu1 }
 0x5f3   :  { %v8317_v13 = vpop.f32.mrb[239].mxu1 }
 0x5f4   :  { %v7043_v6 = vadd.f32 %v8315_v31, %v12775_v46  ;;  %v8318_v26 = vadd.f32 %v8317_v13, %v8316_v2  ;;  %v7183_v18 = vpack.c.bf16 %v7158_v48, %v7157_v23 }
 0x5f6   :  { %v7127_v51 = vmul.f32 0.2, %v7043_v6  ;;  %v7046_v53 = vadd.f32 %v8318_v26, %v12775_v46  ;;  %8419 = vmatprep.mubr.bf16.mxu1 %v7183_v18 }
 0x5f8   :  { %v7128_v58 = vmul.f32 0.2, %v7046_v53  ;;  %v8319_v59 = vpop.f32.mrb[240].mxu1  ;;  %v7159_v60 = vmax.f32 %v7043_v6, %v7127_v51 }
 0x5f9   :  { %v8320_v61 = vpop.f32.mrb[241].mxu1 }
 0x5fa   :  { %v7160_v0 = vmax.f32 %v7046_v53, %v7128_v58  ;;  %v8321_v19 = vadd.f32 %v8320_v61, %v8319_v59  ;;  %v8322_v41 = vpop.f32.mrb[242].mxu1 }
 0x5fb   :  { %v8323_v7 = vpop.f32.mrb[243].mxu1 }
 0x5fc   :  { %v7184_v11 = vpack.c.bf16 %v7160_v0, %v7159_v60  ;;  %v7051_v12 = vadd.f32 %v8321_v19, %v12775_v46  ;;  %v8324_v52 = vadd.f32 %v8323_v7, %v8322_v41 }
 0x5fe   :  { %v7129_v27 = vmul.f32 0.2, %v7051_v12  ;;  %v7054_v29 = vadd.f32 %v8324_v52, %v12775_v46  ;;  %8420 = vmatmul.mubr.bf16.gmra.mrb[28].mxu1 %v7184_v11 }
 0x600   :  { %v7130_v9 = vmul.f32 0.2, %v7054_v29  ;;  %v8325_v10 = vpop.f32.mrb[244].mxu1  ;;  %v7161_v28 = vmax.f32 %v7051_v12, %v7129_v27 }
 0x601   :  { %v8326_v36 = vpop.f32.mrb[245].mxu1 }
 0x602   :  { %v7162_v1 = vmax.f32 %v7054_v29, %v7130_v9  ;;  %v8327_v50 = vadd.f32 %v8326_v36, %v8325_v10  ;;  %v8328_v55 = vpop.f32.mrb[246].mxu1 }
 0x603   :  { %v8329_v63 = vpop.f32.mrb[247].mxu1 }
 0x604   :  { %v7059_v35 = vadd.f32 %v8327_v50, %v12775_v46  ;;  %v8330_v17 = vadd.f32 %v8329_v63, %v8328_v55  ;;  %v7185_v16 = vpack.c.bf16 %v7162_v1, %v7161_v28 }
 0x606   :  { %v7131_v37 = vmul.f32 0.2, %v7059_v35  ;;  %v7062_v5 = vadd.f32 %v8330_v17, %v12775_v46  ;;  %8423 = vmatprep.mubr.bf16.mxu1 %v7185_v16 }
 0x608   :  { %v7132_v3 = vmul.f32 0.2, %v7062_v5  ;;  %v8331_v24 = vpop.f32.mrb[248].mxu1  ;;  %v7163_v15 = vmax.f32 %v7059_v35, %v7131_v37 }
 0x609   :  { %v8332_v62 = vpop.f32.mrb[249].mxu1 }
 0x60a   :  { %v7164_v25 = vmax.f32 %v7062_v5, %v7132_v3  ;;  %v8333_v57 = vadd.f32 %v8332_v62, %v8331_v24  ;;  %v8334_v43 = vpop.f32.mrb[250].mxu1 }
 0x60b   :  { %v8335_v49 = vpop.f32.mrb[251].mxu1 }
 0x60c   :  { %v7186_v30 = vpack.c.bf16 %v7164_v25, %v7163_v15  ;;  %v7067_v38 = vadd.f32 %v8333_v57, %v12775_v46  ;;  %v8336_v47 = vadd.f32 %v8335_v49, %v8334_v43 }
 0x60e   :  { %v7133_v33 = vmul.f32 0.2, %v7067_v38  ;;  %v7070_v56 = vadd.f32 %v8336_v47, %v12775_v46  ;;  %8424 = vmatmul.mubr.bf16.gmra.mrb[32].mxu1 %v7186_v30 }
 0x610   :  { %v7134_v14 = vmul.f32 0.2, %v7070_v56  ;;  %v8337_v42 = vpop.f32.mrb[252].mxu1  ;;  %v7165_v39 = vmax.f32 %v7067_v38, %v7133_v33 }
 0x611   :  { %v8338_v54 = vpop.f32.mrb[253].mxu1 }
 0x612   :  { %v7166_v34 = vmax.f32 %v7070_v56, %v7134_v14  ;;  %v8339_v45 = vadd.f32 %v8338_v54, %v8337_v42  ;;  %v8340_v21 = vpop.f32.mrb[254].mxu1 }
 0x613   :  { %v8341_v20 = vpop.f32.mrb[255].mxu1 }
 0x614   :  { %v7075_v22 = vadd.f32 %v8339_v45, %v12775_v46  ;;  %v8342_v8 = vadd.f32 %v8341_v20, %v8340_v21  ;;  %v7187_v4 = vpack.c.bf16 %v7166_v34, %v7165_v39  ;;  %v12812_v21 = vld [vmem:[%s13208_s10] ss:$0 sm:$0xff] }
 0x616   :  { %v7135_v32 = vmul.f32 0.2, %v7075_v22  ;;  %v7078_v44 = vadd.f32 %v8342_v8, %v12775_v46  ;;  %8427 = vmatprep.mubr.bf16.mxu1 %v7187_v4 }
 0x618   :  { %v7136_v40 = vmul.f32 0.2, %v7078_v44  ;;  %v8343_v23 = vpop.f32.mrb[0].mxu1  ;;  %v7167_v31 = vmax.f32 %v7075_v22, %v7135_v32 }
 0x619   :  { %v8344_v48 = vpop.f32.mrb[1].mxu1 }
 0x61a   :  { %v7168_v2 = vmax.f32 %v7078_v44, %v7136_v40  ;;  %v8345_v13 = vadd.f32 %v8344_v48, %v8343_v23  ;;  %v8346_v6 = vpop.f32.mrb[2].mxu1 }
 0x61b   :  { %v8347_v26 = vpop.f32.mrb[3].mxu1 }
 0x61c   :  { %v7188_v18 = vpack.c.bf16 %v7168_v2, %v7167_v31  ;;  %v7083_v51 = vadd.f32 %v8345_v13, %v12775_v46  ;;  %v8348_v53 = vadd.f32 %v8347_v26, %v8346_v6 }
 0x61e   :  { %v7137_v58 = vmul.f32 0.2, %v7083_v51  ;;  %v7086_v59 = vadd.f32 %v8348_v53, %v12775_v46  ;;  %8428 = vmatmul.mubr.bf16.gmra.mrb[36].mxu1 %v7188_v18 }
 0x620   :  { %v7138_v61 = vmul.f32 0.2, %v7086_v59  ;;  %v8349_v60 = vpop.f32.mrb[4].mxu1  ;;  %v7169_v19 = vmax.f32 %v7083_v51, %v7137_v58 }
 0x621   :  { %v8350_v0 = vpop.f32.mrb[5].mxu1 }
 0x622   :  { %v7170_v41 = vmax.f32 %v7086_v59, %v7138_v61  ;;  %v8351_v7 = vadd.f32 %v8350_v0, %v8349_v60  ;;  %v8352_v11 = vpop.f32.mrb[6].mxu1 }
 0x623   :  { %v8353_v12 = vpop.f32.mrb[7].mxu1 }
 0x624   :  { %v7091_v52 = vadd.f32 %v8351_v7, %v12775_v46  ;;  %v8354_v27 = vadd.f32 %v8353_v12, %v8352_v11  ;;  %v7189_v29 = vpack.c.bf16 %v7170_v41, %v7169_v19 }
 0x626   :  { %v7139_v9 = vmul.f32 0.2, %v7091_v52  ;;  %v7094_v10 = vadd.f32 %v8354_v27, %v12775_v46  ;;  %8431 = vmatprep.mubr.bf16.mxu1 %v7189_v29 }
 0x628   :  { %v7140_v36 = vmul.f32 0.2, %v7094_v10  ;;  %v8355_v28 = vpop.f32.mrb[8].mxu1  ;;  %v7171_v50 = vmax.f32 %v7091_v52, %v7139_v9 }
 0x629   :  { %v8356_v1 = vpop.f32.mrb[9].mxu1 }
 0x62a   :  { %v7172_v55 = vmax.f32 %v7094_v10, %v7140_v36  ;;  %v8357_v63 = vadd.f32 %v8356_v1, %v8355_v28  ;;  %v8358_v35 = vpop.f32.mrb[10].mxu1 }
 0x62b   :  { %v8359_v17 = vpop.f32.mrb[11].mxu1 }
 0x62c   :  { %v7190_v16 = vpack.c.bf16 %v7172_v55, %v7171_v50  ;;  %v7099_v37 = vadd.f32 %v8357_v63, %v12775_v46  ;;  %v8360_v5 = vadd.f32 %v8359_v17, %v8358_v35 }
 0x62e   :  { %v7141_v3 = vmul.f32 0.2, %v7099_v37  ;;  %v7102_v24 = vadd.f32 %v8360_v5, %v12775_v46  ;;  %8432 = vmatmul.mubr.bf16.gmra.mrb[40].mxu1 %v7190_v16 }
 0x630   :  { %v7142_v62 = vmul.f32 0.2, %v7102_v24  ;;  %v8361_v15 = vpop.f32.mrb[12].mxu1  ;;  %v7173_v57 = vmax.f32 %v7099_v37, %v7141_v3 }
 0x631   :  { %v8362_v25 = vpop.f32.mrb[13].mxu1 }
 0x632   :  { %v7174_v43 = vmax.f32 %v7102_v24, %v7142_v62  ;;  %v8363_v49 = vadd.f32 %v8362_v25, %v8361_v15  ;;  %v8364_v30 = vpop.f32.mrb[14].mxu1 }
 0x633   :  { %v8365_v38 = vpop.f32.mrb[15].mxu1 }
 0x634   :  { %v7107_v47 = vadd.f32 %v8363_v49, %v12775_v46  ;;  %v8366_v33 = vadd.f32 %v8365_v38, %v8364_v30  ;;  %v7191_v56 = vpack.c.bf16 %v7174_v43, %v7173_v57 }
 0x636   :  { %v7143_v14 = vmul.f32 0.2, %v7107_v47  ;;  %v7110_v42 = vadd.f32 %v8366_v33, %v12775_v46  ;;  %8435 = vmatprep.mubr.bf16.mxu1 %v7191_v56 }
 0x638   :  { %v7144_v54 = vmul.f32 0.2, %v7110_v42  ;;  %v7175_v39 = vmax.f32 %v7107_v47, %v7143_v14 }
 0x63a   :  { %v7176_v34 = vmax.f32 %v7110_v42, %v7144_v54 }
 0x63c   :  { %v7192_v45 = vpack.c.bf16 %v7176_v34, %v7175_v39 }
 0x63e   :  { %8436 = vmatmul.mubr.bf16.gmra.mrb[44].mxu1 %v7192_v45 }
 0x6a1   :  { %v8409_v20 = vpop.f32.mrb[16].mxu1 }
 0x6a2   :  { %v12815_v22 = vadd.f32 %v8409_v20, %v12812_v21  ;;  %v7298_v8 = vpop.f32.mrb[17].mxu1 }
 0x6a3   :  { %v12818_v4 = vadd.f32 %v12812_v21, %v7298_v8  ;;  %v8410_v46 = vpop.f32.mrb[18].mxu1 }
 0x6a4   :  { %7429 = vmax.xlane.f32.xlu1 %v12815_v22  ;;  %v7301_v32 = vpop.f32.mrb[19].mxu1  ;;  %v12823_v44 = vadd.f32 %v8410_v46, %v12812_v21 }
 0x6a5   :  { %7425 = vmax.xlane.f32.xlu0 %v12818_v4  ;;  %v12826_v40 = vadd.f32 %v12812_v21, %v7301_v32 }
 0x6a8   :  { %7431 = vmax.xlane.f32.xlu1 %v12823_v44 }
 0x6a9   :  { %7427 = vmax.xlane.f32.xlu0 %v12826_v40 }
 0x6b1   :  { %v8413_v23 = vpop.f32.mrb[20].mxu1 }
 0x6b2   :  { %v12831_v48 = vadd.f32 %v8413_v23, %v12812_v21  ;;  %v7314_v31 = vpop.f32.mrb[21].mxu1 }
 0x6b3   :  { %v8414_v2 = vpop.f32.mrb[22].mxu1  ;;  %v12838_v26 = vadd.f32 %v12812_v21, %v7314_v31 }
 0x6b4   :  { %v12834_v13 = vadd.f32 %v8414_v2, %v12812_v21  ;;  %v7317_v6 = vpop.f32.mrb[23].mxu1  ;;  %7437 = vmax.xlane.f32.xlu0 %v12831_v48 }
 0x6b5   :  { %v12842_v18 = vadd.f32 %v12812_v21, %v7317_v6 }
 0x6b6   :  { %7439 = vmax.xlane.f32.xlu1 %v12834_v13 }
 0x6b8   :  { %7433 = vmax.xlane.f32.xlu0 %v12838_v26 }
 0x6ba   :  { %7435 = vmax.xlane.f32.xlu1 %v12842_v18 }
 0x6c1   :  { %v8417_v51 = vpop.f32.mrb[24].mxu1 }
 0x6c2   :  { %v12847_v53 = vadd.f32 %v8417_v51, %v12812_v21  ;;  %v7330_v58 = vpop.f32.mrb[25].mxu1 }
 0x6c3   :  { %v8418_v59 = vpop.f32.mrb[26].mxu1  ;;  %v12854_v0 = vadd.f32 %v12812_v21, %v7330_v58 }
 0x6c4   :  { %v12850_v61 = vadd.f32 %v8418_v59, %v12812_v21  ;;  %v7333_v60 = vpop.f32.mrb[27].mxu1  ;;  %7445 = vmax.xlane.f32.xlu0 %v12847_v53 }
 0x6c5   :  { %v12858_v19 = vadd.f32 %v12812_v21, %v7333_v60 }
 0x6c6   :  { %7447 = vmax.xlane.f32.xlu1 %v12850_v61 }
 0x6c8   :  { %7441 = vmax.xlane.f32.xlu0 %v12854_v0 }
 0x6ca   :  { %7443 = vmax.xlane.f32.xlu1 %v12858_v19 }
 0x6d1   :  { %v8421_v41 = vpop.f32.mrb[28].mxu1 }
 0x6d2   :  { %v12863_v7 = vadd.f32 %v8421_v41, %v12812_v21  ;;  %v7346_v11 = vpop.f32.mrb[29].mxu1 }
 0x6d3   :  { %v8422_v12 = vpop.f32.mrb[30].mxu1  ;;  %v12870_v29 = vadd.f32 %v12812_v21, %v7346_v11 }
 0x6d4   :  { %v12866_v52 = vadd.f32 %v8422_v12, %v12812_v21  ;;  %v7349_v27 = vpop.f32.mrb[31].mxu1  ;;  %7453 = vmax.xlane.f32.xlu0 %v12863_v7 }
 0x6d5   :  { %v12874_v9 = vadd.f32 %v12812_v21, %v7349_v27 }
 0x6d6   :  { %7455 = vmax.xlane.f32.xlu1 %v12866_v52 }
 0x6d8   :  { %7449 = vmax.xlane.f32.xlu0 %v12870_v29 }
 0x6da   :  { %7451 = vmax.xlane.f32.xlu1 %v12874_v9 }
 0x6e1   :  { %v8425_v10 = vpop.f32.mrb[32].mxu1 }
 0x6e2   :  { %v12879_v36 = vadd.f32 %v8425_v10, %v12812_v21  ;;  %v7362_v28 = vpop.f32.mrb[33].mxu1 }
 0x6e3   :  { %v8426_v1 = vpop.f32.mrb[34].mxu1  ;;  %v12886_v63 = vadd.f32 %v12812_v21, %v7362_v28 }
 0x6e4   :  { %v12882_v50 = vadd.f32 %v8426_v1, %v12812_v21  ;;  %v7365_v55 = vpop.f32.mrb[35].mxu1  ;;  %7461 = vmax.xlane.f32.xlu0 %v12879_v36 }
 0x6e5   :  { %v12890_v35 = vadd.f32 %v12812_v21, %v7365_v55 }
 0x6e6   :  { %7463 = vmax.xlane.f32.xlu1 %v12882_v50 }
 0x6e8   :  { %7457 = vmax.xlane.f32.xlu0 %v12886_v63 }
 0x6ea   :  { %7459 = vmax.xlane.f32.xlu1 %v12890_v35 }
 0x6f1   :  { %v8429_v17 = vpop.f32.mrb[36].mxu1 }
 0x6f2   :  { %v12895_v16 = vadd.f32 %v8429_v17, %v12812_v21  ;;  %v7378_v37 = vpop.f32.mrb[37].mxu1 }
 0x6f3   :  { %v8430_v5 = vpop.f32.mrb[38].mxu1  ;;  %v12902_v62 = vadd.f32 %v12812_v21, %v7378_v37 }
 0x6f4   :  { %v12898_v3 = vadd.f32 %v8430_v5, %v12812_v21  ;;  %v7381_v24 = vpop.f32.mrb[39].mxu1  ;;  %7469 = vmax.xlane.f32.xlu0 %v12895_v16 }
 0x6f5   :  { %v12906_v15 = vadd.f32 %v12812_v21, %v7381_v24 }
 0x6f6   :  { %7471 = vmax.xlane.f32.xlu1 %v12898_v3 }
 0x6f8   :  { %7465 = vmax.xlane.f32.xlu0 %v12902_v62 }
 0x6fa   :  { %7467 = vmax.xlane.f32.xlu1 %v12906_v15 }
 0x701   :  { %v8433_v25 = vpop.f32.mrb[40].mxu1 }
 0x702   :  { %v12911_v57 = vadd.f32 %v8433_v25, %v12812_v21  ;;  %v7394_v43 = vpop.f32.mrb[41].mxu1 }
 0x703   :  { %v8434_v49 = vpop.f32.mrb[42].mxu1  ;;  %v12918_v47 = vadd.f32 %v12812_v21, %v7394_v43 }
 0x704   :  { %v12914_v30 = vadd.f32 %v8434_v49, %v12812_v21  ;;  %v7397_v38 = vpop.f32.mrb[43].mxu1  ;;  %7477 = vmax.xlane.f32.xlu0 %v12911_v57 }
 0x705   :  { %v12922_v33 = vadd.f32 %v12812_v21, %v7397_v38 }
 0x706   :  { %7479 = vmax.xlane.f32.xlu1 %v12914_v30 }
 0x708   :  { %7473 = vmax.xlane.f32.xlu0 %v12918_v47 }
 0x70a   :  { %7475 = vmax.xlane.f32.xlu1 %v12922_v33 }
 0x711   :  { %v8437_v56 = vpop.f32.mrb[44].mxu1 }
 0x712   :  { %v7410_v14 = vpop.f32.mrb[45].mxu1  ;;  %v12934_v45 = vadd.f32 %v8437_v56, %v12812_v21 }
 0x713   :  { %v12927_v42 = vadd.f32 %v12812_v21, %v7410_v14  ;;  %v8438_v54 = vpop.f32.mrb[46].mxu1 }
 0x714   :  { %v7413_v39 = vpop.f32.mrb[47].mxu1  ;;  %v12938_v20 = vadd.f32 %v8438_v54, %v12812_v21 }
 0x715   :  { %v12930_v34 = vadd.f32 %v12812_v21, %v7413_v39  ;;  %7481 = vmax.xlane.f32.xlu0 %v12927_v42 }
 0x717   :  { %7483 = vmax.xlane.f32.xlu1 %v12930_v34 }
 0x719   :  { %7485 = vmax.xlane.f32.xlu0 %v12934_v45 }
 0x71b   :  { %7487 = vmax.xlane.f32.xlu1 %v12938_v20 }
 0x731   :  { %v7430_v8 = vpop.xlane.xlu1 %7429 }
 0x732   :  { %v7491_v46 = vsub.f32 %v12815_v22, %v7430_v8  ;;  %v7426_v32 = vpop.xlane.xlu0 %7425 }
 0x733   :  { %v7489_v23 = vsub.f32 %v12818_v4, %v7426_v32 }
 0x734   :  { %v7525_v31 = vmul.f32 1.442695, %v7491_v46 }
 0x735   :  { %v7521_v2 = vmul.f32 1.442695, %v7489_v23  ;;  %v7432_v6 = vpop.xlane.xlu1 %7431 }
 0x736   :  { %9663 = vpow2.f32 %v7525_v31  ;;  %v7492_v51 = vsub.f32 %v12823_v44, %v7432_v6  ;;  %v7428_v58 = vpop.xlane.xlu0 %7427 }
 0x737   :  { %v7490_v21 = vsub.f32 %v12826_v40, %v7428_v58  ;;  %9665 = vpow2.f32 %v7521_v2 }
 0x738   :  { %v7527_v59 = vmul.f32 1.442695, %v7492_v51 }
 0x739   :  { %v7523_v60 = vmul.f32 1.442695, %v7490_v21 }
 0x73a   :  { %9667 = vpow2.f32 %v7527_v59 }
 0x73b   :  { %9669 = vpow2.f32 %v7523_v60 }
 0x740   :  { %v12946_v41 = vpop.eup %9663 }
 0x741   :  { %7589 = vadd.xlane.f32.xlu0 %v12946_v41  ;;  %v7438_v22 = vpop.xlane.xlu0 %7437  ;;  %v12950_v11 = vpop.eup %9665 }
 0x742   :  { %v7495_v4 = vsub.f32 %v12831_v48, %v7438_v22 }
 0x743   :  { %v7440_v12 = vpop.xlane.xlu1 %7439 }
 0x744   :  { %v12952_v27 = vpop.eup %9667  ;;  %v7533_v44 = vmul.f32 1.442695, %v7495_v4  ;;  %v7496_v40 = vsub.f32 %v12834_v13, %v7440_v12 }
 0x745   :  { %7591 = vadd.xlane.f32.xlu1 %v12952_v27  ;;  %7585 = vadd.xlane.f32.xlu0 %v12950_v11  ;;  %v7434_v10 = vpop.xlane.xlu0 %7433  ;;  %v12958_v17 = vpop.eup %9669 }
 0x746   :  { %9671 = vpow2.f32 %v7533_v44  ;;  %v7535_v28 = vmul.f32 1.442695, %v7496_v40  ;;  %v7493_v1 = vsub.f32 %v12838_v26, %v7434_v10 }
 0x747   :  { %v7436_v55 = vpop.xlane.xlu1 %7435 }
 0x748   :  { %9673 = vpow2.f32 %v7535_v28  ;;  %v7529_v48 = vmul.f32 1.442695, %v7493_v1  ;;  %v7494_v37 = vsub.f32 %v12842_v18, %v7436_v55 }
 0x749   :  { %7587 = vadd.xlane.f32.xlu1 %v12958_v17 }
 0x74a   :  { %9675 = vpow2.f32 %v7529_v48  ;;  %v7531_v13 = vmul.f32 1.442695, %v7494_v37 }
 0x74c   :  { %9677 = vpow2.f32 %v7531_v13 }
 0x750   :  { %v12962_v5 = vpop.eup %9671 }
 0x751   :  { %7597 = vadd.xlane.f32.xlu0 %v12962_v5  ;;  %v7446_v24 = vpop.xlane.xlu0 %7445 }
 0x752   :  { %v12965_v25 = vpop.eup %9673  ;;  %v7499_v26 = vsub.f32 %v12847_v53, %v7446_v24 }
 0x753   :  { %v7448_v43 = vpop.xlane.xlu1 %7447  ;;  %7599 = vadd.xlane.f32.xlu1 %v12965_v25 }
 0x754   :  { %v12969_v49 = vpop.eup %9675  ;;  %v7541_v18 = vmul.f32 1.442695, %v7499_v26  ;;  %v7500_v38 = vsub.f32 %v12850_v61, %v7448_v43 }
 0x755   :  { %7593 = vadd.xlane.f32.xlu0 %v12969_v49  ;;  %v7442_v56 = vpop.xlane.xlu0 %7441 }
 0x756   :  { %v12973_v14 = vpop.eup %9677  ;;  %9679 = vpow2.f32 %v7541_v18  ;;  %v7543_v54 = vmul.f32 1.442695, %v7500_v38  ;;  %v7497_v39 = vsub.f32 %v12854_v0, %v7442_v56 }
 0x757   :  { %v7444_v8 = vpop.xlane.xlu1 %7443  ;;  %7595 = vadd.xlane.f32.xlu1 %v12973_v14 }
 0x758   :  { %9681 = vpow2.f32 %v7543_v54  ;;  %v7537_v53 = vmul.f32 1.442695, %v7497_v39  ;;  %v7498_v46 = vsub.f32 %v12858_v19, %v7444_v8 }
 0x75a   :  { %9683 = vpow2.f32 %v7537_v53  ;;  %v7539_v32 = vmul.f32 1.442695, %v7498_v46 }
 0x75c   :  { %9685 = vpow2.f32 %v7539_v32 }
 0x760   :  { %v12978_v61 = vpop.eup %9679 }
 0x761   :  { %7605 = vadd.xlane.f32.xlu0 %v12978_v61  ;;  %v7454_v23 = vpop.xlane.xlu0 %7453 }
 0x762   :  { %v12981_v31 = vpop.eup %9681  ;;  %v7503_v2 = vsub.f32 %v12863_v7, %v7454_v23 }
 0x763   :  { %v7456_v0 = vpop.xlane.xlu1 %7455  ;;  %7607 = vadd.xlane.f32.xlu1 %v12981_v31 }
 0x764   :  { %v12985_v6 = vpop.eup %9683  ;;  %v7549_v51 = vmul.f32 1.442695, %v7503_v2  ;;  %v7504_v19 = vsub.f32 %v12866_v52, %v7456_v0 }
 0x765   :  { %7601 = vadd.xlane.f32.xlu0 %v12985_v6  ;;  %v7450_v58 = vpop.xlane.xlu0 %7449 }
 0x766   :  { %v12989_v21 = vpop.eup %9685  ;;  %9687 = vpow2.f32 %v7549_v51  ;;  %v7551_v59 = vmul.f32 1.442695, %v7504_v19  ;;  %v7501_v60 = vsub.f32 %v12870_v29, %v7450_v58 }
 0x767   :  { %v7452_v22 = vpop.xlane.xlu1 %7451  ;;  %7603 = vadd.xlane.f32.xlu1 %v12989_v21 }
 0x768   :  { %9689 = vpow2.f32 %v7551_v59  ;;  %v7545_v7 = vmul.f32 1.442695, %v7501_v60  ;;  %v7502_v4 = vsub.f32 %v12874_v9, %v7452_v22 }
 0x76a   :  { %9691 = vpow2.f32 %v7545_v7  ;;  %v7547_v12 = vmul.f32 1.442695, %v7502_v4 }
 0x76c   :  { %9693 = vpow2.f32 %v7547_v12 }
 0x770   :  { %v12994_v52 = vpop.eup %9687 }
 0x771   :  { %7613 = vadd.xlane.f32.xlu0 %v12994_v52  ;;  %v7462_v44 = vpop.xlane.xlu0 %7461 }
 0x772   :  { %v12997_v40 = vpop.eup %9689  ;;  %v7507_v10 = vsub.f32 %v12879_v36, %v7462_v44 }
 0x773   :  { %v7464_v29 = vpop.xlane.xlu1 %7463  ;;  %7615 = vadd.xlane.f32.xlu1 %v12997_v40 }
 0x774   :  { %v13001_v28 = vpop.eup %9691  ;;  %v7557_v1 = vmul.f32 1.442695, %v7507_v10  ;;  %v7508_v9 = vsub.f32 %v12882_v50, %v7464_v29 }
 0x775   :  { %7609 = vadd.xlane.f32.xlu0 %v13001_v28  ;;  %v7458_v55 = vpop.xlane.xlu0 %7457 }
 0x776   :  { %v13005_v48 = vpop.eup %9693  ;;  %9695 = vpow2.f32 %v7557_v1  ;;  %v7559_v37 = vmul.f32 1.442695, %v7508_v9  ;;  %v7505_v13 = vsub.f32 %v12886_v63, %v7458_v55 }
 0x777   :  { %v7460_v24 = vpop.xlane.xlu1 %7459  ;;  %7611 = vadd.xlane.f32.xlu1 %v13005_v48 }
 0x778   :  { %9697 = vpow2.f32 %v7559_v37  ;;  %v7553_v36 = vmul.f32 1.442695, %v7505_v13  ;;  %v7506_v26 = vsub.f32 %v12890_v35, %v7460_v24 }
 0x77a   :  { %9699 = vpow2.f32 %v7553_v36  ;;  %v7555_v43 = vmul.f32 1.442695, %v7506_v26 }
 0x77c   :  { %9701 = vpow2.f32 %v7555_v43 }
 0x780   :  { %v13010_v50 = vpop.eup %9695 }
 0x781   :  { %7621 = vadd.xlane.f32.xlu0 %v13010_v50  ;;  %v7470_v18 = vpop.xlane.xlu0 %7469 }
 0x782   :  { %v13013_v38 = vpop.eup %9697  ;;  %v7511_v56 = vsub.f32 %v12895_v16, %v7470_v18 }
 0x783   :  { %v7472_v63 = vpop.xlane.xlu1 %7471  ;;  %7623 = vadd.xlane.f32.xlu1 %v13013_v38 }
 0x784   :  { %v13017_v54 = vpop.eup %9699  ;;  %v7565_v39 = vmul.f32 1.442695, %v7511_v56  ;;  %v7512_v35 = vsub.f32 %v12898_v3, %v7472_v63 }
 0x785   :  { %7617 = vadd.xlane.f32.xlu0 %v13017_v54  ;;  %v7466_v8 = vpop.xlane.xlu0 %7465 }
 0x786   :  { %v13021_v53 = vpop.eup %9701  ;;  %9703 = vpow2.f32 %v7565_v39  ;;  %v7567_v46 = vmul.f32 1.442695, %v7512_v35  ;;  %v7509_v32 = vsub.f32 %v12902_v62, %v7466_v8 }
 0x787   :  { %v7468_v23 = vpop.xlane.xlu1 %7467  ;;  %7619 = vadd.xlane.f32.xlu1 %v13021_v53 }
 0x788   :  { %9705 = vpow2.f32 %v7567_v46  ;;  %v7561_v16 = vmul.f32 1.442695, %v7509_v32  ;;  %v7510_v2 = vsub.f32 %v12906_v15, %v7468_v23 }
 0x78a   :  { %9707 = vpow2.f32 %v7561_v16  ;;  %v7563_v0 = vmul.f32 1.442695, %v7510_v2 }
 0x78c   :  { %9709 = vpow2.f32 %v7563_v0 }
 0x790   :  { %v13026_v3 = vpop.eup %9703 }
 0x791   :  { %7629 = vadd.xlane.f32.xlu0 %v13026_v3  ;;  %v7478_v51 = vpop.xlane.xlu0 %7477 }
 0x792   :  { %v13029_v19 = vpop.eup %9705  ;;  %v7515_v58 = vsub.f32 %v12911_v57, %v7478_v51 }
 0x793   :  { %v7480_v62 = vpop.xlane.xlu1 %7479  ;;  %7631 = vadd.xlane.f32.xlu1 %v13029_v19 }
 0x794   :  { %v13033_v59 = vpop.eup %9707  ;;  %v7573_v60 = vmul.f32 1.442695, %v7515_v58  ;;  %v7516_v15 = vsub.f32 %v12914_v30, %v7480_v62 }
 0x795   :  { %7625 = vadd.xlane.f32.xlu0 %v13033_v59  ;;  %v7474_v22 = vpop.xlane.xlu0 %7473 }
 0x796   :  { %v13037_v7 = vpop.eup %9709  ;;  %9711 = vpow2.f32 %v7573_v60  ;;  %v7575_v4 = vmul.f32 1.442695, %v7516_v15  ;;  %v7513_v12 = vsub.f32 %v12918_v47, %v7474_v22 }
 0x797   :  { %v7476_v44 = vpop.xlane.xlu1 %7475  ;;  %7627 = vadd.xlane.f32.xlu1 %v13037_v7 }
 0x798   :  { %9713 = vpow2.f32 %v7575_v4  ;;  %v7569_v57 = vmul.f32 1.442695, %v7513_v12  ;;  %v7514_v10 = vsub.f32 %v12922_v33, %v7476_v44 }
 0x79a   :  { %9715 = vpow2.f32 %v7569_v57  ;;  %v7571_v29 = vmul.f32 1.442695, %v7514_v10 }
 0x79c   :  { %9717 = vpow2.f32 %v7571_v29 }
 0x7a0   :  { %v13042_v30 = vpop.eup %9711 }
 0x7a1   :  { %7637 = vadd.xlane.f32.xlu0 %v13042_v30 }
 0x7a2   :  { %v13045_v1 = vpop.eup %9713  ;;  %v7482_v9 = vpop.xlane.xlu0 %7481 }
 0x7a3   :  { %v7517_v55 = vsub.f32 %v12927_v42, %v7482_v9  ;;  %7639 = vadd.xlane.f32.xlu1 %v13045_v1 }
 0x7a4   :  { %v13049_v47 = vpop.eup %9715  ;;  %v7484_v37 = vpop.xlane.xlu1 %7483 }
 0x7a5   :  { %v7577_v13 = vmul.f32 1.442695, %v7517_v55  ;;  %v7518_v33 = vsub.f32 %v12930_v34, %v7484_v37  ;;  %7633 = vadd.xlane.f32.xlu0 %v13049_v47 }
 0x7a6   :  { %v13053_v24 = vpop.eup %9717  ;;  %v7486_v36 = vpop.xlane.xlu0 %7485 }
 0x7a7   :  { %9719 = vpow2.f32 %v7577_v13  ;;  %v7579_v26 = vmul.f32 1.442695, %v7518_v33  ;;  %v7519_v43 = vsub.f32 %v12934_v45, %v7486_v36  ;;  %7635 = vadd.xlane.f32.xlu1 %v13053_v24 }
 0x7a8   :  { %v7488_v42 = vpop.xlane.xlu1 %7487 }
 0x7a9   :  { %9721 = vpow2.f32 %v7579_v26  ;;  %v7581_v18 = vmul.f32 1.442695, %v7519_v43  ;;  %v7520_v56 = vsub.f32 %v12938_v20, %v7488_v42 }
 0x7ab   :  { %9723 = vpow2.f32 %v7581_v18  ;;  %v7583_v63 = vmul.f32 1.442695, %v7520_v56 }
 0x7ad   :  { %9725 = vpow2.f32 %v7583_v63 }
 0x7b1   :  { %v13058_v34 = vpop.eup %9719 }
 0x7b2   :  { %7641 = vadd.xlane.f32.xlu0 %v13058_v34 }
 0x7b3   :  { %v13061_v39 = vpop.eup %9721 }
 0x7b4   :  { %7643 = vadd.xlane.f32.xlu1 %v13061_v39 }
 0x7b5   :  { %v13064_v35 = vpop.eup %9723 }
 0x7b6   :  { %7645 = vadd.xlane.f32.xlu0 %v13064_v35 }
 0x7b7   :  { %v13067_v45 = vpop.eup %9725 }
 0x7b8   :  { %7647 = vadd.xlane.f32.xlu1 %v13067_v45 }
 0x7ce   :  { %v7590_v20 = vpop.xlane.xlu0 %7589 }
 0x7cf   :  { %9727 = vrcp.f32 %v7590_v20 }
 0x7d2   :  { %v7592_v8 = vpop.xlane.xlu1 %7591  ;;  %v7586_v46 = vpop.xlane.xlu0 %7585 }
 0x7d3   :  { %9729 = vrcp.f32 %v7592_v8 }
 0x7d4   :  { %9731 = vrcp.f32 %v7586_v46 }
 0x7d6   :  { %v7588_v32 = vpop.xlane.xlu1 %7587 }
 0x7d7   :  { %9733 = vrcp.f32 %v7588_v32 }
 0x7d9   :  { %v9728_v23 = vpop.eup %9727 }
 0x7da   :  { %v7654_v16 = vmul.f32 %v9728_v23, %v12946_v41 }
 0x7dc   :  { %7715 = vst [vmem:[%s13209_s11 + $0x10] sm:$0xff] %v7654_v16 }
 0x7dd   :  { %v9730_v2 = vpop.eup %9729 }
 0x7de   :  { %v9732_v0 = vpop.eup %9731  ;;  %v7656_v51 = vmul.f32 %v9730_v2, %v12952_v27  ;;  %v7598_v58 = vpop.xlane.xlu0 %7597 }
 0x7df   :  { %v7650_v62 = vmul.f32 %v9732_v0, %v12950_v11  ;;  %9735 = vrcp.f32 %v7598_v58 }
 0x7e0   :  { %7716 = vst [vmem:[%s13209_s11 + $0x18] sm:$0xff] %v7656_v51  ;;  %v7600_v60 = vpop.xlane.xlu1 %7599 }
 0x7e1   :  { %v9734_v15 = vpop.eup %9733  ;;  %7713 = vst [vmem:[%s13209_s11] sm:$0xff] %v7650_v62  ;;  %9737 = vrcp.f32 %v7600_v60 }
 0x7e2   :  { %v7652_v41 = vmul.f32 %v9734_v15, %v12958_v17  ;;  %v7594_v22 = vpop.xlane.xlu0 %7593 }
 0x7e3   :  { %9739 = vrcp.f32 %v7594_v22 }
 0x7e4   :  { %7714 = vst [vmem:[%s13209_s11 + $0x8] sm:$0xff] %v7652_v41  ;;  %v7596_v11 = vpop.xlane.xlu1 %7595 }
 0x7e5   :  { %9741 = vrcp.f32 %v7596_v11 }
 0x7e9   :  { %v9736_v27 = vpop.eup %9735 }
 0x7ea   :  { %v7662_v4 = vmul.f32 %v9736_v27, %v12962_v5 }
 0x7eb   :  { %v9738_v12 = vpop.eup %9737 }
 0x7ec   :  { %7719 = vst [vmem:[%s13209_s11 + $0x30] sm:$0xff] %v7662_v4  ;;  %v7664_v44 = vmul.f32 %v9738_v12, %v12965_v25 }
 0x7ed   :  { %v9740_v57 = vpop.eup %9739 }
 0x7ee   :  { %7720 = vst [vmem:[%s13209_s11 + $0x38] sm:$0xff] %v7664_v44  ;;  %v7658_v17 = vmul.f32 %v9740_v57, %v12969_v49  ;;  %v7606_v10 = vpop.xlane.xlu0 %7605 }
 0x7ef   :  { %v9742_v29 = vpop.eup %9741  ;;  %9743 = vrcp.f32 %v7606_v10 }
 0x7f0   :  { %7717 = vst [vmem:[%s13209_s11 + $0x20] sm:$0xff] %v7658_v17  ;;  %v7660_v5 = vmul.f32 %v9742_v29, %v12973_v14  ;;  %v7608_v9 = vpop.xlane.xlu1 %7607 }
 0x7f1   :  { %9745 = vrcp.f32 %v7608_v9 }
 0x7f2   :  { %7718 = vst [vmem:[%s13209_s11 + $0x28] sm:$0xff] %v7660_v5  ;;  %v7602_v25 = vpop.xlane.xlu0 %7601 }
 0x7f3   :  { %9747 = vrcp.f32 %v7602_v25 }
 0x7f4   :  { %v7604_v55 = vpop.xlane.xlu1 %7603 }
 0x7f5   :  { %9749 = vrcp.f32 %v7604_v55 }
 0x7f9   :  { %v9744_v49 = vpop.eup %9743 }
 0x7fa   :  { %v7670_v37 = vmul.f32 %v9744_v49, %v12978_v61 }
 0x7fb   :  { %v9746_v13 = vpop.eup %9745 }
 0x7fc   :  { %7723 = vst [vmem:[%s13209_s11 + $0x50] sm:$0xff] %v7670_v37  ;;  %v7672_v14 = vmul.f32 %v9746_v13, %v12981_v31 }
 0x7fd   :  { %v9748_v33 = vpop.eup %9747 }
 0x7fe   :  { %7724 = vst [vmem:[%s13209_s11 + $0x58] sm:$0xff] %v7672_v14  ;;  %v7666_v36 = vmul.f32 %v9748_v33, %v12985_v6  ;;  %v7614_v26 = vpop.xlane.xlu0 %7613 }
 0x7ff   :  { %v9750_v43 = vpop.eup %9749  ;;  %9751 = vrcp.f32 %v7614_v26 }
 0x800   :  { %7721 = vst [vmem:[%s13209_s11 + $0x40] sm:$0xff] %v7666_v36  ;;  %v7668_v61 = vmul.f32 %v9750_v43, %v12989_v21  ;;  %v7616_v42 = vpop.xlane.xlu1 %7615 }
 0x801   :  { %9753 = vrcp.f32 %v7616_v42 }
 0x802   :  { %7722 = vst [vmem:[%s13209_s11 + $0x48] sm:$0xff] %v7668_v61  ;;  %v7610_v31 = vpop.xlane.xlu0 %7609 }
 0x803   :  { %9755 = vrcp.f32 %v7610_v31 }
 0x804   :  { %v7612_v18 = vpop.xlane.xlu1 %7611 }
 0x805   :  { %9757 = vrcp.f32 %v7612_v18 }
 0x809   :  { %v9752_v6 = vpop.eup %9751 }
 0x80a   :  { %v7678_v56 = vmul.f32 %v9752_v6, %v12994_v52 }
 0x80b   :  { %v9754_v63 = vpop.eup %9753 }
 0x80c   :  { %7727 = vst [vmem:[%s13209_s11 + $0x70] sm:$0xff] %v7678_v56  ;;  %v7680_v21 = vmul.f32 %v9754_v63, %v12997_v40 }
 0x80d   :  { %v9756_v20 = vpop.eup %9755 }
 0x80e   :  { %7728 = vst [vmem:[%s13209_s11 + $0x78] sm:$0xff] %v7680_v21  ;;  %v7674_v8 = vmul.f32 %v9756_v20, %v13001_v28  ;;  %v7622_v46 = vpop.xlane.xlu0 %7621 }
 0x80f   :  { %v9758_v32 = vpop.eup %9757  ;;  %9759 = vrcp.f32 %v7622_v46 }
 0x810   :  { %7725 = vst [vmem:[%s13209_s11 + $0x60] sm:$0xff] %v7674_v8  ;;  %v7676_v52 = vmul.f32 %v9758_v32, %v13005_v48  ;;  %v7624_v23 = vpop.xlane.xlu1 %7623 }
 0x811   :  { %9761 = vrcp.f32 %v7624_v23 }
 0x812   :  { %7726 = vst [vmem:[%s13209_s11 + $0x68] sm:$0xff] %v7676_v52  ;;  %v7618_v40 = vpop.xlane.xlu0 %7617 }
 0x813   :  { %9763 = vrcp.f32 %v7618_v40 }
 0x814   :  { %v7620_v16 = vpop.xlane.xlu1 %7619 }
 0x815   :  { %9765 = vrcp.f32 %v7620_v16 }
 0x819   :  { %v9760_v28 = vpop.eup %9759 }
 0x81a   :  { %v7686_v2 = vmul.f32 %v9760_v28, %v13010_v50 }
 0x81b   :  { %v9762_v0 = vpop.eup %9761 }
 0x81c   :  { %7731 = vst [vmem:[%s13209_s11 + $0x90] sm:$0xff] %v7686_v2  ;;  %v7688_v48 = vmul.f32 %v9762_v0, %v13013_v38 }
 0x81d   :  { %v9764_v51 = vpop.eup %9763 }
 0x81e   :  { %7732 = vst [vmem:[%s13209_s11 + $0x98] sm:$0xff] %v7688_v48  ;;  %v7682_v58 = vmul.f32 %v9764_v51, %v13017_v54  ;;  %v7630_v62 = vpop.xlane.xlu0 %7629 }
 0x81f   :  { %v9766_v60 = vpop.eup %9765  ;;  %9767 = vrcp.f32 %v7630_v62 }
 0x820   :  { %7729 = vst [vmem:[%s13209_s11 + $0x80] sm:$0xff] %v7682_v58  ;;  %v7684_v50 = vmul.f32 %v9766_v60, %v13021_v53  ;;  %v7632_v15 = vpop.xlane.xlu1 %7631 }
 0x821   :  { %9769 = vrcp.f32 %v7632_v15 }
 0x822   :  { %7730 = vst [vmem:[%s13209_s11 + $0x88] sm:$0xff] %v7684_v50  ;;  %v7626_v38 = vpop.xlane.xlu0 %7625 }
 0x823   :  { %9771 = vrcp.f32 %v7626_v38 }
 0x824   :  { %v7628_v41 = vpop.xlane.xlu1 %7627 }
 0x825   :  { %9773 = vrcp.f32 %v7628_v41 }
 0x829   :  { %v9768_v54 = vpop.eup %9767 }
 0x82a   :  { %v7694_v22 = vmul.f32 %v9768_v54, %v13026_v3 }
 0x82b   :  { %v9770_v11 = vpop.eup %9769 }
 0x82c   :  { %7735 = vst [vmem:[%s13209_s11 + $0xb0] sm:$0xff] %v7694_v22  ;;  %v7696_v53 = vmul.f32 %v9770_v11, %v13029_v19 }
 0x82d   :  { %v9772_v27 = vpop.eup %9771 }
 0x82e   :  { %7736 = vst [vmem:[%s13209_s11 + $0xb8] sm:$0xff] %v7696_v53  ;;  %v7690_v4 = vmul.f32 %v9772_v27, %v13033_v59  ;;  %v7638_v12 = vpop.xlane.xlu0 %7637 }
 0x82f   :  { %v9774_v44 = vpop.eup %9773  ;;  %9775 = vrcp.f32 %v7638_v12 }
 0x830   :  { %7733 = vst [vmem:[%s13209_s11 + $0xa0] sm:$0xff] %v7690_v4  ;;  %v7692_v3 = vmul.f32 %v9774_v44, %v13037_v7  ;;  %v7640_v57 = vpop.xlane.xlu1 %7639 }
 0x831   :  { %9777 = vrcp.f32 %v7640_v57 }
 0x832   :  { %7734 = vst [vmem:[%s13209_s11 + $0xa8] sm:$0xff] %v7692_v3  ;;  %v7634_v19 = vpop.xlane.xlu0 %7633 }
 0x833   :  { %9779 = vrcp.f32 %v7634_v19 }
 0x834   :  { %v7636_v17 = vpop.xlane.xlu1 %7635 }
 0x835   :  { %9781 = vrcp.f32 %v7636_v17 }
 0x839   :  { %v9776_v59 = vpop.eup %9775 }
 0x83a   :  { %v7702_v10 = vmul.f32 %v9776_v59, %v13042_v30 }
 0x83b   :  { %v9778_v29 = vpop.eup %9777 }
 0x83c   :  { %7739 = vst [vmem:[%s13209_s11 + $0xd0] sm:$0xff] %v7702_v10  ;;  %v7704_v7 = vmul.f32 %v9778_v29, %v13045_v1 }
 0x83d   :  { %v9780_v5 = vpop.eup %9779 }
 0x83e   :  { %7740 = vst [vmem:[%s13209_s11 + $0xd8] sm:$0xff] %v7704_v7  ;;  %v7698_v9 = vmul.f32 %v9780_v5, %v13049_v47 }
 0x83f   :  { %v9782_v25 = vpop.eup %9781  ;;  %v7642_v55 = vpop.xlane.xlu0 %7641 }
 0x840   :  { %7737 = vst [vmem:[%s13209_s11 + $0xc0] sm:$0xff] %v7698_v9  ;;  %v7700_v30 = vmul.f32 %v9782_v25, %v13053_v24  ;;  %9783 = vrcp.f32 %v7642_v55 }
 0x841   :  { %v7644_v49 = vpop.xlane.xlu1 %7643 }
 0x842   :  { %7738 = vst [vmem:[%s13209_s11 + $0xc8] sm:$0xff] %v7700_v30  ;;  %9785 = vrcp.f32 %v7644_v49 }
 0x843   :  { %v7646_v1 = vpop.xlane.xlu0 %7645 }
 0x844   :  { %9787 = vrcp.f32 %v7646_v1 }
 0x845   :  { %v7648_v37 = vpop.xlane.xlu1 %7647 }
 0x846   :  { %9789 = vrcp.f32 %v7648_v37 }
 0x84a   :  { %v9784_v47 = vpop.eup %9783 }
 0x84b   :  { %v7706_v13 = vmul.f32 %v9784_v47, %v13058_v34 }
 0x84c   :  { %v9786_v14 = vpop.eup %9785 }
 0x84d   :  { %7741 = vst [vmem:[%s13209_s11 + $0xe0] sm:$0xff] %v7706_v13  ;;  %v7708_v24 = vmul.f32 %v9786_v14, %v13061_v39 }
 0x84e   :  { %v9788_v33 = vpop.eup %9787 }
 0x84f   :  { %7742 = vst [vmem:[%s13209_s11 + $0xe8] sm:$0xff] %v7708_v24  ;;  %v7710_v36 = vmul.f32 %v9788_v33, %v13064_v35 }
 0x850   :  { %v9790_v26 = vpop.eup %9789 }
 0x851   :  { %7743 = vst [vmem:[%s13209_s11 + $0xf0] sm:$0xff] %v7710_v36  ;;  %v7712_v34 = vmul.f32 %v9790_v26, %v13067_v45 }
 0x853   :  { %7744 = vst [vmem:[%s13209_s11 + $0xf8] sm:$0xff] %v7712_v34 }

</bundles_post_ra>
